<compile_context>
chip_gen: v7x
topology: tpu7x:2x2x1
jax: 0.10.0
libtpu: 0.0.40
codegen_flags: <defaults>
</compile_context>

<pallas_src>
import jax
import jax.numpy as jnp
from jax import lax
from jax.experimental import pallas as pl
from jax.experimental.pallas import tpu as pltpu


# ------------------------------ small helpers ------------------------------ #
def _round_up(v, m):
    return ((v + m - 1) // m) * m


def _pick_tile_h(Ho, Wo, target_rows=512):
    """Largest divisor of Ho whose row tile (tile_h*Wo) is <= target_rows and a
    multiple of 8 (sublane); fall back to the full sample (always legal)."""
    best = None
    for t in range(1, Ho + 1):
        if Ho % t == 0 and t * Wo <= target_rows and (t * Wo) % 8 == 0:
            best = t
    return best if best is not None else Ho


def _activation(y, atv):
    if atv == 'ReLU':
        return jnp.maximum(y, 0.0)
    if atv == 'LeakyReLU':
        return jnp.where(y >= 0.0, y, 0.2 * y)      # module uses nn.LeakyReLU(0.2)
    if atv == 'Sigmoid':
        return jax.nn.sigmoid(y)
    return y                                        # 'None'


# ------------------------------ Pallas kernels ----------------------------- #
def _make_conv_kernel(*, k, tile_h, Wo, cin, cout_p, n_h, pad, norm, eps,
                      atv, has_mapping):
    """norm=True : conv + bias -> y tile, accumulate per-channel sum/sumsq.
       norm=False: fully fused conv + bias + activation + (mapped) skip + add."""
    thw = tile_h * Wo

    def kernel(*refs):
        it = iter(refs)
        x_ref = next(it)                               # (1, Hp, Wp, cin) bf16 (whole sample)
        w_ref = next(it)                               # (k*k, cin, cout_p) bf16
        b_ref = next(it)                               # (1, cout_p) f32
        wm_ref = next(it) if (not norm and has_mapping) else None
        bm_ref = next(it) if (not norm and has_mapping) else None
        o_ref = next(it)                               # (1, thw, cout_p) f32 (y or out)
        st_ref = next(it) if norm else None            # (1, 2, cout_p) f32 accumulator

        h = pl.program_id(1)
        row0 = h * tile_h

        # KxK conv = k*k accumulated MXU matmuls over shifted views (fused
        # im2col), accumulating straight into the VMEM-resident output block.
        first = True
        for dy in range(k):
            for dx in range(k):
                xt = x_ref[0, pl.ds(row0 + dy, tile_h), pl.ds(dx, Wo), :]
                contrib = jnp.dot(xt.reshape(thw, cin), w_ref[dy * k + dx],
                                  preferred_element_type=jnp.float32)
                if first:
                    o_ref[0] = contrib
                    first = False
                else:
                    o_ref[0] += contrib

        y = o_ref[0] + b_ref[...]

        if norm:
            o_ref[0] = y

            @pl.when(h == 0)
            def _init():
                st_ref[...] = jnp.zeros_like(st_ref)

            part = jnp.concatenate([jnp.sum(y, axis=0, keepdims=True),
                                    jnp.sum(y * y, axis=0, keepdims=True)], axis=0)
            st_ref[0] += part

            @pl.when(h == n_h - 1)
            def _finalize():
                tot = st_ref[0]                                     # (2, cout_p)
                inv_hw = 1.0 / float(n_h * thw)
                mean = tot[0:1, :] * inv_hw
                var = jnp.maximum(tot[1:2, :] * inv_hw - mean * mean, 0.0)
                st_ref[0] = jnp.concatenate([mean, lax.rsqrt(var + eps)], axis=0)
        else:
            y = _activation(y, atv)
            # skip comes straight from the interior of the resident padded sample
            sk = x_ref[0, pl.ds(row0 + pad, tile_h), pl.ds(pad, Wo), :]
            sk = sk.reshape(thw, cin)
            if has_mapping:
                sk = jnp.dot(sk, wm_ref[...],
                             preferred_element_type=jnp.float32) + bm_ref[...]
            else:
                sk = sk.astype(jnp.float32)
                if cout_p > cin:
                    sk = jnp.concatenate(
                        [sk, jnp.zeros((thw, cout_p - cin), jnp.float32)], axis=-1)
            o_ref[0] = y + sk

    return kernel


def _make_apply_kernel(*, cin, cout_p, atv, has_mapping):
    """norm apply pass: InstanceNorm affine + activation + (mapped) skip + add."""

    def kernel(*refs):
        it = iter(refs)
        y_ref = next(it)                               # (1, thw, cout_p) f32
        st_ref = next(it)                              # (1, 2, cout_p) f32: [mean, rstd]
        g_ref = next(it)                               # (1, cout_p) f32
        be_ref = next(it)                              # (1, cout_p) f32
        s_ref = next(it)                               # (1, thw, cin) bf16
        wm_ref = next(it) if has_mapping else None
        bm_ref = next(it) if has_mapping else None
        o_ref = next(it)                               # (1, thw, cout_p) f32

        stats = st_ref[0]
        y = (y_ref[0] - stats[0:1, :]) * stats[1:2, :]
        y = y * g_ref[...] + be_ref[...]
        y = _activation(y, atv)

        sk = s_ref[0]
        if has_mapping:
            sk = jnp.dot(sk, wm_ref[...],
                         preferred_element_type=jnp.float32) + bm_ref[...]
        else:
            sk = sk.astype(jnp.float32)
            if cout_p > cin:
                sk = jnp.concatenate(
                    [sk, jnp.zeros((sk.shape[0], cout_p - cin), jnp.float32)], axis=-1)
        o_ref[0] = y + sk

    return kernel


# --------------------------------- wrapper --------------------------------- #
def init_upconv_params(key, cin, cout, k, norm, has_mapping):
    k1, k2, k3, k4 = jax.random.split(key, 4)
    bound = 1.0 / float(cin * k * k) ** 0.5
    params = {
        'w': jax.random.uniform(k1, (cout, cin, k, k), jnp.float32, -bound, bound),
        'b': jax.random.uniform(k2, (cout,), jnp.float32, -bound, bound),
    }
    if has_mapping:
        mbound = 1.0 / float(cin) ** 0.5
        params['wm'] = jax.random.uniform(k3, (cout, cin, 1, 1), jnp.float32, -mbound, mbound)
        params['bm'] = jax.random.uniform(k4, (cout,), jnp.float32, -mbound, mbound)
    if norm:
        params['gamma'] = jnp.ones((cout,), jnp.float32)
        params['beta'] = jnp.zeros((cout,), jnp.float32)
    return params


def upconv_forward(x, params, *, cin, cout, k, s, p, norm=False, upsample=False,
                   atv='ReLU', pmode='ReflectionPad2d'):
    N, C, H, W = x.shape
    assert C == cin
    # TODO(synk): stride > 1 needs strided pl.ds slicing inside the im2col loop.
    assert s == 1, "fused Pallas Upconv currently supports stride 1 (VGG decoder)"
    has_mapping = (cin != cout)
    eps = 1e-5

    # layout glue (XLA): NCHW -> NHWC bf16, nearest 2x upsample, pad.
    x_nhwc = jnp.transpose(x, (0, 2, 3, 1)).astype(jnp.bfloat16)
    if upsample:
        x_nhwc = jnp.repeat(jnp.repeat(x_nhwc, 2, axis=1), 2, axis=2)
    Hup, Wup = x_nhwc.shape[1], x_nhwc.shape[2]
    if p > 0:
        mode = 'reflect' if pmode == 'ReflectionPad2d' else 'constant'
        xpad = jnp.pad(x_nhwc, ((0, 0), (p, p), (p, p), (0, 0)), mode=mode)
    else:
        xpad = x_nhwc
    Hp, Wp = Hup + 2 * p, Wup + 2 * p
    Ho, Wo = Hp - k + 1, Wp - k + 1
    HW = Ho * Wo

    # skip spatial size must match the conv output (mirrors the PyTorch module)
    skip_sp = (Hup, Wup) if has_mapping else (H, W)
    assert skip_sp == (Ho, Wo), "skip / conv spatial mismatch (invalid Upconv cfg)"

    tile_h = _pick_tile_h(Ho, Wo)            # ~512-row tiles (fits v7x 64 MiB VMEM)
    n_h = Ho // tile_h
    thw = tile_h * Wo
    cout_p = _round_up(cout, 128)            # lane-dense output / dense MXU N dim

    # parameters: PyTorch layouts -> padded, bf16 MXU operands.
    w_taps = jnp.transpose(params['w'], (2, 3, 1, 0)).reshape(k * k, cin, cout)
    w_taps = jnp.pad(w_taps, ((0, 0), (0, 0), (0, cout_p - cout))).astype(jnp.bfloat16)
    b2d = jnp.pad(params['b'], (0, cout_p - cout)).reshape(1, cout_p).astype(jnp.float32)
    if has_mapping:
        wm = jnp.pad(params['wm'].reshape(cout, cin).T,
                     ((0, 0), (0, cout_p - cout))).astype(jnp.bfloat16)
        bm = jnp.pad(params['bm'], (0, cout_p - cout)).reshape(1, cout_p).astype(jnp.float32)
    if norm:
        gamma = jnp.pad(params['gamma'], (0, cout_p - cout),
                        constant_values=1.0).reshape(1, cout_p).astype(jnp.float32)
        beta = jnp.pad(params['beta'], (0, cout_p - cout)).reshape(1, cout_p).astype(jnp.float32)

    grid = (N, n_h)
    vmem_limit = 48 * 1024 * 1024
    x_spec = pl.BlockSpec((1, Hp, Wp, cin), lambda n, h: (n, 0, 0, 0))
    w_spec = pl.BlockSpec((k * k, cin, cout_p), lambda n, h: (0, 0, 0))
    v_spec = pl.BlockSpec((1, cout_p), lambda n, h: (0, 0))
    y_spec = pl.BlockSpec((1, thw, cout_p), lambda n, h: (n, h, 0))
    st_spec = pl.BlockSpec((1, 2, cout_p), lambda n, h: (n, 0, 0))
    wm_spec = pl.BlockSpec((cin, cout_p), lambda n, h: (0, 0))
    sk_spec = pl.BlockSpec((1, thw, cin), lambda n, h: (n, h, 0))

    if norm:
        # pass 1: conv + bias -> y; accumulate per-channel sum / sumsq across HW tiles
        conv_k = _make_conv_kernel(k=k, tile_h=tile_h, Wo=Wo, cin=cin, cout_p=cout_p,
                                   n_h=n_h, pad=p, norm=True, eps=eps, atv=atv,
                                   has_mapping=has_mapping)
        y_buf, stats = pl.pallas_call(
            conv_k,
            out_shape=(jax.ShapeDtypeStruct((N, HW, cout_p), jnp.float32),
                       jax.ShapeDtypeStruct((N, 2, cout_p), jnp.float32)),
            grid=grid,
            in_specs=[x_spec, w_spec, v_spec],
            out_specs=[y_spec, st_spec],
            compiler_params=pltpu.CompilerParams(
                dimension_semantics=("parallel", "arbitrary"),
                vmem_limit_bytes=vmem_limit),
        )(xpad, w_taps, b2d)

        # pass 2: InstanceNorm apply + activation + fused 1x1 mapping skip + add
        skip_flat = x_nhwc.reshape(N, HW, cin)
        apply_args = [y_buf, stats, gamma, beta, skip_flat]
        apply_specs = [y_spec, st_spec, v_spec, v_spec, sk_spec]
        if has_mapping:
            apply_args += [wm, bm]
            apply_specs += [wm_spec, v_spec]
        out_p = pl.pallas_call(
            _make_apply_kernel(cin=cin, cout_p=cout_p, atv=atv, has_mapping=has_mapping),
            out_shape=jax.ShapeDtypeStruct((N, HW, cout_p), jnp.float32),
            grid=grid,
            in_specs=apply_specs,
            out_specs=y_spec,
            compiler_params=pltpu.CompilerParams(
                dimension_semantics=("parallel", "parallel"),
                vmem_limit_bytes=vmem_limit),
        )(*apply_args)
    else:
        conv_k = _make_conv_kernel(k=k, tile_h=tile_h, Wo=Wo, cin=cin, cout_p=cout_p,
                                   n_h=n_h, pad=p, norm=False, eps=eps, atv=atv,
                                   has_mapping=has_mapping)
        conv_args = [xpad, w_taps, b2d]
        conv_specs = [x_spec, w_spec, v_spec]
        if has_mapping:
            conv_args += [wm, bm]
            conv_specs += [wm_spec, v_spec]
        out_p = pl.pallas_call(
            conv_k,
            out_shape=jax.ShapeDtypeStruct((N, HW, cout_p), jnp.float32),
            grid=grid,
            in_specs=conv_specs,
            out_specs=y_spec,
            compiler_params=pltpu.CompilerParams(
                dimension_semantics=("parallel", "parallel"),
                vmem_limit_bytes=vmem_limit),
        )(*conv_args)

    # drop lane padding; restore NCHW to match the PyTorch module interface.
    # (NHWC consumers can use out_p[..., :cout].reshape(N, Ho, Wo, cout) directly
    #  and skip this transpose.)
    out = out_p[:, :, :cout].reshape(N, Ho, Wo, cout)
    return jnp.transpose(out, (0, 3, 1, 2))


# ---------------------------- pure-JAX reference ---------------------------- #
def upconv_reference(x, params, *, cin, cout, k, s, p, norm=False, upsample=False,
                     atv='ReLU', pmode='ReflectionPad2d'):
    has_mapping = (cin != cout)

    def _up(a):
        return jnp.repeat(jnp.repeat(a, 2, axis=2), 2, axis=3)

    skip = x
    if has_mapping:
        if upsample:
            skip = _up(skip)
        skip = lax.conv_general_dilated(skip, params['wm'], (1, 1), 'VALID',
                                        dimension_numbers=('NCHW', 'OIHW', 'NCHW'))
        skip = skip + params['bm'].reshape(1, cout, 1, 1)
    if upsample:
        x = _up(x)
    if pmode == 'ReflectionPad2d':
        if p > 0:
            x = jnp.pad(x, ((0, 0), (0, 0), (p, p), (p, p)), mode='reflect')
        pad = 'VALID'
    else:
        pad = [(p, p), (p, p)]
    y = lax.conv_general_dilated(x, params['w'], (s, s), pad,
                                 dimension_numbers=('NCHW', 'OIHW', 'NCHW'))
    y = y + params['b'].reshape(1, cout, 1, 1)
    if norm:
        mean = y.mean(axis=(2, 3), keepdims=True)
        var = ((y - mean) ** 2).mean(axis=(2, 3), keepdims=True)
        y = (y - mean) * lax.rsqrt(var + 1e-5)
        y = y * params['gamma'].reshape(1, cout, 1, 1) + params['beta'].reshape(1, cout, 1, 1)
    y = _activation(y, atv)
    return y + skip


# ------------------------------------ main ---------------------------------- #
if __name__ == "__main__":
    key = jax.random.PRNGKey(0)
    k1, k2, k3, k4 = jax.random.split(key, 4)

    # Config 1: representative decoder block — 2x upsample, reflection pad, 3x3
    # conv, InstanceNorm, ReLU, channel change (fused 1x1 mapping skip-conv).
    cfg1 = dict(cin=4, cout=8, k=3, s=1, p=1, norm=True, upsample=True,
                atv='ReLU', pmode='ReflectionPad2d')
    params1 = init_upconv_params(k1, cfg1['cin'], cfg1['cout'], cfg1['k'],
                                 cfg1['norm'], cfg1['cin'] != cfg1['cout'])
    x1 = jax.random.normal(k2, (2, cfg1['cin'], 16, 16), jnp.float32)
    out1 = jax.block_until_ready(upconv_forward(x1, params1, **cfg1))
    assert out1.shape == (2, cfg1['cout'], 32, 32), out1.shape
    ref1 = jax.block_until_ready(upconv_reference(x1, params1, **cfg1))
    err1 = float(jnp.max(jnp.abs(out1 - ref1)))
    assert jnp.allclose(out1, ref1, atol=3e-2, rtol=3e-2), f"cfg1 max_err={err1}"

    # Config 2: no norm / no channel change / zero pad / LeakyReLU
    # (exercises the single fully fused kernel path).
    cfg2 = dict(cin=8, cout=8, k=3, s=1, p=1, norm=False, upsample=False,
                atv='LeakyReLU', pmode='zeros')
    params2 = init_upconv_params(k3, cfg2['cin'], cfg2['cout'], cfg2['k'],
                                 cfg2['norm'], cfg2['cin'] != cfg2['cout'])
    x2 = jax.random.normal(k4, (2, cfg2['cin'], 16, 16), jnp.float32)
    out2 = jax.block_until_ready(upconv_forward(x2, params2, **cfg2))
    assert out2.shape == (2, cfg2['cout'], 16, 16), out2.shape
    ref2 = jax.block_until_ready(upconv_reference(x2, params2, **cfg2))
    err2 = float(jnp.max(jnp.abs(out2 - ref2)))
    assert jnp.allclose(out2, ref2, atol=3e-2, rtol=3e-2), f"cfg2 max_err={err2}"

    print("KERNEL_OK")
</pallas_src>

<mosaic_0001>
module attributes {stable_mosaic.version = 11 : i64} {
  func.func @kernel(%arg0: i32, %arg1: i32, %arg2: memref<1x34x34x4xbf16, #tpu.memory_space<vmem>>, %arg3: memref<9x4x128xbf16, #tpu.memory_space<vmem>>, %arg4: memref<1x128xf32, #tpu.memory_space<vmem>>, %arg5: memref<1x512x128xf32, #tpu.memory_space<vmem>>, %arg6: memref<1x2x128xf32, #tpu.memory_space<vmem>>) attributes {dimension_semantics = [#tpu.dimension_semantics<parallel>, #tpu.dimension_semantics<arbitrary>], iteration_bounds = array<i64: 2, 2>, scalar_prefetch = 0 : i64, scratch_operands = 0 : i64, tpu.core_type = #tpu.core_type<tc>, window_params = [{transform_indices = @transform_0, window_bounds = array<i64: 1, 34, 34, 4>}, {pipeline_mode = #tpu.pipeline_mode<synchronous>, transform_indices = @transform_1, window_bounds = array<i64: 9, 4, 128>}, {pipeline_mode = #tpu.pipeline_mode<synchronous>, transform_indices = @transform_2, window_bounds = array<i64: 1, 128>}, {transform_indices = @transform_3, window_bounds = array<i64: 1, 512, 128>}, {transform_indices = @transform_4, window_bounds = array<i64: 1, 2, 128>}]} {
    %c16_i32 = arith.constant 16 : i32
    %0 = arith.muli %arg1, %c16_i32 : i32
    %c0_i32 = arith.constant 0 : i32
    %1 = arith.addi %0, %c0_i32 : i32
    %c0 = arith.constant 0 : index
    %2 = arith.index_cast %1 : i32 to index
    %c0_0 = arith.constant 0 : index
    %c0_1 = arith.constant 0 : index
    %3 = vector.load %arg2[%c0, %2, %c0_0, %c0_1] : memref<1x34x34x4xbf16, #tpu.memory_space<vmem>>, vector<1x16x32x4xbf16>
    %4 = vector.shape_cast %3 : vector<1x16x32x4xbf16> to vector<16x32x4xbf16>
    %5 = vector.shape_cast %4 : vector<16x32x4xbf16> to vector<512x4xbf16>
    %c0_2 = arith.constant 0 : index
    %c0_3 = arith.constant 0 : index
    %c0_4 = arith.constant 0 : index
    %6 = vector.load %arg3[%c0_2, %c0_3, %c0_4] : memref<9x4x128xbf16, #tpu.memory_space<vmem>>, vector<1x4x128xbf16>
    %7 = vector.shape_cast %6 : vector<1x4x128xbf16> to vector<4x128xbf16>
    %cst = arith.constant dense<0.000000e+00> : vector<512x128xf32>
    %8 = tpu.matmul %5, %7, %cst {dimension_numbers = #tpu.dot_dimension_numbers<[1], [0], [0], [1], [0, 0, 1, 1], [], []>} : vector<512x4xbf16>, vector<4x128xbf16>, vector<512x128xf32> -> vector<512x128xf32>
    %c0_5 = arith.constant 0 : index
    %c0_6 = arith.constant 0 : index
    %c0_7 = arith.constant 0 : index
    %9 = vector.load %arg5[%c0_5, %c0_6, %c0_7] : memref<1x512x128xf32, #tpu.memory_space<vmem>>, vector<1x512x128xf32>
    %10 = vector.shape_cast %9 : vector<1x512x128xf32> to vector<512x128xf32>
    %11 = vector.shape_cast %8 : vector<512x128xf32> to vector<1x512x128xf32>
    tpu.vector_store %arg5[%c0_5, %c0_6, %c0_7], %11 {strides = array<i32>} : memref<1x512x128xf32, #tpu.memory_space<vmem>>, vector<1x512x128xf32>,
    %c0_i32_8 = arith.constant 0 : i32
    %12 = arith.addi %0, %c0_i32_8 : i32
    %c0_9 = arith.constant 0 : index
    %13 = arith.index_cast %12 : i32 to index
    %c1 = arith.constant 1 : index
    %c0_10 = arith.constant 0 : index
    %14 = vector.load %arg2[%c0_9, %13, %c1, %c0_10] : memref<1x34x34x4xbf16, #tpu.memory_space<vmem>>, vector<1x16x32x4xbf16>
    %15 = vector.shape_cast %14 : vector<1x16x32x4xbf16> to vector<16x32x4xbf16>
    %16 = vector.shape_cast %15 : vector<16x32x4xbf16> to vector<512x4xbf16>
    %c1_11 = arith.constant 1 : index
    %c0_12 = arith.constant 0 : index
    %c0_13 = arith.constant 0 : index
    %17 = vector.load %arg3[%c1_11, %c0_12, %c0_13] : memref<9x4x128xbf16, #tpu.memory_space<vmem>>, vector<1x4x128xbf16>
    %18 = vector.shape_cast %17 : vector<1x4x128xbf16> to vector<4x128xbf16>
    %cst_14 = arith.constant dense<0.000000e+00> : vector<512x128xf32>
    %19 = tpu.matmul %16, %18, %cst_14 {dimension_numbers = #tpu.dot_dimension_numbers<[1], [0], [0], [1], [0, 0, 1, 1], [], []>} : vector<512x4xbf16>, vector<4x128xbf16>, vector<512x128xf32> -> vector<512x128xf32>
    %c0_15 = arith.constant 0 : index
    %c0_16 = arith.constant 0 : index
    %c0_17 = arith.constant 0 : index
    %20 = vector.load %arg5[%c0_15, %c0_16, %c0_17] : memref<1x512x128xf32, #tpu.memory_space<vmem>>, vector<1x512x128xf32>
    %21 = vector.shape_cast %20 : vector<1x512x128xf32> to vector<512x128xf32>
    %22 = arith.addf %21, %19 : vector<512x128xf32>
    %c0_18 = arith.constant 0 : index
    %c0_19 = arith.constant 0 : index
    %c0_20 = arith.constant 0 : index
    %23 = vector.load %arg5[%c0_18, %c0_19, %c0_20] : memref<1x512x128xf32, #tpu.memory_space<vmem>>, vector<1x512x128xf32>
    %24 = vector.shape_cast %23 : vector<1x512x128xf32> to vector<512x128xf32>
    %25 = vector.shape_cast %22 : vector<512x128xf32> to vector<1x512x128xf32>
    tpu.vector_store %arg5[%c0_18, %c0_19, %c0_20], %25 {strides = array<i32>} : memref<1x512x128xf32, #tpu.memory_space<vmem>>, vector<1x512x128xf32>,
    %c0_i32_21 = arith.constant 0 : i32
    %26 = arith.addi %0, %c0_i32_21 : i32
    %c0_22 = arith.constant 0 : index
    %27 = arith.index_cast %26 : i32 to index
    %c2 = arith.constant 2 : index
    %c0_23 = arith.constant 0 : index
    %28 = vector.load %arg2[%c0_22, %27, %c2, %c0_23] : memref<1x34x34x4xbf16, #tpu.memory_space<vmem>>, vector<1x16x32x4xbf16>
    %29 = vector.shape_cast %28 : vector<1x16x32x4xbf16> to vector<16x32x4xbf16>
    %30 = vector.shape_cast %29 : vector<16x32x4xbf16> to vector<512x4xbf16>
    %c2_24 = arith.constant 2 : index
    %c0_25 = arith.constant 0 : index
    %c0_26 = arith.constant 0 : index
    %31 = vector.load %arg3[%c2_24, %c0_25, %c0_26] : memref<9x4x128xbf16, #tpu.memory_space<vmem>>, vector<1x4x128xbf16>
    %32 = vector.shape_cast %31 : vector<1x4x128xbf16> to vector<4x128xbf16>
    %cst_27 = arith.constant dense<0.000000e+00> : vector<512x128xf32>
    %33 = tpu.matmul %30, %32, %cst_27 {dimension_numbers = #tpu.dot_dimension_numbers<[1], [0], [0], [1], [0, 0, 1, 1], [], []>} : vector<512x4xbf16>, vector<4x128xbf16>, vector<512x128xf32> -> vector<512x128xf32>
    %c0_28 = arith.constant 0 : index
    %c0_29 = arith.constant 0 : index
    %c0_30 = arith.constant 0 : index
    %34 = vector.load %arg5[%c0_28, %c0_29, %c0_30] : memref<1x512x128xf32, #tpu.memory_space<vmem>>, vector<1x512x128xf32>
    %35 = vector.shape_cast %34 : vector<1x512x128xf32> to vector<512x128xf32>
    %36 = arith.addf %35, %33 : vector<512x128xf32>
    %c0_31 = arith.constant 0 : index
    %c0_32 = arith.constant 0 : index
    %c0_33 = arith.constant 0 : index
    %37 = vector.load %arg5[%c0_31, %c0_32, %c0_33] : memref<1x512x128xf32, #tpu.memory_space<vmem>>, vector<1x512x128xf32>
    %38 = vector.shape_cast %37 : vector<1x512x128xf32> to vector<512x128xf32>
    %39 = vector.shape_cast %36 : vector<512x128xf32> to vector<1x512x128xf32>
    tpu.vector_store %arg5[%c0_31, %c0_32, %c0_33], %39 {strides = array<i32>} : memref<1x512x128xf32, #tpu.memory_space<vmem>>, vector<1x512x128xf32>,
    %c1_i32 = arith.constant 1 : i32
    %40 = arith.addi %0, %c1_i32 : i32
    %c0_34 = arith.constant 0 : index
    %41 = arith.index_cast %40 : i32 to index
    %c0_35 = arith.constant 0 : index
    %c0_36 = arith.constant 0 : index
    %42 = vector.load %arg2[%c0_34, %41, %c0_35, %c0_36] : memref<1x34x34x4xbf16, #tpu.memory_space<vmem>>, vector<1x16x32x4xbf16>
    %43 = vector.shape_cast %42 : vector<1x16x32x4xbf16> to vector<16x32x4xbf16>
    %44 = vector.shape_cast %43 : vector<16x32x4xbf16> to vector<512x4xbf16>
    %c3 = arith.constant 3 : index
    %c0_37 = arith.constant 0 : index
    %c0_38 = arith.constant 0 : index
    %45 = vector.load %arg3[%c3, %c0_37, %c0_38] : memref<9x4x128xbf16, #tpu.memory_space<vmem>>, vector<1x4x128xbf16>
    %46 = vector.shape_cast %45 : vector<1x4x128xbf16> to vector<4x128xbf16>
    %cst_39 = arith.constant dense<0.000000e+00> : vector<512x128xf32>
    %47 = tpu.matmul %44, %46, %cst_39 {dimension_numbers = #tpu.dot_dimension_numbers<[1], [0], [0], [1], [0, 0, 1, 1], [], []>} : vector<512x4xbf16>, vector<4x128xbf16>, vector<512x128xf32> -> vector<512x128xf32>
    %c0_40 = arith.constant 0 : index
    %c0_41 = arith.constant 0 : index
    %c0_42 = arith.constant 0 : index
    %48 = vector.load %arg5[%c0_40, %c0_41, %c0_42] : memref<1x512x128xf32, #tpu.memory_space<vmem>>, vector<1x512x128xf32>
    %49 = vector.shape_cast %48 : vector<1x512x128xf32> to vector<512x128xf32>
    %50 = arith.addf %49, %47 : vector<512x128xf32>
    %c0_43 = arith.constant 0 : index
    %c0_44 = arith.constant 0 : index
    %c0_45 = arith.constant 0 : index
    %51 = vector.load %arg5[%c0_43, %c0_44, %c0_45] : memref<1x512x128xf32, #tpu.memory_space<vmem>>, vector<1x512x128xf32>
    %52 = vector.shape_cast %51 : vector<1x512x128xf32> to vector<512x128xf32>
    %53 = vector.shape_cast %50 : vector<512x128xf32> to vector<1x512x128xf32>
    tpu.vector_store %arg5[%c0_43, %c0_44, %c0_45], %53 {strides = array<i32>} : memref<1x512x128xf32, #tpu.memory_space<vmem>>, vector<1x512x128xf32>,
    %c1_i32_46 = arith.constant 1 : i32
    %54 = arith.addi %0, %c1_i32_46 : i32
    %c0_47 = arith.constant 0 : index
    %55 = arith.index_cast %54 : i32 to index
    %c1_48 = arith.constant 1 : index
    %c0_49 = arith.constant 0 : index
    %56 = vector.load %arg2[%c0_47, %55, %c1_48, %c0_49] : memref<1x34x34x4xbf16, #tpu.memory_space<vmem>>, vector<1x16x32x4xbf16>
    %57 = vector.shape_cast %56 : vector<1x16x32x4xbf16> to vector<16x32x4xbf16>
    %58 = vector.shape_cast %57 : vector<16x32x4xbf16> to vector<512x4xbf16>
    %c4 = arith.constant 4 : index
    %c0_50 = arith.constant 0 : index
    %c0_51 = arith.constant 0 : index
    %59 = vector.load %arg3[%c4, %c0_50, %c0_51] : memref<9x4x128xbf16, #tpu.memory_space<vmem>>, vector<1x4x128xbf16>
    %60 = vector.shape_cast %59 : vector<1x4x128xbf16> to vector<4x128xbf16>
    %cst_52 = arith.constant dense<0.000000e+00> : vector<512x128xf32>
    %61 = tpu.matmul %58, %60, %cst_52 {dimension_numbers = #tpu.dot_dimension_numbers<[1], [0], [0], [1], [0, 0, 1, 1], [], []>} : vector<512x4xbf16>, vector<4x128xbf16>, vector<512x128xf32> -> vector<512x128xf32>
    %c0_53 = arith.constant 0 : index
    %c0_54 = arith.constant 0 : index
    %c0_55 = arith.constant 0 : index
    %62 = vector.load %arg5[%c0_53, %c0_54, %c0_55] : memref<1x512x128xf32, #tpu.memory_space<vmem>>, vector<1x512x128xf32>
    %63 = vector.shape_cast %62 : vector<1x512x128xf32> to vector<512x128xf32>
    %64 = arith.addf %63, %61 : vector<512x128xf32>
    %c0_56 = arith.constant 0 : index
    %c0_57 = arith.constant 0 : index
    %c0_58 = arith.constant 0 : index
    %65 = vector.load %arg5[%c0_56, %c0_57, %c0_58] : memref<1x512x128xf32, #tpu.memory_space<vmem>>, vector<1x512x128xf32>
    %66 = vector.shape_cast %65 : vector<1x512x128xf32> to vector<512x128xf32>
    %67 = vector.shape_cast %64 : vector<512x128xf32> to vector<1x512x128xf32>
    tpu.vector_store %arg5[%c0_56, %c0_57, %c0_58], %67 {strides = array<i32>} : memref<1x512x128xf32, #tpu.memory_space<vmem>>, vector<1x512x128xf32>,
    %c1_i32_59 = arith.constant 1 : i32
    %68 = arith.addi %0, %c1_i32_59 : i32
    %c0_60 = arith.constant 0 : index
    %69 = arith.index_cast %68 : i32 to index
    %c2_61 = arith.constant 2 : index
    %c0_62 = arith.constant 0 : index
    %70 = vector.load %arg2[%c0_60, %69, %c2_61, %c0_62] : memref<1x34x34x4xbf16, #tpu.memory_space<vmem>>, vector<1x16x32x4xbf16>
    %71 = vector.shape_cast %70 : vector<1x16x32x4xbf16> to vector<16x32x4xbf16>
    %72 = vector.shape_cast %71 : vector<16x32x4xbf16> to vector<512x4xbf16>
    %c5 = arith.constant 5 : index
    %c0_63 = arith.constant 0 : index
    %c0_64 = arith.constant 0 : index
    %73 = vector.load %arg3[%c5, %c0_63, %c0_64] : memref<9x4x128xbf16, #tpu.memory_space<vmem>>, vector<1x4x128xbf16>
    %74 = vector.shape_cast %73 : vector<1x4x128xbf16> to vector<4x128xbf16>
    %cst_65 = arith.constant dense<0.000000e+00> : vector<512x128xf32>
    %75 = tpu.matmul %72, %74, %cst_65 {dimension_numbers = #tpu.dot_dimension_numbers<[1], [0], [0], [1], [0, 0, 1, 1], [], []>} : vector<512x4xbf16>, vector<4x128xbf16>, vector<512x128xf32> -> vector<512x128xf32>
    %c0_66 = arith.constant 0 : index
    %c0_67 = arith.constant 0 : index
    %c0_68 = arith.constant 0 : index
    %76 = vector.load %arg5[%c0_66, %c0_67, %c0_68] : memref<1x512x128xf32, #tpu.memory_space<vmem>>, vector<1x512x128xf32>
    %77 = vector.shape_cast %76 : vector<1x512x128xf32> to vector<512x128xf32>
    %78 = arith.addf %77, %75 : vector<512x128xf32>
    %c0_69 = arith.constant 0 : index
    %c0_70 = arith.constant 0 : index
    %c0_71 = arith.constant 0 : index
    %79 = vector.load %arg5[%c0_69, %c0_70, %c0_71] : memref<1x512x128xf32, #tpu.memory_space<vmem>>, vector<1x512x128xf32>
    %80 = vector.shape_cast %79 : vector<1x512x128xf32> to vector<512x128xf32>
    %81 = vector.shape_cast %78 : vector<512x128xf32> to vector<1x512x128xf32>
    tpu.vector_store %arg5[%c0_69, %c0_70, %c0_71], %81 {strides = array<i32>} : memref<1x512x128xf32, #tpu.memory_space<vmem>>, vector<1x512x128xf32>,
    %c2_i32 = arith.constant 2 : i32
    %82 = arith.addi %0, %c2_i32 : i32
    %c0_72 = arith.constant 0 : index
    %83 = arith.index_cast %82 : i32 to index
    %c0_73 = arith.constant 0 : index
    %c0_74 = arith.constant 0 : index
    %84 = vector.load %arg2[%c0_72, %83, %c0_73, %c0_74] : memref<1x34x34x4xbf16, #tpu.memory_space<vmem>>, vector<1x16x32x4xbf16>
    %85 = vector.shape_cast %84 : vector<1x16x32x4xbf16> to vector<16x32x4xbf16>
    %86 = vector.shape_cast %85 : vector<16x32x4xbf16> to vector<512x4xbf16>
    %c6 = arith.constant 6 : index
    %c0_75 = arith.constant 0 : index
    %c0_76 = arith.constant 0 : index
    %87 = vector.load %arg3[%c6, %c0_75, %c0_76] : memref<9x4x128xbf16, #tpu.memory_space<vmem>>, vector<1x4x128xbf16>
    %88 = vector.shape_cast %87 : vector<1x4x128xbf16> to vector<4x128xbf16>
    %cst_77 = arith.constant dense<0.000000e+00> : vector<512x128xf32>
    %89 = tpu.matmul %86, %88, %cst_77 {dimension_numbers = #tpu.dot_dimension_numbers<[1], [0], [0], [1], [0, 0, 1, 1], [], []>} : vector<512x4xbf16>, vector<4x128xbf16>, vector<512x128xf32> -> vector<512x128xf32>
    %c0_78 = arith.constant 0 : index
    %c0_79 = arith.constant 0 : index
    %c0_80 = arith.constant 0 : index
    %90 = vector.load %arg5[%c0_78, %c0_79, %c0_80] : memref<1x512x128xf32, #tpu.memory_space<vmem>>, vector<1x512x128xf32>
    %91 = vector.shape_cast %90 : vector<1x512x128xf32> to vector<512x128xf32>
    %92 = arith.addf %91, %89 : vector<512x128xf32>
    %c0_81 = arith.constant 0 : index
    %c0_82 = arith.constant 0 : index
    %c0_83 = arith.constant 0 : index
    %93 = vector.load %arg5[%c0_81, %c0_82, %c0_83] : memref<1x512x128xf32, #tpu.memory_space<vmem>>, vector<1x512x128xf32>
    %94 = vector.shape_cast %93 : vector<1x512x128xf32> to vector<512x128xf32>
    %95 = vector.shape_cast %92 : vector<512x128xf32> to vector<1x512x128xf32>
    tpu.vector_store %arg5[%c0_81, %c0_82, %c0_83], %95 {strides = array<i32>} : memref<1x512x128xf32, #tpu.memory_space<vmem>>, vector<1x512x128xf32>,
    %c2_i32_84 = arith.constant 2 : i32
    %96 = arith.addi %0, %c2_i32_84 : i32
    %c0_85 = arith.constant 0 : index
    %97 = arith.index_cast %96 : i32 to index
    %c1_86 = arith.constant 1 : index
    %c0_87 = arith.constant 0 : index
    %98 = vector.load %arg2[%c0_85, %97, %c1_86, %c0_87] : memref<1x34x34x4xbf16, #tpu.memory_space<vmem>>, vector<1x16x32x4xbf16>
    %99 = vector.shape_cast %98 : vector<1x16x32x4xbf16> to vector<16x32x4xbf16>
    %100 = vector.shape_cast %99 : vector<16x32x4xbf16> to vector<512x4xbf16>
    %c7 = arith.constant 7 : index
    %c0_88 = arith.constant 0 : index
    %c0_89 = arith.constant 0 : index
    %101 = vector.load %arg3[%c7, %c0_88, %c0_89] : memref<9x4x128xbf16, #tpu.memory_space<vmem>>, vector<1x4x128xbf16>
    %102 = vector.shape_cast %101 : vector<1x4x128xbf16> to vector<4x128xbf16>
    %cst_90 = arith.constant dense<0.000000e+00> : vector<512x128xf32>
    %103 = tpu.matmul %100, %102, %cst_90 {dimension_numbers = #tpu.dot_dimension_numbers<[1], [0], [0], [1], [0, 0, 1, 1], [], []>} : vector<512x4xbf16>, vector<4x128xbf16>, vector<512x128xf32> -> vector<512x128xf32>
    %c0_91 = arith.constant 0 : index
    %c0_92 = arith.constant 0 : index
    %c0_93 = arith.constant 0 : index
    %104 = vector.load %arg5[%c0_91, %c0_92, %c0_93] : memref<1x512x128xf32, #tpu.memory_space<vmem>>, vector<1x512x128xf32>
    %105 = vector.shape_cast %104 : vector<1x512x128xf32> to vector<512x128xf32>
    %106 = arith.addf %105, %103 : vector<512x128xf32>
    %c0_94 = arith.constant 0 : index
    %c0_95 = arith.constant 0 : index
    %c0_96 = arith.constant 0 : index
    %107 = vector.load %arg5[%c0_94, %c0_95, %c0_96] : memref<1x512x128xf32, #tpu.memory_space<vmem>>, vector<1x512x128xf32>
    %108 = vector.shape_cast %107 : vector<1x512x128xf32> to vector<512x128xf32>
    %109 = vector.shape_cast %106 : vector<512x128xf32> to vector<1x512x128xf32>
    tpu.vector_store %arg5[%c0_94, %c0_95, %c0_96], %109 {strides = array<i32>} : memref<1x512x128xf32, #tpu.memory_space<vmem>>, vector<1x512x128xf32>,
    %c2_i32_97 = arith.constant 2 : i32
    %110 = arith.addi %0, %c2_i32_97 : i32
    %c0_98 = arith.constant 0 : index
    %111 = arith.index_cast %110 : i32 to index
    %c2_99 = arith.constant 2 : index
    %c0_100 = arith.constant 0 : index
    %112 = vector.load %arg2[%c0_98, %111, %c2_99, %c0_100] : memref<1x34x34x4xbf16, #tpu.memory_space<vmem>>, vector<1x16x32x4xbf16>
    %113 = vector.shape_cast %112 : vector<1x16x32x4xbf16> to vector<16x32x4xbf16>
    %114 = vector.shape_cast %113 : vector<16x32x4xbf16> to vector<512x4xbf16>
    %c8 = arith.constant 8 : index
    %c0_101 = arith.constant 0 : index
    %c0_102 = arith.constant 0 : index
    %115 = vector.load %arg3[%c8, %c0_101, %c0_102] : memref<9x4x128xbf16, #tpu.memory_space<vmem>>, vector<1x4x128xbf16>
    %116 = vector.shape_cast %115 : vector<1x4x128xbf16> to vector<4x128xbf16>
    %cst_103 = arith.constant dense<0.000000e+00> : vector<512x128xf32>
    %117 = tpu.matmul %114, %116, %cst_103 {dimension_numbers = #tpu.dot_dimension_numbers<[1], [0], [0], [1], [0, 0, 1, 1], [], []>} : vector<512x4xbf16>, vector<4x128xbf16>, vector<512x128xf32> -> vector<512x128xf32>
    %c0_104 = arith.constant 0 : index
    %c0_105 = arith.constant 0 : index
    %c0_106 = arith.constant 0 : index
    %118 = vector.load %arg5[%c0_104, %c0_105, %c0_106] : memref<1x512x128xf32, #tpu.memory_space<vmem>>, vector<1x512x128xf32>
    %119 = vector.shape_cast %118 : vector<1x512x128xf32> to vector<512x128xf32>
    %120 = arith.addf %119, %117 : vector<512x128xf32>
    %c0_107 = arith.constant 0 : index
    %c0_108 = arith.constant 0 : index
    %c0_109 = arith.constant 0 : index
    %121 = vector.load %arg5[%c0_107, %c0_108, %c0_109] : memref<1x512x128xf32, #tpu.memory_space<vmem>>, vector<1x512x128xf32>
    %122 = vector.shape_cast %121 : vector<1x512x128xf32> to vector<512x128xf32>
    %123 = vector.shape_cast %120 : vector<512x128xf32> to vector<1x512x128xf32>
    tpu.vector_store %arg5[%c0_107, %c0_108, %c0_109], %123 {strides = array<i32>} : memref<1x512x128xf32, #tpu.memory_space<vmem>>, vector<1x512x128xf32>,
    %c0_110 = arith.constant 0 : index
    %c0_111 = arith.constant 0 : index
    %c0_112 = arith.constant 0 : index
    %124 = vector.load %arg5[%c0_110, %c0_111, %c0_112] : memref<1x512x128xf32, #tpu.memory_space<vmem>>, vector<1x512x128xf32>
    %125 = vector.shape_cast %124 : vector<1x512x128xf32> to vector<512x128xf32>
    %c0_113 = arith.constant 0 : index
    %c0_114 = arith.constant 0 : index
    %126 = vector.load %arg4[%c0_113, %c0_114] : memref<1x128xf32, #tpu.memory_space<vmem>>, vector<1x128xf32>
    %127 = vector.broadcast %126 : vector<1x128xf32> to vector<512x128xf32>
    %128 = arith.addf %125, %127 : vector<512x128xf32>
    %c0_115 = arith.constant 0 : index
    %c0_116 = arith.constant 0 : index
    %c0_117 = arith.constant 0 : index
    %129 = vector.load %arg5[%c0_115, %c0_116, %c0_117] : memref<1x512x128xf32, #tpu.memory_space<vmem>>, vector<1x512x128xf32>
    %130 = vector.shape_cast %129 : vector<1x512x128xf32> to vector<512x128xf32>
    %131 = vector.shape_cast %128 : vector<512x128xf32> to vector<1x512x128xf32>
    tpu.vector_store %arg5[%c0_115, %c0_116, %c0_117], %131 {strides = array<i32>} : memref<1x512x128xf32, #tpu.memory_space<vmem>>, vector<1x512x128xf32>,
    %c0_i32_118 = arith.constant 0 : i32
    %132 = arith.cmpi eq, %arg1, %c0_i32_118 : i32
    %133 = arith.extui %132 : i1 to i32
    %c0_i32_119 = arith.constant 0 : i32
    %134 = arith.cmpi ne, %133, %c0_i32_119 : i32
    scf.if %134 {
      %cst_130 = arith.constant 0.000000e+00 : f32
      %150 = vector.broadcast %cst_130 : f32 to vector<1x2x128xf32>
      %c0_131 = arith.constant 0 : index
      %c0_132 = arith.constant 0 : index
      %c0_133 = arith.constant 0 : index
      %151 = vector.load %arg6[%c0_131, %c0_132, %c0_133] : memref<1x2x128xf32, #tpu.memory_space<vmem>>, vector<1x2x128xf32>
      tpu.vector_store %arg6[%c0_131, %c0_132, %c0_133], %150 {strides = array<i32>} : memref<1x2x128xf32, #tpu.memory_space<vmem>>, vector<1x2x128xf32>,
    } else {
    }
    %cst_120 = arith.constant dense<0.000000e+00> : vector<128xf32>
    %135 = vector.multi_reduction <add>, %128, %cst_120 [0] : vector<512x128xf32> to vector<128xf32>
    %136 = vector.shape_cast %135 : vector<128xf32> to vector<1x128xf32>
    %137 = arith.mulf %128, %128 : vector<512x128xf32>
    %cst_121 = arith.constant dense<0.000000e+00> : vector<128xf32>
    %138 = vector.multi_reduction <add>, %137, %cst_121 [0] : vector<512x128xf32> to vector<128xf32>
    %139 = vector.shape_cast %138 : vector<128xf32> to vector<1x128xf32>
    %140 = tpu.concatenate %136, %139 in 0 : vector<1x128xf32>, vector<1x128xf32> -> vector<2x128xf32>
    %c0_122 = arith.constant 0 : index
    %c0_123 = arith.constant 0 : index
    %c0_124 = arith.constant 0 : index
    %141 = vector.load %arg6[%c0_122, %c0_123, %c0_124] : memref<1x2x128xf32, #tpu.memory_space<vmem>>, vector<1x2x128xf32>
    %142 = vector.shape_cast %141 : vector<1x2x128xf32> to vector<2x128xf32>
    %143 = arith.addf %142, %140 : vector<2x128xf32>
    %c0_125 = arith.constant 0 : index
    %c0_126 = arith.constant 0 : index
    %c0_127 = arith.constant 0 : index
    %144 = vector.load %arg6[%c0_125, %c0_126, %c0_127] : memref<1x2x128xf32, #tpu.memory_space<vmem>>, vector<1x2x128xf32>
    %145 = vector.shape_cast %144 : vector<1x2x128xf32> to vector<2x128xf32>
    %146 = vector.shape_cast %143 : vector<2x128xf32> to vector<1x2x128xf32>
    tpu.vector_store %arg6[%c0_125, %c0_126, %c0_127], %146 {strides = array<i32>} : memref<1x2x128xf32, #tpu.memory_space<vmem>>, vector<1x2x128xf32>,
    %c1_i32_128 = arith.constant 1 : i32
    %147 = arith.cmpi eq, %arg1, %c1_i32_128 : i32
    %148 = arith.extui %147 : i1 to i32
    %c0_i32_129 = arith.constant 0 : i32
    %149 = arith.cmpi ne, %148, %c0_i32_129 : i32
    scf.if %149 {
      %c0_130 = arith.constant 0 : index
      %c0_131 = arith.constant 0 : index
      %c0_132 = arith.constant 0 : index
      %150 = vector.load %arg6[%c0_130, %c0_131, %c0_132] : memref<1x2x128xf32, #tpu.memory_space<vmem>>, vector<1x2x128xf32>
      %151 = vector.shape_cast %150 : vector<1x2x128xf32> to vector<2x128xf32>
      %152 = vector.extract_strided_slice %151 {offsets = [0, 0], sizes = [1, 128], strides = [1, 1]} : vector<2x128xf32> to vector<1x128xf32>
      %cst_133 = arith.constant 9.765625E-4 : f32
      %153 = vector.broadcast %cst_133 : f32 to vector<1x128xf32>
      %154 = arith.mulf %152, %153 : vector<1x128xf32>
      %155 = vector.extract_strided_slice %151 {offsets = [1, 0], sizes = [1, 128], strides = [1, 1]} : vector<2x128xf32> to vector<1x128xf32>
      %cst_134 = arith.constant 9.765625E-4 : f32
      %156 = vector.broadcast %cst_134 : f32 to vector<1x128xf32>
      %157 = arith.mulf %155, %156 : vector<1x128xf32>
      %158 = arith.mulf %154, %154 : vector<1x128xf32>
      %159 = arith.subf %157, %158 : vector<1x128xf32>
      %cst_135 = arith.constant 0.000000e+00 : f32
      %160 = vector.broadcast %cst_135 : f32 to vector<1x128xf32>
      %161 = arith.maximumf %159, %160 : vector<1x128xf32>
      %cst_136 = arith.constant 9.99999974E-6 : f32
      %162 = vector.broadcast %cst_136 : f32 to vector<1x128xf32>
      %163 = arith.addf %161, %162 : vector<1x128xf32>
      %164 = math.rsqrt %163 : vector<1x128xf32>
      %165 = tpu.concatenate %154, %164 in 0 : vector<1x128xf32>, vector<1x128xf32> -> vector<2x128xf32>
      %c0_137 = arith.constant 0 : index
      %c0_138 = arith.constant 0 : index
      %c0_139 = arith.constant 0 : index
      %166 = vector.load %arg6[%c0_137, %c0_138, %c0_139] : memref<1x2x128xf32, #tpu.memory_space<vmem>>, vector<1x2x128xf32>
      %167 = vector.shape_cast %166 : vector<1x2x128xf32> to vector<2x128xf32>
      %168 = vector.shape_cast %165 : vector<2x128xf32> to vector<1x2x128xf32>
      tpu.vector_store %arg6[%c0_137, %c0_138, %c0_139], %168 {strides = array<i32>} : memref<1x2x128xf32, #tpu.memory_space<vmem>>, vector<1x2x128xf32>,
    } else {
    }
    return
  }
  func.func @transform_0(%arg0: i32, %arg1: i32) -> (i32, i32, i32, i32) {
    %c0_i32 = arith.constant 0 : i32
    %c0_i32_0 = arith.constant 0 : i32
    %c0_i32_1 = arith.constant 0 : i32
    %c0_i32_2 = arith.constant 0 : i32
    return %arg0, %c0_i32, %c0_i32_0, %c0_i32_1 : i32, i32, i32, i32
  }
  func.func @transform_1(%arg0: i32, %arg1: i32) -> (i32, i32, i32) {
    %c0_i32 = arith.constant 0 : i32
    %c0_i32_0 = arith.constant 0 : i32
    %c0_i32_1 = arith.constant 0 : i32
    %c0_i32_2 = arith.constant 0 : i32
    return %c0_i32, %c0_i32_0, %c0_i32_1 : i32, i32, i32
  }
  func.func @transform_2(%arg0: i32, %arg1: i32) -> (i32, i32) {
    %c0_i32 = arith.constant 0 : i32
    %c0_i32_0 = arith.constant 0 : i32
    %c0_i32_1 = arith.constant 0 : i32
    return %c0_i32, %c0_i32_0 : i32, i32
  }
  func.func @transform_3(%arg0: i32, %arg1: i32) -> (i32, i32, i32) {
    %c0_i32 = arith.constant 0 : i32
    %c0_i32_0 = arith.constant 0 : i32
    return %arg0, %arg1, %c0_i32 : i32, i32, i32
  }
  func.func @transform_4(%arg0: i32, %arg1: i32) -> (i32, i32, i32) {
    %c0_i32 = arith.constant 0 : i32
    %c0_i32_0 = arith.constant 0 : i32
    %c0_i32_1 = arith.constant 0 : i32
    return %arg0, %c0_i32, %c0_i32_0 : i32, i32, i32
  }
}

</mosaic_0001>

<bundles_post_ra>
// kernel: tpu_custom_call.1
= control target key start
LH: loop header
LB: loop body
LE: loop exit
PB: predicated region body
PF: predicated region fallthrough
CT: control target
= control target key end

     0   :  { %s17169_s0 = inlined_call_operand.vmem [shape: bf16[2,34,34,4], index: 0, kind: input, shape index: {}]   ;;  %s17170_s1 = inlined_call_operand.vmem [shape: bf16[9,4,128], index: 1, kind: input, shape index: {}]   ;;  %s17171_s2 = inlined_call_operand.vmem [shape: f32[1,128], index: 2, kind: input, shape index: {}]   ;;  %s17172_s3 = inlined_call_operand.hbm [shape: f32[2,1024,128], index: 3, kind: output, shape index: {0}]   ;;  %s17173_s4 = inlined_call_operand.hbm [shape: f32[2,2,128], index: 4, kind: output, shape index: {1}]  }
   0x1   :  { %17204 = sst [smem:[#allocation24_spill]] %s17169_s0 }
   0x2   :  { %17205 = sst [smem:[#allocation25_spill]] %s17170_s1 }
   0x3   :  { %17206 = sst [smem:[#allocation26_spill]] %s17171_s2 }
   0x4   :  { %17207 = sst [smem:[#allocation27_spill]] %s17172_s3 }
   0x5   :  { %10 = vsyncpa [#allocation3], 0 }
   0x6   :  { %12 = vsyncpa [#allocation3 + $0x1], 0 }
   0x7   :  { %13 = vsyncpa [#allocation5], 0 }
   0x8   :  { %15 = vsyncpa [#allocation5 + $0x1], 0  ;;  %s13670_s15 = smov 0   ;;  %s13672_s16 = smov 0  }
   0x9   :  { %s13674_s17 = smov 0   ;;  %s13676_s18 = smov 0  }
   0xa   :  { %s13678_s19 = smov 0   ;;  %s13680_s20 = smov 0  }
   0xb   :  { %s13682_s21 = smov 0   ;;  %s13684_s22 = smov 0  }
   0xc   :  { %s13686_s23 = smov 0   ;;  %s13688_s24 = smov 0  }
   0xd   :  { %s13690_s25 = smov 0  }
   0xe LB: > { %17208 = sst [smem:[#allocation8_spill]] %s13630_s23  ;;  %s10635_s26 = sadd.s32 4294967295, %s13638_s25   ;;  %s13638_s25 = sphi %s13690_s25, %s21_s25   ;;  %s13634_s24 = sphi %s13688_s24, %s17258_s24   ;;  %s13630_s23 = sphi %s13686_s23, %s17257_s23   ;;  %s13626_s22 = sphi %s13684_s22, %s17256_s22   ;;  %s13622_s21 = sphi %s13682_s21, %s17255_s21   ;;  %s13618_s20 = sphi %s13680_s20, %s17264_s20   ;;  %s13614_s19 = sphi %s13678_s19, %s17263_s19   ;;  %s13610_s18 = sphi %s13676_s18, %s17262_s18   ;;  %s13606_s17 = sphi %s13674_s17, %s17261_s17   ;;  %s13602_s16 = sphi %s13672_s16, %s17260_s16   ;;  %s13598_s15 = sphi %s13670_s15, %s17259_s15  }
   0xf   : > { %17209 = sst [smem:[#allocation9_spill]] %s13634_s24  ;;  %s10636_s27 = sadd.s32 4294967294, %s13638_s25  }
  0x10   : > { %s30_s28 = sadd.s32 1, %s13630_s23  ;;  %s33_s29 = sadd.s32 1, %s13634_s24 }
  0x11   : > { %p31_p0 = scmp.ge.s32.totalorder %s30_s28, 2  ;;  %s110_s30 = sadd.s32 1, %s13618_s20 }
  0x12   : > { %p120_p1 = scmp.ne.s32.totalorder %s13618_s20, %s13614_s19  ;;  %p13732_p2 = scmp.eq.s32.totalorder %s10635_s26, 3 }
  0x13   : > { %s17266_s28 = smov (%p31_p0, %s30_s28), 0  ;;  %s17268_s29 = smov (!%p31_p0, %s33_s29), %s13634_s24 }
  0x14   : > { %17211 = sst [smem:[#allocation10_spill]] %s17266_s28  ;;  %s106_s6 = ssub.s32 %s13630_s23, %s17266_s28 }
  0x15   : > { %p13743_p3 = por %p13732_p2, %p120_p1  ;;  %p35_p4 = scmp.ge.s32.totalorder %s17268_s29, 2 }
  0x16   : > { %p126_p5 = scmp.ne.s32.totalorder %s13614_s19, %s13610_s18  ;;  %p13749_p6 = scmp.eq.s32.totalorder %s10636_s27, 3 }
  0x17   : > { %s136_s9 = sadd.s32 1, %s13606_s17  ;;  %s17270_s29 = smov (%p35_p4, %s17268_s29), 0 }
  0x18   : > { %17214 = sst [smem:[#allocation11_spill]] %s17270_s29  ;;  %p13758_p7 = por %p13749_p6, %p126_p5 }
  0x19   : > { %p146_p8 = scmp.ne.s32.totalorder %s13606_s17, %s13602_s16  ;;  %s105_s11 = ssub.s32 %s13634_s24, %s17270_s29 }
  0x1a   : > { %p152_p9 = scmp.ne.s32.totalorder %s13602_s16, %s13598_s15  ;;  %s107_s12 = sor.u32 %s106_s6, %s105_s11 }
  0x1b   : > { %p134_p10 = scmp.eq.s32.totalorder %s105_s11, 0  ;;  %p108_p11 = scmp.eq.s32.totalorder %s107_s12, 0 }
  0x1c   : > { %p13770_p12 = por %p146_p8, %p13732_p2  ;;  %p13782_p13 = por %p152_p9, %p13749_p6 }
  0x1d   : > { %s13775_s14 = scalar_select %p134_p10, %s13606_s17, %s136_s9  }
  0x1e   : > { %s13778_s26 = scalar_select %p108_p11, %s13618_s20, %s110_s30  }
  0x1f   : > { %p10639_p0 = scmp.ge.s32.totalorder %s13638_s25, 1  ;;  %p185_p1 = scmp.lt.s32.totalorder %s13638_s25, 5 }
  0x21   : > { %p186_p4 = pnand %p10639_p0, %p185_p1 }
  0x23   : > { %189 = sbr.rel (%p186_p4) target bundleno = 1096 (0x448), region = 32 }
  0x2a   : > { %s17175_s5 = sand.u32 1, %s13602_s16   ;;  %s17218_s1 = sld [smem:[#allocation25_spill]]  ;;  %vm549_vm0 = vcmask 1041408   ;;  %vm452_vm1 = vcmask 31744   ;;  %vm986_vm2 = vsmask.f32 3328 }
  0x2b   : > { %p216_p2 = scmp.lt.s32.totalorder %s13626_s22, 1  ;;  %s13795_s30 = sshll.u32 %s17175_s5, 1  ;;  %vm987_vm3 = vsmask.f32 7440  ;;  %vm2531_vm5 = vcmask 1042432   ;;  %vm2532_vm6 = vcmask 1046532  }
  0x2c   : > { %s11741_s28 = smul.u32 320, %s13622_s21  ;;  %s17219_s0 = sld [smem:[#allocation24_spill]]  ;;  %vm13838_vm4 = vmor %vm986_vm2, %vm987_vm3 }
  0x2d   : > { %s217_s6 = scalar_select %p216_p2, %s13626_s22, 1  ;;  %vm13988_vm7 = vmor %vm2531_vm5, %vm2532_vm6 }
  0x2e   : > { %s17227_s2 = sld [smem:[#allocation26_spill]]  ;;  %p11731_p5 = scmp.ne.s32.totalorder %s13622_s21, 0 }
  0x2f   : > { %s13285_s8 = smul.u32 680, %s217_s6 }
  0x30   : > { %v291_v0 = vld [vmem:[%s17218_s1] sm:$0x3]  ;;  %v10710_v2 = vld [vmem:[%s17218_s1 + $0x2] sm:$0x3]  ;;  %v11067_v3 = vld [vmem:[%s17218_s1 + $0x8] sm:$0x3] }
  0x31   : > { %13275 = vmatprep.subr.msk.bf16.mxu1 %vm549_vm0, %v291_v0  ;;  %v551_v1 = vsel %vm549_vm0, %v291_v0, 0  ;;  %13279 = vmatprep.subr.msk.bf16.mxu0 %vm549_vm0, %v11067_v3  ;;  %v13809_v4 = vsel %vm549_vm0, %v11067_v3, 0  ;;  %v11228_v5 = vld [vmem:[%s17218_s1 + $0xa] sm:$0x3]  ;;  %v1888_v8 = vsel %vm549_vm0, %v10710_v2, 0 }
  0x32   : > { %12040 = vmatpush3.bf16.msra.mxu1 %v551_v1  ;;  %12304 = vmatpush3.bf16.msra.mxu0 %v13809_v4  ;;  %s220_s12 = scalar_lea.vmem %s17219_s0, %s13285_s8  ;;  %v6255_v39 = vsel %vm549_vm0, %v11228_v5, 0  ;;  %v13861_v61 = vld [vmem:[%s17218_s1 + $0xc] sm:$0x3] }
  0x33   : > { %13276 = vmatprep.subr.msk.bf16.mxu1 %vm549_vm0, %v10710_v2  ;;  %13281 = vmatprep.subr.msk.bf16.mxu0 %vm549_vm0, %v11228_v5  ;;  %s13820_s24 = scalar_lea.vmem %s220_s12, %s11741_s28  ;;  %s16864_s28 = scalar_lea.vmem [#allocation4], %s13795_s30 }
  0x34   : > { %v13389_v6 = vld [vmem:[%s13820_s24] sm:$0xff]   ;;  %v13390_v7 = vld [vmem:[%s13820_s24 + $0x8] sm:$0xff]   ;;  %v13391_v9 = vld [vmem:[%s13820_s24 + $0x14] sm:$0xff]  }
  0x35   : > { %12041 = vmatprep.mubr.msk.bf16.mxu1 %vm452_vm1, %v13389_v6  ;;  %v10987_v10 = vld [vmem:[%s13820_s24 + $0x14] sm:$0xf]  ;;  %v10988_v11 = vld [vmem:[%s13820_s24 + $0x18] sm:$0xf]  ;;  %v10989_v12 = vld [vmem:[%s13820_s24 + $0x1c] sm:$0xf] }
  0x36   : > { %12042 = vmatmul.mubr.msk.bf16.vlgmr.msra.gmra.mrb[0].mxu1 %vm452_vm1, %v13390_v7  ;;  %v13392_v13 = vld [vmem:[%s13820_s24 + $0x1c] sm:$0xff]   ;;  %v4311_v14 = vshrl.u32 %v10987_v10, 16  ;;  %v4314_v15 = vshll.u32 %v10987_v10, 16  ;;  %v4320_v16 = vshll.u32 %v10988_v11, 16  ;;  %v4324_v17 = vshrl.u32 %v10988_v11, 16  ;;  %v13393_v35 = vld [vmem:[%s13820_s24 + $0x28] sm:$0xff]  }
  0x37   : > { %12106 = vmatpush3.bf16.msra.mxu1 %v1888_v8  ;;  %12045 = vmatprep.mubr.msk.bf16.mxu1 %vm452_vm1, %v13391_v9  ;;  %v10990_v18 = vld [vmem:[%s13820_s24 + $0x20] sm:$0xf]  ;;  %v4330_v19 = vshll.u32 %v10989_v12, 16  ;;  %v4334_v20 = vshrl.u32 %v10989_v12, 16  ;;  %v10991_v21 = vld [vmem:[%s13820_s24 + $0x24] sm:$0x1] }
  0x38   : > { %v4340_v22 = vshll.u32 %v10990_v18, 16  ;;  %v4344_v23 = vshrl.u32 %v10990_v18, 16  ;;  %v4313_v24 = vrot.slane %v4311_v14, 4  ;;  %v4316_v25 = vrot.slane %v4314_v15, 5  ;;  %v10992_v40 = vld [vmem:[%s13820_s24 + $0x28] sm:$0xf] }
  0x39   : > { %v4322_v26 = vrot.slane %v4320_v16, 5  ;;  %v4326_v27 = vrot.slane %v4324_v17, 4  ;;  %v4332_v28 = vrot.slane %v4330_v19, 5  ;;  %v4336_v29 = vrot.slane %v4334_v20, 4  ;;  %v10993_v41 = vld [vmem:[%s13820_s24 + $0x2c] sm:$0xf] }
  0x3a   : > { %v4342_v30 = vrot.slane %v4340_v22, 5  ;;  %v4346_v31 = vrot.slane %v4344_v23, 4  ;;  %v4317_v32 = vor.u32 %v4316_v25, %v4313_v24  ;;  %v4350_v34 = vshll.u32 %v10991_v21, 16  ;;  %v10994_v45 = vld [vmem:[%s13820_s24 + $0x30] sm:$0xf]  ;;  %v13395_v8 = vld [vmem:[%s13820_s24 + $0x3c] sm:$0xff]  }
  0x3b   : > { %v4327_v33 = vor.u32 %v4326_v27, %v4322_v26  ;;  %v4337_v37 = vor.u32 %v4336_v29, %v4332_v28  ;;  %v4355_v46 = vshrl.u32 %v10992_v40, 16  ;;  %v4358_v49 = vshll.u32 %v10992_v40, 16  ;;  %v10995_v51 = vld [vmem:[%s13820_s24 + $0x34] sm:$0xf]  ;;  %v10996_v56 = vld [vmem:[%s13820_s24 + $0x38] sm:$0x1] }
  0x3c   : > { %v4347_v38 = vor.u32 %v4346_v31, %v4342_v30  ;;  %v4318_v42 = vrot.slane %v4317_v32, 4  ;;  %v4352_v44 = vrot.slane %v4350_v34, 5  ;;  %v4364_v50 = vshll.u32 %v10993_v41, 16  ;;  %v13394_v63 = vld [vmem:[%s13820_s24 + $0x30] sm:$0xff]   ;;  %v10997_v9 = vld [vmem:[%s13820_s24 + $0x3c] sm:$0xf] }
  0x3d   : > { %v4328_v43 = vrot.slane %v4327_v33, 4  ;;  %v4338_v47 = vrot.slane %v4337_v37, 4  ;;  %v4357_v54 = vrot.slane %v4355_v46, 4  ;;  %v4368_v55 = vshrl.u32 %v10993_v41, 16  ;;  %v10999_v18 = vld [vmem:[%s13820_s24 + $0x44] sm:$0xf] }
  0x3e   : > { %12046 = vmatmul.mubr.msk.bf16.gmra.mrb[4].mxu1 %vm452_vm1, %v13392_v13  ;;  %v4348_v48 = vrot.slane %v4347_v38, 4  ;;  %v4323_v52 = vsel %vm13838_vm4, %v4318_v42, %v4322_v26  ;;  %v4360_v60 = vrot.slane %v4358_v49, 5  ;;  %v4366_v0 = vrot.slane %v4364_v50, 5  ;;  %v10998_v13 = vld [vmem:[%s13820_s24 + $0x40] sm:$0xf]  ;;  %v13396_v37 = vld [vmem:[%s13820_s24 + $0x44] sm:$0xff]  }
  0x3f   : > { %12049 = vmatprep.mubr.msk.bf16.mxu1 %vm452_vm1, %v13393_v35  ;;  %v4333_v53 = vsel %vm13838_vm4, %v4328_v43, %v4332_v28  ;;  %v4343_v58 = vsel %vm13838_vm4, %v4338_v47, %v4342_v30  ;;  %v4370_v1 = vrot.slane %v4368_v55, 4  ;;  %v4374_v2 = vshll.u32 %v10994_v45, 16  ;;  %v11000_v23 = vld [vmem:[%s13820_s24 + $0x48] sm:$0xf]  ;;  %v11001_v42 = vld [vmem:[%s13820_s24 + $0x4c] sm:$0x1] }
  0x40   : > { %v11068_v57 = vcombine.low %v4323_v52, %v4333_v53  ;;  %v4353_v59 = vsel %vm13838_vm4, %v4348_v48, %v4352_v44  ;;  %v4361_v3 = vor.u32 %v4360_v60, %v4357_v54  ;;  %v4378_v5 = vshrl.u32 %v10994_v45, 16  ;;  %v13397_v47 = vld [vmem:[%s13820_s24 + $0x50] sm:$0xff]  }
  0x41   : > { %v11069_v62 = vcombine.low %v4343_v58, %v4353_v59  ;;  %v4384_v6 = vshll.u32 %v10995_v51, 16  ;;  %v4388_v7 = vshrl.u32 %v10995_v51, 16  ;;  %v4371_v10 = vor.u32 %v4370_v1, %v4366_v0  ;;  %v11002_v48 = vld [vmem:[%s13820_s24 + $0x50] sm:$0xf]  ;;  %v11003_v53 = vld [vmem:[%s13820_s24 + $0x54] sm:$0xf] }
  0x42   : > { %12305 = vmatprep.mubr.msk.bf16.mxu0 %vm452_vm1, %v11068_v57  ;;  %v4376_v11 = vrot.slane %v4374_v2, 5  ;;  %v4394_v12 = vshll.u32 %v10996_v56, 16  ;;  %v4362_v14 = vrot.slane %v4361_v3, 4  ;;  %v4380_v15 = vrot.slane %v4378_v5, 4  ;;  %v11004_v58 = vld [vmem:[%s13820_s24 + $0x58] sm:$0xf] }
  0x43   : > { %12306 = vmatmul.mubr.msk.bf16.vlgmr.msra.gmra.mrb[0].mxu0 %vm452_vm1, %v11069_v62  ;;  %v4386_v16 = vrot.slane %v4384_v6, 5  ;;  %v4390_v17 = vrot.slane %v4388_v7, 4  ;;  %v4372_v19 = vrot.slane %v4371_v10, 4  ;;  %v4399_v21 = vshrl.u32 %v10997_v9, 16 }
  0x44   : > { %12370 = vmatpush3.bf16.msra.mxu0 %v6255_v39  ;;  %v4396_v20 = vrot.slane %v4394_v12, 5  ;;  %v4402_v22 = vshll.u32 %v10997_v9, 16  ;;  %v4367_v24 = vsel %vm13838_vm4, %v4362_v14, %v4366_v0  ;;  %v4381_v25 = vor.u32 %v4380_v15, %v4376_v11  ;;  %v11005_v9 = vld [vmem:[%s13820_s24 + $0x5c] sm:$0xf] }
  0x45   : > { %13282 = vmatprep.subr.msk.bf16.mxu0 %vm549_vm0, %v13861_v61  ;;  %v4391_v26 = vor.u32 %v4390_v17, %v4386_v16  ;;  %v4408_v27 = vshll.u32 %v10998_v13, 16  ;;  %v4377_v28 = vsel %vm13838_vm4, %v4372_v19, %v4376_v11  ;;  %v4401_v29 = vrot.slane %v4399_v21, 4  ;;  %v11006_v19 = vld [vmem:[%s13820_s24 + $0x60] sm:$0x1] }
  0x46   : > { %12050 = vmatmul.mubr.msk.bf16.gmra.mrb[8].mxu1 %vm452_vm1, %v13394_v63  ;;  %v4404_v30 = vrot.slane %v4402_v22, 5  ;;  %v4412_v31 = vshrl.u32 %v10998_v13, 16  ;;  %v11070_v32 = vcombine.low %v4367_v24, %v4377_v28  ;;  %v4382_v33 = vrot.slane %v4381_v25, 4  ;;  %v13398_v13 = vld [vmem:[%s13820_s24 + $0x58] sm:$0xff]   ;;  %v11007_v25 = vld [vmem:[%s13820_s24 + $0x64] sm:$0xf] }
  0x47   : > { %12053 = vmatprep.mubr.msk.bf16.mxu1 %vm452_vm1, %v13395_v8  ;;  %v4392_v34 = vrot.slane %v4391_v26, 4  ;;  %v4410_v35 = vrot.slane %v4408_v27, 5  ;;  %v4418_v40 = vshll.u32 %v10999_v18, 16  ;;  %v4422_v41 = vshrl.u32 %v10999_v18, 16  ;;  %v11008_v26 = vld [vmem:[%s13820_s24 + $0x68] sm:$0xf] }
  0x48   : > { %v4405_v38 = vor.u32 %v4404_v30, %v4401_v29  ;;  %v4414_v39 = vrot.slane %v4412_v31, 4  ;;  %12309 = vmatprep.mubr.msk.bf16.mxu0 %vm452_vm1, %v11070_v32  ;;  %v4387_v43 = vsel %vm13838_vm4, %v4382_v33, %v4386_v16  ;;  %v4428_v45 = vshll.u32 %v11000_v23, 16 }
  0x49   : > { %v4397_v44 = vsel %vm13838_vm4, %v4392_v34, %v4396_v20  ;;  %v4432_v46 = vshrl.u32 %v11000_v23, 16  ;;  %v4420_v52 = vrot.slane %v4418_v40, 5  ;;  %v4424_v54 = vrot.slane %v4422_v41, 4  ;;  %v13399_v20 = vld [vmem:[%s13820_s24 + $0x64] sm:$0xff]  }
  0x4a   : > { %v11071_v49 = vcombine.low %v4387_v43, %v4397_v44  ;;  %v4406_v50 = vrot.slane %v4405_v38, 4  ;;  %v4415_v51 = vor.u32 %v4414_v39, %v4410_v35  ;;  %v4430_v55 = vrot.slane %v4428_v45, 5  ;;  %v11009_v43 = vld [vmem:[%s13820_s24 + $0x6c] sm:$0xf]  ;;  %v11010_v45 = vld [vmem:[%s13820_s24 + $0x70] sm:$0xf] }
  0x4b   : > { %v4434_v56 = vrot.slane %v4432_v46, 4  ;;  %v4438_v57 = vshll.u32 %v11001_v42, 16  ;;  %v4443_v62 = vshrl.u32 %v11002_v48, 16  ;;  %v4446_v63 = vshll.u32 %v11002_v48, 16 }
  0x4c   : > { %12310 = vmatmul.mubr.msk.bf16.gmra.mrb[4].mxu0 %vm452_vm1, %v11071_v49  ;;  %v4411_v59 = vsel %vm13838_vm4, %v4406_v50, %v4410_v35  ;;  %v4416_v60 = vrot.slane %v4415_v51, 4  ;;  %v4425_v0 = vor.u32 %v4424_v54, %v4420_v52  ;;  %v4452_v3 = vshll.u32 %v11003_v53, 16  ;;  %v11011_v50 = vld [vmem:[%s13820_s24 + $0x74] sm:$0x1]  ;;  %v13400_v54 = vld [vmem:[%s13820_s24 + $0x6c] sm:$0xff]  }
  0x4d   : > { %v4435_v1 = vor.u32 %v4434_v56, %v4430_v55  ;;  %v4440_v2 = vrot.slane %v4438_v57, 5  ;;  %v4445_v6 = vrot.slane %v4443_v62, 4  ;;  %v4448_v7 = vrot.slane %v4446_v63, 5  ;;  %v11012_v56 = vld [vmem:[%s13820_s24 + $0x78] sm:$0xf] }
  0x4e   : > { %12054 = vmatmul.mubr.msk.bf16.gmra.mrb[12].mxu1 %vm452_vm1, %v13396_v37  ;;  %v4421_v5 = vsel %vm13838_vm4, %v4416_v60, %v4420_v52  ;;  %v4456_v8 = vshrl.u32 %v11003_v53, 16  ;;  %v4426_v11 = vrot.slane %v4425_v0, 4  ;;  %v4454_v14 = vrot.slane %v4452_v3, 5  ;;  %v13401_v62 = vld [vmem:[%s13820_s24 + $0x78] sm:$0xff]  }
  0x4f   : > { %12057 = vmatprep.mubr.msk.bf16.mxu1 %vm452_vm1, %v13397_v47  ;;  %v11072_v10 = vcombine.low %v4411_v59, %v4421_v5  ;;  %v4436_v12 = vrot.slane %v4435_v1, 4  ;;  %v4449_v15 = vor.u32 %v4448_v7, %v4445_v6  ;;  %v4462_v17 = vshll.u32 %v11004_v58, 16  ;;  %v11013_v63 = vld [vmem:[%s13820_s24 + $0x7c] sm:$0xf] }
  0x50   : > { %v4458_v16 = vrot.slane %v4456_v8, 4  ;;  %v4466_v18 = vshrl.u32 %v11004_v58, 16  ;;  %v4431_v21 = vsel %vm13838_vm4, %v4426_v11, %v4430_v55  ;;  %v4472_v23 = vshll.u32 %v11005_v9, 16 }
  0x51   : > { %12313 = vmatprep.mubr.msk.bf16.mxu0 %vm452_vm1, %v11072_v10  ;;  %v4441_v22 = vsel %vm13838_vm4, %v4436_v12, %v4440_v2  ;;  %v4476_v24 = vshrl.u32 %v11005_v9, 16  ;;  %v4450_v28 = vrot.slane %v4449_v15, 4  ;;  %v4464_v30 = vrot.slane %v4462_v17, 5 }
  0x52   : > { %v11073_v27 = vcombine.low %v4431_v21, %v4441_v22  ;;  %v4459_v29 = vor.u32 %v4458_v16, %v4454_v14  ;;  %v4468_v31 = vrot.slane %v4466_v18, 4  ;;  %v4474_v32 = vrot.slane %v4472_v23, 5  ;;  %v11015_v22 = vld [vmem:[%s13820_s24 + $0x84] sm:$0xf] }
  0x53   : > { %v4478_v33 = vrot.slane %v4476_v24, 4  ;;  %v4482_v34 = vshll.u32 %v11006_v19, 16  ;;  %v4455_v35 = vsel %vm13838_vm4, %v4450_v28, %v4454_v14  ;;  %v4487_v38 = vshrl.u32 %v11007_v25, 16 }
  0x54   : > { %12314 = vmatmul.mubr.msk.bf16.gmra.mrb[8].mxu0 %vm452_vm1, %v11073_v27  ;;  %v4460_v37 = vrot.slane %v4459_v29, 4  ;;  %v4490_v39 = vshll.u32 %v11007_v25, 16  ;;  %v4469_v40 = vor.u32 %v4468_v31, %v4464_v30  ;;  %v4496_v44 = vshll.u32 %v11008_v26, 16  ;;  %v11016_v27 = vld [vmem:[%s13820_s24 + $0x88] sm:$0x1]  ;;  %v13402_v31 = vld [vmem:[%s13820_s24 + $0x80] sm:$0xff]  }
  0x55   : > { %v4479_v41 = vor.u32 %v4478_v33, %v4474_v32  ;;  %v4484_v42 = vrot.slane %v4482_v34, 5  ;;  %v4489_v47 = vrot.slane %v4487_v38, 4  ;;  %v4500_v49 = vshrl.u32 %v11008_v26, 16  ;;  %v11017_v33 = vld [vmem:[%s13820_s24 + $0x8c] sm:$0xf] }
  0x56   : > { %12058 = vmatmul.mubr.msk.bf16.gmra.mrb[16].mxu1 %vm452_vm1, %v13398_v13  ;;  %v4465_v46 = vsel %vm13838_vm4, %v4460_v37, %v4464_v30  ;;  %v4492_v48 = vrot.slane %v4490_v39, 5  ;;  %v4470_v52 = vrot.slane %v4469_v40, 4  ;;  %v4498_v55 = vrot.slane %v4496_v44, 5  ;;  %v13403_v39 = vld [vmem:[%s13820_s24 + $0x8c] sm:$0xff]  }
  0x57   : > { %12061 = vmatprep.mubr.msk.bf16.mxu1 %vm452_vm1, %v13399_v20  ;;  %v11074_v51 = vcombine.low %v4455_v35, %v4465_v46  ;;  %v4480_v53 = vrot.slane %v4479_v41, 4  ;;  %v4502_v58 = vrot.slane %v4500_v49, 4  ;;  %v4506_v59 = vshll.u32 %v11009_v43, 16  ;;  %v11014_v20 = vld [vmem:[%s13820_s24 + $0x80] sm:$0xf] }
  0x58   : > { %v4493_v57 = vor.u32 %v4492_v48, %v4489_v47  ;;  %v4510_v60 = vshrl.u32 %v11009_v43, 16  ;;  %v4475_v0 = vsel %vm13838_vm4, %v4470_v52, %v4474_v32  ;;  %v4516_v2 = vshll.u32 %v11010_v45, 16  ;;  %v11018_v48 = vld [vmem:[%s13820_s24 + $0x90] sm:$0xf] }
  0x59   : > { %12317 = vmatprep.mubr.msk.bf16.mxu0 %vm452_vm1, %v11074_v51  ;;  %v4485_v1 = vsel %vm13838_vm4, %v4480_v53, %v4484_v42  ;;  %v4520_v3 = vshrl.u32 %v11010_v45, 16  ;;  %v4503_v7 = vor.u32 %v4502_v58, %v4498_v55  ;;  %v4508_v8 = vrot.slane %v4506_v59, 5 }
  0x5a   : > { %v11075_v5 = vcombine.low %v4475_v0, %v4485_v1  ;;  %v4494_v6 = vrot.slane %v4493_v57, 4  ;;  %v4512_v9 = vrot.slane %v4510_v60, 4  ;;  %v4518_v10 = vrot.slane %v4516_v2, 5 }
  0x5b   : > { %v4522_v11 = vrot.slane %v4520_v3, 4  ;;  %v4526_v12 = vshll.u32 %v11011_v50, 16  ;;  %v4504_v14 = vrot.slane %v4503_v7, 4  ;;  %v4531_v15 = vshrl.u32 %v11012_v56, 16 }
  0x5c   : > { %12318 = vmatmul.mubr.msk.bf16.gmra.mrb[12].mxu0 %vm452_vm1, %v11075_v5  ;;  %v4499_v13 = vsel %vm13838_vm4, %v4494_v6, %v4498_v55  ;;  %v4534_v16 = vshll.u32 %v11012_v56, 16  ;;  %v4513_v17 = vor.u32 %v4512_v9, %v4508_v8  ;;  %v4540_v21 = vshll.u32 %v11013_v63, 16  ;;  %v11019_v55 = vld [vmem:[%s13820_s24 + $0x94] sm:$0xf]  ;;  %v11021_v5 = vld [vmem:[%s13820_s24 + $0x9c] sm:$0x1] }
  0x5d   : > { %v4523_v18 = vor.u32 %v4522_v11, %v4518_v10  ;;  %v4528_v19 = vrot.slane %v4526_v12, 5  ;;  %v4509_v23 = vsel %vm13838_vm4, %v4504_v14, %v4508_v8  ;;  %v4533_v24 = vrot.slane %v4531_v15, 4 }
  0x5e   : > { %12062 = vmatmul.mubr.msk.bf16.gmra.mrb[20].mxu1 %vm452_vm1, %v13400_v54  ;;  %v4536_v25 = vrot.slane %v4534_v16, 5  ;;  %v4544_v26 = vshrl.u32 %v11013_v63, 16  ;;  %v11076_v28 = vcombine.low %v4499_v13, %v4509_v23  ;;  %v4514_v29 = vrot.slane %v4513_v17, 4  ;;  %v11020_v63 = vld [vmem:[%s13820_s24 + $0x98] sm:$0xf] }
  0x5f   : > { %12065 = vmatprep.mubr.msk.bf16.mxu1 %vm452_vm1, %v13401_v62  ;;  %v4524_v30 = vrot.slane %v4523_v18, 4  ;;  %v4542_v32 = vrot.slane %v4540_v21, 5  ;;  %v4550_v37 = vshll.u32 %v11014_v20, 16  ;;  %v4554_v38 = vshrl.u32 %v11014_v20, 16  ;;  %v11022_v20 = vld [vmem:[%s13820_s24 + $0xa0] sm:$0xf] }
  0x60   : > { %v4537_v34 = vor.u32 %v4536_v25, %v4533_v24  ;;  %v4546_v35 = vrot.slane %v4544_v26, 4  ;;  %12321 = vmatprep.mubr.msk.bf16.mxu0 %vm452_vm1, %v11076_v28  ;;  %v4519_v40 = vsel %vm13838_vm4, %v4514_v29, %v4518_v10  ;;  %v4560_v42 = vshll.u32 %v11015_v22, 16  ;;  %v13404_v10 = vld [vmem:[%s13820_s24 + $0x94] sm:$0xff]   ;;  %v11023_v25 = vld [vmem:[%s13820_s24 + $0xa4] sm:$0xf] }
  0x61   : > { %v4529_v41 = vsel %vm13838_vm4, %v4524_v30, %v4528_v19  ;;  %v4564_v43 = vshrl.u32 %v11015_v22, 16  ;;  %v4552_v47 = vrot.slane %v4550_v37, 5  ;;  %v4556_v49 = vrot.slane %v4554_v38, 4  ;;  %v13405_v19 = vld [vmem:[%s13820_s24 + $0xa0] sm:$0xff]   ;;  %v11024_v30 = vld [vmem:[%s13820_s24 + $0xa8] sm:$0xf] }
  0x62   : > { %v11077_v44 = vcombine.low %v4519_v40, %v4529_v41  ;;  %v4538_v45 = vrot.slane %v4537_v34, 4  ;;  %v4547_v46 = vor.u32 %v4546_v35, %v4542_v32  ;;  %v4562_v50 = vrot.slane %v4560_v42, 5  ;;  %v11025_v35 = vld [vmem:[%s13820_s24 + $0xac] sm:$0xf] }
  0x63   : > { %v4566_v51 = vrot.slane %v4564_v43, 4  ;;  %v4570_v52 = vshll.u32 %v11016_v27, 16  ;;  %v4575_v56 = vshrl.u32 %v11017_v33, 16  ;;  %v4578_v57 = vshll.u32 %v11017_v33, 16 }
  0x64   : > { %12322 = vmatmul.mubr.msk.bf16.gmra.mrb[16].mxu0 %vm452_vm1, %v11077_v44  ;;  %v4543_v53 = vsel %vm13838_vm4, %v4538_v45, %v4542_v32  ;;  %v4548_v54 = vrot.slane %v4547_v46, 4  ;;  %v4557_v58 = vor.u32 %v4556_v49, %v4552_v47  ;;  %v4584_v62 = vshll.u32 %v11018_v48, 16 }
  0x65   : > { %v4567_v59 = vor.u32 %v4566_v51, %v4562_v50  ;;  %v4572_v60 = vrot.slane %v4570_v52, 5  ;;  %v4577_v1 = vrot.slane %v4575_v56, 4  ;;  %v4580_v2 = vrot.slane %v4578_v57, 5  ;;  %v11132_v56 = vld [vmem:[%s13820_s24 + $0x14] sm:$0xe] }
  0x66   : > { %12066 = vmatmul.mubr.msk.bf16.gmra.mrb[24].mxu1 %vm452_vm1, %v13402_v31  ;;  %v4553_v0 = vsel %vm13838_vm4, %v4548_v54, %v4552_v47  ;;  %v4588_v3 = vshrl.u32 %v11018_v48, 16  ;;  %v4558_v7 = vrot.slane %v4557_v58, 4  ;;  %v4586_v9 = vrot.slane %v4584_v62, 5  ;;  %v13406_v48 = vld [vmem:[%s13820_s24 + $0xa8] sm:$0xff]   ;;  %v11133_v62 = vld [vmem:[%s13820_s24 + $0x18] sm:$0xf] }
  0x67   : > { %12069 = vmatprep.mubr.msk.bf16.mxu1 %vm452_vm1, %v13403_v39  ;;  %v11078_v6 = vcombine.low %v4543_v53, %v4553_v0  ;;  %v4568_v8 = vrot.slane %v4567_v59, 4  ;;  %v4581_v11 = vor.u32 %v4580_v2, %v4577_v1  ;;  %v4594_v13 = vshll.u32 %v11019_v55, 16 }
  0x68   : > { %v4590_v12 = vrot.slane %v4588_v3, 4  ;;  %v4598_v14 = vshrl.u32 %v11019_v55, 16  ;;  %v4563_v15 = vsel %vm13838_vm4, %v4558_v7, %v4562_v50  ;;  %v4604_v17 = vshll.u32 %v11020_v63, 16  ;;  %v11026_v50 = vld [vmem:[%s13820_s24 + $0xb0] sm:$0x1]  ;;  %v13407_v55 = vld [vmem:[%s13820_s24 + $0xb4] sm:$0xff]  }
  0x69   : > { %12325 = vmatprep.mubr.msk.bf16.mxu0 %vm452_vm1, %v11078_v6  ;;  %v4573_v16 = vsel %vm13838_vm4, %v4568_v8, %v4572_v60  ;;  %v4608_v18 = vshrl.u32 %v11020_v63, 16  ;;  %v4582_v22 = vrot.slane %v4581_v11, 4  ;;  %v4596_v24 = vrot.slane %v4594_v13, 5  ;;  %v11134_v63 = vld [vmem:[%s13820_s24 + $0x1c] sm:$0xf] }
  0x6a   : > { %v11079_v21 = vcombine.low %v4563_v15, %v4573_v16  ;;  %v4591_v23 = vor.u32 %v4590_v12, %v4586_v9  ;;  %v4600_v26 = vrot.slane %v4598_v14, 4  ;;  %v4606_v27 = vrot.slane %v4604_v17, 5  ;;  %v11136_v11 = vld [vmem:[%s13820_s24 + $0x24] sm:$0x1] }
  0x6b   : > { %v4610_v28 = vrot.slane %v4608_v18, 4  ;;  %v4614_v29 = vshll.u32 %v11021_v5, 16  ;;  %v4587_v31 = vsel %vm13838_vm4, %v4582_v22, %v4586_v9  ;;  %v4619_v33 = vshrl.u32 %v11022_v20, 16  ;;  %v11135_v5 = vld [vmem:[%s13820_s24 + $0x20] sm:$0xf] }
  0x6c   : > { %12326 = vmatmul.mubr.msk.bf16.gmra.mrb[20].mxu0 %vm452_vm1, %v11079_v21  ;;  %v4592_v32 = vrot.slane %v4591_v23, 4  ;;  %v4622_v34 = vshll.u32 %v11022_v20, 16  ;;  %v4601_v37 = vor.u32 %v4600_v26, %v4596_v24  ;;  %v4628_v40 = vshll.u32 %v11023_v25, 16  ;;  %v11137_v20 = vld [vmem:[%s13820_s24 + $0x28] sm:$0xe]  ;;  %v13408_v23 = vld [vmem:[%s13820_s24 + $0xbc] sm:$0xff]  }
  0x6d   : > { %v4611_v38 = vor.u32 %v4610_v28, %v4606_v27  ;;  %v4616_v39 = vrot.slane %v4614_v29, 5  ;;  %v4621_v42 = vrot.slane %v4619_v33, 4  ;;  %v4632_v44 = vshrl.u32 %v11023_v25, 16  ;;  %v11138_v21 = vld [vmem:[%s13820_s24 + $0x2c] sm:$0xf] }
  0x6e   : > { %12070 = vmatmul.mubr.msk.bf16.gmra.mrb[28].mxu1 %vm452_vm1, %v13404_v10  ;;  %v4597_v41 = vsel %vm13838_vm4, %v4592_v32, %v4596_v24  ;;  %v4624_v43 = vrot.slane %v4622_v34, 5  ;;  %v4602_v46 = vrot.slane %v4601_v37, 4  ;;  %v4630_v49 = vrot.slane %v4628_v40, 5  ;;  %v11140_v28 = vld [vmem:[%s13820_s24 + $0x34] sm:$0xf]  ;;  %v13409_v33 = vld [vmem:[%s13820_s24 + $0xc8] sm:$0xff]  }
  0x6f   : > { %12073 = vmatprep.mubr.msk.bf16.mxu1 %vm452_vm1, %v13405_v19  ;;  %v11080_v45 = vcombine.low %v4587_v31, %v4597_v41  ;;  %v4612_v47 = vrot.slane %v4611_v38, 4  ;;  %v4634_v52 = vrot.slane %v4632_v44, 4  ;;  %v4638_v53 = vshll.u32 %v11024_v30, 16  ;;  %v11141_v34 = vld [vmem:[%s13820_s24 + $0x38] sm:$0x1] }
  0x70   : > { %v4625_v51 = vor.u32 %v4624_v43, %v4621_v42  ;;  %v4642_v54 = vshrl.u32 %v11024_v30, 16  ;;  %v4607_v57 = vsel %vm13838_vm4, %v4602_v46, %v4606_v27  ;;  %v4648_v59 = vshll.u32 %v11025_v35, 16  ;;  %v11139_v27 = vld [vmem:[%s13820_s24 + $0x30] sm:$0xf]  ;;  %v11142_v40 = vld [vmem:[%s13820_s24 + $0x3c] sm:$0xe] }
  0x71   : > { %12329 = vmatprep.mubr.msk.bf16.mxu0 %vm452_vm1, %v11080_v45  ;;  %v4617_v58 = vsel %vm13838_vm4, %v4612_v47, %v4616_v39  ;;  %v4652_v60 = vshrl.u32 %v11025_v35, 16  ;;  %v4635_v2 = vor.u32 %v4634_v52, %v4630_v49  ;;  %v4640_v3 = vrot.slane %v4638_v53, 5  ;;  %v11143_v35 = vld [vmem:[%s13820_s24 + $0x40] sm:$0xf]  ;;  %v11144_v41 = vld [vmem:[%s13820_s24 + $0x44] sm:$0xf] }
  0x72   : > { %v11081_v0 = vcombine.low %v4607_v57, %v4617_v58  ;;  %v4626_v1 = vrot.slane %v4625_v51, 4  ;;  %v4644_v6 = vrot.slane %v4642_v54, 4  ;;  %v4650_v7 = vrot.slane %v4648_v59, 5  ;;  %v14015_v42 = vld [vmem:[%s13820_s24 + $0x48] sm:$0xf] }
  0x73   : > { %v4654_v8 = vrot.slane %v4652_v60, 4  ;;  %v4658_v9 = vshll.u32 %v11026_v50, 16  ;;  %v4636_v13 = vrot.slane %v4635_v2, 4  ;;  %v11212_v14 = vrot.slane %v11132_v56, 9  ;;  %v14029_v54 = vld [vmem:[%s13820_s24 + $0x4c] sm:$0x1] }
  0x74   : > { %12330 = vmatmul.mubr.msk.bf16.gmra.mrb[24].mxu0 %vm452_vm1, %v11081_v0  ;;  %v4631_v12 = vsel %vm13838_vm4, %v4626_v1, %v4630_v49  ;;  %v5854_v15 = vrot.slane %v11133_v62, 5  ;;  %v4645_v16 = vor.u32 %v4644_v6, %v4640_v3  ;;  %v5857_v19 = vrot.slane %v11134_v63, 5  ;;  %v11148_v59 = vld [vmem:[%s13820_s24 + $0x54] sm:$0xf]  ;;  %v11147_v0 = vld [vmem:[%s13820_s24 + $0x50] sm:$0xe] }
  0x75   : > { %v4655_v17 = vor.u32 %v4654_v8, %v4650_v7  ;;  %v4660_v18 = vrot.slane %v4658_v9, 5  ;;  %v4641_v22 = vsel %vm13838_vm4, %v4636_v13, %v4640_v3  ;;  %v5860_v26 = vrot.slane %v11135_v5, 5  ;;  %v11149_v1 = vld [vmem:[%s13820_s24 + $0x58] sm:$0xf]  ;;  %v13410_v2 = vld [vmem:[%s13820_s24 + $0xd0] sm:$0xff]   ;;  %v13411_v13 = vld [vmem:[%s13820_s24 + $0xdc] sm:$0xff]  }
  0x76   : > { %12074 = vmatmul.mubr.msk.bf16.gmra.mrb[32].mxu1 %vm452_vm1, %v13406_v48  ;;  %v5855_v24 = vsel %vm13988_vm7, %v11212_v14, %v5854_v15  ;;  %v5856_v25 = vrot.slane %v5854_v15, 4  ;;  %v11082_v29 = vcombine.low %v4631_v12, %v4641_v22  ;;  %v4646_v30 = vrot.slane %v4645_v16, 4  ;;  %v11150_v8 = vld [vmem:[%s13820_s24 + $0x5c] sm:$0xf]  ;;  %v11151_v9 = vld [vmem:[%s13820_s24 + $0x60] sm:$0x1] }
  0x77   : > { %12077 = vmatprep.mubr.msk.bf16.mxu1 %vm452_vm1, %v13407_v55  ;;  %v4656_v31 = vrot.slane %v4655_v17, 4  ;;  %v5859_v32 = vrot.slane %v5857_v19, 4  ;;  %v5862_v38 = vrot.slane %v5860_v26, 4  ;;  %v5863_v39 = vrot.slane %v11136_v11, 5  ;;  %v11152_v16 = vld [vmem:[%s13820_s24 + $0x64] sm:$0xe] }
  0x78   : > { %v5858_v37 = vsel %vm13988_vm7, %v5856_v25, %v5857_v19  ;;  %12333 = vmatprep.mubr.msk.bf16.mxu0 %vm452_vm1, %v11082_v29  ;;  %v4651_v43 = vsel %vm13838_vm4, %v4646_v30, %v4650_v7  ;;  %v11213_v47 = vrot.slane %v11137_v20, 9  ;;  %v5867_v48 = vrot.slane %v11138_v21, 5  ;;  %v11153_v21 = vld [vmem:[%s13820_s24 + $0x68] sm:$0xf]  ;;  %v11154_v22 = vld [vmem:[%s13820_s24 + $0x6c] sm:$0xf] }
  0x79   : > { %v4661_v44 = vsel %vm13838_vm4, %v4656_v31, %v4660_v18  ;;  %v11229_v45 = vcombine.low %v5855_v24, %v5858_v37  ;;  %v5870_v49 = vrot.slane %v11139_v27, 5  ;;  %v5861_v50 = vsel %vm13988_vm7, %v5859_v32, %v5860_v26  ;;  %v11155_v27 = vld [vmem:[%s13820_s24 + $0x70] sm:$0xf] }
  0x7a   : > { %v11083_v46 = vcombine.low %v4651_v43, %v4661_v44  ;;  %v5864_v51 = vsel %vm13988_vm7, %v5862_v38, %v5863_v39  ;;  %v7065_v52 = vsel %vm549_vm0, %v13861_v61, 0  ;;  %v5873_v53 = vrot.slane %v11140_v28, 5  ;;  %v11156_v28 = vld [vmem:[%s13820_s24 + $0x74] sm:$0x1] }
  0x7b   : > { %v5869_v55 = vrot.slane %v5867_v48, 4  ;;  %v5872_v56 = vrot.slane %v5870_v49, 4  ;;  %v5876_v57 = vrot.slane %v11141_v34, 5  ;;  %v5880_v58 = vrot.slane %v11143_v35, 5 }
  0x7c   : > { %12334 = vmatmul.mubr.msk.bf16.gmra.mrb[28].mxu0 %vm452_vm1, %v11083_v46  ;;  %v5875_v61 = vrot.slane %v5873_v53, 4  ;;  %v11214_v60 = vrot.slane %v11142_v40, 9  ;;  %v5883_v62 = vrot.slane %v11144_v41, 5  ;;  %v5886_v63 = vrot.slane %v14015_v42, 5 }
  0x7d   : > { %12371 = vmatprep.mubr.msk.bf16.mxu0 %vm452_vm1, %v11229_v45  ;;  %v5868_v3 = vsel %vm13988_vm7, %v11213_v47, %v5867_v48  ;;  %v5871_v5 = vsel %vm13988_vm7, %v5869_v55, %v5870_v49  ;;  %v5882_v6 = vrot.slane %v5880_v58, 4  ;;  %v5889_v7 = vrot.slane %v14029_v54, 5  ;;  %v11157_v45 = vld [vmem:[%s13820_s24 + $0x78] sm:$0xe]  ;;  %v11158_v49 = vld [vmem:[%s13820_s24 + $0x7c] sm:$0xf] }
  0x7e   : > { %12078 = vmatmul.mubr.msk.bf16.gmra.mrb[36].mxu1 %vm452_vm1, %v13408_v23  ;;  %v11230_v11 = vcombine.low %v5861_v50, %v5864_v51  ;;  %v14049_v12 = vsel %vm13988_vm7, %v5872_v56, %v5873_v53  ;;  %v5885_v14 = vrot.slane %v5883_v62, 4  ;;  %v5893_v15 = vrot.slane %v11148_v59, 5  ;;  %v11159_v50 = vld [vmem:[%s13820_s24 + $0x80] sm:$0xf]  ;;  %v13413_v59 = vld [vmem:[%s13820_s24 + $0xf0] sm:$0xff]  }
  0x7f   : > { %12081 = vmatprep.mubr.msk.bf16.mxu1 %vm452_vm1, %v13409_v33  ;;  %v11231_v17 = vcombine.low %v5868_v3, %v5871_v5  ;;  %v14055_v18 = vsel %vm13988_vm7, %v11214_v60, %v5880_v58  ;;  %v5888_v19 = vrot.slane %v5886_v63, 4  ;;  %v5896_v20 = vrot.slane %v11149_v1, 5  ;;  %v11161_v58 = vld [vmem:[%s13820_s24 + $0x88] sm:$0x1] }
  0x80   : > { %v5877_v23 = vsel %vm13988_vm7, %v5875_v61, %v5876_v57  ;;  %v5884_v24 = vsel %vm13988_vm7, %v5882_v6, %v5883_v62  ;;  %v11215_v25 = vrot.slane %v11147_v0, 9  ;;  %v5899_v26 = vrot.slane %v11150_v8, 5  ;;  %v11160_v57 = vld [vmem:[%s13820_s24 + $0x84] sm:$0xf] }
  0x81   : > { %v5895_v29 = vrot.slane %v5893_v15, 4  ;;  %v5898_v30 = vrot.slane %v5896_v20, 4  ;;  %v5902_v31 = vrot.slane %v11151_v9, 5  ;;  %v5906_v32 = vrot.slane %v11153_v21, 5  ;;  %v11162_v9 = vld [vmem:[%s13820_s24 + $0x8c] sm:$0xe] }
  0x82   : > { %v5901_v33 = vrot.slane %v5899_v26, 4  ;;  %v11216_v34 = vrot.slane %v11152_v16, 9  ;;  %v5909_v35 = vrot.slane %v11154_v22, 5  ;;  %v5912_v37 = vrot.slane %v11155_v27, 5  ;;  %v11165_v21 = vld [vmem:[%s13820_s24 + $0x98] sm:$0xf] }
  0x83   : > { %v11232_v38 = vcombine.low %v14049_v12, %v5877_v23  ;;  %v11233_v39 = vcombine.low %v14055_v18, %v5884_v24  ;;  %v5908_v40 = vrot.slane %v5906_v32, 4  ;;  %v14073_v41 = vsel %vm13988_vm7, %v5885_v14, %v5886_v63  ;;  %v11163_v14 = vld [vmem:[%s13820_s24 + $0x90] sm:$0xf]  ;;  %v11166_v22 = vld [vmem:[%s13820_s24 + $0x9c] sm:$0x1] }
  0x84   : > { %12372 = vmatmul.mubr.msk.bf16.vlgmr.msra.gmra.mrb[0].mxu0 %vm452_vm1, %v11230_v11  ;;  %v5911_v42 = vrot.slane %v5909_v35, 4  ;;  %v5914_v43 = vrot.slane %v5912_v37, 4  ;;  %v5915_v44 = vrot.slane %v11156_v28, 5  ;;  %v14078_v46 = vsel %vm13988_vm7, %v5888_v19, %v5889_v7  ;;  %v13414_v23 = vld [vmem:[%s13820_s24 + $0xf8] sm:$0xff]   ;;  %v906_v28 = vld [vmem:[%s13820_s24] sm:$0xf] }
  0x85   : > { %12436 = vmatpush3.bf16.msra.mxu0 %v7065_v52  ;;  %12375 = vmatprep.mubr.msk.bf16.mxu0 %vm452_vm1, %v11231_v17  ;;  %v14082_v47 = vsel %vm13988_vm7, %v11215_v25, %v5893_v15  ;;  %v14086_v48 = vsel %vm13988_vm7, %v5895_v29, %v5896_v20  ;;  %v11217_v51 = vrot.slane %v11157_v45, 9  ;;  %v13412_v52 = vld [vmem:[%s13820_s24 + $0xe4] sm:$0xff]   ;;  %v14093_v53 = vsel %vm13988_vm7, %v5898_v30, %v5899_v26  ;;  %v11164_v15 = vld [vmem:[%s13820_s24 + $0x94] sm:$0xf] }
  0x86   : > { %12082 = vmatmul.mubr.msk.bf16.gmra.mrb[40].mxu1 %vm452_vm1, %v13410_v2  ;;  %v14097_v54 = vsel %vm13988_vm7, %v5901_v33, %v5902_v31  ;;  %v14101_v55 = vsel %vm13988_vm7, %v11216_v34, %v5906_v32  ;;  %v5919_v56 = vrot.slane %v11158_v49, 5  ;;  %v14108_v61 = vsel %vm13988_vm7, %v5908_v40, %v5909_v35  ;;  %v907_v32 = vld [vmem:[%s13820_s24 + $0x4] sm:$0xf]  ;;  %v908_v33 = vld [vmem:[%s13820_s24 + $0x8] sm:$0xf] }
  0x87   : > { %12085 = vmatprep.mubr.msk.bf16.mxu1 %vm452_vm1, %v13411_v13  ;;  %v5922_v60 = vrot.slane %v11159_v50, 5  ;;  %v5925_v62 = vrot.slane %v11160_v57, 5  ;;  %v5928_v63 = vrot.slane %v11161_v58, 5  ;;  %v11234_v0 = vcombine.low %v14073_v41, %v14078_v46  ;;  %v909_v40 = vld [vmem:[%s13820_s24 + $0xc] sm:$0xf]  ;;  %v13415_v41 = vld [vmem:[%s13820_s24 + $0x104] sm:$0xff]  }
  0x88   : > { %v14114_v1 = vsel %vm13988_vm7, %v5911_v42, %v5912_v37  ;;  %v14118_v2 = vsel %vm13988_vm7, %v5914_v43, %v5915_v44  ;;  %v5921_v3 = vrot.slane %v5919_v56, 4  ;;  %v11235_v5 = vcombine.low %v14082_v47, %v14086_v48  ;;  %v910_v46 = vld [vmem:[%s13820_s24 + $0x10] sm:$0x1]  ;;  %v11167_v57 = vld [vmem:[%s13820_s24 + $0xa0] sm:$0xe] }
  0x89   : > { %v14124_v6 = vsel %vm13988_vm7, %v11217_v51, %v5919_v56  ;;  %v5924_v7 = vrot.slane %v5922_v60, 4  ;;  %v5927_v8 = vrot.slane %v5925_v62, 4  ;;  %v11236_v11 = vcombine.low %v14093_v53, %v14097_v54  ;;  %v10791_v56 = vld [vmem:[%s17218_s1 + $0x4] sm:$0x3] }
  0x8a   : > { %v11237_v12 = vcombine.low %v14101_v55, %v14108_v61  ;;  %v14135_v13 = vsel %vm13988_vm7, %v5921_v3, %v5922_v60  ;;  %v11218_v16 = vrot.slane %v11162_v9, 9  ;;  %v11238_v17 = vcombine.low %v14114_v1, %v14118_v2  ;;  %13277 = vmatprep.subr.msk.bf16.mxu1 %vm549_vm0, %v10791_v56 }
  0x8b   : > { %v14145_v18 = vsel %vm13988_vm7, %v5924_v7, %v5925_v62  ;;  %v14149_v19 = vsel %vm13988_vm7, %v5927_v8, %v5928_v63  ;;  %v5932_v20 = vrot.slane %v11163_v14, 5  ;;  %v11239_v24 = vcombine.low %v14124_v6, %v14135_v13  ;;  %v11168_v63 = vld [vmem:[%s13820_s24 + $0xa4] sm:$0xf]  ;;  %v11169_v14 = vld [vmem:[%s13820_s24 + $0xa8] sm:$0xf] }
  0x8c   : > { %12376 = vmatmul.mubr.msk.bf16.gmra.mrb[4].mxu0 %vm452_vm1, %v11232_v38  ;;  %v5935_v25 = vrot.slane %v11164_v15, 5  ;;  %v5938_v26 = vrot.slane %v11165_v21, 5  ;;  %v5941_v27 = vrot.slane %v11166_v22, 5  ;;  %v11240_v29 = vcombine.low %v14145_v18, %v14149_v19  ;;  %v11170_v21 = vld [vmem:[%s13820_s24 + $0xac] sm:$0xf] }
  0x8d   : > { %12379 = vmatprep.mubr.msk.bf16.mxu0 %vm452_vm1, %v11233_v39  ;;  %v14161_v30 = vsel %vm13988_vm7, %v11218_v16, %v5932_v20  ;;  %v5934_v31 = vrot.slane %v5932_v20, 4  ;;  %v990_v34 = vshrl.u32 %v906_v28, 16  ;;  %v993_v38 = vshll.u32 %v906_v28, 16  ;;  %v917_v13 = vld [vmem:[%s13820_s24 + $0x2c] sm:$0xf] }
  0x8e   : > { %12086 = vmatmul.mubr.msk.bf16.gmra.mrb[44].mxu1 %vm452_vm1, %v13412_v52  ;;  %v5937_v35 = vrot.slane %v5935_v25, 4  ;;  %v5940_v37 = vrot.slane %v5938_v26, 4  ;;  %v999_v39 = vshll.u32 %v907_v32, 16  ;;  %v1003_v44 = vshrl.u32 %v907_v32, 16 }
  0x8f   : > { %12089 = vmatprep.mubr.msk.bf16.mxu1 %vm452_vm1, %v13413_v59  ;;  %v14169_v42 = vsel %vm13988_vm7, %v5934_v31, %v5935_v25  ;;  %v992_v43 = vrot.slane %v990_v34, 4  ;;  %v1009_v45 = vshll.u32 %v908_v33, 16  ;;  %v995_v52 = vrot.slane %v993_v38, 5  ;;  %v13416_v31 = vld [vmem:[%s13820_s24 + $0x10c] sm:$0xff]   ;;  %v13417_v38 = vld [vmem:[%s13820_s24 + $0x118] sm:$0xff]  }
  0x90   : > { %v11241_v49 = vcombine.low %v14161_v30, %v14169_v42  ;;  %v14176_v50 = vsel %vm13988_vm7, %v5937_v35, %v5938_v26  ;;  %v14180_v51 = vsel %vm13988_vm7, %v5940_v37, %v5941_v27  ;;  %v1001_v59 = vrot.slane %v999_v39, 5  ;;  %v11171_v27 = vld [vmem:[%s13820_s24 + $0xb0] sm:$0x1]  ;;  %v911_v37 = vld [vmem:[%s13820_s24 + $0x14] sm:$0xf] }
  0x91   : > { %v11242_v58 = vcombine.low %v14176_v50, %v14180_v51  ;;  %v1005_v60 = vrot.slane %v1003_v44, 4  ;;  %v1011_v62 = vrot.slane %v1009_v45, 5  ;;  %v996_v3 = vor.u32 %v995_v52, %v992_v43  ;;  %v912_v44 = vld [vmem:[%s13820_s24 + $0x18] sm:$0xf] }
  0x92   : > { %v1013_v7 = vshrl.u32 %v908_v33, 16  ;;  %v1019_v8 = vshll.u32 %v909_v40, 16  ;;  %v1023_v9 = vshrl.u32 %v909_v40, 16  ;;  %v1029_v16 = vshll.u32 %v910_v46, 16 }
  0x93   : > { %v1006_v15 = vor.u32 %v1005_v60, %v1001_v59  ;;  %v11219_v20 = vrot.slane %v11167_v57, 9  ;;  %v997_v22 = vrot.slane %v996_v3, 4  ;;  %v5948_v35 = vrot.slane %v11169_v14, 5  ;;  %v914_v14 = vld [vmem:[%s13820_s24 + $0x20] sm:$0xf] }
  0x94   : > { %12380 = vmatmul.mubr.msk.bf16.gmra.mrb[8].mxu0 %vm452_vm1, %v11234_v0  ;;  %v5945_v0 = vrot.slane %v11168_v63, 5  ;;  %v1021_v25 = vrot.slane %v1019_v8, 5  ;;  %v1025_v26 = vrot.slane %v1023_v9, 4  ;;  %v1031_v47 = vrot.slane %v1029_v16, 5  ;;  %v915_v16 = vld [vmem:[%s13820_s24 + $0x24] sm:$0x1] }
  0x95   : > { %12383 = vmatprep.mubr.msk.bf16.mxu0 %vm452_vm1, %v11235_v5  ;;  %v1007_v28 = vrot.slane %v1006_v15, 4  ;;  %v1002_v32 = vsel %vm13838_vm4, %v997_v22, %v1001_v59  ;;  %v14212_v40 = vsel %vm549_vm0, %v10791_v56, 0  ;;  %v5954_v43 = vrot.slane %v11171_v27, 5  ;;  %v11174_v27 = vld [vmem:[%s13820_s24 + $0xbc] sm:$0xf] }
  0x96   : > { %12090 = vmatmul.mubr.msk.bf16.gmra.mrb[48].mxu1 %vm452_vm1, %v13414_v23  ;;  %v1015_v23 = vrot.slane %v1013_v7, 4  ;;  %v14202_v48 = vsel %vm13988_vm7, %v11219_v20, %v5945_v0  ;;  %v5947_v5 = vrot.slane %v5945_v0, 4  ;;  %v1026_v34 = vor.u32 %v1025_v26, %v1021_v25  ;;  %v913_v7 = vld [vmem:[%s13820_s24 + $0x1c] sm:$0xf]  ;;  %v11172_v20 = vld [vmem:[%s13820_s24 + $0xb4] sm:$0xe] }
  0x97   : > { %12093 = vmatprep.mubr.msk.bf16.mxu1 %vm452_vm1, %v13415_v41  ;;  %v1012_v39 = vsel %vm13838_vm4, %v1007_v28, %v1011_v62  ;;  %v5951_v41 = vrot.slane %v11170_v21, 5  ;;  %v5950_v60 = vrot.slane %v5948_v35, 4  ;;  %v1034_v56 = vshrl.u32 %v911_v37, 16  ;;  %v11173_v21 = vld [vmem:[%s13820_s24 + $0xb8] sm:$0xf]  ;;  %v13418_v28 = vld [vmem:[%s13820_s24 + $0x120] sm:$0xff]  }
  0x98   : > { %v1016_v33 = vor.u32 %v1015_v23, %v1011_v62  ;;  %v14215_v46 = vcombine.low %v1002_v32, %v1012_v39  ;;  %v1027_v52 = vrot.slane %v1026_v34, 4  ;;  %v14219_v57 = vsel %vm13988_vm7, %v5947_v5, %v5948_v35  ;;  %v13419_v34 = vld [vmem:[%s13820_s24 + $0x12c] sm:$0xff]  }
  0x99   : > { %v11243_v59 = vcombine.low %v14202_v48, %v14219_v57  ;;  %v5953_v62 = vrot.slane %v5951_v41, 4  ;;  %v1037_v8 = vshll.u32 %v911_v37, 16  ;;  %v1043_v9 = vshll.u32 %v912_v44, 16 }
  0x9a   : > { %v1017_v45 = vrot.slane %v1016_v33, 4  ;;  %v1032_v3 = vsel %vm13838_vm4, %v1027_v52, %v1031_v47  ;;  %v14243_v54 = vsel %vm13988_vm7, %v5950_v60, %v5951_v41  ;;  %v1036_v15 = vrot.slane %v1034_v56, 4  ;;  %v11175_v33 = vld [vmem:[%s13820_s24 + $0xc0] sm:$0xf]  ;;  %v11176_v56 = vld [vmem:[%s13820_s24 + $0xc4] sm:$0x1] }
  0x9b   : > { %v1039_v61 = vrot.slane %v1037_v8, 5  ;;  %v1047_v0 = vshrl.u32 %v912_v44, 16  ;;  %v1053_v22 = vshll.u32 %v913_v7, 16  ;;  %v1057_v23 = vshrl.u32 %v913_v7, 16 }
  0x9c   : > { %12384 = vmatmul.mubr.msk.bf16.gmra.mrb[12].mxu0 %vm452_vm1, %v11236_v11  ;;  %v1022_v63 = vsel %vm13838_vm4, %v1017_v45, %v1021_v25  ;;  %v14247_v11 = vsel %vm13988_vm7, %v5953_v62, %v5954_v43  ;;  %v1063_v25 = vshll.u32 %v914_v14, 16  ;;  %v1067_v26 = vshrl.u32 %v914_v14, 16 }
  0x9d   : > { %12387 = vmatprep.mubr.msk.bf16.mxu0 %vm452_vm1, %v11237_v12  ;;  %v14239_v53 = vcombine.low %v1022_v63, %v1032_v3  ;;  %v11244_v55 = vcombine.low %v14243_v54, %v14247_v11  ;;  %v1045_v12 = vrot.slane %v1043_v9, 5  ;;  %v1040_v47 = vor.u32 %v1039_v61, %v1036_v15  ;;  %v916_v3 = vld [vmem:[%s13820_s24 + $0x28] sm:$0xf] }
  0x9e   : > { %12094 = vmatmul.mubr.msk.bf16.gmra.mrb[52].mxu1 %vm452_vm1, %v13416_v31  ;;  %v1049_v5 = vrot.slane %v1047_v0, 4  ;;  %v1073_v31 = vshll.u32 %v915_v16, 16  ;;  %v11220_v32 = vrot.slane %v11172_v20, 9  ;;  %v1055_v35 = vrot.slane %v1053_v22, 5  ;;  %v918_v22 = vld [vmem:[%s13820_s24 + $0x30] sm:$0xf] }
  0x9f   : > { %12097 = vmatprep.mubr.msk.bf16.mxu1 %vm452_vm1, %v13417_v38  ;;  %v1059_v37 = vrot.slane %v1057_v23, 4  ;;  %v1065_v38 = vrot.slane %v1063_v25, 5  ;;  %v1069_v39 = vrot.slane %v1067_v26, 4  ;;  %v1041_v41 = vrot.slane %v1040_v47, 4  ;;  %v919_v23 = vld [vmem:[%s13820_s24 + $0x34] sm:$0xf] }
  0xa0   : > { %v1050_v43 = vor.u32 %v1049_v5, %v1045_v12  ;;  %v1075_v44 = vrot.slane %v1073_v31, 5  ;;  %v5958_v45 = vrot.slane %v11173_v21, 5  ;;  %v5961_v62 = vrot.slane %v11174_v27, 5  ;;  %v13420_v25 = vld [vmem:[%s13820_s24 + $0x134] sm:$0xff]   ;;  %v11177_v31 = vld [vmem:[%s13820_s24 + $0xc8] sm:$0xe] }
  0xa1   : > { %v1060_v52 = vor.u32 %v1059_v37, %v1055_v35  ;;  %v1070_v60 = vor.u32 %v1069_v39, %v1065_v38  ;;  %v5964_v63 = vrot.slane %v11175_v33, 5  ;;  %v1046_v7 = vsel %vm13838_vm4, %v1041_v41, %v1045_v12  ;;  %v920_v5 = vld [vmem:[%s13820_s24 + $0x38] sm:$0x1]  ;;  %v11178_v37 = vld [vmem:[%s13820_s24 + $0xcc] sm:$0xf] }
  0xa2   : > { %v1051_v8 = vrot.slane %v1050_v43, 4  ;;  %v14269_v9 = vsel %vm13988_vm7, %v11220_v32, %v5958_v45  ;;  %v5960_v14 = vrot.slane %v5958_v45, 4  ;;  %v5967_v6 = vrot.slane %v11176_v56, 5  ;;  %v11180_v56 = vld [vmem:[%s13820_s24 + $0xd4] sm:$0xf] }
  0xa3   : > { %v1061_v1 = vrot.slane %v1060_v52, 4  ;;  %v1071_v2 = vrot.slane %v1070_v60, 4  ;;  %v5966_v15 = vrot.slane %v5964_v63, 4  ;;  %v1081_v33 = vshll.u32 %v916_v3, 16 }
  0xa4   : > { %12388 = vmatmul.mubr.msk.bf16.gmra.mrb[16].mxu0 %vm452_vm1, %v11238_v17  ;;  %v5963_v17 = vrot.slane %v5961_v62, 4  ;;  %v1056_v16 = vsel %vm13838_vm4, %v1051_v8, %v1055_v35  ;;  %v14280_v20 = vsel %vm13988_vm7, %v5960_v14, %v5961_v62  ;;  %v1091_v35 = vshrl.u32 %v917_v13, 16  ;;  %v11181_v14 = vld [vmem:[%s13820_s24 + $0xd8] sm:$0x1] }
  0xa5   : > { %12391 = vmatprep.mubr.msk.bf16.mxu0 %vm452_vm1, %v11239_v24  ;;  %v1078_v24 = vshrl.u32 %v916_v3, 16  ;;  %v14283_v61 = vcombine.low %v1046_v7, %v1056_v16  ;;  %v1066_v12 = vsel %vm13838_vm4, %v1061_v1, %v1065_v38  ;;  %v1076_v0 = vsel %vm13838_vm4, %v1071_v2, %v1075_v44  ;;  %v11179_v44 = vld [vmem:[%s13820_s24 + $0xd0] sm:$0xf] }
  0xa6   : > { %12098 = vmatmul.mubr.msk.bf16.gmra.mrb[56].mxu1 %vm452_vm1, %v13418_v28  ;;  %v11245_v21 = vcombine.low %v14269_v9, %v14280_v20  ;;  %v14294_v26 = vcombine.low %v1066_v12, %v1076_v0  ;;  %v14298_v27 = vsel %vm13988_vm7, %v5963_v17, %v5964_v63  ;;  %v14302_v28 = vsel %vm13988_vm7, %v5966_v15, %v5967_v6 }
  0xa7   : > { %12101 = vmatprep.mubr.msk.bf16.mxu1 %vm452_vm1, %v13419_v34  ;;  %v1080_v47 = vrot.slane %v1078_v24, 4  ;;  %v11246_v32 = vcombine.low %v14298_v27, %v14302_v28  ;;  %v1087_v34 = vshll.u32 %v917_v13, 16  ;;  %v1097_v38 = vshll.u32 %v918_v22, 16 }
  0xa8   : > { %v1101_v39 = vshrl.u32 %v918_v22, 16  ;;  %v1107_v41 = vshll.u32 %v919_v23, 16  ;;  %v1111_v43 = vshrl.u32 %v919_v23, 16  ;;  %v1083_v45 = vrot.slane %v1081_v33, 5 }
  0xa9   : > { %v1089_v52 = vrot.slane %v1087_v34, 5  ;;  %v1093_v60 = vrot.slane %v1091_v35, 4  ;;  %v1117_v62 = vshll.u32 %v920_v5, 16  ;;  %v1099_v63 = vrot.slane %v1097_v38, 5  ;;  %v922_v5 = vld [vmem:[%s13820_s24 + $0x40] sm:$0xf] }
  0xaa   : > { %v1103_v3 = vrot.slane %v1101_v39, 4  ;;  %v1109_v7 = vrot.slane %v1107_v41, 5  ;;  %v1113_v8 = vrot.slane %v1111_v43, 4  ;;  %v1084_v1 = vor.u32 %v1083_v45, %v1080_v47  ;;  %v921_v47 = vld [vmem:[%s13820_s24 + $0x3c] sm:$0xf] }
  0xab   : > { %v1094_v2 = vor.u32 %v1093_v60, %v1089_v52  ;;  %v1119_v18 = vrot.slane %v1117_v62, 5  ;;  %v11221_v19 = vrot.slane %v11177_v31, 9  ;;  %v5971_v15 = vrot.slane %v11178_v37, 5  ;;  %v923_v37 = vld [vmem:[%s13820_s24 + $0x44] sm:$0xf] }
  0xac   : > { %12392 = vmatmul.mubr.msk.bf16.gmra.mrb[20].mxu0 %vm452_vm1, %v11240_v29  ;;  %v1104_v29 = vor.u32 %v1103_v3, %v1099_v63  ;;  %v1114_v17 = vor.u32 %v1113_v8, %v1109_v7  ;;  %v5974_v16 = vrot.slane %v11179_v44, 5  ;;  %v1085_v6 = vrot.slane %v1084_v1, 4  ;;  %v924_v38 = vld [vmem:[%s13820_s24 + $0x48] sm:$0xf]  ;;  %v925_v45 = vld [vmem:[%s13820_s24 + $0x4c] sm:$0x1] }
  0xad   : > { %12395 = vmatprep.mubr.msk.bf16.mxu0 %vm452_vm1, %v11241_v49  ;;  %v1095_v13 = vrot.slane %v1094_v2, 4  ;;  %v5977_v24 = vrot.slane %v11180_v56, 5  ;;  %v5980_v30 = vrot.slane %v11181_v14, 5  ;;  %v5973_v12 = vrot.slane %v5971_v15, 4  ;;  %v11183_v3 = vld [vmem:[%s13820_s24 + $0xe0] sm:$0xf] }
  0xae   : > { %12102 = vmatmul.mubr.msk.bf16.gmra.mrb[60].mxu1 %vm452_vm1, %v13420_v25  ;;  %v1105_v42 = vrot.slane %v1104_v29, 4  ;;  %v1115_v49 = vrot.slane %v1114_v17, 4  ;;  %v1090_v0 = vsel %vm13838_vm4, %v1085_v6, %v1089_v52  ;;  %v5976_v23 = vrot.slane %v5974_v16, 4  ;;  %v11184_v2 = vld [vmem:[%s13820_s24 + $0xe4] sm:$0xf] }
  0xaf   : > { %12107 = vmatprep.mubr.msk.bf16.mxu1 %vm452_vm1, %v14215_v46  ;;  %v14325_v46 = vsel %vm13988_vm7, %v11221_v19, %v5971_v15  ;;  %v1100_v22 = vsel %vm13838_vm4, %v1095_v13, %v1099_v63  ;;  %v5979_v25 = vrot.slane %v5977_v24, 4  ;;  %v14339_v35 = vsel %vm13988_vm7, %v5973_v12, %v5974_v16  ;;  %v11182_v63 = vld [vmem:[%s13820_s24 + $0xdc] sm:$0xe] }
  0xb0   : > { %v10715_v31 = vcombine.low %v1090_v0, %v1100_v22  ;;  %v1110_v33 = vsel %vm13838_vm4, %v1105_v42, %v1109_v7  ;;  %v1120_v34 = vsel %vm13838_vm4, %v1115_v49, %v1119_v18  ;;  %v11247_v41 = vcombine.low %v14325_v46, %v14339_v35  ;;  %v11186_v49 = vld [vmem:[%s13820_s24 + $0xec] sm:$0x1] }
  0xb1   : > { %v14343_v39 = vcombine.low %v1110_v33, %v1120_v34  ;;  %v14349_v43 = vsel %vm13988_vm7, %v5976_v23, %v5977_v24  ;;  %v14353_v44 = vsel %vm13988_vm7, %v5979_v25, %v5980_v30  ;;  %v1122_v60 = vshrl.u32 %v921_v47, 16 }
  0xb2   : > { %v11248_v52 = vcombine.low %v14349_v43, %v14353_v44  ;;  %v1125_v62 = vshll.u32 %v921_v47, 16  ;;  %v1131_v56 = vshll.u32 %v922_v5, 16  ;;  %v1135_v50 = vshrl.u32 %v922_v5, 16 }
  0xb3   : > { %v1141_v51 = vshll.u32 %v923_v37, 16  ;;  %v1124_v7 = vrot.slane %v1122_v60, 4  ;;  %v1155_v1 = vshrl.u32 %v924_v38, 16  ;;  %v1161_v17 = vshll.u32 %v925_v45, 16  ;;  %v928_v45 = vld [vmem:[%s13820_s24 + $0x58] sm:$0xf] }
  0xb4   : > { %12396 = vmatmul.mubr.msk.bf16.gmra.mrb[24].mxu0 %vm452_vm1, %v11242_v58  ;;  %v1145_v58 = vshrl.u32 %v923_v37, 16  ;;  %v1127_v8 = vrot.slane %v1125_v62, 5  ;;  %v1133_v14 = vrot.slane %v1131_v56, 5  ;;  %v1137_v18 = vrot.slane %v1135_v50, 4  ;;  %v926_v37 = vld [vmem:[%s13820_s24 + $0x50] sm:$0xf] }
  0xb5   : > { %12399 = vmatprep.mubr.msk.bf16.mxu0 %vm452_vm1, %v11243_v59  ;;  %v1143_v48 = vrot.slane %v1141_v51, 5  ;;  %v1157_v29 = vrot.slane %v1155_v1, 4  ;;  %v11222_v15 = vrot.slane %v11182_v63, 9  ;;  %v5984_v13 = vrot.slane %v11183_v3, 5  ;;  %v929_v60 = vld [vmem:[%s13820_s24 + $0x5c] sm:$0xf] }
  0xb6   : > { %12108 = vmatmul.mubr.msk.bf16.vlgmr.msra.gmra.mrb[0].mxu1 %vm452_vm1, %v14239_v53  ;;  %v1151_v53 = vshll.u32 %v924_v38, 16  ;;  %v1147_v57 = vrot.slane %v1145_v58, 4  ;;  %v1128_v19 = vor.u32 %v1127_v8, %v1124_v7  ;;  %v1138_v16 = vor.u32 %v1137_v18, %v1133_v14  ;;  %v927_v38 = vld [vmem:[%s13820_s24 + $0x54] sm:$0xf]  ;;  %v930_v51 = vld [vmem:[%s13820_s24 + $0x60] sm:$0x1] }
  0xb7   : > { %12172 = vmatpush3.bf16.msra.mxu1 %v14212_v40  ;;  %12111 = vmatprep.mubr.msk.bf16.mxu1 %vm452_vm1, %v14283_v61  ;;  %v11185_v40 = vld [vmem:[%s13820_s24 + $0xe8] sm:$0xf]  ;;  %v5987_v24 = vrot.slane %v11184_v2, 5  ;;  %v1163_v42 = vrot.slane %v1161_v17, 5  ;;  %v14378_v23 = vsel %vm13988_vm7, %v11222_v15, %v5984_v13  ;;  %v5986_v25 = vrot.slane %v5984_v13, 4 }
  0xb8   : > { %v1153_v59 = vrot.slane %v1151_v53, 5  ;;  %v1148_v6 = vor.u32 %v1147_v57, %v1143_v48  ;;  %v1129_v61 = vrot.slane %v1128_v19, 4  ;;  %v5990_v12 = vrot.slane %v11185_v40, 5  ;;  %v11187_v8 = vld [vmem:[%s13820_s24 + $0xf0] sm:$0xe] }
  0xb9   : > { %v1139_v0 = vrot.slane %v1138_v16, 4  ;;  %v5989_v33 = vrot.slane %v5987_v24, 4  ;;  %v1166_v63 = vshrl.u32 %v926_v37, 16  ;;  %v1169_v50 = vshll.u32 %v926_v37, 16 }
  0xba   : > { %v1158_v30 = vor.u32 %v1157_v29, %v1153_v59  ;;  %v1149_v22 = vrot.slane %v1148_v6, 4  ;;  %v1134_v47 = vsel %vm13838_vm4, %v1129_v61, %v1133_v14  ;;  %v5992_v34 = vrot.slane %v5990_v12, 4  ;;  %v11189_v29 = vld [vmem:[%s13820_s24 + $0xf8] sm:$0xf] }
  0xbb   : > { %v1144_v54 = vsel %vm13838_vm4, %v1139_v0, %v1143_v48  ;;  %v1175_v53 = vshll.u32 %v927_v38, 16  ;;  %v1179_v3 = vshrl.u32 %v927_v38, 16  ;;  %v1185_v7 = vshll.u32 %v928_v45, 16  ;;  %v11188_v48 = vld [vmem:[%s13820_s24 + $0xf4] sm:$0xf] }
  0xbc   : > { %12400 = vmatmul.mubr.msk.bf16.gmra.mrb[28].mxu0 %vm452_vm1, %v11244_v55  ;;  %v1159_v5 = vrot.slane %v1158_v30, 4  ;;  %v1154_v11 = vsel %vm13838_vm4, %v1149_v22, %v1153_v59  ;;  %v14400_v55 = vsel %vm13988_vm7, %v5986_v25, %v5987_v24  ;;  %v10717_v9 = vcombine.low %v1134_v47, %v1144_v54 }
  0xbd   : > { %12403 = vmatprep.mubr.msk.bf16.mxu0 %vm452_vm1, %v11245_v21  ;;  %v11249_v21 = vcombine.low %v14378_v23, %v14400_v55  ;;  %v1168_v14 = vrot.slane %v1166_v63, 4  ;;  %v1171_v1 = vrot.slane %v1169_v50, 5  ;;  %v1189_v2 = vshrl.u32 %v928_v45, 16 }
  0xbe   : > { %12112 = vmatmul.mubr.msk.bf16.gmra.mrb[4].mxu1 %vm452_vm1, %v14294_v26  ;;  %v5993_v26 = vrot.slane %v11186_v49, 5  ;;  %v1164_v20 = vsel %vm13838_vm4, %v1159_v5, %v1163_v42  ;;  %v1195_v18 = vshll.u32 %v929_v60, 16  ;;  %v1177_v57 = vrot.slane %v1175_v53, 5  ;;  %v11190_v42 = vld [vmem:[%s13820_s24 + $0xfc] sm:$0xf] }
  0xbf   : > { %12115 = vmatprep.mubr.msk.bf16.mxu1 %vm452_vm1, %v10715_v31  ;;  %v14410_v31 = vsel %vm13988_vm7, %v5989_v33, %v5990_v12  ;;  %v14413_v62 = vcombine.low %v1154_v11, %v1164_v20  ;;  %v1181_v59 = vrot.slane %v1179_v3, 4  ;;  %v1187_v40 = vrot.slane %v1185_v7, 5  ;;  %v931_v5 = vld [vmem:[%s13820_s24 + $0x64] sm:$0xf]  ;;  %v932_v11 = vld [vmem:[%s13820_s24 + $0x68] sm:$0xf] }
  0xc0   : > { %v14417_v56 = vsel %vm13988_vm7, %v5992_v34, %v5993_v26  ;;  %v1199_v19 = vshrl.u32 %v929_v60, 16  ;;  %v1172_v17 = vor.u32 %v1171_v1, %v1168_v14  ;;  %v1191_v15 = vrot.slane %v1189_v2, 4  ;;  %v933_v26 = vld [vmem:[%s13820_s24 + $0x6c] sm:$0xf]  ;;  %v934_v60 = vld [vmem:[%s13820_s24 + $0x70] sm:$0xf] }
  0xc1   : > { %v11250_v58 = vcombine.low %v14410_v31, %v14417_v56  ;;  %v1197_v16 = vrot.slane %v1195_v18, 5  ;;  %v1205_v6 = vshll.u32 %v930_v51, 16  ;;  %v1182_v13 = vor.u32 %v1181_v59, %v1177_v57  ;;  %v935_v3 = vld [vmem:[%s13820_s24 + $0x74] sm:$0x1]  ;;  %v11192_v2 = vld [vmem:[%s13820_s24 + $0x104] sm:$0xe] }
  0xc2   : > { %v1201_v24 = vrot.slane %v1199_v19, 4  ;;  %v11223_v61 = vrot.slane %v11187_v8, 9  ;;  %v5997_v30 = vrot.slane %v11188_v48, 5  ;;  %v1173_v49 = vrot.slane %v1172_v17, 4  ;;  %v11194_v19 = vld [vmem:[%s13820_s24 + $0x10c] sm:$0xf] }
  0xc3   : > { %v1192_v27 = vor.u32 %v1191_v15, %v1187_v40  ;;  %v1207_v28 = vrot.slane %v1205_v6, 5  ;;  %v1183_v12 = vrot.slane %v1182_v13, 4  ;;  %v6003_v47 = vrot.slane %v11190_v42, 5  ;;  %v11195_v6 = vld [vmem:[%s13820_s24 + $0x110] sm:$0xf] }
  0xc4   : > { %12404 = vmatmul.mubr.msk.bf16.gmra.mrb[32].mxu0 %vm452_vm1, %v11246_v32  ;;  %v6000_v32 = vrot.slane %v11189_v29, 5  ;;  %v1202_v0 = vor.u32 %v1201_v24, %v1197_v16  ;;  %v14440_v22 = vsel %vm13988_vm7, %v11223_v61, %v5997_v30  ;;  %v5999_v25 = vrot.slane %v5997_v30, 4  ;;  %v11196_v24 = vld [vmem:[%s13820_s24 + $0x114] sm:$0x1] }
  0xc5   : > { %12407 = vmatprep.mubr.msk.bf16.mxu0 %vm452_vm1, %v11247_v41  ;;  %v1178_v46 = vsel %vm13838_vm4, %v1173_v49, %v1177_v57  ;;  %v1193_v35 = vrot.slane %v1192_v27, 4  ;;  %v1188_v33 = vsel %vm13838_vm4, %v1183_v12, %v1187_v40  ;;  %v6005_v50 = vrot.slane %v6003_v47, 4  ;;  %v11193_v40 = vld [vmem:[%s13820_s24 + $0x108] sm:$0xf]  ;;  %v936_v27 = vld [vmem:[%s13820_s24 + $0x78] sm:$0xf] }
  0xc6   : > { %12116 = vmatmul.mubr.msk.bf16.gmra.mrb[8].mxu1 %vm452_vm1, %v14343_v39  ;;  %v11191_v39 = vld [vmem:[%s13820_s24 + $0x100] sm:$0x1]  ;;  %v6002_v41 = vrot.slane %v6000_v32, 4  ;;  %v1203_v34 = vrot.slane %v1202_v0, 4  ;;  %v14449_v37 = vsel %vm13988_vm7, %v5999_v25, %v6000_v32  ;;  %v10719_v38 = vcombine.low %v1178_v46, %v1188_v33  ;;  %v937_v0 = vld [vmem:[%s13820_s24 + $0x7c] sm:$0xf] }
  0xc7   : > { %12119 = vmatprep.mubr.msk.bf16.mxu1 %vm452_vm1, %v10717_v9  ;;  %v6006_v54 = vrot.slane %v11191_v39, 5  ;;  %v1198_v45 = vsel %vm13838_vm4, %v1193_v35, %v1197_v16  ;;  %v11251_v9 = vcombine.low %v14440_v22, %v14449_v37  ;;  %v1210_v51 = vshrl.u32 %v931_v5, 16 }
  0xc8   : > { %v14459_v20 = vsel %vm13988_vm7, %v6002_v41, %v6003_v47  ;;  %v1208_v63 = vsel %vm13838_vm4, %v1203_v34, %v1207_v28  ;;  %v1213_v53 = vshll.u32 %v931_v5, 16  ;;  %v1219_v8 = vshll.u32 %v932_v11, 16  ;;  %v938_v47 = vld [vmem:[%s13820_s24 + $0x80] sm:$0xf] }
  0xc9   : > { %v10720_v7 = vcombine.low %v1198_v45, %v1208_v63  ;;  %v1223_v14 = vshrl.u32 %v932_v11, 16  ;;  %v1229_v1 = vshll.u32 %v933_v26, 16  ;;  %v14474_v18 = vsel %vm13988_vm7, %v6005_v50, %v6006_v54  ;;  %v14501_v11 = vld [vmem:[%s17218_s1 + $0xe] sm:$0x3]  ;;  %v939_v50 = vld [vmem:[%s13820_s24 + $0x84] sm:$0xf] }
  0xca   : > { %v1212_v48 = vrot.slane %v1210_v51, 4  ;;  %v1215_v57 = vrot.slane %v1213_v53, 5  ;;  %v1233_v59 = vshrl.u32 %v933_v26, 16  ;;  %v11252_v43 = vcombine.low %v14459_v20, %v14474_v18  ;;  %13283 = vmatprep.subr.msk.bf16.mxu0 %vm549_vm0, %v14501_v11  ;;  %v940_v53 = vld [vmem:[%s13820_s24 + $0x88] sm:$0x1] }
  0xcb   : > { %v1221_v44 = vrot.slane %v1219_v8, 5  ;;  %v1239_v15 = vshll.u32 %v934_v60, 16  ;;  %v1243_v16 = vshrl.u32 %v934_v60, 16  ;;  %v1249_v55 = vshll.u32 %v935_v3, 16  ;;  %v941_v20 = vld [vmem:[%s13820_s24 + $0x8c] sm:$0xf] }
  0xcc   : > { %12408 = vmatmul.mubr.msk.bf16.gmra.mrb[36].mxu0 %vm452_vm1, %v11248_v52  ;;  %v1225_v52 = vrot.slane %v1223_v14, 4  ;;  %v1216_v29 = vor.u32 %v1215_v57, %v1212_v48  ;;  %v1235_v17 = vrot.slane %v1233_v59, 4  ;;  %v6010_v13 = vrot.slane %v11193_v40, 5 }
  0xcd   : > { %12411 = vmatprep.mubr.msk.bf16.mxu0 %vm452_vm1, %v11249_v21  ;;  %v11224_v21 = vrot.slane %v11192_v2, 9  ;;  %v1241_v42 = vrot.slane %v1239_v15, 5  ;;  %v1245_v49 = vrot.slane %v1243_v16, 4  ;;  %v1251_v32 = vrot.slane %v1249_v55, 5  ;;  %v11198_v2 = vld [vmem:[%s13820_s24 + $0x11c] sm:$0xf] }
  0xce   : > { %12120 = vmatmul.mubr.msk.bf16.gmra.mrb[12].mxu1 %vm452_vm1, %v14413_v62  ;;  %v1231_v62 = vrot.slane %v1229_v1, 5  ;;  %v1226_v23 = vor.u32 %v1225_v52, %v1221_v44  ;;  %v1217_v61 = vrot.slane %v1216_v29, 4  ;;  %v6012_v12 = vrot.slane %v6010_v13, 4  ;;  %v11197_v1 = vld [vmem:[%s13820_s24 + $0x118] sm:$0xe] }
  0xcf   : > { %12123 = vmatprep.mubr.msk.bf16.mxu1 %vm452_vm1, %v10719_v38  ;;  %v14490_v39 = vsel %vm13988_vm7, %v11224_v21, %v6010_v13  ;;  %v1246_v35 = vor.u32 %v1245_v49, %v1241_v42  ;;  %v6013_v41 = vrot.slane %v11194_v19, 5  ;;  %v6016_v33 = vrot.slane %v11195_v6, 5 }
  0xd0   : > { %v1236_v30 = vor.u32 %v1235_v17, %v1231_v62  ;;  %v1227_v28 = vrot.slane %v1226_v23, 4  ;;  %v1222_v25 = vsel %vm13838_vm4, %v1217_v61, %v1221_v44  ;;  %v6019_v34 = vrot.slane %v11196_v24, 5  ;;  %v11199_v44 = vld [vmem:[%s13820_s24 + $0x120] sm:$0xf]  ;;  %v11200_v17 = vld [vmem:[%s13820_s24 + $0x124] sm:$0xf] }
  0xd1   : > { %v1254_v54 = vshrl.u32 %v936_v27, 16  ;;  %v1247_v45 = vrot.slane %v1246_v35, 4  ;;  %v6014_v60 = vsel %vm13988_vm7, %v6012_v12, %v6013_v41  ;;  %v6015_v56 = vrot.slane %v6013_v41, 4  ;;  %v11201_v12 = vld [vmem:[%s13820_s24 + $0x128] sm:$0x1] }
  0xd2   : > { %v1237_v46 = vrot.slane %v1236_v30, 4  ;;  %v1232_v5 = vsel %vm13838_vm4, %v1227_v28, %v1231_v62  ;;  %v11253_v31 = vcombine.low %v14490_v39, %v6014_v60  ;;  %v1257_v22 = vshll.u32 %v936_v27, 16  ;;  %v943_v35 = vld [vmem:[%s13820_s24 + $0x94] sm:$0xf] }
  0xd3   : > { %v10721_v26 = vcombine.low %v1222_v25, %v1232_v5  ;;  %v1256_v63 = vrot.slane %v1254_v54, 4  ;;  %v1252_v51 = vsel %vm13838_vm4, %v1247_v45, %v1251_v32  ;;  %v1263_v37 = vshll.u32 %v937_v0, 16 }
  0xd4   : > { %12412 = vmatmul.mubr.msk.bf16.gmra.mrb[40].mxu0 %vm452_vm1, %v11250_v58  ;;  %v1242_v38 = vsel %vm13838_vm4, %v1237_v46, %v1241_v42  ;;  %v6018_v58 = vrot.slane %v6016_v33, 4  ;;  %v1273_v14 = vshll.u32 %v938_v47, 16  ;;  %v1259_v57 = vrot.slane %v1257_v22, 5  ;;  %v942_v46 = vld [vmem:[%s13820_s24 + $0x90] sm:$0xf] }
  0xd5   : > { %12415 = vmatprep.mubr.msk.bf16.mxu0 %vm452_vm1, %v11251_v9  ;;  %v1267_v9 = vshrl.u32 %v937_v0, 16  ;;  %v10722_v3 = vcombine.low %v1242_v38, %v1252_v51  ;;  %v1265_v59 = vrot.slane %v1263_v37, 5  ;;  %v1277_v62 = vshrl.u32 %v938_v47, 16 }
  0xd6   : > { %12124 = vmatmul.mubr.msk.bf16.gmra.mrb[16].mxu1 %vm452_vm1, %v10720_v7  ;;  %v14526_v7 = vsel %vm13988_vm7, %v6015_v56, %v6016_v33  ;;  %v14530_v8 = vsel %vm13988_vm7, %v6018_v58, %v6019_v34  ;;  %v1275_v52 = vrot.slane %v1273_v14, 5  ;;  %v1283_v19 = vshll.u32 %v939_v50, 16  ;;  %v944_v58 = vld [vmem:[%s13820_s24 + $0x98] sm:$0xf] }
  0xd7   : > { %12127 = vmatprep.mubr.msk.bf16.mxu1 %vm452_vm1, %v10721_v26  ;;  %v11254_v48 = vcombine.low %v14526_v7, %v14530_v8  ;;  %v1269_v40 = vrot.slane %v1267_v9, 4  ;;  %v1287_v29 = vshrl.u32 %v939_v50, 16  ;;  %v1260_v15 = vor.u32 %v1259_v57, %v1256_v63  ;;  %v945_v63 = vld [vmem:[%s13820_s24 + $0x9c] sm:$0x1]  ;;  %v11202_v9 = vld [vmem:[%s13820_s24 + $0x12c] sm:$0xe] }
  0xd8   : > { %v1293_v6 = vshll.u32 %v940_v53, 16  ;;  %v11225_v23 = vrot.slane %v11197_v1, 9  ;;  %v1279_v55 = vrot.slane %v1277_v62, 4  ;;  %v1285_v21 = vrot.slane %v1283_v19, 5  ;;  %v11203_v53 = vld [vmem:[%s13820_s24 + $0x130] sm:$0xf] }
  0xd9   : > { %v1270_v16 = vor.u32 %v1269_v40, %v1265_v59  ;;  %v1289_v13 = vrot.slane %v1287_v29, 4  ;;  %v6023_v24 = vrot.slane %v11198_v2, 5  ;;  %v1261_v61 = vrot.slane %v1260_v15, 4  ;;  %v11204_v57 = vld [vmem:[%s13820_s24 + $0x134] sm:$0xf] }
  0xda   : > { %v1295_v42 = vrot.slane %v1293_v6, 5  ;;  %v6026_v49 = vrot.slane %v11199_v44, 5  ;;  %v1280_v27 = vor.u32 %v1279_v55, %v1275_v52  ;;  %v6029_v25 = vrot.slane %v11200_v17, 5 }
  0xdb   : > { %v1271_v30 = vrot.slane %v1270_v16, 4  ;;  %v1290_v28 = vor.u32 %v1289_v13, %v1285_v21  ;;  %v6024_v32 = vsel %vm13988_vm7, %v11225_v23, %v6023_v24  ;;  %v6025_v39 = vrot.slane %v6023_v24, 4 }
  0xdc   : > { %12416 = vmatmul.mubr.msk.bf16.gmra.mrb[44].mxu0 %vm452_vm1, %v11252_v43  ;;  %v1266_v18 = vsel %vm13838_vm4, %v1261_v61, %v1265_v59  ;;  %v6028_v0 = vrot.slane %v6026_v49, 4  ;;  %v1281_v47 = vrot.slane %v1280_v27, 4  ;;  %v6031_v26 = vrot.slane %v6029_v25, 4  ;;  %v11205_v59 = vld [vmem:[%s13820_s24 + $0x138] sm:$0xf] }
  0xdd   : > { %12419 = vmatprep.mubr.msk.bf16.mxu0 %vm452_vm1, %v11253_v31  ;;  %v1276_v43 = vsel %vm13838_vm4, %v1271_v30, %v1275_v52  ;;  %v1291_v5 = vrot.slane %v1290_v28, 4  ;;  %v6027_v33 = vsel %vm13988_vm7, %v6025_v39, %v6026_v49  ;;  %v6032_v38 = vrot.slane %v11201_v12, 5  ;;  %v11206_v30 = vld [vmem:[%s13820_s24 + $0x13c] sm:$0x1]  ;;  %v946_v39 = vld [vmem:[%s13820_s24 + $0xa0] sm:$0xf] }
  0xde   : > { %12128 = vmatmul.mubr.msk.bf16.gmra.mrb[20].mxu1 %vm452_vm1, %v10722_v3  ;;  %v10723_v41 = vcombine.low %v1266_v18, %v1276_v43  ;;  %v11255_v34 = vcombine.low %v6024_v32, %v6027_v33  ;;  %v14558_v54 = vsel %vm13988_vm7, %v6028_v0, %v6029_v25  ;;  %v1286_v45 = vsel %vm13838_vm4, %v1281_v47, %v1285_v21  ;;  %v947_v12 = vld [vmem:[%s13820_s24 + $0xa4] sm:$0xf]  ;;  %v948_v25 = vld [vmem:[%s13820_s24 + $0xa8] sm:$0xf]  ;;  %v950_v33 = vld [vmem:[%s13820_s24 + $0xb0] sm:$0x1] }
  0xdf   : > { %v1296_v60 = vsel %vm13838_vm4, %v1291_v5, %v1295_v42  ;;  %v1298_v31 = vshrl.u32 %v941_v20, 16  ;;  %v1301_v56 = vshll.u32 %v941_v20, 16  ;;  %v6033_v51 = vsel %vm13988_vm7, %v6031_v26, %v6032_v38  ;;  %v949_v5 = vld [vmem:[%s13820_s24 + $0xac] sm:$0xf] }
  0xe0   : > { %12131 = vmatprep.mubr.msk.bf16.mxu1 %vm452_vm1, %v10723_v41  ;;  %v10724_v50 = vcombine.low %v1286_v45, %v1296_v60  ;;  %v1307_v22 = vshll.u32 %v942_v46, 16  ;;  %v1311_v37 = vshrl.u32 %v942_v46, 16  ;;  %v11256_v3 = vcombine.low %v14558_v54, %v6033_v51 }
  0xe1   : > { %v1300_v14 = vrot.slane %v1298_v31, 4  ;;  %v1303_v1 = vrot.slane %v1301_v56, 5  ;;  %v1317_v2 = vshll.u32 %v943_v35, 16  ;;  %v1321_v52 = vshrl.u32 %v943_v35, 16 }
  0xe2   : > { %v1309_v40 = vrot.slane %v1307_v22, 5  ;;  %v1313_v44 = vrot.slane %v1311_v37, 4  ;;  %v1327_v62 = vshll.u32 %v944_v58, 16  ;;  %v1331_v17 = vshrl.u32 %v944_v58, 16  ;;  %v11207_v58 = vld [vmem:[%s13820_s24 + $0x140] sm:$0xe] }
  0xe3   : > { %v1304_v19 = vor.u32 %v1303_v1, %v1300_v14  ;;  %v1319_v29 = vrot.slane %v1317_v2, 5  ;;  %v1337_v15 = vshll.u32 %v945_v63, 16  ;;  %v1323_v6 = vrot.slane %v1321_v52, 4  ;;  %v11208_v37 = vld [vmem:[%s13820_s24 + $0x144] sm:$0xf] }
  0xe4   : > { %12420 = vmatmul.mubr.msk.bf16.gmra.mrb[48].mxu0 %vm452_vm1, %v11254_v48  ;;  %v1314_v16 = vor.u32 %v1313_v44, %v1309_v40  ;;  %v1329_v23 = vrot.slane %v1327_v62, 5  ;;  %v11226_v7 = vrot.slane %v11202_v9, 9  ;;  %v1333_v48 = vrot.slane %v1331_v17, 4  ;;  %v11209_v9 = vld [vmem:[%s13820_s24 + $0x148] sm:$0xf] }
  0xe5   : > { %12423 = vmatprep.mubr.msk.bf16.mxu0 %vm452_vm1, %v11255_v34  ;;  %v1305_v8 = vrot.slane %v1304_v19, 4  ;;  %v1339_v55 = vrot.slane %v1337_v15, 5  ;;  %v6036_v21 = vrot.slane %v11203_v53, 5  ;;  %v1324_v24 = vor.u32 %v1323_v6, %v1319_v29  ;;  %v11210_v2 = vld [vmem:[%s13820_s24 + $0x14c] sm:$0xf] }
  0xe6   : > { %12132 = vmatmul.mubr.msk.bf16.gmra.mrb[24].mxu1 %vm452_vm1, %v10724_v50  ;;  %v1315_v13 = vrot.slane %v1314_v16, 4  ;;  %v6039_v61 = vrot.slane %v11204_v57, 5  ;;  %v6042_v42 = vrot.slane %v11205_v59, 5  ;;  %v1334_v27 = vor.u32 %v1333_v48, %v1329_v23  ;;  %v11211_v52 = vld [vmem:[%s13820_s24 + $0x150] sm:$0x1] }
  0xe7   : > { %v1310_v49 = vsel %vm13838_vm4, %v1305_v8, %v1309_v40  ;;  %v6037_v28 = vsel %vm13988_vm7, %v11226_v7, %v6036_v21  ;;  %v6038_v32 = vrot.slane %v6036_v21, 4  ;;  %v1325_v18 = vrot.slane %v1324_v24, 4  ;;  %v951_v7 = vld [vmem:[%s13820_s24 + $0xb4] sm:$0xf] }
  0xe8   : > { %v1320_v20 = vsel %vm13838_vm4, %v1315_v13, %v1319_v29  ;;  %v6041_v43 = vrot.slane %v6039_v61, 4  ;;  %v6044_v0 = vrot.slane %v6042_v42, 4  ;;  %v1335_v35 = vrot.slane %v1334_v27, 4 }
  0xe9   : > { %v10725_v46 = vcombine.low %v1310_v49, %v1320_v20  ;;  %v6040_v41 = vsel %vm13988_vm7, %v6038_v32, %v6039_v61  ;;  %v6045_v47 = vrot.slane %v11206_v30, 5  ;;  %v1330_v34 = vsel %vm13838_vm4, %v1325_v18, %v1329_v23  ;;  %v952_v32 = vld [vmem:[%s13820_s24 + $0xb8] sm:$0xf] }
  0xea   : > { %v11257_v54 = vcombine.low %v6037_v28, %v6040_v41  ;;  %v6043_v26 = vsel %vm13988_vm7, %v6041_v43, %v6042_v42  ;;  %v1342_v38 = vshrl.u32 %v946_v39, 16  ;;  %v1340_v45 = vsel %vm13838_vm4, %v1335_v35, %v1339_v55  ;;  %v953_v43 = vld [vmem:[%s13820_s24 + $0xbc] sm:$0xf]  ;;  %v954_v41 = vld [vmem:[%s13820_s24 + $0xc0] sm:$0xf] }
  0xeb   : > { %12135 = vmatprep.mubr.msk.bf16.mxu1 %vm452_vm1, %v10725_v46  ;;  %v6046_v60 = vsel %vm13988_vm7, %v6044_v0, %v6045_v47  ;;  %v1345_v31 = vshll.u32 %v946_v39, 16  ;;  %v1351_v56 = vshll.u32 %v947_v12, 16  ;;  %v10726_v63 = vcombine.low %v1330_v34, %v1340_v45  ;;  %v955_v47 = vld [vmem:[%s13820_s24 + $0xc4] sm:$0x1] }
  0xec   : > { %12424 = vmatmul.mubr.msk.bf16.gmra.mrb[52].mxu0 %vm452_vm1, %v11256_v3  ;;  %v11258_v50 = vcombine.low %v6043_v26, %v6046_v60  ;;  %v1344_v51 = vrot.slane %v1342_v38, 4  ;;  %v1355_v22 = vshrl.u32 %v947_v12, 16  ;;  %v1361_v14 = vshll.u32 %v948_v25, 16 }
  0xed   : > { %12427 = vmatprep.mubr.msk.bf16.mxu0 %vm452_vm1, %v11257_v54  ;;  %v1347_v53 = vrot.slane %v1345_v31, 5  ;;  %v1353_v3 = vrot.slane %v1351_v56, 5  ;;  %v1365_v1 = vshrl.u32 %v948_v25, 16  ;;  %v1371_v59 = vshll.u32 %v949_v5, 16  ;;  %v13421_v31 = vld [vmem:[%s13820_s24 + $0x28] sm:$0xff]  }
  0xee   : > { %12136 = vmatmul.mubr.msk.bf16.gmra.mrb[28].mxu1 %vm452_vm1, %v10726_v63  ;;  %v1357_v57 = vrot.slane %v1355_v22, 4  ;;  %v1375_v40 = vshrl.u32 %v949_v5, 16  ;;  %v1381_v44 = vshll.u32 %v950_v33, 16  ;;  %v1363_v19 = vrot.slane %v1361_v14, 5 }
  0xef   : > { %v1348_v62 = vor.u32 %v1347_v53, %v1344_v51  ;;  %v1367_v29 = vrot.slane %v1365_v1, 4  ;;  %v11227_v17 = vrot.slane %v11207_v58, 9  ;;  %v1373_v16 = vrot.slane %v1371_v59, 5  ;;  %v956_v53 = vld [vmem:[%s13820_s24 + $0xc8] sm:$0xf] }
  0xf0   : > { %v1358_v15 = vor.u32 %v1357_v57, %v1353_v3  ;;  %v1377_v6 = vrot.slane %v1375_v40, 4  ;;  %v1383_v23 = vrot.slane %v1381_v44, 5  ;;  %v6049_v55 = vrot.slane %v11208_v37, 5  ;;  %v957_v57 = vld [vmem:[%s13820_s24 + $0xcc] sm:$0xf] }
  0xf1   : > { %v1349_v8 = vrot.slane %v1348_v62, 4  ;;  %v1368_v48 = vor.u32 %v1367_v29, %v1363_v19  ;;  %v6052_v21 = vrot.slane %v11209_v9, 5  ;;  %v6055_v61 = vrot.slane %v11210_v2, 5  ;;  %v958_v62 = vld [vmem:[%s13820_s24 + $0xd0] sm:$0xf] }
  0xf2   : > { %v1359_v13 = vrot.slane %v1358_v15, 4  ;;  %v1378_v24 = vor.u32 %v1377_v6, %v1373_v16  ;;  %v6058_v30 = vrot.slane %v11211_v52, 5  ;;  %v6050_v27 = vsel %vm13988_vm7, %v11227_v17, %v6049_v55 }
  0xf3   : > { %v1354_v42 = vsel %vm13838_vm4, %v1349_v8, %v1353_v3  ;;  %v1369_v49 = vrot.slane %v1368_v48, 4  ;;  %v6051_v28 = vrot.slane %v6049_v55, 4  ;;  %v6054_v20 = vrot.slane %v6052_v21, 4  ;;  %v959_v55 = vld [vmem:[%s13820_s24 + $0xd4] sm:$0xf] }
  0xf4   : > { %12428 = vmatmul.mubr.msk.bf16.gmra.mrb[56].mxu0 %vm452_vm1, %v11258_v50  ;;  %v1364_v39 = vsel %vm13838_vm4, %v1359_v13, %v1363_v19  ;;  %v1379_v12 = vrot.slane %v1378_v24, 4  ;;  %v6057_v18 = vrot.slane %v6055_v61, 4  ;;  %v1386_v35 = vshrl.u32 %v951_v7, 16 }
  0xf5   : > { %v10727_v0 = vcombine.low %v1354_v42, %v1364_v39  ;;  %v1374_v25 = vsel %vm13838_vm4, %v1369_v49, %v1373_v16  ;;  %v6053_v46 = vsel %vm13988_vm7, %v6051_v28, %v6052_v21  ;;  %v6056_v34 = vsel %vm13988_vm7, %v6054_v20, %v6055_v61  ;;  %v14647_v16 = vld [vmem:[%s17218_s1 + $0x6] sm:$0x3]  ;;  %v13423_v20 = vld [vmem:[%s13820_s24 + $0x3c] sm:$0xff]  }
  0xf6   : > { %v1384_v5 = vsel %vm13838_vm4, %v1379_v12, %v1383_v23  ;;  %v11259_v33 = vcombine.low %v6050_v27, %v6053_v46  ;;  %v6059_v54 = vsel %vm13988_vm7, %v6057_v18, %v6058_v30  ;;  %v1388_v45 = vrot.slane %v1386_v35, 4  ;;  %13278 = vmatprep.subr.msk.bf16.mxu1 %vm549_vm0, %v14647_v16  ;;  %v960_v12 = vld [vmem:[%s13820_s24 + $0xd8] sm:$0x1]  ;;  %v961_v46 = vld [vmem:[%s13820_s24 + $0xdc] sm:$0xf] }
  0xf7   : > { %12139 = vmatprep.mubr.msk.bf16.mxu1 %vm452_vm1, %v10727_v0  ;;  %v10728_v26 = vcombine.low %v1374_v25, %v1384_v5  ;;  %v11260_v38 = vcombine.low %v6056_v34, %v6059_v54  ;;  %v1389_v60 = vshll.u32 %v951_v7, 16  ;;  %v1395_v56 = vshll.u32 %v952_v32, 16  ;;  %v13422_v7 = vld [vmem:[%s13820_s24 + $0x30] sm:$0xff]  }
  0xf8   : > { %12431 = vmatprep.mubr.msk.bf16.mxu0 %vm452_vm1, %v11259_v33  ;;  %v1399_v58 = vshrl.u32 %v952_v32, 16  ;;  %v1405_v63 = vshll.u32 %v953_v43, 16  ;;  %v1409_v50 = vshrl.u32 %v953_v43, 16  ;;  %v1415_v22 = vshll.u32 %v954_v41, 16  ;;  %v962_v33 = vld [vmem:[%s13820_s24 + $0xe0] sm:$0xf] }
  0xf9   : > { %12140 = vmatmul.mubr.msk.bf16.gmra.mrb[32].mxu1 %vm452_vm1, %v10728_v26  ;;  %v1391_v51 = vrot.slane %v1389_v60, 5  ;;  %v1419_v37 = vshrl.u32 %v954_v41, 16  ;;  %v1425_v9 = vshll.u32 %v955_v47, 16  ;;  %v1397_v3 = vrot.slane %v1395_v56, 5 }
  0xfa   : > { %v1401_v14 = vrot.slane %v1399_v58, 4  ;;  %v1407_v1 = vrot.slane %v1405_v63, 5  ;;  %v1411_v2 = vrot.slane %v1409_v50, 4  ;;  %v1417_v40 = vrot.slane %v1415_v22, 5  ;;  %v963_v22 = vld [vmem:[%s13820_s24 + $0xe4] sm:$0xf] }
  0xfb   : > { %v1392_v59 = vor.u32 %v1391_v51, %v1388_v45  ;;  %v1421_v44 = vrot.slane %v1419_v37, 4  ;;  %v1427_v52 = vrot.slane %v1425_v9, 5  ;;  %v8527_v17 = vsel %vm549_vm0, %v14501_v11, 0  ;;  %v13424_v9 = vld [vmem:[%s13820_s24 + $0x44] sm:$0xff]  }
  0xfc   : > { %12432 = vmatmul.mubr.msk.bf16.gmra.mrb[60].mxu0 %vm452_vm1, %v11260_v38  ;;  %v1402_v19 = vor.u32 %v1401_v14, %v1397_v3  ;;  %v1412_v29 = vor.u32 %v1411_v2, %v1407_v1  ;;  %v1430_v15 = vshrl.u32 %v956_v53, 16  ;;  %v1433_v8 = vshll.u32 %v956_v53, 16 }
  0xfd   : > { %12437 = vmatprep.mubr.msk.bf16.mxu0 %vm452_vm1, %v13421_v31  ;;  %v1393_v6 = vrot.slane %v1392_v59, 4  ;;  %v1422_v23 = vor.u32 %v1421_v44, %v1417_v40  ;;  %v1439_v48 = vshll.u32 %v957_v57, 16  ;;  %v1443_v24 = vshrl.u32 %v957_v57, 16  ;;  %v965_v44 = vld [vmem:[%s13820_s24 + $0xec] sm:$0x1] }
  0xfe   : > { %v1403_v21 = vrot.slane %v1402_v19, 4  ;;  %v1413_v13 = vrot.slane %v1412_v29, 4  ;;  %v1432_v11 = vrot.slane %v1430_v15, 4  ;;  %v1435_v42 = vrot.slane %v1433_v8, 5  ;;  %v966_v15 = vld [vmem:[%s13820_s24 + $0xf0] sm:$0xf] }
  0xff   : > { %v1398_v61 = vsel %vm13838_vm4, %v1393_v6, %v1397_v3  ;;  %v1423_v30 = vrot.slane %v1422_v23, 4  ;;  %v1441_v49 = vrot.slane %v1439_v48, 5  ;;  %v1445_v32 = vrot.slane %v1443_v24, 4  ;;  %v967_v48 = vld [vmem:[%s13820_s24 + $0xf4] sm:$0xf] }
 0x100   : > { %v1408_v27 = vsel %vm13838_vm4, %v1403_v21, %v1407_v1  ;;  %v1418_v28 = vsel %vm13838_vm4, %v1413_v13, %v1417_v40  ;;  %v1449_v39 = vshll.u32 %v958_v62, 16  ;;  %v1436_v0 = vor.u32 %v1435_v42, %v1432_v11  ;;  %v964_v1 = vld [vmem:[%s13820_s24 + $0xe8] sm:$0xf] }
 0x101   : > { %v10729_v18 = vcombine.low %v1398_v61, %v1408_v27  ;;  %v1428_v43 = vsel %vm13838_vm4, %v1423_v30, %v1427_v52  ;;  %v1453_v25 = vshrl.u32 %v958_v62, 16  ;;  %v1446_v41 = vor.u32 %v1445_v32, %v1441_v49  ;;  %v13425_v52 = vld [vmem:[%s13820_s24 + $0x50] sm:$0xff]  }
 0x102   : > { %v10730_v35 = vcombine.low %v1418_v28, %v1428_v43  ;;  %v1451_v47 = vrot.slane %v1449_v39, 5  ;;  %v1459_v5 = vshll.u32 %v959_v55, 16  ;;  %v1437_v34 = vrot.slane %v1436_v0, 4  ;;  %v968_v39 = vld [vmem:[%s13820_s24 + $0xf8] sm:$0xf] }
 0x103   : > { %12143 = vmatprep.mubr.msk.bf16.mxu1 %vm452_vm1, %v10729_v18  ;;  %v1455_v54 = vrot.slane %v1453_v25, 4  ;;  %v1463_v26 = vshrl.u32 %v959_v55, 16  ;;  %v1469_v38 = vshll.u32 %v960_v12, 16  ;;  %v1447_v45 = vrot.slane %v1446_v41, 4  ;;  %v969_v0 = vld [vmem:[%s13820_s24 + $0xfc] sm:$0xf] }
 0x104   : > { %12438 = vmatmul.mubr.msk.bf16.vlgmr.msra.gmra.mrb[0].mxu0 %vm452_vm1, %v13422_v7  ;;  %12144 = vmatmul.mubr.msk.bf16.gmra.mrb[36].mxu1 %vm452_vm1, %v10730_v35  ;;  %v1461_v60 = vrot.slane %v1459_v5, 5  ;;  %v1474_v31 = vshrl.u32 %v961_v46, 16  ;;  %v1477_v56 = vshll.u32 %v961_v46, 16  ;;  %v1442_v58 = vsel %vm13838_vm4, %v1437_v34, %v1441_v49  ;;  %v13426_v35 = vld [vmem:[%s13820_s24 + $0x58] sm:$0xff]   ;;  %v970_v5 = vld [vmem:[%s13820_s24 + $0x100] sm:$0x1] }
 0x105   : > { %12502 = vmatpush3.bf16.msra.mxu0 %v8527_v17  ;;  %12441 = vmatprep.mubr.msk.bf16.mxu0 %vm452_vm1, %v13423_v20  ;;  %v1456_v63 = vor.u32 %v1455_v54, %v1451_v47  ;;  %v1465_v50 = vrot.slane %v1463_v26, 4  ;;  %v1471_v51 = vrot.slane %v1469_v38, 5  ;;  %v1452_v37 = vsel %vm13838_vm4, %v1447_v45, %v1451_v47  ;;  %v13427_v38 = vld [vmem:[%s13820_s24 + $0x64] sm:$0xff]  }
 0x106   : > { %v1476_v53 = vrot.slane %v1474_v31, 4  ;;  %v1479_v3 = vrot.slane %v1477_v56, 5  ;;  %v1483_v14 = vshll.u32 %v962_v33, 16  ;;  %v10731_v2 = vcombine.low %v1442_v58, %v1452_v37  ;;  %v971_v45 = vld [vmem:[%s13820_s24 + $0x104] sm:$0xf] }
 0x107   : > { %v1457_v57 = vrot.slane %v1456_v63, 4  ;;  %v1466_v59 = vor.u32 %v1465_v50, %v1461_v60  ;;  %v1487_v40 = vshrl.u32 %v962_v33, 16  ;;  %v1493_v29 = vshll.u32 %v963_v22, 16 }
 0x108   : > { %v1480_v62 = vor.u32 %v1479_v3, %v1476_v53  ;;  %v1485_v19 = vrot.slane %v1483_v14, 5  ;;  %v1497_v17 = vshrl.u32 %v963_v22, 16  ;;  %12147 = vmatprep.mubr.msk.bf16.mxu1 %vm452_vm1, %v10731_v2  ;;  %v1503_v8 = vshll.u32 %v964_v1, 16 }
 0x109   : > { %v1462_v6 = vsel %vm13838_vm4, %v1457_v57, %v1461_v60  ;;  %v1467_v23 = vrot.slane %v1466_v59, 4  ;;  %v1489_v7 = vrot.slane %v1487_v40, 4  ;;  %v1495_v21 = vrot.slane %v1493_v29, 5  ;;  %v972_v59 = vld [vmem:[%s13820_s24 + $0x108] sm:$0xf] }
 0x10a   : > { %v1481_v55 = vrot.slane %v1480_v62, 4  ;;  %v1499_v13 = vrot.slane %v1497_v17, 4  ;;  %v1507_v11 = vshrl.u32 %v964_v1, 16  ;;  %v1505_v30 = vrot.slane %v1503_v8, 5  ;;  %v973_v62 = vld [vmem:[%s13820_s24 + $0x10c] sm:$0xf] }
 0x10b   : > { %v1472_v24 = vsel %vm13838_vm4, %v1467_v23, %v1471_v51  ;;  %v1490_v61 = vor.u32 %v1489_v7, %v1485_v19  ;;  %v1513_v42 = vshll.u32 %v965_v44, 16  ;;  %v1518_v18 = vshrl.u32 %v966_v15, 16  ;;  %v974_v23 = vld [vmem:[%s13820_s24 + $0x110] sm:$0xf] }
 0x10c   : > { %12442 = vmatmul.mubr.msk.bf16.gmra.mrb[4].mxu0 %vm452_vm1, %v13424_v9  ;;  %v10732_v49 = vcombine.low %v1462_v6, %v1472_v24  ;;  %v1486_v27 = vsel %vm13838_vm4, %v1481_v55, %v1485_v19  ;;  %v1500_v28 = vor.u32 %v1499_v13, %v1495_v21  ;;  %v1509_v32 = vrot.slane %v1507_v11, 4  ;;  %v13428_v8 = vld [vmem:[%s13820_s24 + $0x6c] sm:$0xff]   ;;  %v975_v13 = vld [vmem:[%s13820_s24 + $0x114] sm:$0x1] }
 0x10d   : > { %12445 = vmatprep.mubr.msk.bf16.mxu0 %vm452_vm1, %v13425_v52  ;;  %v1491_v12 = vrot.slane %v1490_v61, 4  ;;  %v1515_v20 = vrot.slane %v1513_v42, 5  ;;  %v1521_v43 = vshll.u32 %v966_v15, 16  ;;  %v1527_v41 = vshll.u32 %v967_v48, 16  ;;  %v13429_v42 = vld [vmem:[%s13820_s24 + $0x78] sm:$0xff]  }
 0x10e   : > { %12148 = vmatmul.mubr.msk.bf16.gmra.mrb[40].mxu1 %vm452_vm1, %v10732_v49  ;;  %v1501_v25 = vrot.slane %v1500_v28, 4  ;;  %v1510_v46 = vor.u32 %v1509_v32, %v1505_v30  ;;  %v1531_v47 = vshrl.u32 %v967_v48, 16  ;;  %v1520_v34 = vrot.slane %v1518_v18, 4 }
 0x10f   : > { %v1496_v33 = vsel %vm13838_vm4, %v1491_v12, %v1495_v21  ;;  %v1523_v54 = vrot.slane %v1521_v43, 5  ;;  %v1537_v26 = vshll.u32 %v968_v39, 16  ;;  %v1529_v58 = vrot.slane %v1527_v41, 5  ;;  %v976_v43 = vld [vmem:[%s13820_s24 + $0x118] sm:$0xf] }
 0x110   : > { %v10733_v60 = vcombine.low %v1486_v27, %v1496_v33  ;;  %v1506_v31 = vsel %vm13838_vm4, %v1501_v25, %v1505_v30  ;;  %v1511_v56 = vrot.slane %v1510_v46, 4  ;;  %v1533_v50 = vrot.slane %v1531_v47, 4  ;;  %v977_v41 = vld [vmem:[%s13820_s24 + $0x11c] sm:$0xf] }
 0x111   : > { %v1524_v63 = vor.u32 %v1523_v54, %v1520_v34  ;;  %v1539_v51 = vrot.slane %v1537_v26, 5  ;;  %v1541_v22 = vshrl.u32 %v968_v39, 16  ;;  %v1547_v9 = vshll.u32 %v969_v0, 16  ;;  %v978_v54 = vld [vmem:[%s13820_s24 + $0x120] sm:$0xf] }
 0x112   : > { %12151 = vmatprep.mubr.msk.bf16.mxu1 %vm452_vm1, %v10733_v60  ;;  %v1516_v37 = vsel %vm13838_vm4, %v1511_v56, %v1515_v20  ;;  %v1551_v53 = vshrl.u32 %v969_v0, 16  ;;  %v1557_v3 = vshll.u32 %v970_v5, 16  ;;  %v1534_v2 = vor.u32 %v1533_v50, %v1529_v58  ;;  %v13430_v60 = vld [vmem:[%s13820_s24 + $0x80] sm:$0xff]  }
 0x113   : > { %v10734_v14 = vcombine.low %v1506_v31, %v1516_v37  ;;  %v1525_v1 = vrot.slane %v1524_v63, 4  ;;  %v1543_v57 = vrot.slane %v1541_v22, 4  ;;  %v1549_v40 = vrot.slane %v1547_v9, 5  ;;  %v979_v56 = vld [vmem:[%s13820_s24 + $0x124] sm:$0xf] }
 0x114   : > { %12446 = vmatmul.mubr.msk.bf16.gmra.mrb[8].mxu0 %vm452_vm1, %v13426_v35  ;;  %v1553_v44 = vrot.slane %v1551_v53, 4  ;;  %v1559_v52 = vrot.slane %v1557_v3, 5  ;;  %v1562_v19 = vshrl.u32 %v971_v45, 16  ;;  %v1535_v17 = vrot.slane %v1534_v2, 4 }
 0x115   : > { %12449 = vmatprep.mubr.msk.bf16.mxu0 %vm452_vm1, %v13427_v38  ;;  %v1530_v29 = vsel %vm13838_vm4, %v1525_v1, %v1529_v58  ;;  %v1544_v15 = vor.u32 %v1543_v57, %v1539_v51  ;;  %v1565_v6 = vshll.u32 %v971_v45, 16  ;;  %v1571_v55 = vshll.u32 %v972_v59, 16  ;;  %v13431_v57 = vld [vmem:[%s13820_s24 + $0x8c] sm:$0xff]  }
 0x116   : > { %12152 = vmatmul.mubr.msk.bf16.gmra.mrb[44].mxu1 %vm452_vm1, %v10734_v14  ;;  %v1554_v7 = vor.u32 %v1553_v44, %v1549_v40  ;;  %v1564_v48 = vrot.slane %v1562_v19, 4  ;;  %v1575_v21 = vshrl.u32 %v972_v59, 16  ;;  %v1540_v11 = vsel %vm13838_vm4, %v1535_v17, %v1539_v51  ;;  %v980_v17 = vld [vmem:[%s13820_s24 + $0x128] sm:$0x1] }
 0x117   : > { %v1545_v24 = vrot.slane %v1544_v15, 4  ;;  %v1567_v61 = vrot.slane %v1565_v6, 5  ;;  %v1581_v30 = vshll.u32 %v973_v62, 16  ;;  %v10735_v49 = vcombine.low %v1530_v29, %v1540_v11  ;;  %v981_v6 = vld [vmem:[%s13820_s24 + $0x12c] sm:$0xf] }
 0x118   : > { %v1555_v27 = vrot.slane %v1554_v7, 4  ;;  %v1573_v28 = vrot.slane %v1571_v55, 5  ;;  %v1577_v32 = vrot.slane %v1575_v21, 4  ;;  %v1585_v18 = vshrl.u32 %v973_v62, 16  ;;  %v982_v55 = vld [vmem:[%s13820_s24 + $0x130] sm:$0xf] }
 0x119   : > { %v1550_v39 = vsel %vm13838_vm4, %v1545_v24, %v1549_v40  ;;  %v1568_v12 = vor.u32 %v1567_v61, %v1564_v48  ;;  %v1583_v20 = vrot.slane %v1581_v30, 5  ;;  %12155 = vmatprep.mubr.msk.bf16.mxu1 %vm452_vm1, %v10735_v49  ;;  %v1591_v46 = vshll.u32 %v974_v23, 16  ;;  %v983_v61 = vld [vmem:[%s13820_s24 + $0x134] sm:$0xf] }
 0x11a   : > { %v1560_v0 = vsel %vm13838_vm4, %v1555_v27, %v1559_v52  ;;  %v1578_v25 = vor.u32 %v1577_v32, %v1573_v28  ;;  %v1595_v35 = vshrl.u32 %v974_v23, 16  ;;  %v1587_v33 = vrot.slane %v1585_v18, 4 }
 0x11b   : > { %v10736_v47 = vcombine.low %v1550_v39, %v1560_v0  ;;  %v1569_v5 = vrot.slane %v1568_v12, 4  ;;  %v1601_v34 = vshll.u32 %v975_v13, 16  ;;  %v1593_v38 = vrot.slane %v1591_v46, 5  ;;  %v13432_v0 = vld [vmem:[%s13820_s24 + $0x94] sm:$0xff]  }
 0x11c   : > { %12450 = vmatmul.mubr.msk.bf16.gmra.mrb[12].mxu0 %vm452_vm1, %v13428_v8  ;;  %v1579_v26 = vrot.slane %v1578_v25, 4  ;;  %v1597_v45 = vrot.slane %v1595_v35, 4  ;;  %v1606_v31 = vshrl.u32 %v976_v43, 16  ;;  %v1588_v63 = vor.u32 %v1587_v33, %v1583_v20  ;;  %v984_v46 = vld [vmem:[%s13820_s24 + $0x138] sm:$0xf] }
 0x11d   : > { %12453 = vmatprep.mubr.msk.bf16.mxu0 %vm452_vm1, %v13429_v42  ;;  %v1574_v58 = vsel %vm13838_vm4, %v1569_v5, %v1573_v28  ;;  %v1603_v50 = vrot.slane %v1601_v34, 5  ;;  %v1609_v51 = vshll.u32 %v976_v43, 16  ;;  %v1615_v53 = vshll.u32 %v977_v41, 16  ;;  %v985_v33 = vld [vmem:[%s13820_s24 + $0x13c] sm:$0x1]  ;;  %v13433_v34 = vld [vmem:[%s13820_s24 + $0xa0] sm:$0xff]  }
 0x11e   : > { %12156 = vmatmul.mubr.msk.bf16.gmra.mrb[48].mxu1 %vm452_vm1, %v10736_v47  ;;  %v1584_v22 = vsel %vm13838_vm4, %v1579_v26, %v1583_v20  ;;  %v1598_v37 = vor.u32 %v1597_v45, %v1593_v38  ;;  %v1608_v9 = vrot.slane %v1606_v31, 4  ;;  %v1589_v14 = vrot.slane %v1588_v63, 4  ;;  %v2372_v31 = vld [vmem:[%s13820_s24 + $0x4] sm:$0xf] }
 0x11f   : > { %v10737_v3 = vcombine.low %v1574_v58, %v1584_v22  ;;  %v1611_v1 = vrot.slane %v1609_v51, 5  ;;  %v1619_v2 = vshrl.u32 %v977_v41, 16  ;;  %v1617_v40 = vrot.slane %v1615_v53, 5  ;;  %v2373_v51 = vld [vmem:[%s13820_s24 + $0x8] sm:$0xf] }
 0x120   : > { %v1599_v59 = vrot.slane %v1598_v37, 4  ;;  %v1625_v44 = vshll.u32 %v978_v54, 16  ;;  %v1629_v52 = vshrl.u32 %v978_v54, 16  ;;  %v1594_v62 = vsel %vm13838_vm4, %v1589_v14, %v1593_v38  ;;  %v2374_v22 = vld [vmem:[%s13820_s24 + $0xc] sm:$0xf] }
 0x121   : > { %12159 = vmatprep.mubr.msk.bf16.mxu1 %vm452_vm1, %v10737_v3  ;;  %v1612_v19 = vor.u32 %v1611_v1, %v1608_v9  ;;  %v1621_v29 = vrot.slane %v1619_v2, 4  ;;  %v1635_v15 = vshll.u32 %v979_v56, 16  ;;  %v1639_v48 = vshrl.u32 %v979_v56, 16  ;;  %v2375_v37 = vld [vmem:[%s13820_s24 + $0x10] sm:$0x1] }
 0x122   : > { %v1604_v23 = vsel %vm13838_vm4, %v1599_v59, %v1603_v50  ;;  %v1627_v7 = vrot.slane %v1625_v44, 5  ;;  %v1631_v8 = vrot.slane %v1629_v52, 4  ;;  %v1645_v49 = vshll.u32 %v980_v17, 16 }
 0x123   : > { %v10738_v21 = vcombine.low %v1594_v62, %v1604_v23  ;;  %v1613_v13 = vrot.slane %v1612_v19, 4  ;;  %v1622_v11 = vor.u32 %v1621_v29, %v1617_v40  ;;  %v1637_v24 = vrot.slane %v1635_v15, 5  ;;  %v13434_v62 = vld [vmem:[%s13820_s24 + $0xa8] sm:$0xff]   ;;  %v2376_v23 = vld [vmem:[%s13820_s24 + $0x14] sm:$0xe] }
 0x124   : > { %12454 = vmatmul.mubr.msk.bf16.gmra.mrb[16].mxu0 %vm452_vm1, %v13430_v60  ;;  %v1632_v30 = vor.u32 %v1631_v8, %v1627_v7  ;;  %v1641_v42 = vrot.slane %v1639_v48, 4  ;;  %v1650_v27 = vshrl.u32 %v981_v6, 16  ;;  %v1653_v39 = vshll.u32 %v981_v6, 16  ;;  %v2371_v60 = vld [vmem:[%s13820_s24] sm:$0xe] }
 0x125   : > { %12457 = vmatprep.mubr.msk.bf16.mxu0 %vm452_vm1, %v13431_v57  ;;  %v1618_v28 = vsel %vm13838_vm4, %v1613_v13, %v1617_v40  ;;  %v1623_v32 = vrot.slane %v1622_v11, 4  ;;  %v1659_v12 = vshll.u32 %v982_v55, 16  ;;  %v1647_v43 = vrot.slane %v1645_v49, 5  ;;  %v13435_v13 = vld [vmem:[%s13820_s24 + $0xb4] sm:$0xff]   ;;  %v2378_v11 = vld [vmem:[%s13820_s24 + $0x1c] sm:$0xf] }
 0x126   : > { %12160 = vmatmul.mubr.msk.bf16.gmra.mrb[52].mxu1 %vm452_vm1, %v10738_v21  ;;  %v1633_v20 = vrot.slane %v1632_v30, 4  ;;  %v1642_v18 = vor.u32 %v1641_v42, %v1637_v24  ;;  %v1652_v25 = vrot.slane %v1650_v27, 4  ;;  %v1655_v41 = vrot.slane %v1653_v39, 5  ;;  %v2379_v49 = vld [vmem:[%s13820_s24 + $0x20] sm:$0xf] }
 0x127   : > { %v1628_v35 = vsel %vm13838_vm4, %v1623_v32, %v1627_v7  ;;  %v1661_v47 = vrot.slane %v1659_v12, 5  ;;  %v1663_v5 = vshrl.u32 %v982_v55, 16  ;;  %v1669_v45 = vshll.u32 %v983_v61, 16  ;;  %v2377_v7 = vld [vmem:[%s13820_s24 + $0x18] sm:$0xf] }
 0x128   : > { %v10739_v54 = vcombine.low %v1618_v28, %v1628_v35  ;;  %v1638_v26 = vsel %vm13838_vm4, %v1633_v20, %v1637_v24  ;;  %v1643_v38 = vrot.slane %v1642_v18, 4  ;;  %v1656_v56 = vor.u32 %v1655_v41, %v1652_v25  ;;  %v2380_v27 = vld [vmem:[%s13820_s24 + $0x24] sm:$0x1]  ;;  %v2382_v20 = vld [vmem:[%s13820_s24 + $0x2c] sm:$0xf] }
 0x129   : > { %v1665_v58 = vrot.slane %v1663_v5, 4  ;;  %v1673_v63 = vshrl.u32 %v983_v61, 16  ;;  %v1679_v50 = vshll.u32 %v984_v46, 16  ;;  %v1671_v53 = vrot.slane %v1669_v45, 5  ;;  %v2381_v25 = vld [vmem:[%s13820_s24 + $0x28] sm:$0xe] }
 0x12a   : > { %12163 = vmatprep.mubr.msk.bf16.mxu1 %vm452_vm1, %v10739_v54  ;;  %v1648_v9 = vsel %vm13838_vm4, %v1643_v38, %v1647_v43  ;;  %v1683_v3 = vshrl.u32 %v984_v46, 16  ;;  %v1689_v14 = vshll.u32 %v985_v33, 16  ;;  %v1657_v2 = vrot.slane %v1656_v56, 4  ;;  %v2383_v5 = vld [vmem:[%s13820_s24 + $0x30] sm:$0xf] }
 0x12b   : > { %v10740_v1 = vcombine.low %v1638_v26, %v1648_v9  ;;  %v1666_v57 = vor.u32 %v1665_v58, %v1661_v47  ;;  %v1675_v59 = vrot.slane %v1673_v63, 4  ;;  %v1681_v40 = vrot.slane %v1679_v50, 5  ;;  %v2384_v38 = vld [vmem:[%s13820_s24 + $0x34] sm:$0xf]  ;;  %v2385_v45 = vld [vmem:[%s13820_s24 + $0x38] sm:$0x1] }
 0x12c   : > { %12458 = vmatmul.mubr.msk.bf16.gmra.mrb[20].mxu0 %vm452_vm1, %v13432_v0  ;;  %v1685_v44 = vrot.slane %v1683_v3, 4  ;;  %v1691_v52 = vrot.slane %v1689_v14, 5  ;;  %v10775_v19 = vrot.slane %v2371_v60, 9  ;;  %v1662_v29 = vsel %vm13838_vm4, %v1657_v2, %v1661_v47  ;;  %v2386_v56 = vld [vmem:[%s13820_s24 + $0x3c] sm:$0xe] }
 0x12d   : > { %12461 = vmatprep.mubr.msk.bf16.mxu0 %vm452_vm1, %v13433_v34  ;;  %v1667_v17 = vrot.slane %v1666_v57, 4  ;;  %v1676_v15 = vor.u32 %v1675_v59, %v1671_v53  ;;  %v2536_v6 = vrot.slane %v2372_v31, 5  ;;  %v2539_v48 = vrot.slane %v2373_v51, 5  ;;  %v2387_v58 = vld [vmem:[%s13820_s24 + $0x40] sm:$0xf] }
 0x12e   : > { %12164 = vmatmul.mubr.msk.bf16.gmra.mrb[56].mxu1 %vm452_vm1, %v10740_v1  ;;  %v1686_v8 = vor.u32 %v1685_v44, %v1681_v40  ;;  %v2542_v55 = vrot.slane %v2374_v22, 5  ;;  %v2545_v21 = vrot.slane %v2375_v37, 5  ;;  %v10776_v0 = vrot.slane %v2376_v23, 9  ;;  %v2388_v37 = vld [vmem:[%s13820_s24 + $0x44] sm:$0xf] }
 0x12f   : > { %v1672_v24 = vsel %vm13838_vm4, %v1667_v17, %v1671_v53  ;;  %v1677_v61 = vrot.slane %v1676_v15, 4  ;;  %v2537_v30 = vsel %vm13988_vm7, %v10775_v19, %v2536_v6  ;;  %v2538_v42 = vrot.slane %v2536_v6, 4  ;;  %v13436_v53 = vld [vmem:[%s13820_s24 + $0xbc] sm:$0xff]   ;;  %v2389_v2 = vld [vmem:[%s13820_s24 + $0x48] sm:$0xf] }
 0x130   : > { %v10741_v28 = vcombine.low %v1662_v29, %v1672_v24  ;;  %v1687_v32 = vrot.slane %v1686_v8, 4  ;;  %v2541_v39 = vrot.slane %v2539_v48, 4  ;;  %v2544_v12 = vrot.slane %v2542_v55, 4  ;;  %v2391_v6 = vld [vmem:[%s13820_s24 + $0x50] sm:$0xe] }
 0x131   : > { %v1682_v18 = vsel %vm13838_vm4, %v1677_v61, %v1681_v40  ;;  %v2540_v43 = vsel %vm13988_vm7, %v2538_v42, %v2539_v48  ;;  %v2549_v47 = vrot.slane %v2377_v7, 5  ;;  %v2552_v54 = vrot.slane %v2378_v11, 5  ;;  %v13437_v40 = vld [vmem:[%s13820_s24 + $0xc8] sm:$0xff]   ;;  %v2393_v61 = vld [vmem:[%s13820_s24 + $0x58] sm:$0xf] }
 0x132   : > { %12167 = vmatprep.mubr.msk.bf16.mxu1 %vm452_vm1, %v10741_v28  ;;  %v1692_v46 = vsel %vm13838_vm4, %v1687_v32, %v1691_v52  ;;  %v10792_v35 = vcombine.low %v2537_v30, %v2540_v43  ;;  %v14792_v41 = vsel %vm13988_vm7, %v2541_v39, %v2542_v55  ;;  %v14797_v34 = vsel %vm13988_vm7, %v2544_v12, %v2545_v21  ;;  %v2390_v52 = vld [vmem:[%s13820_s24 + $0x4c] sm:$0x1]  ;;  %v2392_v55 = vld [vmem:[%s13820_s24 + $0x54] sm:$0xf]  ;;  %v2394_v30 = vld [vmem:[%s13820_s24 + $0x5c] sm:$0xf] }
 0x133   : > { %v10742_v33 = vcombine.low %v1682_v18, %v1692_v46  ;;  %v2555_v26 = vrot.slane %v2379_v49, 5  ;;  %v2551_v60 = vrot.slane %v2549_v47, 4  ;;  %v2558_v31 = vrot.slane %v2380_v27, 5  ;;  %v2395_v32 = vld [vmem:[%s13820_s24 + $0x60] sm:$0x1] }
 0x134   : > { %12462 = vmatmul.mubr.msk.bf16.gmra.mrb[24].mxu0 %vm452_vm1, %v13434_v62  ;;  %v3747_v63 = vsel %vm549_vm0, %v14647_v16, 0  ;;  %v2554_v50 = vrot.slane %v2552_v54, 4  ;;  %v2562_v22 = vrot.slane %v2382_v20, 5  ;;  %v10793_v9 = vcombine.low %v14792_v41, %v14797_v34  ;;  %v14826_v62 = vld [vmem:[%s17218_s1 + $0x10] sm:$0x3] }
 0x135   : > { %12465 = vmatprep.mubr.msk.bf16.mxu0 %vm452_vm1, %v13435_v13  ;;  %v2557_v51 = vrot.slane %v2555_v26, 4  ;;  %v10777_v3 = vrot.slane %v2381_v25, 9  ;;  %v2565_v14 = vrot.slane %v2383_v5, 5  ;;  %v2568_v1 = vrot.slane %v2384_v38, 5  ;;  %13284 = vmatprep.subr.msk.bf16.mxu0 %vm549_vm0, %v14826_v62  ;;  %v2396_v39 = vld [vmem:[%s13820_s24 + $0x64] sm:$0xe] }
 0x136   : > { %12168 = vmatmul.mubr.msk.bf16.gmra.mrb[60].mxu1 %vm452_vm1, %v10742_v33  ;;  %v2550_v16 = vsel %vm13988_vm7, %v10776_v0, %v2549_v47  ;;  %v2553_v57 = vsel %vm13988_vm7, %v2551_v60, %v2552_v54  ;;  %v14819_v59 = vsel %vm13988_vm7, %v2554_v50, %v2555_v26  ;;  %v2571_v44 = vrot.slane %v2385_v45, 5  ;;  %v2397_v0 = vld [vmem:[%s13820_s24 + $0x68] sm:$0xf]  ;;  %v2398_v47 = vld [vmem:[%s13820_s24 + $0x6c] sm:$0xf]  ;;  %v13438_v33 = vld [vmem:[%s13820_s24 + $0xd0] sm:$0xff]  }
 0x137   : > { %12173 = vmatprep.mubr.msk.bf16.mxu1 %vm452_vm1, %v10792_v35  ;;  %v14830_v19 = vsel %vm13988_vm7, %v2557_v51, %v2558_v31  ;;  %v2564_v29 = vrot.slane %v2562_v22, 4  ;;  %v2567_v17 = vrot.slane %v2565_v14, 4  ;;  %v2570_v15 = vrot.slane %v2568_v1, 4  ;;  %v2399_v5 = vld [vmem:[%s13820_s24 + $0x70] sm:$0xf]  ;;  %v13439_v60 = vld [vmem:[%s13820_s24 + $0xdc] sm:$0xff]  }
 0x138   : > { %v10778_v23 = vrot.slane %v2386_v56, 9  ;;  %v2575_v7 = vrot.slane %v2387_v58, 5  ;;  %v2578_v8 = vrot.slane %v2388_v37, 5  ;;  %v2581_v48 = vrot.slane %v2389_v2, 5  ;;  %v2400_v45 = vld [vmem:[%s13820_s24 + $0x74] sm:$0x1] }
 0x139   : > { %v10794_v21 = vcombine.low %v2550_v16, %v2553_v57  ;;  %v14839_v13 = vsel %vm13988_vm7, %v10777_v3, %v2562_v22  ;;  %v14843_v11 = vsel %vm13988_vm7, %v2564_v29, %v2565_v14  ;;  %v2584_v24 = vrot.slane %v2390_v52, 5  ;;  %v2401_v51 = vld [vmem:[%s13820_s24 + $0x78] sm:$0xe]  ;;  %v2402_v22 = vld [vmem:[%s13820_s24 + $0x7c] sm:$0xf] }
 0x13a   : > { %v10795_v42 = vcombine.low %v14819_v59, %v14830_v19  ;;  %v14852_v49 = vsel %vm13988_vm7, %v2567_v17, %v2568_v1  ;;  %v14856_v27 = vsel %vm13988_vm7, %v2570_v15, %v2571_v44  ;;  %v2577_v28 = vrot.slane %v2575_v7, 4  ;;  %v13485_v14 = vld [vmem:[%s17218_s1 + $0x8] sm:$0x3] }
 0x13b   : > { %v2580_v12 = vrot.slane %v2578_v8, 4  ;;  %v2583_v20 = vrot.slane %v2581_v48, 4  ;;  %v10779_v18 = vrot.slane %v2391_v6, 9  ;;  %v2588_v43 = vrot.slane %v2392_v55, 5  ;;  %v2405_v44 = vld [vmem:[%s13820_s24 + $0x88] sm:$0x1] }
 0x13c   : > { %12466 = vmatmul.mubr.msk.bf16.gmra.mrb[28].mxu0 %vm452_vm1, %v13436_v53  ;;  %v10796_v25 = vcombine.low %v14839_v13, %v14843_v11  ;;  %v14865_v46 = vsel %vm13988_vm7, %v10778_v23, %v2575_v7  ;;  %v2591_v35 = vrot.slane %v2393_v61, 5  ;;  %v2594_v41 = vrot.slane %v2394_v30, 5  ;;  %v2406_v6 = vld [vmem:[%s13820_s24 + $0x8c] sm:$0xe]  ;;  %v2407_v23 = vld [vmem:[%s13820_s24 + $0x90] sm:$0xf] }
 0x13d   : > { %12469 = vmatprep.mubr.msk.bf16.mxu0 %vm452_vm1, %v13437_v40  ;;  %v14873_v34 = vsel %vm13988_vm7, %v2577_v28, %v2578_v8  ;;  %v14877_v54 = vsel %vm13988_vm7, %v2580_v12, %v2581_v48  ;;  %v14881_v26 = vsel %vm13988_vm7, %v2583_v20, %v2584_v24  ;;  %v2597_v38 = vrot.slane %v2395_v32, 5  ;;  %v2404_v40 = vld [vmem:[%s13820_s24 + $0x84] sm:$0xf]  ;;  %v2409_v32 = vld [vmem:[%s13820_s24 + $0x98] sm:$0xf] }
 0x13e   : > { %12174 = vmatmul.mubr.msk.bf16.vlgmr.msra.gmra.mrb[0].mxu1 %vm452_vm1, %v10793_v9  ;;  %v14888_v31 = vsel %vm13988_vm7, %v10779_v18, %v2588_v43  ;;  %v2590_v56 = vrot.slane %v2588_v43, 4  ;;  %v2593_v58 = vrot.slane %v2591_v35, 4  ;;  %v2596_v50 = vrot.slane %v2594_v41, 4  ;;  %v2413_v11 = vld [vmem:[%s13820_s24 + $0xa8] sm:$0xf] }
 0x13f   : > { %12238 = vmatpush3.bf16.msra.mxu1 %v3747_v63  ;;  %12177 = vmatprep.mubr.msk.bf16.mxu1 %vm452_vm1, %v10794_v21  ;;  %v10780_v37 = vrot.slane %v2396_v39, 9  ;;  %v2601_v9 = vrot.slane %v2397_v0, 5  ;;  %v2604_v53 = vrot.slane %v2398_v47, 5  ;;  %v2607_v3 = vrot.slane %v2399_v5, 5  ;;  %v2403_v63 = vld [vmem:[%s13820_s24 + $0x80] sm:$0xf] }
 0x140   : > { %13280 = vmatprep.subr.msk.bf16.mxu1 %vm549_vm0, %v13485_v14  ;;  %v10797_v1 = vcombine.low %v14852_v49, %v14856_v27  ;;  %v10798_v2 = vcombine.low %v14865_v46, %v14873_v34  ;;  %v14903_v16 = vsel %vm13988_vm7, %v2590_v56, %v2591_v35  ;;  %v2610_v57 = vrot.slane %v2400_v45, 5  ;;  %v2408_v21 = vld [vmem:[%s13820_s24 + $0x94] sm:$0xf]  ;;  %v13440_v39 = vld [vmem:[%s13820_s24 + $0xe4] sm:$0xff]   ;;  %v2410_v0 = vld [vmem:[%s13820_s24 + $0x9c] sm:$0x1] }
 0x141   : > { %v10799_v52 = vcombine.low %v14877_v54, %v14881_v26  ;;  %v14912_v29 = vsel %vm13988_vm7, %v2593_v58, %v2594_v41  ;;  %v14916_v17 = vsel %vm13988_vm7, %v2596_v50, %v2597_v38  ;;  %v2603_v15 = vrot.slane %v2601_v9, 4  ;;  %v13441_v35 = vld [vmem:[%s13820_s24 + $0xf0] sm:$0xff]   ;;  %v2411_v38 = vld [vmem:[%s13820_s24 + $0xa0] sm:$0xe]  ;;  %v13445_v54 = vld [vmem:[%s13820_s24 + $0x118] sm:$0xff]  }
 0x142   : > { %v10800_v7 = vcombine.low %v14888_v31, %v14903_v16  ;;  %v2606_v8 = vrot.slane %v2604_v53, 4  ;;  %v2609_v48 = vrot.slane %v2607_v3, 4  ;;  %v2614_v55 = vrot.slane %v2402_v22, 5 }
 0x143   : > { %v14926_v24 = vsel %vm13988_vm7, %v10780_v37, %v2601_v9  ;;  %v10781_v61 = vrot.slane %v2401_v51, 9  ;;  %v2617_v30 = vrot.slane %v2403_v63, 5  ;;  %v2620_v28 = vrot.slane %v2404_v40, 5 }
 0x144   : > { %12470 = vmatmul.mubr.msk.bf16.gmra.mrb[32].mxu0 %vm452_vm1, %v13438_v33  ;;  %v14932_v12 = vsel %vm13988_vm7, %v2603_v15, %v2604_v53  ;;  %v14936_v20 = vsel %vm13988_vm7, %v2606_v8, %v2607_v3  ;;  %v14940_v18 = vsel %vm13988_vm7, %v2609_v48, %v2610_v57  ;;  %v2623_v43 = vrot.slane %v2405_v44, 5  ;;  %v2415_v53 = vld [vmem:[%s13820_s24 + $0xb0] sm:$0x1]  ;;  %v2416_v3 = vld [vmem:[%s13820_s24 + $0xb4] sm:$0xe] }
 0x145   : > { %12473 = vmatprep.mubr.msk.bf16.mxu0 %vm452_vm1, %v13439_v60  ;;  %v10801_v41 = vcombine.low %v14912_v29, %v14916_v17  ;;  %v2616_v47 = vrot.slane %v2614_v55, 4  ;;  %v2619_v5 = vrot.slane %v2617_v30, 4  ;;  %v2622_v33 = vrot.slane %v2620_v28, 4  ;;  %v2412_v60 = vld [vmem:[%s13820_s24 + $0xa4] sm:$0xf]  ;;  %v13447_v29 = vld [vmem:[%s13820_s24 + $0x12c] sm:$0xff]  }
 0x146   : > { %12178 = vmatmul.mubr.msk.bf16.gmra.mrb[4].mxu1 %vm452_vm1, %v10795_v42  ;;  %v10782_v45 = vrot.slane %v2406_v6, 9  ;;  %v2627_v59 = vrot.slane %v2407_v23, 5  ;;  %v2630_v19 = vrot.slane %v2408_v21, 5  ;;  %v2633_v42 = vrot.slane %v2409_v32, 5  ;;  %v2417_v44 = vld [vmem:[%s13820_s24 + $0xb8] sm:$0xf] }
 0x147   : > { %12181 = vmatprep.mubr.msk.bf16.mxu1 %vm452_vm1, %v10796_v25  ;;  %v10802_v56 = vcombine.low %v14926_v24, %v14932_v12  ;;  %v10803_v58 = vcombine.low %v14936_v20, %v14940_v18  ;;  %v14962_v50 = vsel %vm13988_vm7, %v10781_v61, %v2614_v55  ;;  %v2636_v13 = vrot.slane %v2410_v0, 5  ;;  %v2414_v25 = vld [vmem:[%s13820_s24 + $0xac] sm:$0xf]  ;;  %v2418_v48 = vld [vmem:[%s13820_s24 + $0xbc] sm:$0xf] }
 0x148   : > { %v14968_v51 = vsel %vm13988_vm7, %v2616_v47, %v2617_v30  ;;  %v14972_v22 = vsel %vm13988_vm7, %v2619_v5, %v2620_v28  ;;  %v14976_v37 = vsel %vm13988_vm7, %v2622_v33, %v2623_v43  ;;  %v2629_v9 = vrot.slane %v2627_v59, 4  ;;  %v2419_v28 = vld [vmem:[%s13820_s24 + $0xc0] sm:$0xf]  ;;  %v13442_v47 = vld [vmem:[%s13820_s24 + $0xf8] sm:$0xff]  }
 0x149   : > { %v14983_v63 = vsel %vm13988_vm7, %v10782_v45, %v2627_v59  ;;  %v2632_v14 = vrot.slane %v2630_v19, 4  ;;  %v2635_v57 = vrot.slane %v2633_v42, 4  ;;  %v2640_v40 = vrot.slane %v2412_v60, 5  ;;  %v11424_v59 = vld [vmem:[%s13820_s24 + $0x28] sm:$0xf] }
 0x14a   : > { %v14989_v15 = vsel %vm13988_vm7, %v2629_v9, %v2630_v19  ;;  %v10783_v6 = vrot.slane %v2411_v38, 9  ;;  %v2643_v23 = vrot.slane %v2413_v11, 5  ;;  %v2646_v8 = vrot.slane %v2414_v25, 5  ;;  %v13443_v19 = vld [vmem:[%s13820_s24 + $0x104] sm:$0xff]   ;;  %v11425_v60 = vld [vmem:[%s13820_s24 + $0x2c] sm:$0xf] }
 0x14b   : > { %v10804_v55 = vcombine.low %v14962_v50, %v14968_v51  ;;  %v14996_v21 = vsel %vm13988_vm7, %v2632_v14, %v2633_v42  ;;  %v15000_v61 = vsel %vm13988_vm7, %v2635_v57, %v2636_v13  ;;  %v2649_v30 = vrot.slane %v2415_v53, 5  ;;  %v11426_v13 = vld [vmem:[%s13820_s24 + $0x30] sm:$0xf] }
 0x14c   : > { %12474 = vmatmul.mubr.msk.bf16.gmra.mrb[36].mxu0 %vm452_vm1, %v13440_v39  ;;  %v10805_v32 = vcombine.low %v14972_v22, %v14976_v37  ;;  %v2642_v39 = vrot.slane %v2640_v40, 4  ;;  %v2645_v43 = vrot.slane %v2643_v23, 4  ;;  %v2648_v0 = vrot.slane %v2646_v8, 4 }
 0x14d   : > { %12477 = vmatprep.mubr.msk.bf16.mxu0 %vm452_vm1, %v13441_v35  ;;  %v2420_v35 = vld [vmem:[%s13820_s24 + $0xc4] sm:$0x1]  ;;  %v10806_v5 = vcombine.low %v14983_v63, %v14989_v15  ;;  %v10784_v33 = vrot.slane %v2416_v3, 9  ;;  %v2653_v38 = vrot.slane %v2417_v44, 5  ;;  %v2656_v45 = vrot.slane %v2418_v48, 5 }
 0x14e   : > { %12182 = vmatmul.mubr.msk.bf16.gmra.mrb[8].mxu1 %vm452_vm1, %v10797_v1  ;;  %v10807_v42 = vcombine.low %v14996_v21, %v15000_v61  ;;  %v15023_v49 = vsel %vm13988_vm7, %v10783_v6, %v2640_v40  ;;  %v15027_v27 = vsel %vm13988_vm7, %v2642_v39, %v2643_v23  ;;  %v2659_v1 = vrot.slane %v2419_v28, 5  ;;  %v11427_v6 = vld [vmem:[%s13820_s24 + $0x34] sm:$0xf]  ;;  %v11428_v28 = vld [vmem:[%s13820_s24 + $0x38] sm:$0x1] }
 0x14f   : > { %12185 = vmatprep.mubr.msk.bf16.mxu1 %vm452_vm1, %v10798_v2  ;;  %v15033_v46 = vsel %vm13988_vm7, %v2645_v43, %v2646_v8  ;;  %v15037_v34 = vsel %vm13988_vm7, %v2648_v0, %v2649_v30  ;;  %v2655_v2 = vrot.slane %v2653_v38, 4  ;;  %v2662_v11 = vrot.slane %v2420_v35, 5  ;;  %v11429_v39 = vld [vmem:[%s13820_s24 + $0x3c] sm:$0xf] }
 0x150   : > { %v15041_v25 = vsel %vm13988_vm7, %v10784_v33, %v2653_v38  ;;  %v2658_v9 = vrot.slane %v2656_v45, 4  ;;  %v7629_v53 = vshrl.u32 %v11424_v59, 16  ;;  %v7632_v3 = vshll.u32 %v11424_v59, 16 }
 0x151   : > { %v15046_v14 = vsel %vm13988_vm7, %v2655_v2, %v2656_v45  ;;  %v7638_v57 = vshll.u32 %v11425_v60, 16  ;;  %v7642_v40 = vshrl.u32 %v11425_v60, 16  ;;  %v7648_v44 = vshll.u32 %v11426_v13, 16  ;;  %v13444_v60 = vld [vmem:[%s13820_s24 + $0x10c] sm:$0xff]  }
 0x152   : > { %v10808_v23 = vcombine.low %v15023_v49, %v15027_v27  ;;  %v2661_v48 = vrot.slane %v2659_v1, 4  ;;  %v7631_v30 = vrot.slane %v7629_v53, 4  ;;  %v7634_v43 = vrot.slane %v7632_v3, 5  ;;  %v2439_v27 = vld [vmem:[%s13820_s24 + $0x110] sm:$0xf] }
 0x153   : > { %v7640_v0 = vrot.slane %v7638_v57, 5  ;;  %v7644_v35 = vrot.slane %v7642_v40, 4  ;;  %v7650_v33 = vrot.slane %v7648_v44, 5  ;;  %v7652_v38 = vshrl.u32 %v11426_v13, 16  ;;  %v2423_v40 = vld [vmem:[%s13820_s24 + $0xd0] sm:$0xf] }
 0x154   : > { %12478 = vmatmul.mubr.msk.bf16.gmra.mrb[40].mxu0 %vm452_vm1, %v13442_v47  ;;  %v2421_v47 = vld [vmem:[%s13820_s24 + $0xc8] sm:$0xe]  ;;  %v7658_v45 = vshll.u32 %v11427_v6, 16  ;;  %v7662_v59 = vshrl.u32 %v11427_v6, 16  ;;  %v15066_v2 = vsel %vm13988_vm7, %v2658_v9, %v2659_v1  ;;  %v7635_v53 = vor.u32 %v7634_v43, %v7631_v30  ;;  %v2424_v44 = vld [vmem:[%s13820_s24 + $0xd4] sm:$0xf] }
 0x155   : > { %12481 = vmatprep.mubr.msk.bf16.mxu0 %vm452_vm1, %v13443_v19  ;;  %v2422_v19 = vld [vmem:[%s13820_s24 + $0xcc] sm:$0xf]  ;;  %v7645_v3 = vor.u32 %v7644_v35, %v7640_v0  ;;  %v7668_v57 = vshll.u32 %v11428_v28, 16  ;;  %v15077_v26 = vsel %vm13988_vm7, %v2661_v48, %v2662_v11  ;;  %v10785_v30 = vrot.slane %v2421_v47, 9  ;;  %v2425_v35 = vld [vmem:[%s13820_s24 + $0xd8] sm:$0x1] }
 0x156   : > { %12186 = vmatmul.mubr.msk.bf16.gmra.mrb[12].mxu1 %vm452_vm1, %v10799_v52  ;;  %v7654_v52 = vrot.slane %v7652_v38, 4  ;;  %v15079_v1 = vrot.slane %v7658_v45, 5  ;;  %v7664_v13 = vrot.slane %v7662_v59, 4  ;;  %v7636_v9 = vrot.slane %v7635_v53, 4  ;;  %v11430_v53 = vld [vmem:[%s13820_s24 + $0x40] sm:$0xf] }
 0x157   : > { %12189 = vmatprep.mubr.msk.bf16.mxu1 %vm452_vm1, %v10800_v7  ;;  %v7646_v6 = vrot.slane %v7645_v3, 4  ;;  %v2666_v28 = vrot.slane %v2422_v19, 5  ;;  %v2669_v16 = vrot.slane %v2423_v40, 5  ;;  %v2672_v7 = vrot.slane %v2424_v44, 5  ;;  %v13446_v44 = vld [vmem:[%s13820_s24 + $0x120] sm:$0xff]  }
 0x158   : > { %v7655_v43 = vor.u32 %v7654_v52, %v7650_v33  ;;  %v7665_v31 = vor.u32 %v7664_v13, %v15079_v1  ;;  %v7641_v11 = vsel %vm13838_vm4, %v7636_v9, %v7640_v0  ;;  %v15089_v47 = vrot.slane %v7668_v57, 5  ;;  %v11431_v57 = vld [vmem:[%s13820_s24 + $0x44] sm:$0xf]  ;;  %v11432_v9 = vld [vmem:[%s13820_s24 + $0x48] sm:$0xf] }
 0x159   : > { %v7651_v48 = vsel %vm13838_vm4, %v7646_v6, %v7650_v33  ;;  %v2668_v38 = vrot.slane %v2666_v28, 4  ;;  %v15101_v0 = vsel %vm549_vm0, %v14826_v62, 0  ;;  %v2674_v33 = vrot.slane %v2672_v7, 4  ;;  %v11433_v6 = vld [vmem:[%s13820_s24 + $0x4c] sm:$0x1] }
 0x15a   : > { %v15094_v59 = vrot.slane %v7655_v43, 4  ;;  %v15096_v19 = vrot.slane %v7665_v31, 4  ;;  %v2675_v3 = vrot.slane %v2425_v35, 5  ;;  %v7673_v40 = vshrl.u32 %v11429_v39, 16  ;;  %v2427_v35 = vld [vmem:[%s13820_s24 + $0xe0] sm:$0xf] }
 0x15b   : > { %v15113_v13 = vsel %vm13988_vm7, %v10785_v30, %v2666_v28  ;;  %v15117_v62 = vsel %vm13988_vm7, %v2668_v38, %v2669_v16  ;;  %v7676_v31 = vshll.u32 %v11429_v39, 16  ;;  %v7696_v38 = vshrl.u32 %v11431_v57, 16 }
 0x15c   : > { %12482 = vmatmul.mubr.msk.bf16.gmra.mrb[44].mxu0 %vm452_vm1, %v13444_v60  ;;  %v2671_v60 = vrot.slane %v2669_v16, 4  ;;  %v7661_v52 = vsel %vm13838_vm4, %v15094_v59, %v15079_v1  ;;  %v7671_v43 = vsel %vm13838_vm4, %v15096_v19, %v15089_v47  ;;  %v7675_v28 = vrot.slane %v7673_v40, 4  ;;  %v2426_v16 = vld [vmem:[%s13820_s24 + $0xdc] sm:$0xe] }
 0x15d   : > { %12485 = vmatprep.mubr.msk.bf16.mxu0 %vm452_vm1, %v13445_v54  ;;  %v15105_v54 = vcombine.low %v7641_v11, %v7651_v48  ;;  %v15142_v17 = vsel %vm13988_vm7, %v2674_v33, %v2675_v3  ;;  %v7686_v11 = vshrl.u32 %v11430_v53, 16  ;;  %v7692_v48 = vshll.u32 %v11431_v57, 16 }
 0x15e   : > { %12190 = vmatmul.mubr.msk.bf16.gmra.mrb[16].mxu1 %vm452_vm1, %v10801_v41  ;;  %v15131_v30 = vsel %vm13988_vm7, %v2671_v60, %v2672_v7  ;;  %v7682_v41 = vshll.u32 %v11430_v53, 16  ;;  %v2428_v7 = vld [vmem:[%s13820_s24 + $0xe4] sm:$0xf]  ;;  %v7678_v47 = vrot.slane %v7676_v31, 5  ;;  %v7702_v19 = vshll.u32 %v11432_v9, 16 }
 0x15f   : > { %12193 = vmatprep.mubr.msk.bf16.mxu1 %vm452_vm1, %v10802_v56  ;;  %v7706_v39 = vshrl.u32 %v11432_v9, 16  ;;  %v2429_v60 = vld [vmem:[%s13820_s24 + $0xe8] sm:$0xf]  ;;  %v7688_v45 = vrot.slane %v7686_v11, 4  ;;  %v7694_v8 = vrot.slane %v7692_v48, 5  ;;  %v7712_v24 = vshll.u32 %v11433_v6, 16 }
 0x160   : > { %v7684_v40 = vrot.slane %v7682_v41, 5  ;;  %v7679_v12 = vor.u32 %v7678_v47, %v7675_v28  ;;  %v7698_v56 = vrot.slane %v7696_v38, 4  ;;  %v15147_v33 = vrot.slane %v7702_v19, 5  ;;  %v2430_v28 = vld [vmem:[%s13820_s24 + $0xec] sm:$0x1]  ;;  %v13448_v47 = vld [vmem:[%s13820_s24 + $0x134] sm:$0xff]  }
 0x161   : > { %v7708_v53 = vrot.slane %v7706_v39, 4  ;;  %v15150_v57 = vrot.slane %v7712_v24, 5  ;;  %v10786_v9 = vrot.slane %v2426_v16, 9  ;;  %v2679_v31 = vrot.slane %v2427_v35, 5  ;;  %v11434_v48 = vld [vmem:[%s13820_s24 + $0x50] sm:$0xf] }
 0x162   : > { %v7689_v3 = vor.u32 %v7688_v45, %v7684_v40  ;;  %v7680_v41 = vrot.slane %v7679_v12, 4  ;;  %v7699_v6 = vor.u32 %v7698_v56, %v7694_v8  ;;  %v2685_v19 = vrot.slane %v2429_v60, 5  ;;  %v11435_v39 = vld [vmem:[%s13820_s24 + $0x54] sm:$0xf]  ;;  %v13449_v16 = vld [vmem:[%s13820_s24 + $0x140] sm:$0xff]  }
 0x163   : > { %v7709_v11 = vor.u32 %v7708_v53, %v15147_v33  ;;  %v2681_v45 = vrot.slane %v2679_v31, 4  ;;  %v11436_v56 = vld [vmem:[%s13820_s24 + $0x58] sm:$0xf]  ;;  %v15185_v50 = vcombine.low %v7661_v52, %v7671_v43  ;;  %v10812_v51 = vcombine.low %v15113_v13, %v15117_v62  ;;  %v11438_v52 = vld [vmem:[%s13820_s24 + $0x60] sm:$0x1] }
 0x164   : > { %12486 = vmatmul.mubr.msk.bf16.gmra.mrb[48].mxu0 %vm452_vm1, %v13446_v44  ;;  %v2682_v44 = vrot.slane %v2428_v7, 5  ;;  %v7690_v38 = vrot.slane %v7689_v3, 4  ;;  %v7685_v35 = vsel %vm13838_vm4, %v7680_v41, %v7684_v40  ;;  %v7700_v7 = vrot.slane %v7699_v6, 4  ;;  %v11437_v40 = vld [vmem:[%s13820_s24 + $0x5c] sm:$0xf] }
 0x165   : > { %12489 = vmatprep.mubr.msk.bf16.mxu0 %vm452_vm1, %v13447_v29  ;;  %v15158_v29 = vsel %vm13988_vm7, %v10786_v9, %v2679_v31  ;;  %v7710_v24 = vrot.slane %v7709_v11, 4  ;;  %v2687_v18 = vrot.slane %v2685_v19, 4  ;;  %v7717_v59 = vshrl.u32 %v11434_v48, 16  ;;  %v2431_v41 = vld [vmem:[%s13820_s24 + $0xf0] sm:$0xe] }
 0x166   : > { %12194 = vmatmul.mubr.msk.bf16.gmra.mrb[20].mxu1 %vm452_vm1, %v10803_v58  ;;  %v2684_v12 = vrot.slane %v2682_v44, 4  ;;  %v7695_v60 = vsel %vm13838_vm4, %v7690_v38, %v7694_v8  ;;  %v15177_v20 = vsel %vm13988_vm7, %v2681_v45, %v2682_v44  ;;  %v2688_v58 = vrot.slane %v2430_v28, 5  ;;  %v2432_v6 = vld [vmem:[%s13820_s24 + $0xf4] sm:$0xf]  ;;  %v2433_v38 = vld [vmem:[%s13820_s24 + $0xf8] sm:$0xf] }
 0x167   : > { %12197 = vmatprep.mubr.msk.bf16.mxu1 %vm452_vm1, %v10804_v55  ;;  %v10813_v55 = vcombine.low %v15131_v30, %v15142_v17  ;;  %v15191_v8 = vcombine.low %v7685_v35, %v7695_v60  ;;  %v7705_v53 = vsel %vm13838_vm4, %v7700_v7, %v15147_v33  ;;  %v7715_v3 = vsel %vm13838_vm4, %v7710_v24, %v15150_v57  ;;  %v2434_v7 = vld [vmem:[%s13820_s24 + $0xfc] sm:$0xf]  ;;  %v13450_v24 = vld [vmem:[%s13820_s24 + $0x148] sm:$0xff]   ;;  %v2448_v30 = vld [vmem:[%s13820_s24 + $0x134] sm:$0xf] }
 0x168   : > { %v10814_v1 = vcombine.low %v15158_v29, %v15177_v20  ;;  %v15205_v43 = vsel %vm13988_vm7, %v2684_v12, %v2685_v19  ;;  %v7720_v9 = vshll.u32 %v11434_v48, 16  ;;  %v7726_v33 = vshll.u32 %v11435_v39, 16  ;;  %v11449_v62 = vld [vmem:[%s13820_s24 + $0x8c] sm:$0xf]  ;;  %v11454_v29 = vld [vmem:[%s13820_s24 + $0xa0] sm:$0xf] }
 0x169   : > { %v7730_v31 = vshrl.u32 %v11435_v39, 16  ;;  %v7719_v57 = vrot.slane %v7717_v59, 4  ;;  %v7736_v11 = vshll.u32 %v11436_v56, 16  ;;  %v7740_v44 = vshrl.u32 %v11436_v56, 16 }
 0x16a   : > { %v7746_v28 = vshll.u32 %v11437_v40, 16  ;;  %v7722_v45 = vrot.slane %v7720_v9, 5  ;;  %v7750_v19 = vshrl.u32 %v11437_v40, 16  ;;  %v15215_v48 = vsel %vm13988_vm7, %v2687_v18, %v2688_v58  ;;  %v13451_v18 = vld [vmem:[%s13820_s24 + $0x154] sm:$0xff]  }
 0x16b   : > { %v7732_v35 = vrot.slane %v7730_v31, 4  ;;  %v7738_v39 = vrot.slane %v7736_v11, 5  ;;  %v7742_v12 = vrot.slane %v7740_v44, 4  ;;  %v7756_v40 = vshll.u32 %v11438_v52, 16 }
 0x16c   : > { %12490 = vmatmul.mubr.msk.bf16.gmra.mrb[52].mxu0 %vm452_vm1, %v13448_v47  ;;  %v7728_v47 = vrot.slane %v7726_v33, 5  ;;  %v7723_v56 = vor.u32 %v7722_v45, %v7719_v57  ;;  %v7752_v59 = vrot.slane %v7750_v19, 4  ;;  %v10787_v9 = vrot.slane %v2431_v41, 9 }
 0x16d   : > { %12493 = vmatprep.mubr.msk.bf16.mxu0 %vm452_vm1, %v13449_v16  ;;  %v15217_v16 = vrot.slane %v7746_v28, 5  ;;  %v7743_v58 = vor.u32 %v7742_v12, %v7738_v39  ;;  %v2692_v33 = vrot.slane %v2432_v6, 5  ;;  %v2695_v31 = vrot.slane %v2433_v38, 5 }
 0x16e   : > { %12198 = vmatmul.mubr.msk.bf16.gmra.mrb[24].mxu1 %vm452_vm1, %v10805_v32  ;;  %v7733_v60 = vor.u32 %v7732_v35, %v7728_v47  ;;  %v7724_v11 = vrot.slane %v7723_v56, 4  ;;  %v2435_v32 = vld [vmem:[%s13820_s24 + $0x100] sm:$0x1]  ;;  %v2698_v57 = vrot.slane %v2434_v7, 5  ;;  %v15230_v52 = vcombine.low %v7705_v53, %v7715_v3  ;;  %v11440_v53 = vld [vmem:[%s13820_s24 + $0x68] sm:$0xf] }
 0x16f   : > { %12201 = vmatprep.mubr.msk.bf16.mxu1 %vm452_vm1, %v10806_v5  ;;  %v7753_v37 = vor.u32 %v7752_v59, %v15217_v16  ;;  %v15232_v44 = vrot.slane %v7743_v58, 4  ;;  %v2694_v63 = vrot.slane %v2692_v33, 4  ;;  %v2697_v15 = vrot.slane %v2695_v31, 4  ;;  %v11439_v5 = vld [vmem:[%s13820_s24 + $0x64] sm:$0xf] }
 0x170   : > { %v7734_v22 = vrot.slane %v7733_v60, 4  ;;  %v7729_v41 = vsel %vm13838_vm4, %v7724_v11, %v7728_v47  ;;  %v15242_v38 = vrot.slane %v7756_v40, 5  ;;  %v11441_v3 = vld [vmem:[%s13820_s24 + $0x6c] sm:$0xf]  ;;  %v10815_v45 = vcombine.low %v15205_v43, %v15215_v48  ;;  %v11442_v7 = vld [vmem:[%s13820_s24 + $0x70] sm:$0xf] }
 0x171   : > { %v15240_v28 = vrot.slane %v7753_v37, 4  ;;  %v15253_v47 = vsel %vm13988_vm7, %v10787_v9, %v2692_v33  ;;  %v2700_v19 = vrot.slane %v2698_v57, 4  ;;  %v2701_v12 = vrot.slane %v2435_v32, 5  ;;  %v11443_v58 = vld [vmem:[%s13820_s24 + $0x74] sm:$0x1] }
 0x172   : > { %v7739_v6 = vsel %vm13838_vm4, %v7734_v22, %v7738_v39  ;;  %v15262_v39 = vsel %vm13988_vm7, %v2694_v63, %v2695_v31  ;;  %v7761_v56 = vshrl.u32 %v11439_v5, 16  ;;  %v15266_v60 = vsel %vm13988_vm7, %v2697_v15, %v2698_v57  ;;  %v2436_v22 = vld [vmem:[%s13820_s24 + $0x104] sm:$0xe]  ;;  %v2437_v32 = vld [vmem:[%s13820_s24 + $0x108] sm:$0xf] }
 0x173   : > { %v15249_v35 = vcombine.low %v7729_v41, %v7739_v6  ;;  %v7764_v59 = vshll.u32 %v11439_v5, 16  ;;  %v7770_v40 = vshll.u32 %v11440_v53, 16  ;;  %v7759_v9 = vsel %vm13838_vm4, %v15240_v28, %v15242_v38  ;;  %v2438_v5 = vld [vmem:[%s13820_s24 + $0x10c] sm:$0xf] }
 0x174   : > { %12494 = vmatmul.mubr.msk.bf16.gmra.mrb[56].mxu0 %vm452_vm1, %v13450_v24  ;;  %v7749_v24 = vsel %vm13838_vm4, %v15232_v44, %v15217_v16  ;;  %v13452_v16 = vld [vmem:[%s13820_s24 + $0x15c] sm:$0xff]   ;;  %v7763_v33 = vrot.slane %v7761_v56, 4  ;;  %v7780_v31 = vshll.u32 %v11441_v3, 16  ;;  %v7784_v11 = vshrl.u32 %v11441_v3, 16 }
 0x175   : > { %12497 = vmatprep.mubr.msk.bf16.mxu0 %vm452_vm1, %v13451_v18  ;;  %v7774_v18 = vshrl.u32 %v11440_v53, 16  ;;  %v15285_v21 = vsel %vm13988_vm7, %v2700_v19, %v2701_v12  ;;  %v7766_v61 = vrot.slane %v7764_v59, 5  ;;  %v7790_v63 = vshll.u32 %v11442_v7, 16 }
 0x176   : > { %12202 = vmatmul.mubr.msk.bf16.gmra.mrb[28].mxu1 %vm452_vm1, %v10807_v42  ;;  %v7772_v42 = vrot.slane %v7770_v40, 5  ;;  %v7782_v57 = vrot.slane %v7780_v31, 5  ;;  %v7786_v44 = vrot.slane %v7784_v11, 4  ;;  %v7794_v15 = vshrl.u32 %v11442_v7, 16 }
 0x177   : > { %12205 = vmatprep.mubr.msk.bf16.mxu1 %vm452_vm1, %v10808_v23  ;;  %v7776_v37 = vrot.slane %v7774_v18, 4  ;;  %v7767_v41 = vor.u32 %v7766_v61, %v7763_v33  ;;  %v7800_v28 = vshll.u32 %v11443_v58, 16  ;;  %v10788_v49 = vrot.slane %v2436_v22, 9  ;;  %v11444_v22 = vld [vmem:[%s13820_s24 + $0x78] sm:$0xf] }
 0x178   : > { %v7787_v23 = vor.u32 %v7786_v44, %v7782_v57  ;;  %v7792_v38 = vrot.slane %v7790_v63, 5  ;;  %v7796_v53 = vrot.slane %v7794_v15, 4  ;;  %v2705_v3 = vrot.slane %v2437_v32, 5  ;;  %v11445_v61 = vld [vmem:[%s13820_s24 + $0x7c] sm:$0xf] }
 0x179   : > { %v7777_v6 = vor.u32 %v7776_v37, %v7772_v42  ;;  %v7768_v19 = vrot.slane %v7767_v41, 4  ;;  %v7802_v12 = vrot.slane %v7800_v28, 5  ;;  %v2708_v56 = vrot.slane %v2438_v5, 5  ;;  %v11446_v63 = vld [vmem:[%s13820_s24 + $0x80] sm:$0xf] }
 0x17a   : > { %v7788_v59 = vrot.slane %v7787_v23, 4  ;;  %v7797_v40 = vor.u32 %v7796_v53, %v7792_v38  ;;  %v15295_v18 = vsel %vm13988_vm7, %v10788_v49, %v2705_v3  ;;  %v2707_v58 = vrot.slane %v2705_v3, 4  ;;  %v11447_v15 = vld [vmem:[%s13820_s24 + $0x84] sm:$0xf]  ;;  %v2441_v41 = vld [vmem:[%s13820_s24 + $0x118] sm:$0xe] }
 0x17b   : > { %v7778_v7 = vrot.slane %v7777_v6, 4  ;;  %v2710_v31 = vrot.slane %v2708_v56, 4  ;;  %v2711_v11 = vrot.slane %v2439_v27, 5  ;;  %v17224_v37 = vcombine.low %v15033_v46, %v15037_v34 }
 0x17c   : > { %12498 = vmatmul.mubr.msk.bf16.gmra.mrb[60].mxu0 %vm452_vm1, %v13452_v16  ;;  %v7773_v16 = vsel %vm13838_vm4, %v7768_v19, %v7772_v42  ;;  %v15308_v32 = vcombine.low %v7749_v24, %v7759_v9  ;;  %v10816_v44 = vcombine.low %v15253_v47, %v15262_v39  ;;  %v7798_v42 = vrot.slane %v7797_v40, 4  ;;  %v11459_v39 = vld [vmem:[%s13820_s24 + $0xb4] sm:$0xf] }
 0x17d   : > { %12503 = vmatprep.mubr.msk.bf16.mxu0 %vm452_vm1, %v15105_v54  ;;  %v7783_v33 = vsel %vm13838_vm4, %v7778_v7, %v7782_v57  ;;  %v2440_v54 = vld [vmem:[%s13820_s24 + $0x114] sm:$0x1]  ;;  %v15314_v57 = vsel %vm13988_vm7, %v2707_v58, %v2708_v56  ;;  %v17225_v5 = vcombine.low %v15041_v25, %v15046_v14  ;;  %v10817_v46 = vcombine.low %v15266_v60, %v15285_v21 }
 0x17e   : > { %12206 = vmatmul.mubr.msk.bf16.gmra.mrb[32].mxu1 %vm452_vm1, %v17224_v37  ;;  %v15324_v34 = vcombine.low %v7773_v16, %v7783_v33  ;;  %v7793_v24 = vsel %vm13838_vm4, %v7788_v59, %v7792_v38  ;;  %v10818_v9 = vcombine.low %v15295_v18, %v15314_v57  ;;  %v15333_v6 = vsel %vm13988_vm7, %v2710_v31, %v2711_v11  ;;  %v11448_v38 = vld [vmem:[%s13820_s24 + $0x88] sm:$0x1]  ;;  %v2442_v59 = vld [vmem:[%s13820_s24 + $0x11c] sm:$0xf]  ;;  %v2443_v33 = vld [vmem:[%s13820_s24 + $0x120] sm:$0xf] }
 0x17f   : > { %12209 = vmatprep.mubr.msk.bf16.mxu1 %vm452_vm1, %v17225_v5  ;;  %v7805_v25 = vshrl.u32 %v11444_v22, 16  ;;  %v7808_v14 = vshll.u32 %v11444_v22, 16  ;;  %v7814_v28 = vshll.u32 %v11445_v61, 16  ;;  %v7803_v49 = vsel %vm13838_vm4, %v7798_v42, %v7802_v12  ;;  %v2444_v22 = vld [vmem:[%s13820_s24 + $0x124] sm:$0xf] }
 0x180   : > { %v2713_v27 = vrot.slane %v2711_v11, 4  ;;  %v7818_v23 = vshrl.u32 %v11445_v61, 16  ;;  %v7824_v53 = vshll.u32 %v11446_v63, 16  ;;  %v2714_v3 = vrot.slane %v2440_v54, 5  ;;  %v15351_v5 = vld [vmem:[%s13820_s24 + $0x128] sm:$0x1] }
 0x181   : > { %v7807_v19 = vrot.slane %v7805_v25, 4  ;;  %v7810_v7 = vrot.slane %v7808_v14, 5  ;;  %v7816_v56 = vrot.slane %v7814_v28, 5  ;;  %v7828_v58 = vshrl.u32 %v11446_v63, 16 }
 0x182   : > { %v7820_v12 = vrot.slane %v7818_v23, 4  ;;  %v7826_v40 = vrot.slane %v7824_v53, 5  ;;  %v7834_v16 = vshll.u32 %v11447_v15, 16  ;;  %v15345_v31 = vcombine.low %v7793_v24, %v7803_v49 }
 0x183   : > { %v7838_v54 = vshrl.u32 %v11447_v15, 16  ;;  %v10789_v11 = vrot.slane %v2441_v41, 9  ;;  %v7830_v37 = vrot.slane %v7828_v58, 4  ;;  %v7844_v25 = vshll.u32 %v11448_v38, 16 }
 0x184   : > { %12504 = vmatmul.mubr.msk.bf16.vlgmr.msra.gmra.mrb[0].mxu0 %vm452_vm1, %v15185_v50  ;;  %v7811_v50 = vor.u32 %v7810_v7, %v7807_v19  ;;  %v7821_v61 = vor.u32 %v7820_v12, %v7816_v56  ;;  %v15348_v42 = vrot.slane %v7834_v16, 5  ;;  %v2721_v15 = vrot.slane %v2443_v33, 5  ;;  %v11451_v19 = vld [vmem:[%s13820_s24 + $0x94] sm:$0xf] }
 0x185   : > { %12568 = vmatpush3.bf16.msra.mxu0 %v15101_v0  ;;  %12507 = vmatprep.mubr.msk.bf16.mxu0 %vm452_vm1, %v15191_v8  ;;  %v2718_v0 = vrot.slane %v2442_v59, 5  ;;  %v17226_v8 = vcombine.low %v15066_v2, %v15077_v26  ;;  %v7840_v24 = vrot.slane %v7838_v54, 4  ;;  %v15363_v41 = vsel %vm13988_vm7, %v2713_v27, %v2714_v3  ;;  %v11450_v3 = vld [vmem:[%s13820_s24 + $0x90] sm:$0xf]  ;;  %v11453_v54 = vld [vmem:[%s13820_s24 + $0x9c] sm:$0x1] }
 0x186   : > { %v7812_v63 = vrot.slane %v7811_v50, 4  ;;  %v7822_v14 = vrot.slane %v7821_v61, 4  ;;  %v7831_v28 = vor.u32 %v7830_v37, %v7826_v40  ;;  %v2724_v13 = vrot.slane %v2444_v22, 5 }
 0x187   : > { %12210 = vmatmul.mubr.msk.bf16.gmra.mrb[36].mxu1 %vm452_vm1, %v17226_v8  ;;  %v2720_v2 = vrot.slane %v2718_v0, 4  ;;  %v7841_v49 = vor.u32 %v7840_v24, %v15348_v42  ;;  %v15370_v23 = vsel %vm13988_vm7, %v10789_v11, %v2718_v0  ;;  %v2723_v38 = vrot.slane %v2721_v15, 4  ;;  %v2447_v11 = vld [vmem:[%s13820_s24 + $0x130] sm:$0xf] }
 0x188   : > { %12213 = vmatprep.mubr.msk.bf16.mxu1 %vm452_vm1, %v10812_v51  ;;  %v7817_v26 = vsel %vm13838_vm4, %v7812_v63, %v7816_v56  ;;  %v7827_v51 = vsel %vm13838_vm4, %v7822_v14, %v7826_v40  ;;  %v15375_v27 = vrot.slane %v7831_v28, 4  ;;  %v10819_v7 = vcombine.low %v15333_v6, %v15363_v41  ;;  %v11452_v40 = vld [vmem:[%s13820_s24 + $0x98] sm:$0xf] }
 0x189   : > { %v15379_v53 = vsel %vm13988_vm7, %v2720_v2, %v2721_v15  ;;  %v7842_v56 = vrot.slane %v7841_v49, 4  ;;  %v7846_v59 = vrot.slane %v7844_v25, 5  ;;  %v2727_v12 = vrot.slane %v15351_v5, 5 }
 0x18a   : > { %v15391_v58 = vcombine.low %v7817_v26, %v7827_v51  ;;  %v10820_v16 = vcombine.low %v15370_v23, %v15379_v53  ;;  %v7849_v33 = vshrl.u32 %v11449_v62, 16  ;;  %v7852_v50 = vshll.u32 %v11449_v62, 16  ;;  %v2449_v62 = vld [vmem:[%s13820_s24 + $0x138] sm:$0xf] }
 0x18b   : > { %v2726_v22 = vrot.slane %v2724_v13, 4  ;;  %v7858_v61 = vshll.u32 %v11450_v3, 16  ;;  %v7862_v37 = vshrl.u32 %v11450_v3, 16  ;;  %v7868_v0 = vshll.u32 %v11451_v19, 16 }
 0x18c   : > { %12508 = vmatmul.mubr.msk.bf16.gmra.mrb[4].mxu0 %vm452_vm1, %v15230_v52  ;;  %v2446_v52 = vld [vmem:[%s13820_s24 + $0x12c] sm:$0xe]  ;;  %v15404_v5 = vsel %vm13988_vm7, %v2723_v38, %v2724_v13  ;;  %v7851_v8 = vrot.slane %v7849_v33, 4  ;;  %v7854_v63 = vrot.slane %v7852_v50, 5  ;;  %v7847_v24 = vsel %vm13838_vm4, %v7842_v56, %v7846_v59  ;;  %v2450_v59 = vld [vmem:[%s13820_s24 + $0x13c] sm:$0x1] }
 0x18d   : > { %12511 = vmatprep.mubr.msk.bf16.mxu0 %vm452_vm1, %v15249_v35  ;;  %v7837_v35 = vsel %vm13838_vm4, %v15375_v27, %v15348_v42  ;;  %v7860_v25 = vrot.slane %v7858_v61, 5  ;;  %v7864_v15 = vrot.slane %v7862_v37, 4  ;;  %v7870_v14 = vrot.slane %v7868_v0, 5 }
 0x18e   : > { %v7855_v42 = vor.u32 %v7854_v63, %v7851_v8  ;;  %v7872_v28 = vshrl.u32 %v11451_v19, 16  ;;  %v7878_v2 = vshll.u32 %v11452_v40, 16  ;;  %v7882_v26 = vshrl.u32 %v11452_v40, 16 }
 0x18f   : > { %12214 = vmatmul.mubr.msk.bf16.gmra.mrb[40].mxu1 %vm452_vm1, %v10813_v55  ;;  %v7865_v17 = vor.u32 %v7864_v15, %v7860_v25  ;;  %v7888_v55 = vshll.u32 %v11453_v54, 16  ;;  %v10790_v49 = vrot.slane %v2446_v52, 9  ;;  %v2731_v13 = vrot.slane %v2447_v11, 5  ;;  %v11455_v11 = vld [vmem:[%s13820_s24 + $0xa4] sm:$0xf] }
 0x190   : > { %12217 = vmatprep.mubr.msk.bf16.mxu1 %vm452_vm1, %v10814_v1  ;;  %v7856_v51 = vrot.slane %v7855_v42, 4  ;;  %v7874_v27 = vrot.slane %v7872_v28, 4  ;;  %v15418_v38 = vrot.slane %v7878_v2, 5  ;;  %v7884_v3 = vrot.slane %v7882_v26, 4  ;;  %v11457_v15 = vld [vmem:[%s13820_s24 + $0xac] sm:$0xf] }
 0x191   : > { %v15425_v20 = vsel %vm13988_vm7, %v2726_v22, %v2727_v12  ;;  %v7866_v1 = vrot.slane %v7865_v17, 4  ;;  %v15427_v19 = vrot.slane %v7888_v55, 5  ;;  %v2733_v56 = vrot.slane %v2731_v13, 4  ;;  %v11458_v42 = vld [vmem:[%s13820_s24 + $0xb0] sm:$0x1] }
 0x192   : > { %v7861_v40 = vsel %vm13838_vm4, %v7856_v51, %v7860_v25  ;;  %v7875_v33 = vor.u32 %v7874_v27, %v7870_v14  ;;  %v7885_v50 = vor.u32 %v7884_v3, %v15418_v38  ;;  %v15439_v54 = vsel %vm13988_vm7, %v10790_v49, %v2731_v13  ;;  %v11456_v25 = vld [vmem:[%s13820_s24 + $0xa8] sm:$0xf]  ;;  %v11460_v49 = vld [vmem:[%s13820_s24 + $0xb8] sm:$0xf] }
 0x193   : > { %v7871_v12 = vsel %vm13838_vm4, %v7866_v1, %v7870_v14  ;;  %v2737_v52 = vrot.slane %v2449_v62, 5  ;;  %v7893_v22 = vshrl.u32 %v11454_v29, 16  ;;  %v10821_v8 = vcombine.low %v15404_v5, %v15425_v20 }
 0x194   : > { %12512 = vmatmul.mubr.msk.bf16.gmra.mrb[8].mxu0 %vm452_vm1, %v15308_v32  ;;  %v2734_v32 = vrot.slane %v2448_v30, 5  ;;  %v7876_v61 = vrot.slane %v7875_v33, 4  ;;  %v7886_v37 = vrot.slane %v7885_v50, 4  ;;  %v15454_v63 = vcombine.low %v7861_v40, %v7871_v12  ;;  %v11461_v33 = vld [vmem:[%s13820_s24 + $0xbc] sm:$0xf] }
 0x195   : > { %12515 = vmatprep.mubr.msk.bf16.mxu0 %vm452_vm1, %v15324_v34  ;;  %v15442_v34 = vcombine.low %v7837_v35, %v7847_v24  ;;  %v2740_v24 = vrot.slane %v2450_v59, 5  ;;  %v7895_v48 = vrot.slane %v7893_v22, 4  ;;  %v7902_v14 = vshll.u32 %v11455_v11, 16 }
 0x196   : > { %v15446_v0 = vsel %vm13988_vm7, %v2733_v56, %v2734_v32  ;;  %v2736_v35 = vrot.slane %v2734_v32, 4  ;;  %v7881_v28 = vsel %vm13838_vm4, %v7876_v61, %v15418_v38  ;;  %v7891_v2 = vsel %vm13838_vm4, %v7886_v37, %v15427_v19  ;;  %v11462_v61 = vld [vmem:[%s13820_s24 + $0xc0] sm:$0xf] }
 0x197   : > { %12218 = vmatmul.mubr.msk.bf16.gmra.mrb[44].mxu1 %vm452_vm1, %v10815_v45  ;;  %v10822_v43 = vcombine.low %v15439_v54, %v15446_v0  ;;  %v7896_v45 = vshll.u32 %v11454_v29, 16  ;;  %v2739_v26 = vrot.slane %v2737_v52, 4  ;;  %v7906_v47 = vshrl.u32 %v11455_v11, 16 }
 0x198   : > { %12221 = vmatprep.mubr.msk.bf16.mxu1 %vm452_vm1, %v10816_v44  ;;  %v15474_v44 = vsel %vm13988_vm7, %v2736_v35, %v2737_v52  ;;  %v7904_v17 = vrot.slane %v7902_v14, 5  ;;  %v7912_v55 = vshll.u32 %v11456_v25, 16  ;;  %v7916_v62 = vshrl.u32 %v11456_v25, 16 }
 0x199   : > { %v7898_v30 = vrot.slane %v7896_v45, 5  ;;  %v7908_v13 = vrot.slane %v7906_v47, 4  ;;  %v7922_v51 = vshll.u32 %v11457_v15, 16  ;;  %v7926_v27 = vshrl.u32 %v11457_v15, 16  ;;  %v11463_v15 = vld [vmem:[%s13820_s24 + $0xc4] sm:$0x1] }
 0x19a   : > { %v7914_v3 = vrot.slane %v7912_v55, 5  ;;  %v7932_v29 = vshll.u32 %v11458_v42, 16  ;;  %v7937_v1 = vshrl.u32 %v11459_v39, 16  ;;  %v7918_v56 = vrot.slane %v7916_v62, 4  ;;  %v11464_v45 = vld [vmem:[%s13820_s24 + $0xc8] sm:$0xf] }
 0x19b   : > { %v7899_v38 = vor.u32 %v7898_v30, %v7895_v48  ;;  %v7909_v19 = vor.u32 %v7908_v13, %v7904_v17  ;;  %v15481_v59 = vrot.slane %v7922_v51, 5  ;;  %v7928_v40 = vrot.slane %v7926_v27, 4  ;;  %v11465_v55 = vld [vmem:[%s13820_s24 + $0xcc] sm:$0xf] }
 0x19c   : > { %12516 = vmatmul.mubr.msk.bf16.gmra.mrb[12].mxu0 %vm452_vm1, %v15345_v31  ;;  %v15486_v31 = vsel %vm13988_vm7, %v2739_v26, %v2740_v24  ;;  %v7939_v32 = vrot.slane %v7937_v1, 4  ;;  %v7940_v12 = vshll.u32 %v11459_v39, 16  ;;  %v7919_v52 = vor.u32 %v7918_v56, %v7914_v3 }
 0x19d   : > { %12519 = vmatprep.mubr.msk.bf16.mxu0 %vm452_vm1, %v15391_v58  ;;  %v7900_v50 = vrot.slane %v7899_v38, 4  ;;  %v7910_v58 = vrot.slane %v7909_v19, 4  ;;  %v7929_v11 = vor.u32 %v7928_v40, %v15481_v59  ;;  %v7946_v22 = vshll.u32 %v11460_v49, 16  ;;  %v11467_v40 = vld [vmem:[%s13820_s24 + $0xd4] sm:$0xf] }
 0x19e   : > { %v11516_v37 = vcombine.low %v7881_v28, %v7891_v2  ;;  %v7942_v35 = vrot.slane %v7940_v12, 5  ;;  %v7950_v24 = vshrl.u32 %v11460_v49, 16  ;;  %v7956_v25 = vshll.u32 %v11461_v33, 16 }
 0x19f   : > { %12222 = vmatmul.mubr.msk.bf16.gmra.mrb[48].mxu1 %vm452_vm1, %v10817_v46  ;;  %v7905_v60 = vsel %vm13838_vm4, %v7900_v50, %v7904_v17  ;;  %v7915_v21 = vsel %vm13838_vm4, %v7910_v58, %v7914_v3  ;;  %v7934_v46 = vrot.slane %v7932_v29, 5  ;;  %v7948_v48 = vrot.slane %v7946_v22, 5  ;;  %v11466_v3 = vld [vmem:[%s13820_s24 + $0xd0] sm:$0xf] }
 0x1a0   : > { %12225 = vmatprep.mubr.msk.bf16.mxu1 %vm452_vm1, %v10818_v9  ;;  %v10823_v18 = vcombine.low %v15474_v44, %v15486_v31  ;;  %v7920_v57 = vrot.slane %v7919_v52, 4  ;;  %v7943_v9 = vor.u32 %v7942_v35, %v7939_v32  ;;  %v7952_v14 = vrot.slane %v7950_v24, 4  ;;  %v11468_v52 = vld [vmem:[%s13820_s24 + $0xd8] sm:$0x1]  ;;  %v11469_v24 = vld [vmem:[%s13820_s24 + $0xdc] sm:$0xf] }
 0x1a1   : > { %v7930_v42 = vrot.slane %v7929_v11, 4  ;;  %v7958_v28 = vrot.slane %v7956_v25, 5  ;;  %v7960_v2 = vshrl.u32 %v11461_v33, 16  ;;  %v7966_v26 = vshll.u32 %v11462_v61, 16  ;;  %v13454_v44 = vld [vmem:[%s13820_s24 + $0x1c] sm:$0xff]  }
 0x1a2   : > { %v11517_v47 = vcombine.low %v7905_v60, %v7915_v21  ;;  %v7944_v39 = vrot.slane %v7943_v9, 4  ;;  %v7953_v30 = vor.u32 %v7952_v14, %v7948_v48  ;;  %v7970_v17 = vshrl.u32 %v11462_v61, 16 }
 0x1a3   : > { %v7962_v49 = vrot.slane %v7960_v2, 4  ;;  %v15511_v13 = vrot.slane %v7966_v26, 5  ;;  %v7976_v62 = vshll.u32 %v11463_v15, 16  ;;  %v7981_v51 = vshrl.u32 %v11464_v45, 16 }
 0x1a4   : > { %12520 = vmatmul.mubr.msk.bf16.gmra.mrb[16].mxu0 %vm452_vm1, %v15442_v34  ;;  %v7925_v34 = vsel %vm13838_vm4, %v7920_v57, %v15481_v59  ;;  %v7954_v27 = vrot.slane %v7953_v30, 4  ;;  %v7972_v38 = vrot.slane %v7970_v17, 4  ;;  %v7984_v29 = vshll.u32 %v11464_v45, 16  ;;  %v11472_v17 = vld [vmem:[%s13820_s24 + $0xe8] sm:$0xf] }
 0x1a5   : > { %12523 = vmatprep.mubr.msk.bf16.mxu0 %vm452_vm1, %v15454_v63  ;;  %v7935_v63 = vsel %vm13838_vm4, %v7930_v42, %v7934_v46  ;;  %v7963_v1 = vor.u32 %v7962_v49, %v7958_v28  ;;  %v7983_v19 = vrot.slane %v7981_v51, 4  ;;  %v7990_v56 = vshll.u32 %v11465_v55, 16  ;;  %v11470_v46 = vld [vmem:[%s13820_s24 + $0xe0] sm:$0xf] }
 0x1a6   : > { %v7949_v59 = vsel %vm13838_vm4, %v7944_v39, %v7948_v48  ;;  %v7973_v6 = vor.u32 %v7972_v38, %v15511_v13  ;;  %v7986_v41 = vrot.slane %v7984_v29, 5  ;;  %v7959_v33 = vsel %vm13838_vm4, %v7954_v27, %v7958_v28  ;;  %v11473_v27 = vld [vmem:[%s13820_s24 + $0xec] sm:$0x1]  ;;  %v13453_v38 = vld [vmem:[%s13820_s24 + $0x14] sm:$0xff]  }
 0x1a7   : > { %12226 = vmatmul.mubr.msk.bf16.gmra.mrb[52].mxu1 %vm452_vm1, %v10819_v7  ;;  %v7994_v7 = vshrl.u32 %v11465_v55, 16  ;;  %v15533_v50 = vrot.slane %v7976_v62, 5  ;;  %v15535_v32 = vrot.slane %v7990_v56, 5  ;;  %v8000_v12 = vshll.u32 %v11466_v3, 16 }
 0x1a8   : > { %12229 = vmatprep.mubr.msk.bf16.mxu1 %vm452_vm1, %v10820_v16  ;;  %v15537_v58 = vrot.slane %v7963_v1, 4  ;;  %v7987_v23 = vor.u32 %v7986_v41, %v7983_v19  ;;  %v8004_v16 = vshrl.u32 %v11466_v3, 16  ;;  %v7974_v11 = vrot.slane %v7973_v6, 4  ;;  %v11474_v19 = vld [vmem:[%s13820_s24 + $0xf0] sm:$0xf] }
 0x1a9   : > { %v7996_v53 = vrot.slane %v7994_v7, 4  ;;  %v8002_v22 = vrot.slane %v8000_v12, 5  ;;  %v8010_v61 = vshll.u32 %v11467_v40, 16  ;;  %v8014_v35 = vshrl.u32 %v11467_v40, 16  ;;  %v11475_v41 = vld [vmem:[%s13820_s24 + $0xf4] sm:$0xf] }
 0x1aa   : > { %v11518_v25 = vcombine.low %v7925_v34, %v7935_v63  ;;  %v11519_v15 = vcombine.low %v7949_v59, %v7959_v33  ;;  %v8006_v21 = vrot.slane %v8004_v16, 4  ;;  %v7988_v48 = vrot.slane %v7987_v23, 4 }
 0x1ab   : > { %v7997_v60 = vor.u32 %v7996_v53, %v15535_v32  ;;  %v8012_v45 = vrot.slane %v8010_v61, 5  ;;  %v8016_v57 = vrot.slane %v8014_v35, 4  ;;  %v8020_v9 = vshll.u32 %v11468_v52, 16 }
 0x1ac   : > { %12524 = vmatmul.mubr.msk.bf16.gmra.mrb[20].mxu0 %vm452_vm1, %v11516_v37  ;;  %v11471_v37 = vld [vmem:[%s13820_s24 + $0xe4] sm:$0xf]  ;;  %v7969_v14 = vsel %vm13838_vm4, %v15537_v58, %v15511_v13  ;;  %v8007_v28 = vor.u32 %v8006_v21, %v8002_v22  ;;  %v8025_v2 = vshrl.u32 %v11469_v24, 16  ;;  %v7979_v26 = vsel %vm13838_vm4, %v7974_v11, %v15533_v50  ;;  %v11476_v11 = vld [vmem:[%s13820_s24 + $0xf8] sm:$0xf] }
 0x1ad   : > { %12527 = vmatprep.mubr.msk.bf16.mxu0 %vm452_vm1, %v11517_v47  ;;  %v7998_v42 = vrot.slane %v7997_v60, 4  ;;  %v8017_v47 = vor.u32 %v8016_v57, %v8012_v45  ;;  %v8028_v39 = vshll.u32 %v11469_v24, 16  ;;  %v8034_v30 = vshll.u32 %v11470_v46, 16 }
 0x1ae   : > { %v8008_v55 = vrot.slane %v8007_v28, 4  ;;  %v8022_v49 = vrot.slane %v8020_v9, 5  ;;  %v8027_v5 = vrot.slane %v8025_v2, 4  ;;  %v8038_v20 = vshrl.u32 %v11470_v46, 16  ;;  %v11478_v46 = vld [vmem:[%s13820_s24 + $0x100] sm:$0x1] }
 0x1af   : > { %12230 = vmatmul.mubr.msk.bf16.gmra.mrb[56].mxu1 %vm452_vm1, %v10821_v8  ;;  %v7993_v8 = vsel %vm13838_vm4, %v7988_v48, %v15535_v32  ;;  %v8018_v13 = vrot.slane %v8017_v47, 4  ;;  %v8030_v62 = vrot.slane %v8028_v39, 5  ;;  %v15565_v51 = vrot.slane %v8034_v30, 5  ;;  %v13455_v48 = vld [vmem:[%s13820_s24 + $0x28] sm:$0xff]  }
 0x1b0   : > { %12233 = vmatprep.mubr.msk.bf16.mxu1 %vm452_vm1, %v10822_v43  ;;  %v8003_v34 = vsel %vm13838_vm4, %v7998_v42, %v8002_v22  ;;  %v8040_v54 = vrot.slane %v8038_v20, 4  ;;  %v8044_v0 = vshll.u32 %v11471_v37, 16  ;;  %v8048_v43 = vshrl.u32 %v11471_v37, 16  ;;  %v11480_v42 = vld [vmem:[%s13820_s24 + $0x108] sm:$0xf] }
 0x1b1   : > { %v8013_v3 = vsel %vm13838_vm4, %v8008_v55, %v8012_v45  ;;  %v8031_v29 = vor.u32 %v8030_v62, %v8027_v5  ;;  %v8054_v63 = vshll.u32 %v11472_v17, 16  ;;  %v8058_v1 = vshrl.u32 %v11472_v17, 16 }
 0x1b2   : > { %v8023_v56 = vsel %vm13838_vm4, %v8018_v13, %v8022_v49  ;;  %v8041_v40 = vor.u32 %v8040_v54, %v15565_v51  ;;  %v8046_v59 = vrot.slane %v8044_v0, 5  ;;  %v8050_v6 = vrot.slane %v8048_v43, 4 }
 0x1b3   : > { %v8032_v7 = vrot.slane %v8031_v29, 4  ;;  %v15580_v33 = vrot.slane %v8054_v63, 5  ;;  %v8060_v50 = vrot.slane %v8058_v1, 4  ;;  %v8064_v32 = vshll.u32 %v11473_v27, 16 }
 0x1b4   : > { %12528 = vmatmul.mubr.msk.bf16.gmra.mrb[24].mxu0 %vm452_vm1, %v11518_v25  ;;  %v8042_v12 = vrot.slane %v8041_v40, 4  ;;  %v8069_v58 = vshrl.u32 %v11474_v19, 16  ;;  %v8072_v23 = vshll.u32 %v11474_v19, 16  ;;  %v11520_v53 = vcombine.low %v7969_v14, %v7979_v26  ;;  %v11479_v14 = vld [vmem:[%s13820_s24 + $0x104] sm:$0xf]  ;;  %v13456_v40 = vld [vmem:[%s13820_s24 + $0x30] sm:$0xff]  }
 0x1b5   : > { %12531 = vmatprep.mubr.msk.bf16.mxu0 %vm452_vm1, %v11519_v15  ;;  %v11521_v16 = vcombine.low %v7993_v8, %v8003_v34  ;;  %v8051_v52 = vor.u32 %v8050_v6, %v8046_v59  ;;  %v8078_v22 = vshll.u32 %v11475_v41, 16  ;;  %v11522_v61 = vcombine.low %v8013_v3, %v8023_v56  ;;  %v11477_v15 = vld [vmem:[%s13820_s24 + $0xfc] sm:$0xf]  ;;  %v11482_v3 = vld [vmem:[%s13820_s24 + $0x110] sm:$0xf] }
 0x1b6   : > { %v8061_v35 = vor.u32 %v8060_v50, %v15580_v33  ;;  %v8071_v24 = vrot.slane %v8069_v58, 4  ;;  %v8074_v25 = vrot.slane %v8072_v23, 5  ;;  %v8037_v31 = vsel %vm13838_vm4, %v8032_v7, %v15565_v51  ;;  %v11481_v51 = vld [vmem:[%s13820_s24 + $0x10c] sm:$0xf]  ;;  %v11483_v56 = vld [vmem:[%s13820_s24 + $0x114] sm:$0x1] }
 0x1b7   : > { %12234 = vmatmul.mubr.msk.bf16.gmra.mrb[60].mxu1 %vm452_vm1, %v10823_v18  ;;  %v8066_v18 = vrot.slane %v8064_v32, 5  ;;  %v15594_v60 = vrot.slane %v8078_v22, 5  ;;  %v8082_v21 = vshrl.u32 %v11475_v41, 16  ;;  %v8047_v45 = vsel %vm13838_vm4, %v8042_v12, %v8046_v59  ;;  %v11484_v7 = vld [vmem:[%s13820_s24 + $0x118] sm:$0xf] }
 0x1b8   : > { %12239 = vmatprep.mubr.msk.bf16.mxu1 %vm452_vm1, %v13453_v38  ;;  %v8075_v57 = vor.u32 %v8074_v25, %v8071_v24  ;;  %v8088_v9 = vshll.u32 %v11476_v11, 16  ;;  %v8092_v37 = vshrl.u32 %v11476_v11, 16  ;;  %v8052_v28 = vrot.slane %v8051_v52, 4  ;;  %v11485_v23 = vld [vmem:[%s13820_s24 + $0x11c] sm:$0xf] }
 0x1b9   : > { %v8084_v2 = vrot.slane %v8082_v21, 4  ;;  %v8098_v26 = vshll.u32 %v11477_v15, 16  ;;  %v8102_v47 = vshrl.u32 %v11477_v15, 16  ;;  %v8062_v39 = vrot.slane %v8061_v35, 4 }
 0x1ba   : > { %v8076_v30 = vrot.slane %v8075_v57, 4  ;;  %v8090_v17 = vrot.slane %v8088_v9, 5  ;;  %v8094_v55 = vrot.slane %v8092_v37, 4  ;;  %v8108_v8 = vshll.u32 %v11478_v46, 16  ;;  %v11486_v46 = vld [vmem:[%s13820_s24 + $0x120] sm:$0xf] }
 0x1bb   : > { %v8085_v49 = vor.u32 %v8084_v2, %v15594_v60  ;;  %v15605_v5 = vrot.slane %v8098_v26, 5  ;;  %v8104_v20 = vrot.slane %v8102_v47, 4  ;;  %v11523_v13 = vcombine.low %v8037_v31, %v8047_v45  ;;  %v11487_v26 = vld [vmem:[%s13820_s24 + $0x124] sm:$0xf] }
 0x1bc   : > { %12532 = vmatmul.mubr.msk.bf16.gmra.mrb[28].mxu0 %vm452_vm1, %v11520_v53  ;;  %v8095_v62 = vor.u32 %v8094_v55, %v8090_v17  ;;  %v8113_v34 = vshrl.u32 %v11479_v14, 16  ;;  %v8116_v54 = vshll.u32 %v11479_v14, 16  ;;  %v8057_v0 = vsel %vm13838_vm4, %v8052_v28, %v15580_v33  ;;  %v13457_v33 = vld [vmem:[%s13820_s24 + $0x3c] sm:$0xff]   ;;  %v13458_v55 = vld [vmem:[%s13820_s24 + $0x44] sm:$0xff]  }
 0x1bd   : > { %12535 = vmatprep.mubr.msk.bf16.mxu0 %vm452_vm1, %v11521_v16  ;;  %v8086_v43 = vrot.slane %v8085_v49, 4  ;;  %v8105_v27 = vor.u32 %v8104_v20, %v15605_v5  ;;  %v8122_v38 = vshll.u32 %v11480_v42, 16  ;;  %v8067_v29 = vsel %vm13838_vm4, %v8062_v39, %v8066_v18 }
 0x1be   : > { %v8115_v63 = vrot.slane %v8113_v34, 4  ;;  %v8118_v1 = vrot.slane %v8116_v54, 5  ;;  %v8126_v19 = vshrl.u32 %v11480_v42, 16  ;;  %v8081_v59 = vsel %vm13838_vm4, %v8076_v30, %v15594_v60 }
 0x1bf   : > { %12240 = vmatmul.mubr.msk.bf16.vlgmr.msra.gmra.mrb[0].mxu1 %vm452_vm1, %v13454_v44  ;;  %v15623_v6 = vrot.slane %v8108_v8, 5  ;;  %v15625_v41 = vrot.slane %v8122_v38, 5  ;;  %v8091_v50 = vsel %vm13838_vm4, %v8086_v43, %v8090_v17  ;;  %v8096_v32 = vrot.slane %v8095_v62, 4  ;;  %v13459_v43 = vld [vmem:[%s13820_s24 + $0x50] sm:$0xff]  }
 0x1c0   : > { %12634 = vmatpush3.bf16.msra.mxu1 %v13809_v4  ;;  %12243 = vmatprep.mubr.msk.bf16.mxu1 %vm452_vm1, %v13455_v48  ;;  %v8132_v4 = vshll.u32 %v11481_v51, 16  ;;  %v8119_v12 = vor.u32 %v8118_v1, %v8115_v63  ;;  %v8128_v58 = vrot.slane %v8126_v19, 4  ;;  %v8106_v53 = vrot.slane %v8105_v27, 4  ;;  %v11490_v63 = vld [vmem:[%s13820_s24 + $0x130] sm:$0xf] }
 0x1c1   : > { %v8136_v52 = vshrl.u32 %v11481_v51, 16  ;;  %v8142_v11 = vshll.u32 %v11482_v3, 16  ;;  %v11524_v22 = vcombine.low %v8057_v0, %v8067_v29  ;;  %v8146_v25 = vshrl.u32 %v11482_v3, 16  ;;  %v11489_v0 = vld [vmem:[%s13820_s24 + $0x12c] sm:$0xf] }
 0x1c2   : > { %v8134_v16 = vrot.slane %v8132_v4, 5  ;;  %v8120_v35 = vrot.slane %v8119_v12, 4  ;;  %v8129_v24 = vor.u32 %v8128_v58, %v15625_v41  ;;  %v8152_v31 = vshll.u32 %v11483_v56, 16 }
 0x1c3   : > { %v8138_v15 = vrot.slane %v8136_v52, 4  ;;  %v15635_v44 = vrot.slane %v8142_v11, 5  ;;  %v8157_v18 = vshrl.u32 %v11484_v7, 16  ;;  %v11525_v60 = vcombine.low %v8081_v59, %v8091_v50  ;;  %v11491_v50 = vld [vmem:[%s13820_s24 + $0x134] sm:$0xf] }
 0x1c4   : > { %12536 = vmatmul.mubr.msk.bf16.gmra.mrb[32].mxu0 %vm452_vm1, %v11522_v61  ;;  %v8130_v61 = vrot.slane %v8129_v24, 4  ;;  %v8148_v21 = vrot.slane %v8146_v25, 4  ;;  %v8160_v48 = vshll.u32 %v11484_v7, 16  ;;  %v8101_v45 = vsel %vm13838_vm4, %v8096_v32, %v15605_v5  ;;  %v11492_v52 = vld [vmem:[%s13820_s24 + $0x138] sm:$0xf] }
 0x1c5   : > { %12539 = vmatprep.mubr.msk.bf16.mxu0 %vm452_vm1, %v11523_v13  ;;  %v8139_v57 = vor.u32 %v8138_v15, %v8134_v16  ;;  %v8159_v9 = vrot.slane %v8157_v18, 4  ;;  %v8166_v37 = vshll.u32 %v11485_v23, 16  ;;  %v8111_v14 = vsel %vm13838_vm4, %v8106_v53, %v15623_v6  ;;  %v11488_v13 = vld [vmem:[%s13820_s24 + $0x128] sm:$0x1]  ;;  %v13460_v18 = vld [vmem:[%s13820_s24 + $0x58] sm:$0xff]  }
 0x1c6   : > { %v8149_v42 = vor.u32 %v8148_v21, %v15635_v44  ;;  %v8162_v28 = vrot.slane %v8160_v48, 5  ;;  %v8170_v2 = vshrl.u32 %v11485_v23, 16  ;;  %v8125_v47 = vsel %vm13838_vm4, %v8120_v35, %v15625_v41  ;;  %v11494_v48 = vld [vmem:[%s13820_s24 + $0x140] sm:$0xf] }
 0x1c7   : > { %12244 = vmatmul.mubr.msk.bf16.gmra.mrb[4].mxu1 %vm452_vm1, %v13456_v40  ;;  %v15651_v39 = vrot.slane %v8152_v31, 5  ;;  %v15653_v30 = vrot.slane %v8166_v37, 5  ;;  %v8176_v17 = vshll.u32 %v11486_v46, 16  ;;  %v8135_v49 = vsel %vm13838_vm4, %v8130_v61, %v8134_v16 }
 0x1c8   : > { %12247 = vmatprep.mubr.msk.bf16.mxu1 %vm452_vm1, %v13457_v33  ;;  %v8163_v5 = vor.u32 %v8162_v28, %v8159_v9  ;;  %v8172_v20 = vrot.slane %v8170_v2, 4  ;;  %v8180_v8 = vshrl.u32 %v11486_v46, 16  ;;  %v8140_v62 = vrot.slane %v8139_v57, 4  ;;  %v11495_v9 = vld [vmem:[%s13820_s24 + $0x144] sm:$0xf] }
 0x1c9   : > { %v8178_v51 = vrot.slane %v8176_v17, 5  ;;  %v8186_v34 = vshll.u32 %v11487_v26, 16  ;;  %v8190_v54 = vshrl.u32 %v11487_v26, 16  ;;  %v8150_v27 = vrot.slane %v8149_v42, 4 }
 0x1ca   : > { %v8164_v38 = vrot.slane %v8163_v5, 4  ;;  %v8173_v3 = vor.u32 %v8172_v20, %v15653_v30  ;;  %v8182_v29 = vrot.slane %v8180_v8, 4  ;;  %v11526_v1 = vcombine.low %v8101_v45, %v8111_v14  ;;  %v13461_v45 = vld [vmem:[%s13820_s24 + $0x64] sm:$0xff]   ;;  %v11493_v14 = vld [vmem:[%s13820_s24 + $0x13c] sm:$0x1] }
 0x1cb   : > { %v15665_v19 = vrot.slane %v8186_v34, 5  ;;  %v8192_v56 = vrot.slane %v8190_v54, 4  ;;  %v8196_v40 = vshll.u32 %v11488_v13, 16  ;;  %v11527_v59 = vcombine.low %v8125_v47, %v8135_v49  ;;  %v11496_v5 = vld [vmem:[%s13820_s24 + $0x148] sm:$0xf] }
 0x1cc   : > { %12540 = vmatmul.mubr.msk.bf16.gmra.mrb[36].mxu0 %vm452_vm1, %v11524_v22  ;;  %v8174_v6 = vrot.slane %v8173_v3, 4  ;;  %v8183_v41 = vor.u32 %v8182_v29, %v8178_v51  ;;  %v8201_v4 = vshrl.u32 %v11489_v0, 16  ;;  %v8145_v7 = vsel %vm13838_vm4, %v8140_v62, %v15635_v44  ;;  %v11497_v34 = vld [vmem:[%s13820_s24 + $0x14c] sm:$0xf] }
 0x1cd   : > { %12543 = vmatprep.mubr.msk.bf16.mxu0 %vm452_vm1, %v11525_v60  ;;  %v8193_v33 = vor.u32 %v8192_v56, %v15665_v19  ;;  %v8204_v32 = vshll.u32 %v11489_v0, 16  ;;  %v8210_v12 = vshll.u32 %v11490_v63, 16  ;;  %v8155_v58 = vsel %vm13838_vm4, %v8150_v27, %v15651_v39 }
 0x1ce   : > { %v8169_v23 = vsel %vm13838_vm4, %v8164_v38, %v15653_v30  ;;  %v8203_v53 = vrot.slane %v8201_v4, 4  ;;  %v8214_v16 = vshrl.u32 %v11490_v63, 16  ;;  %v8179_v11 = vsel %vm13838_vm4, %v8174_v6, %v8178_v51  ;;  %v13462_v63 = vld [vmem:[%s13820_s24 + $0x6c] sm:$0xff]  }
 0x1cf   : > { %12248 = vmatmul.mubr.msk.bf16.gmra.mrb[8].mxu1 %vm452_vm1, %v13458_v55  ;;  %v8198_v22 = vrot.slane %v8196_v40, 5  ;;  %v8206_v35 = vrot.slane %v8204_v32, 5  ;;  %v15683_v24 = vrot.slane %v8210_v12, 5  ;;  %v8184_v25 = vrot.slane %v8183_v41, 4  ;;  %v11499_v40 = vld [vmem:[%s13820_s24 + $0x154] sm:$0xf] }
 0x1d0   : > { %12251 = vmatprep.mubr.msk.bf16.mxu1 %vm452_vm1, %v13459_v43  ;;  %v8216_v15 = vrot.slane %v8214_v16, 4  ;;  %v8220_v44 = vshll.u32 %v11491_v50, 16  ;;  %v8224_v31 = vshrl.u32 %v11491_v50, 16  ;;  %v8194_v60 = vrot.slane %v8193_v33, 4  ;;  %v11500_v33 = vld [vmem:[%s13820_s24 + $0x158] sm:$0xf] }
 0x1d1   : > { %v8207_v61 = vor.u32 %v8206_v35, %v8203_v53  ;;  %v8230_v21 = vshll.u32 %v11492_v52, 16  ;;  %v8234_v46 = vshrl.u32 %v11492_v52, 16  ;;  %v11528_v26 = vcombine.low %v8145_v7, %v8155_v58 }
 0x1d2   : > { %v8217_v57 = vor.u32 %v8216_v15, %v15683_v24  ;;  %v8222_v37 = vrot.slane %v8220_v44, 5  ;;  %v8226_v42 = vrot.slane %v8224_v31, 4  ;;  %v11529_v47 = vcombine.low %v8169_v23, %v8179_v11  ;;  %v11501_v44 = vld [vmem:[%s13820_s24 + $0x15c] sm:$0xf] }
 0x1d3   : > { %v15693_v28 = vrot.slane %v8230_v21, 5  ;;  %v8236_v2 = vrot.slane %v8234_v46, 4  ;;  %v8245_v39 = vshrl.u32 %v11494_v48, 16  ;;  %v8248_v30 = vshll.u32 %v11494_v48, 16  ;;  %v11502_v21 = vld [vmem:[%s13820_s24 + $0x160] sm:$0xf] }
 0x1d4   : > { %12544 = vmatmul.mubr.msk.bf16.gmra.mrb[40].mxu0 %vm452_vm1, %v11526_v1  ;;  %v8189_v17 = vsel %vm13838_vm4, %v8184_v25, %v15665_v19  ;;  %v8199_v55 = vsel %vm13838_vm4, %v8194_v60, %v8198_v22  ;;  %v8208_v49 = vrot.slane %v8207_v61, 4  ;;  %v8254_v20 = vshll.u32 %v11495_v9, 16  ;;  %v11498_v22 = vld [vmem:[%s13820_s24 + $0x150] sm:$0x1] }
 0x1d5   : > { %12547 = vmatprep.mubr.msk.bf16.mxu0 %vm452_vm1, %v11527_v59  ;;  %v8218_v8 = vrot.slane %v8217_v57, 4  ;;  %v8240_v13 = vshll.u32 %v11493_v14, 16  ;;  %v8247_v62 = vrot.slane %v8245_v39, 4  ;;  %v8250_v51 = vrot.slane %v8248_v30, 5  ;;  %v13463_v59 = vld [vmem:[%s13820_s24 + $0x78] sm:$0xff]  }
 0x1d6   : > { %v8227_v54 = vor.u32 %v8226_v42, %v8222_v37  ;;  %v8237_v0 = vor.u32 %v8236_v2, %v15693_v28  ;;  %v8256_v43 = vrot.slane %v8254_v20, 5  ;;  %v8258_v27 = vshrl.u32 %v11495_v9, 16  ;;  %v13464_v9 = vld [vmem:[%s13820_s24 + $0x80] sm:$0xff]  }
 0x1d7   : > { %12252 = vmatmul.mubr.msk.bf16.gmra.mrb[12].mxu1 %vm452_vm1, %v13460_v18  ;;  %v8251_v38 = vor.u32 %v8250_v51, %v8247_v62  ;;  %v8264_v3 = vshll.u32 %v11496_v5, 16  ;;  %v8268_v29 = vshrl.u32 %v11496_v5, 16  ;;  %v8274_v19 = vshll.u32 %v11497_v34, 16 }
 0x1d8   : > { %12255 = vmatprep.mubr.msk.bf16.mxu1 %vm452_vm1, %v13461_v45  ;;  %v8260_v1 = vrot.slane %v8258_v27, 4  ;;  %v8278_v56 = vshrl.u32 %v11497_v34, 16  ;;  %v11530_v6 = vcombine.low %v8189_v17, %v8199_v55  ;;  %v8213_v41 = vsel %vm13838_vm4, %v8208_v49, %v15683_v24  ;;  %v11503_v27 = vld [vmem:[%s13820_s24 + $0x164] sm:$0x1] }
 0x1d9   : > { %v8223_v4 = vsel %vm13838_vm4, %v8218_v8, %v8222_v37  ;;  %v8242_v7 = vrot.slane %v8240_v13, 5  ;;  %v8228_v50 = vrot.slane %v8227_v54, 4  ;;  %v8238_v32 = vrot.slane %v8237_v0, 4 }
 0x1da   : > { %v8252_v12 = vrot.slane %v8251_v38, 4  ;;  %v8261_v58 = vor.u32 %v8260_v1, %v8256_v43  ;;  %v8266_v23 = vrot.slane %v8264_v3, 5  ;;  %v8270_v53 = vrot.slane %v8268_v29, 4  ;;  %v11570_v38 = vld [vmem:[%s13820_s24 + $0x2c] sm:$0xf]  ;;  %v13466_v3 = vld [vmem:[%s13820_s24 + $0x94] sm:$0xff]  }
 0x1db   : > { %v8289_v16 = vshrl.u32 %v11499_v40, 16  ;;  %v8292_v52 = vshll.u32 %v11499_v40, 16  ;;  %v8276_v35 = vrot.slane %v8274_v19, 5  ;;  %v8280_v24 = vrot.slane %v8278_v56, 4 }
 0x1dc   : > { %12548 = vmatmul.mubr.msk.bf16.gmra.mrb[44].mxu0 %vm452_vm1, %v11528_v26  ;;  %v8262_v11 = vrot.slane %v8261_v58, 4  ;;  %v8298_v25 = vshll.u32 %v11500_v33, 16  ;;  %v11531_v15 = vcombine.low %v8213_v41, %v8223_v4  ;;  %v8302_v31 = vshrl.u32 %v11500_v33, 16  ;;  %v13465_v26 = vld [vmem:[%s13820_s24 + $0x8c] sm:$0xff]   ;;  %v11572_v33 = vld [vmem:[%s13820_s24 + $0x34] sm:$0xf] }
 0x1dd   : > { %12551 = vmatprep.mubr.msk.bf16.mxu0 %vm452_vm1, %v11529_v47  ;;  %v8291_v18 = vrot.slane %v8289_v16, 4  ;;  %v8294_v60 = vrot.slane %v8292_v52, 5  ;;  %v8233_v46 = vsel %vm13838_vm4, %v8228_v50, %v15693_v28  ;;  %v8243_v48 = vsel %vm13838_vm4, %v8238_v32, %v8242_v7  ;;  %v11571_v7 = vld [vmem:[%s13820_s24 + $0x30] sm:$0xf]  ;;  %v11575_v16 = vld [vmem:[%s13820_s24 + $0x40] sm:$0xf] }
 0x1de   : > { %v8300_v61 = vrot.slane %v8298_v25, 5  ;;  %v8284_v45 = vshll.u32 %v11498_v22, 16  ;;  %v8304_v57 = vrot.slane %v8302_v31, 4  ;;  %v8257_v37 = vsel %vm13838_vm4, %v8252_v12, %v8256_v43  ;;  %v13468_v25 = vld [vmem:[%s13820_s24 + $0xa8] sm:$0xff]  }
 0x1df   : > { %12256 = vmatmul.mubr.msk.bf16.gmra.mrb[16].mxu1 %vm452_vm1, %v13462_v63  ;;  %v8267_v14 = vsel %vm13838_vm4, %v8262_v11, %v8266_v23  ;;  %v8271_v42 = vor.u32 %v8270_v53, %v8266_v23  ;;  %v8281_v2 = vor.u32 %v8280_v24, %v8276_v35  ;;  %v8308_v28 = vshll.u32 %v11501_v44, 16  ;;  %v13467_v63 = vld [vmem:[%s13820_s24 + $0xa0] sm:$0xff]   ;;  %v11574_v24 = vld [vmem:[%s13820_s24 + $0x3c] sm:$0xe]  ;;  %v11577_v31 = vld [vmem:[%s13820_s24 + $0x48] sm:$0xf] }
 0x1e0   : > { %12259 = vmatprep.mubr.msk.bf16.mxu1 %vm452_vm1, %v13463_v59  ;;  %v8312_v47 = vshrl.u32 %v11501_v44, 16  ;;  %v8318_v39 = vshll.u32 %v11502_v21, 16  ;;  %v8322_v30 = vshrl.u32 %v11502_v21, 16  ;;  %v8295_v17 = vor.u32 %v8294_v60, %v8291_v18  ;;  %v11569_v59 = vld [vmem:[%s13820_s24 + $0x28] sm:$0xe]  ;;  %v13469_v18 = vld [vmem:[%s13820_s24 + $0xb4] sm:$0xff]  }
 0x1e1   : > { %v8305_v55 = vor.u32 %v8304_v57, %v8300_v61  ;;  %v11532_v49 = vcombine.low %v8233_v46, %v8243_v48  ;;  %v11533_v5 = vcombine.low %v8257_v37, %v8267_v14  ;;  %v8272_v20 = vrot.slane %v8271_v42, 4  ;;  %v11580_v46 = vld [vmem:[%s13820_s24 + $0x54] sm:$0xf]  ;;  %v11581_v37 = vld [vmem:[%s13820_s24 + $0x58] sm:$0xf] }
 0x1e2   : > { %v8282_v8 = vrot.slane %v8281_v2, 4  ;;  %v8286_v13 = vrot.slane %v8284_v45, 5  ;;  %v8310_v62 = vrot.slane %v8308_v28, 5  ;;  %v8314_v51 = vrot.slane %v8312_v47, 4 }
 0x1e3   : > { %v8320_v34 = vrot.slane %v8318_v39, 5  ;;  %v8324_v54 = vrot.slane %v8322_v30, 4  ;;  %v8296_v0 = vrot.slane %v8295_v17, 4  ;;  %v8306_v43 = vrot.slane %v8305_v55, 4  ;;  %v11578_v39 = vld [vmem:[%s13820_s24 + $0x4c] sm:$0x1] }
 0x1e4   : > { %12552 = vmatmul.mubr.msk.bf16.gmra.mrb[48].mxu0 %vm452_vm1, %v11530_v6  ;;  %v8277_v29 = vsel %vm13838_vm4, %v8272_v20, %v8276_v35  ;;  %v8287_v1 = vsel %vm13838_vm4, %v8282_v8, %v8286_v13  ;;  %v8315_v19 = vor.u32 %v8314_v51, %v8310_v62  ;;  %v8328_v40 = vshll.u32 %v11503_v27, 16  ;;  %v11573_v35 = vld [vmem:[%s13820_s24 + $0x38] sm:$0x1]  ;;  %v11579_v55 = vld [vmem:[%s13820_s24 + $0x50] sm:$0xe] }
 0x1e5   : > { %12555 = vmatprep.mubr.msk.bf16.mxu0 %vm452_vm1, %v11531_v15  ;;  %v8325_v56 = vor.u32 %v8324_v54, %v8320_v34  ;;  %v8301_v6 = vsel %vm13838_vm4, %v8296_v0, %v8300_v61  ;;  %v8311_v41 = vsel %vm13838_vm4, %v8306_v43, %v8310_v62  ;;  %v9172_v4 = vrot.slane %v11570_v38, 5  ;;  %v11576_v15 = vld [vmem:[%s13820_s24 + $0x44] sm:$0xf]  ;;  %v11583_v13 = vld [vmem:[%s13820_s24 + $0x60] sm:$0x1] }
 0x1e6   : > { %v11534_v50 = vcombine.low %v8277_v29, %v8287_v1  ;;  %v11649_v32 = vrot.slane %v11569_v59, 9  ;;  %v11535_v12 = vcombine.low %v8301_v6, %v8311_v41  ;;  %v8316_v58 = vrot.slane %v8315_v19, 4  ;;  %v11586_v51 = vld [vmem:[%s13820_s24 + $0x6c] sm:$0xf]  ;;  %v11587_v27 = vld [vmem:[%s13820_s24 + $0x70] sm:$0xf] }
 0x1e7   : > { %12260 = vmatmul.mubr.msk.bf16.gmra.mrb[20].mxu1 %vm452_vm1, %v13464_v9  ;;  %v8326_v23 = vrot.slane %v8325_v56, 4  ;;  %v8330_v53 = vrot.slane %v8328_v40, 5  ;;  %v9174_v52 = vrot.slane %v9172_v4, 4  ;;  %v9175_v11 = vrot.slane %v11571_v7, 5  ;;  %v13470_v38 = vld [vmem:[%s13820_s24 + $0xbc] sm:$0xff]  }
 0x1e8   : > { %12263 = vmatprep.mubr.msk.bf16.mxu1 %vm452_vm1, %v13465_v26  ;;  %v9178_v22 = vrot.slane %v11572_v33, 5  ;;  %v9185_v44 = vrot.slane %v11575_v16, 5  ;;  %v8321_v60 = vsel %vm13838_vm4, %v8316_v58, %v8320_v34  ;;  %v9173_v21 = vsel %vm13988_vm7, %v11649_v32, %v9172_v4  ;;  %v11582_v26 = vld [vmem:[%s13820_s24 + $0x5c] sm:$0xf]  ;;  %v11584_v40 = vld [vmem:[%s13820_s24 + $0x64] sm:$0xe] }
 0x1e9   : > { %v8331_v61 = vsel %vm13838_vm4, %v8326_v23, %v8330_v53  ;;  %v9176_v48 = vsel %vm13988_vm7, %v9174_v52, %v9175_v11  ;;  %v9177_v45 = vrot.slane %v9175_v11, 4  ;;  %v9181_v9 = vrot.slane %v11573_v35, 5  ;;  %v11588_v6 = vld [vmem:[%s13820_s24 + $0x74] sm:$0x1]  ;;  %v11590_v33 = vld [vmem:[%s13820_s24 + $0x7c] sm:$0xf] }
 0x1ea   : > { %v9180_v57 = vrot.slane %v9178_v22, 4  ;;  %v11650_v14 = vrot.slane %v11574_v24, 9  ;;  %v9188_v42 = vrot.slane %v11576_v15, 5  ;;  %v9191_v2 = vrot.slane %v11577_v31, 5  ;;  %v11591_v23 = vld [vmem:[%s13820_s24 + $0x80] sm:$0xf] }
 0x1eb   : > { %v11536_v28 = vcombine.low %v8321_v60, %v8331_v61  ;;  %v9187_v47 = vrot.slane %v9185_v44, 4  ;;  %v9198_v30 = vrot.slane %v11580_v46, 5  ;;  %v11666_v17 = vcombine.low %v9173_v21, %v9176_v48  ;;  %v11592_v53 = vld [vmem:[%s13820_s24 + $0x84] sm:$0xf]  ;;  %v13472_v21 = vld [vmem:[%s13820_s24 + $0xd0] sm:$0xff]   ;;  %v13473_v46 = vld [vmem:[%s13820_s24 + $0xdc] sm:$0xff]  }
 0x1ec   : > { %12556 = vmatmul.mubr.msk.bf16.gmra.mrb[52].mxu0 %vm452_vm1, %v11532_v49  ;;  %v9201_v49 = vrot.slane %v11581_v37, 5  ;;  %v9179_v20 = vsel %vm13988_vm7, %v9177_v45, %v9178_v22  ;;  %v9182_v8 = vsel %vm13988_vm7, %v9180_v57, %v9181_v9  ;;  %v9204_v62 = vrot.slane %v11582_v26, 5  ;;  %v11593_v48 = vld [vmem:[%s13820_s24 + $0x88] sm:$0x1]  ;;  %v11597_v26 = vld [vmem:[%s13820_s24 + $0x98] sm:$0xf] }
 0x1ed   : > { %12559 = vmatprep.mubr.msk.bf16.mxu0 %vm452_vm1, %v11533_v5  ;;  %v11585_v5 = vld [vmem:[%s13820_s24 + $0x68] sm:$0xf]  ;;  %v9186_v34 = vsel %vm13988_vm7, %v11650_v14, %v9185_v44  ;;  %v9190_v54 = vrot.slane %v9188_v42, 4  ;;  %v9193_v0 = vrot.slane %v9191_v2, 4  ;;  %v9194_v43 = vrot.slane %v11578_v39, 5 }
 0x1ee   : > { %v9189_v29 = vsel %vm13988_vm7, %v9187_v47, %v9188_v42  ;;  %v9200_v1 = vrot.slane %v9198_v30, 4  ;;  %v9211_v19 = vrot.slane %v11585_v5, 5  ;;  %v9203_v56 = vrot.slane %v9201_v49, 4  ;;  %v15844_v14 = vld [vmem:[%s13820_s24 + $0x8c] sm:$0xe] }
 0x1ef   : > { %12264 = vmatmul.mubr.msk.bf16.gmra.mrb[24].mxu1 %vm452_vm1, %v13466_v3  ;;  %v13471_v3 = vld [vmem:[%s13820_s24 + $0xc8] sm:$0xff]   ;;  %v9214_v59 = vrot.slane %v11586_v51, 5  ;;  %v9206_v41 = vrot.slane %v9204_v62, 4  ;;  %v9207_v4 = vrot.slane %v11583_v13, 5  ;;  %v9217_v7 = vrot.slane %v11587_v27, 5 }
 0x1f0   : > { %12267 = vmatprep.mubr.msk.bf16.mxu1 %vm452_vm1, %v13467_v63  ;;  %v11651_v63 = vrot.slane %v11579_v55, 9  ;;  %v11668_v32 = vcombine.low %v9186_v34, %v9189_v29  ;;  %v15804_v58 = vsel %vm13988_vm7, %v9193_v0, %v9194_v43  ;;  %v15815_v52 = vsel %vm13988_vm7, %v9200_v1, %v9201_v49  ;;  %v11595_v42 = vld [vmem:[%s13820_s24 + $0x90] sm:$0xf]  ;;  %v11028_v55 = vld [vmem:[%s13820_s24 + $0xb8] sm:$0xf] }
 0x1f1   : > { %v11652_v11 = vrot.slane %v11584_v40, 9  ;;  %v9213_v22 = vrot.slane %v9211_v19, 4  ;;  %v15820_v35 = vsel %vm13988_vm7, %v9203_v56, %v9204_v62  ;;  %v9216_v24 = vrot.slane %v9214_v59, 4  ;;  %v11598_v13 = vld [vmem:[%s13820_s24 + $0x9c] sm:$0x1] }
 0x1f2   : > { %v15811_v16 = vsel %vm13988_vm7, %v11651_v63, %v9198_v30  ;;  %v9224_v15 = vrot.slane %v11590_v33, 5  ;;  %v15824_v44 = vsel %vm13988_vm7, %v9206_v41, %v9207_v4  ;;  %v9219_v31 = vrot.slane %v9217_v7, 4  ;;  %v11600_v0 = vld [vmem:[%s13820_s24 + $0xa4] sm:$0xf]  ;;  %v11601_v43 = vld [vmem:[%s13820_s24 + $0xa8] sm:$0xf] }
 0x1f3   : > { %v9227_v60 = vrot.slane %v11591_v23, 5  ;;  %v9230_v61 = vrot.slane %v11592_v53, 5  ;;  %v11670_v57 = vcombine.low %v15811_v16, %v15815_v52  ;;  %v15837_v9 = vsel %vm13988_vm7, %v11652_v11, %v9211_v19  ;;  %v11599_v40 = vld [vmem:[%s13820_s24 + $0xa0] sm:$0xe]  ;;  %v11602_v23 = vld [vmem:[%s13820_s24 + $0xac] sm:$0xf] }
 0x1f4   : > { %12560 = vmatmul.mubr.msk.bf16.gmra.mrb[56].mxu0 %vm452_vm1, %v11534_v50  ;;  %v11667_v50 = vcombine.low %v9179_v20, %v9182_v8  ;;  %v15841_v37 = vsel %vm13988_vm7, %v9213_v22, %v9214_v59  ;;  %v15854_v47 = vsel %vm13988_vm7, %v9216_v24, %v9217_v7  ;;  %v9226_v30 = vrot.slane %v9224_v15, 4  ;;  %v11029_v7 = vld [vmem:[%s13820_s24 + $0xbc] sm:$0xf]  ;;  %v11030_v33 = vld [vmem:[%s13820_s24 + $0xc0] sm:$0xf]  ;;  %v13474_v53 = vld [vmem:[%s13820_s24 + $0xe4] sm:$0xff]  }
 0x1f5   : > { %12563 = vmatprep.mubr.msk.bf16.mxu0 %vm452_vm1, %v11535_v12  ;;  %v15800_v12 = vsel %vm13988_vm7, %v9190_v54, %v9191_v2  ;;  %v11596_v2 = vld [vmem:[%s13820_s24 + $0x94] sm:$0xf]  ;;  %v9229_v5 = vrot.slane %v9227_v60, 4  ;;  %v9232_v20 = vrot.slane %v9230_v61, 4  ;;  %v9233_v8 = vrot.slane %v11593_v48, 5 }
 0x1f6   : > { %v11669_v45 = vcombine.low %v15800_v12, %v15804_v58  ;;  %v11672_v62 = vcombine.low %v15837_v9, %v15841_v37  ;;  %v9237_v51 = vrot.slane %v11595_v42, 5  ;;  %v9240_v34 = vrot.slane %v11596_v2, 5  ;;  %v13475_v24 = vld [vmem:[%s13820_s24 + $0xf0] sm:$0xff]   ;;  %v11031_v2 = vld [vmem:[%s13820_s24 + $0xc4] sm:$0x1] }
 0x1f7   : > { %12268 = vmatmul.mubr.msk.bf16.gmra.mrb[28].mxu1 %vm452_vm1, %v13468_v25  ;;  %v9220_v25 = vrot.slane %v11588_v6, 5  ;;  %v9243_v54 = vrot.slane %v11597_v26, 5  ;;  %v4676_v29 = vshrl.u32 %v11028_v55, 16  ;;  %v15877_v19 = vsel %vm13988_vm7, %v9226_v30, %v9227_v60  ;;  %v11603_v42 = vld [vmem:[%s13820_s24 + $0xb0] sm:$0x1] }
 0x1f8   : > { %12271 = vmatprep.mubr.msk.bf16.mxu1 %vm452_vm1, %v13469_v18  ;;  %v11589_v18 = vld [vmem:[%s13820_s24 + $0x78] sm:$0xe]  ;;  %v11654_v56 = vrot.slane %v15844_v14, 9  ;;  %v15883_v59 = vsel %vm13988_vm7, %v9229_v5, %v9230_v61  ;;  %v15887_v6 = vsel %vm13988_vm7, %v9232_v20, %v9233_v8  ;;  %v9246_v41 = vrot.slane %v11598_v13, 5  ;;  %v11032_v5 = vld [vmem:[%s13820_s24 + $0xc8] sm:$0xf] }
 0x1f9   : > { %v11653_v39 = vrot.slane %v11589_v18, 9  ;;  %v15860_v49 = vsel %vm13988_vm7, %v9219_v31, %v9220_v25  ;;  %v9250_v4 = vrot.slane %v11600_v0, 5  ;;  %v9245_v12 = vrot.slane %v9243_v54, 4 }
 0x1fa   : > { %v11673_v63 = vcombine.low %v15854_v47, %v15860_v49  ;;  %v9253_v58 = vrot.slane %v11601_v43, 5  ;;  %v4678_v22 = vrot.slane %v4676_v29, 4  ;;  %v4682_v25 = vshll.u32 %v11029_v7, 16 }
 0x1fb   : > { %v15873_v1 = vsel %vm13988_vm7, %v11653_v39, %v9224_v15  ;;  %v4686_v15 = vshrl.u32 %v11029_v7, 16  ;;  %v4692_v31 = vshll.u32 %v11030_v33, 16  ;;  %v4696_v18 = vshrl.u32 %v11030_v33, 16 }
 0x1fc   : > { %12564 = vmatmul.mubr.msk.bf16.gmra.mrb[60].mxu0 %vm452_vm1, %v11536_v28  ;;  %v11671_v28 = vcombine.low %v15820_v35, %v15824_v44  ;;  %v11674_v60 = vcombine.low %v15873_v1, %v15877_v19  ;;  %v11655_v61 = vrot.slane %v11599_v40, 9  ;;  %v11675_v48 = vcombine.low %v15883_v59, %v15887_v6  ;;  %v11038_v19 = vld [vmem:[%s13820_s24 + $0xe0] sm:$0xf] }
 0x1fd   : > { %12569 = vmatprep.mubr.msk.bf16.mxu0 %vm452_vm1, %v11666_v17  ;;  %v11027_v17 = vld [vmem:[%s13820_s24 + $0xb4] sm:$0xf]  ;;  %v15919_v26 = vsel %vm13988_vm7, %v9245_v12, %v9246_v41  ;;  %v9255_v39 = vrot.slane %v9253_v58, 4  ;;  %v4684_v20 = vrot.slane %v4682_v25, 5  ;;  %v4688_v8 = vrot.slane %v4686_v15, 4  ;;  %v13476_v41 = vld [vmem:[%s13820_s24 + $0xf8] sm:$0xff]  }
 0x1fe   : > { %v4663_v27 = vshrl.u32 %v11027_v17, 16  ;;  %v15925_v13 = vrot.slane %v4692_v31, 5  ;;  %v9259_v43 = vrot.slane %v11603_v42, 5  ;;  %v4710_v40 = vshll.u32 %v11032_v5, 16  ;;  %v11606_v12 = vld [vmem:[%s13820_s24 + $0xbc] sm:$0xf] }
 0x1ff   : > { %12272 = vmatmul.mubr.msk.bf16.gmra.mrb[32].mxu1 %vm452_vm1, %v13470_v38  ;;  %v4666_v38 = vshll.u32 %v11027_v17, 16  ;;  %v4689_v44 = vor.u32 %v4688_v8, %v4684_v20  ;;  %v11035_v15 = vld [vmem:[%s13820_s24 + $0xd4] sm:$0xf] }
 0x200   : > { %12275 = vmatprep.mubr.msk.bf16.mxu1 %vm452_vm1, %v13471_v3  ;;  %v4672_v3 = vshll.u32 %v11028_v55, 16  ;;  %v4665_v16 = vrot.slane %v4663_v27, 4  ;;  %v11605_v55 = vld [vmem:[%s13820_s24 + $0xb8] sm:$0xf]  ;;  %v11033_v27 = vld [vmem:[%s13820_s24 + $0xcc] sm:$0xf] }
 0x201   : > { %v4668_v52 = vrot.slane %v4666_v38, 5  ;;  %v4702_v38 = vshll.u32 %v11031_v2, 16  ;;  %v9263_v29 = vrot.slane %v11605_v55, 5  ;;  %v4712_v25 = vrot.slane %v4710_v40, 5 }
 0x202   : > { %v15894_v11 = vrot.slane %v4672_v3, 5  ;;  %v11604_v3 = vld [vmem:[%s13820_s24 + $0xb4] sm:$0xe]  ;;  %v4690_v42 = vrot.slane %v4689_v44, 4  ;;  %v4740_v8 = vshrl.u32 %v11035_v15, 16 }
 0x203   : > { %v4669_v30 = vor.u32 %v4668_v52, %v4665_v16  ;;  %v11656_v37 = vrot.slane %v11604_v3, 9  ;;  %v4720_v16 = vshrl.u32 %v11033_v27, 16  ;;  %v4704_v52 = vrot.slane %v4702_v38, 5 }
 0x204   : > { %12570 = vmatmul.mubr.msk.bf16.vlgmr.msra.gmra.mrb[0].mxu0 %vm452_vm1, %v11667_v50  ;;  %v9239_v50 = vrot.slane %v9237_v51, 4  ;;  %v4679_v17 = vor.u32 %v4678_v22, %v15894_v11  ;;  %v9265_v22 = vrot.slane %v9263_v29, 4  ;;  %v4695_v47 = vsel %vm13838_vm4, %v4690_v42, %v15925_v13 }
 0x205   : > { %12573 = vmatprep.mubr.msk.bf16.mxu0 %vm452_vm1, %v11668_v32  ;;  %v9242_v32 = vrot.slane %v9240_v34, 4  ;;  %v4670_v33 = vrot.slane %v4669_v30, 4  ;;  %v4742_v1 = vrot.slane %v4740_v8, 4  ;;  %v11613_v8 = vld [vmem:[%s13820_s24 + $0xd8] sm:$0x1] }
 0x207   : > { %12276 = vmatmul.mubr.msk.bf16.gmra.mrb[36].mxu1 %vm452_vm1, %v13472_v21  ;;  %v9252_v21 = vrot.slane %v9250_v4, 4  ;;  %v15912_v14 = vsel %vm13988_vm7, %v9242_v32, %v9243_v54  ;;  %v13477_v32 = vld [vmem:[%s13820_s24 + $0x104] sm:$0xff]   ;;  %v4675_v31 = vsel %vm13838_vm4, %v4670_v33, %v15894_v11  ;;  %v4736_v11 = vshll.u32 %v11035_v15, 16  ;;  %v13479_v33 = vld [vmem:[%s13820_s24 + $0x118] sm:$0xff]  }
 0x208   : > { %12279 = vmatprep.mubr.msk.bf16.mxu1 %vm452_vm1, %v13473_v46  ;;  %v9256_v46 = vrot.slane %v11602_v23, 5  ;;  %v11677_v7 = vcombine.low %v15912_v14, %v15919_v26  ;;  %v4716_v23 = vshll.u32 %v11033_v27, 16 }
 0x209   : > { %v15933_v54 = vsel %vm13988_vm7, %v9252_v21, %v9253_v58  ;;  %v11607_v58 = vld [vmem:[%s13820_s24 + $0xc0] sm:$0xf]  ;;  %v11608_v21 = vld [vmem:[%s13820_s24 + $0xc4] sm:$0x1] }
 0x20a   : > { %v9258_v0 = vrot.slane %v9256_v46, 4  ;;  %v15953_v35 = vsel %vm13988_vm7, %v9255_v39, %v9256_v46  ;;  %v9269_v46 = vrot.slane %v11607_v58, 5  ;;  %v15974_v39 = vrot.slane %v4716_v23, 5  ;;  %v11611_v58 = vld [vmem:[%s13820_s24 + $0xd0] sm:$0xf] }
 0x20c   : > { %12574 = vmatmul.mubr.msk.bf16.gmra.mrb[4].mxu0 %vm452_vm1, %v11669_v45  ;;  %v15904_v45 = vsel %vm13988_vm7, %v11654_v56, %v9237_v51  ;;  %v4698_v51 = vrot.slane %v4696_v18, 4  ;;  %v4707_v56 = vshrl.u32 %v11032_v5, 16  ;;  %v15962_v9 = vsel %vm13988_vm7, %v9258_v0, %v9259_v43  ;;  %v11036_v5 = vld [vmem:[%s13820_s24 + $0xd8] sm:$0x1] }
 0x20d   : > { %12577 = vmatprep.mubr.msk.bf16.mxu0 %vm452_vm1, %v11670_v57  ;;  %v15908_v57 = vsel %vm13988_vm7, %v9239_v50, %v9240_v34  ;;  %v15929_v34 = vsel %vm13988_vm7, %v11655_v61, %v9250_v4  ;;  %v4680_v50 = vrot.slane %v4679_v17, 4  ;;  %v9266_v61 = vrot.slane %v11606_v12, 5 }
 0x20e   : > { %v11676_v4 = vcombine.low %v15904_v45, %v15908_v57  ;;  %v4722_v17 = vrot.slane %v4720_v16, 4  ;;  %v15982_v0 = vsel %vm13988_vm7, %v11656_v37, %v9263_v29  ;;  %v9272_v43 = vrot.slane %v11608_v21, 5  ;;  %v11610_v29 = vld [vmem:[%s13820_s24 + $0xcc] sm:$0xf] }
 0x20f   : > { %12280 = vmatmul.mubr.msk.bf16.gmra.mrb[40].mxu1 %vm452_vm1, %v13474_v53  ;;  %v11678_v53 = vcombine.low %v15929_v34, %v15933_v54  ;;  %v4685_v18 = vsel %vm13838_vm4, %v4680_v50, %v4684_v20  ;;  %v11679_v20 = vcombine.low %v15953_v35, %v15962_v9  ;;  %v15992_v3 = vsel %vm13988_vm7, %v9265_v22, %v9266_v61 }
 0x210   : > { %12283 = vmatprep.mubr.msk.bf16.mxu1 %vm452_vm1, %v13475_v24  ;;  %v4709_v24 = vrot.slane %v4707_v56, 4  ;;  %v15988_v38 = vcombine.low %v4675_v31, %v4685_v18  ;;  %v9268_v56 = vrot.slane %v9266_v61, 4  ;;  %v9271_v40 = vrot.slane %v9269_v46, 4  ;;  %v11039_v31 = vld [vmem:[%s13820_s24 + $0xe4] sm:$0xf] }
 0x211   : > { %v4746_v50 = vshll.u32 %v11036_v5, 16  ;;  %v4723_v44 = vor.u32 %v4722_v17, %v15974_v39  ;;  %v16010_v12 = vrot.slane %v4736_v11, 5  ;;  %v9276_v37 = vrot.slane %v11610_v29, 5  ;;  %v13480_v17 = vld [vmem:[%s13820_s24 + $0x120] sm:$0xff]   ;;  %v13481_v29 = vld [vmem:[%s13820_s24 + $0x12c] sm:$0xff]  }
 0x212   : > { %v4713_v27 = vor.u32 %v4712_v25, %v4709_v24  ;;  %v16021_v16 = vsel %vm13988_vm7, %v9268_v56, %v9269_v46  ;;  %v16027_v25 = vsel %vm13988_vm7, %v9271_v40, %v9272_v43  ;;  %v4760_v18 = vshll.u32 %v11038_v19, 16 }
 0x213   : > { %v16029_v15 = vrot.slane %v4746_v50, 5  ;;  %v4764_v61 = vshrl.u32 %v11038_v19, 16  ;;  %v4724_v21 = vrot.slane %v4723_v44, 4  ;;  %v4743_v42 = vor.u32 %v4742_v1, %v16010_v12  ;;  %v11614_v19 = vld [vmem:[%s13820_s24 + $0xdc] sm:$0xe] }
 0x214   : > { %12578 = vmatmul.mubr.msk.bf16.gmra.mrb[8].mxu0 %vm452_vm1, %v11671_v28  ;;  %v4699_v28 = vor.u32 %v4698_v51, %v15925_v13  ;;  %v13478_v51 = vld [vmem:[%s13820_s24 + $0x10c] sm:$0xff]   ;;  %v4714_v13 = vrot.slane %v4713_v27, 4  ;;  %v9278_v11 = vrot.slane %v9276_v37, 4  ;;  %v4770_v56 = vshll.u32 %v11039_v31, 16 }
 0x215   : > { %12581 = vmatprep.mubr.msk.bf16.mxu0 %vm452_vm1, %v11672_v62  ;;  %v11034_v62 = vld [vmem:[%s13820_s24 + $0xd0] sm:$0xf]  ;;  %v4774_v40 = vshrl.u32 %v11039_v31, 16  ;;  %v11681_v44 = vcombine.low %v16021_v16, %v16027_v25 }
 0x216   : > { %v4700_v2 = vrot.slane %v4699_v28, 4  ;;  %v4726_v30 = vshll.u32 %v11034_v62, 16  ;;  %v4730_v55 = vshrl.u32 %v11034_v62, 16 }
 0x217   : > { %12284 = vmatmul.mubr.msk.bf16.gmra.mrb[44].mxu1 %vm452_vm1, %v13476_v41  ;;  %v11609_v41 = vld [vmem:[%s13820_s24 + $0xc8] sm:$0xe]  ;;  %v4776_v1 = vrot.slane %v4774_v40, 4 }
 0x218   : > { %12287 = vmatprep.mubr.msk.bf16.mxu1 %vm452_vm1, %v13477_v32  ;;  %v4705_v49 = vsel %vm13838_vm4, %v4700_v2, %v4704_v52  ;;  %v11037_v32 = vld [vmem:[%s13820_s24 + $0xdc] sm:$0xf]  ;;  %v4732_v28 = vrot.slane %v4730_v55, 4  ;;  %v11657_v23 = vrot.slane %v11609_v41, 9  ;;  %v11612_v52 = vld [vmem:[%s13820_s24 + $0xd4] sm:$0xf]  ;;  %v4719_v55 = vsel %vm13838_vm4, %v4714_v13, %v15974_v39 }
 0x219   : > { %v16017_v62 = vcombine.low %v4695_v47, %v4705_v49  ;;  %v4751_v22 = vshrl.u32 %v11037_v32, 16  ;;  %v4754_v24 = vshll.u32 %v11037_v32, 16  ;;  %v9279_v2 = vrot.slane %v11611_v58, 5  ;;  %v11041_v41 = vld [vmem:[%s13820_s24 + $0xec] sm:$0x1] }
 0x21a   : > { %v16041_v5 = vsel %vm13988_vm7, %v11657_v23, %v9276_v37  ;;  %v16054_v39 = vrot.slane %v4760_v18, 5  ;;  %v16061_v49 = vrot.slane %v4743_v42, 4  ;;  %v4790_v32 = vshll.u32 %v11041_v41, 16  ;;  %v11615_v13 = vld [vmem:[%s13820_s24 + $0xe0] sm:$0xf] }
 0x21b   : > { %v4753_v43 = vrot.slane %v4751_v22, 4  ;;  %v4756_v27 = vrot.slane %v4754_v24, 5  ;;  %v9281_v50 = vrot.slane %v9279_v2, 4  ;;  %v16065_v45 = vsel %vm13988_vm7, %v9278_v11, %v9279_v2  ;;  %v11042_v22 = vld [vmem:[%s13820_s24 + $0xf0] sm:$0xf] }
 0x21c   : > { %12582 = vmatmul.mubr.msk.bf16.gmra.mrb[12].mxu0 %vm452_vm1, %v11673_v63  ;;  %v16006_v63 = vrot.slane %v4726_v30, 5  ;;  %v11040_v30 = vld [vmem:[%s13820_s24 + $0xe8] sm:$0xf]  ;;  %v4749_v31 = vsel %vm13838_vm4, %v16061_v49, %v16029_v15  ;;  %v11682_v18 = vcombine.low %v16041_v5, %v16065_v45  ;;  %v11044_v42 = vld [vmem:[%s13820_s24 + $0xf8] sm:$0xf]  ;;  %v16102_v2 = vrot.slane %v4790_v32, 5 }
 0x21d   : > { %12585 = vmatprep.mubr.msk.bf16.mxu0 %vm452_vm1, %v11674_v60  ;;  %v11680_v60 = vcombine.low %v15982_v0, %v15992_v3  ;;  %v4780_v47 = vshll.u32 %v11040_v30, 16  ;;  %v4784_v59 = vshrl.u32 %v11040_v30, 16  ;;  %v11658_v30 = vrot.slane %v11614_v19, 9  ;;  %v11045_v15 = vld [vmem:[%s13820_s24 + $0xfc] sm:$0xf] }
 0x21e   : > { %v4733_v46 = vor.u32 %v4732_v28, %v16006_v63  ;;  %v4729_v6 = vsel %vm13838_vm4, %v4724_v21, %v16006_v63  ;;  %v4757_v63 = vor.u32 %v4756_v27, %v4753_v43  ;;  %v16070_v28 = vrot.slane %v4770_v56, 5  ;;  %v11616_v21 = vld [vmem:[%s13820_s24 + $0xe4] sm:$0xf]  ;;  %v11618_v49 = vld [vmem:[%s13820_s24 + $0xec] sm:$0x1] }
 0x21f   : > { %12288 = vmatmul.mubr.msk.bf16.gmra.mrb[48].mxu1 %vm452_vm1, %v13478_v51  ;;  %v9282_v51 = vrot.slane %v11612_v52, 5  ;;  %v16075_v58 = vcombine.low %v4719_v55, %v4729_v6  ;;  %v16078_v37 = vrot.slane %v4780_v47, 5  ;;  %v4786_v52 = vrot.slane %v4784_v59, 4  ;;  %v13482_v55 = vld [vmem:[%s13820_s24 + $0x134] sm:$0xff]   ;;  %v13483_v56 = vld [vmem:[%s13820_s24 + $0x140] sm:$0xff]  }
 0x220   : > { %12291 = vmatprep.mubr.msk.bf16.mxu1 %vm452_vm1, %v13479_v33  ;;  %v4766_v33 = vrot.slane %v4764_v61, 4  ;;  %v4758_v11 = vrot.slane %v4757_v63, 4  ;;  %v4795_v43 = vshrl.u32 %v11042_v22, 16  ;;  %v4798_v27 = vshll.u32 %v11042_v22, 16  ;;  %v11046_v19 = vld [vmem:[%s13820_s24 + $0x100] sm:$0x1] }
 0x221   : > { %v9284_v57 = vrot.slane %v9282_v51, 4  ;;  %v16093_v61 = vsel %vm13988_vm7, %v9281_v50, %v9282_v51  ;;  %v11617_v51 = vld [vmem:[%s13820_s24 + $0xe8] sm:$0xf]  ;;  %v4787_v41 = vor.u32 %v4786_v52, %v16078_v37  ;;  %v4814_v26 = vshll.u32 %v11044_v42, 16 }
 0x222   : > { %v4767_v23 = vor.u32 %v4766_v33, %v16054_v39  ;;  %v4824_v33 = vshll.u32 %v11045_v15, 16  ;;  %v4828_v47 = vshrl.u32 %v11045_v15, 16  ;;  %v9295_v34 = vrot.slane %v11617_v51, 5 }
 0x223   : > { %v4763_v54 = vsel %vm13838_vm4, %v4758_v11, %v16054_v39  ;;  %v4797_v50 = vrot.slane %v4795_v43, 4  ;;  %v4788_v32 = vrot.slane %v4787_v41, 4  ;;  %v4834_v11 = vshll.u32 %v11046_v19, 16 }
 0x224   : > { %12586 = vmatmul.mubr.msk.bf16.gmra.mrb[16].mxu0 %vm452_vm1, %v11675_v48  ;;  %v16059_v48 = vrot.slane %v4733_v46, 4  ;;  %v11043_v46 = vld [vmem:[%s13820_s24 + $0xf4] sm:$0xf]  ;;  %v4768_v40 = vrot.slane %v4767_v23, 4  ;;  %v16136_v23 = vrot.slane %v4824_v33, 5  ;;  %v4830_v52 = vrot.slane %v4828_v47, 4 }
 0x225   : > { %12589 = vmatprep.mubr.msk.bf16.mxu0 %vm452_vm1, %v11676_v4  ;;  %v9285_v4 = vrot.slane %v11613_v8, 5  ;;  %v4777_v8 = vor.u32 %v4776_v1, %v16070_v28  ;;  %v4808_v14 = vshrl.u32 %v11043_v46, 16  ;;  %v4793_v9 = vsel %vm13838_vm4, %v4788_v32, %v16102_v2  ;;  %v11049_v33 = vld [vmem:[%s13820_s24 + $0x10c] sm:$0xf] }
 0x226   : > { %v4739_v24 = vsel %vm13838_vm4, %v16059_v48, %v16010_v12  ;;  %v9292_v48 = vrot.slane %v11616_v21, 5  ;;  %v4831_v3 = vor.u32 %v4830_v52, %v16136_v23  ;;  %v4858_v19 = vshll.u32 %v11049_v33, 16 }
 0x227   : > { %12292 = vmatmul.mubr.msk.bf16.gmra.mrb[52].mxu1 %vm452_vm1, %v13480_v17  ;;  %v16100_v12 = vsel %vm13988_vm7, %v9284_v57, %v9285_v4  ;;  %v9289_v17 = vrot.slane %v11615_v13, 5  ;;  %v4800_v57 = vrot.slane %v4798_v27, 5  ;;  %v4773_v4 = vsel %vm13838_vm4, %v4768_v40, %v16070_v28  ;;  %v11048_v27 = vld [vmem:[%s13820_s24 + $0x108] sm:$0xf] }
 0x228   : > { %12295 = vmatprep.mubr.msk.bf16.mxu1 %vm452_vm1, %v13481_v29  ;;  %v4804_v29 = vshll.u32 %v11043_v46, 16  ;;  %v4810_v1 = vrot.slane %v4808_v14, 4  ;;  %v16134_v13 = vrot.slane %v4814_v26, 5  ;;  %v9294_v21 = vrot.slane %v9292_v48, 4 }
 0x229   : > { %v16120_v59 = vsel %vm13988_vm7, %v11658_v30, %v9289_v17  ;;  %v9291_v6 = vrot.slane %v9289_v17, 4  ;;  %v9297_v46 = vrot.slane %v9295_v34, 4  ;;  %v9298_v28 = vrot.slane %v11618_v49, 5  ;;  %v13484_v30 = vld [vmem:[%s13820_s24 + $0x148] sm:$0xff]  }
 0x22a   : > { %v16131_v63 = vrot.slane %v4804_v29, 5  ;;  %v16148_v17 = vcombine.low %v4739_v24, %v4749_v31  ;;  %v11683_v15 = vcombine.low %v16093_v61, %v16100_v12  ;;  %v16157_v51 = vcombine.low %v4763_v54, %v4773_v4  ;;  %v11619_v24 = vld [vmem:[%s13820_s24 + $0xf0] sm:$0xe]  ;;  %v11623_v4 = vld [vmem:[%s13820_s24 + $0x100] sm:$0x1] }
 0x22b   : > { %v16140_v22 = vsel %vm13988_vm7, %v9291_v6, %v9292_v48  ;;  %v16179_v2 = vsel %vm13988_vm7, %v9297_v46, %v9298_v28  ;;  %v4836_v26 = vrot.slane %v4834_v11, 5  ;;  %v4848_v48 = vshll.u32 %v11048_v27, 16  ;;  %v11050_v54 = vld [vmem:[%s13820_s24 + $0x110] sm:$0xf]  ;;  %v11051_v11 = vld [vmem:[%s13820_s24 + $0x114] sm:$0x1] }
 0x22c   : > { %12590 = vmatmul.mubr.msk.bf16.gmra.mrb[20].mxu0 %vm452_vm1, %v11677_v7  ;;  %v4818_v7 = vshrl.u32 %v11044_v42, 16  ;;  %v11620_v42 = vld [vmem:[%s13820_s24 + $0xf4] sm:$0xf]  ;;  %v11684_v31 = vcombine.low %v16120_v59, %v16140_v22  ;;  %v4832_v49 = vrot.slane %v4831_v3, 4  ;;  %v4872_v46 = vshrl.u32 %v11050_v54, 16 }
 0x22d   : > { %12593 = vmatprep.mubr.msk.bf16.mxu0 %vm452_vm1, %v11678_v53  ;;  %v4778_v53 = vrot.slane %v4777_v8, 4  ;;  %v11047_v8 = vld [vmem:[%s13820_s24 + $0x104] sm:$0xf]  ;;  %v9302_v43 = vrot.slane %v11620_v42, 5  ;;  %v9311_v45 = vrot.slane %v11623_v4, 5 }
 0x22e   : > { %v4820_v39 = vrot.slane %v4818_v7, 4  ;;  %v4839_v40 = vshrl.u32 %v11047_v8, 16  ;;  %v4842_v41 = vshll.u32 %v11047_v8, 16  ;;  %v11659_v7 = vrot.slane %v11619_v24, 9  ;;  %v11624_v24 = vld [vmem:[%s13820_s24 + $0x104] sm:$0xe] }
 0x22f   : > { %12296 = vmatmul.mubr.msk.bf16.gmra.mrb[56].mxu1 %vm452_vm1, %v13482_v55  ;;  %v4801_v55 = vor.u32 %v4800_v57, %v4797_v50  ;;  %v4783_v35 = vsel %vm13838_vm4, %v4778_v53, %v16078_v37  ;;  %v16175_v37 = vsel %vm13988_vm7, %v9294_v21, %v9295_v34  ;;  %v4852_v34 = vshrl.u32 %v11048_v27, 16 }
 0x230   : > { %12299 = vmatprep.mubr.msk.bf16.mxu1 %vm452_vm1, %v13483_v56  ;;  %v4821_v0 = vor.u32 %v4820_v39, %v16134_v13  ;;  %v11622_v56 = vld [vmem:[%s13820_s24 + $0xfc] sm:$0xf]  ;;  %v16183_v29 = vcombine.low %v4783_v35, %v4793_v9  ;;  %v9304_v50 = vrot.slane %v9302_v43, 4  ;;  %v4841_v32 = vrot.slane %v4839_v40, 4 }
 0x231   : > { %v4802_v14 = vrot.slane %v4801_v55, 4  ;;  %v9308_v57 = vrot.slane %v11622_v56, 5  ;;  %v4862_v39 = vshrl.u32 %v11049_v33, 16  ;;  %v16199_v52 = vsel %vm13988_vm7, %v11659_v7, %v9302_v43  ;;  %v11053_v43 = vld [vmem:[%s13820_s24 + $0x11c] sm:$0xf] }
 0x232   : > { %v4822_v53 = vrot.slane %v4821_v0, 4  ;;  %v4868_v21 = vshll.u32 %v11050_v54, 16  ;;  %v16220_v55 = vrot.slane %v4858_v19, 5  ;;  %v11625_v0 = vld [vmem:[%s13820_s24 + $0x108] sm:$0xf] }
 0x233   : > { %v9310_v5 = vrot.slane %v9308_v57, 4  ;;  %v4864_v8 = vrot.slane %v4862_v39, 4  ;;  %v11054_v7 = vld [vmem:[%s13820_s24 + $0x120] sm:$0xf]  ;;  %v11628_v19 = vld [vmem:[%s13820_s24 + $0x114] sm:$0x1] }
 0x234   : > { %12594 = vmatmul.mubr.msk.bf16.gmra.mrb[24].mxu0 %vm452_vm1, %v11679_v20  ;;  %v4811_v20 = vor.u32 %v4810_v1, %v16131_v63  ;;  %v4844_v1 = vrot.slane %v4842_v41, 5  ;;  %v4827_v28 = vsel %vm13838_vm4, %v4822_v53, %v16136_v23  ;;  %v11685_v23 = vcombine.low %v16175_v37, %v16179_v2 }
 0x235   : > { %12597 = vmatprep.mubr.msk.bf16.mxu0 %vm452_vm1, %v11680_v60  ;;  %v11621_v60 = vld [vmem:[%s13820_s24 + $0xf8] sm:$0xf]  ;;  %v16229_v9 = vrot.slane %v4868_v21, 5  ;;  %v4902_v39 = vshll.u32 %v11054_v7, 16  ;;  %v4906_v61 = vshrl.u32 %v11054_v7, 16 }
 0x236   : > { %v4812_v47 = vrot.slane %v4811_v20, 4  ;;  %v9305_v6 = vrot.slane %v11621_v60, 5  ;;  %v4874_v20 = vrot.slane %v4872_v46, 4  ;;  %v11626_v60 = vld [vmem:[%s13820_s24 + $0x10c] sm:$0xf] }
 0x237   : > { %12300 = vmatmul.mubr.msk.bf16.gmra.mrb[60].mxu1 %vm452_vm1, %v13484_v30  ;;  %v4845_v30 = vor.u32 %v4844_v1, %v4841_v32  ;;  %v9318_v53 = vrot.slane %v11626_v60, 5 }
 0x238   : > { %12337 = vmatprep.mubr.msk.bf16.mxu1 %vm452_vm1, %v15988_v38  ;;  %v4807_v38 = vsel %vm13838_vm4, %v4802_v14, %v16131_v63  ;;  %v4817_v16 = vsel %vm13838_vm4, %v4812_v47, %v16134_v13  ;;  %v9307_v25 = vrot.slane %v9305_v6, 4  ;;  %v4854_v63 = vrot.slane %v4852_v34, 4  ;;  %v11055_v34 = vld [vmem:[%s13820_s24 + $0x124] sm:$0xf] }
 0x239   : > { %v16215_v42 = vsel %vm13988_vm7, %v9304_v50, %v9305_v6  ;;  %v4837_v13 = vsel %vm13838_vm4, %v4832_v49, %v4836_v26  ;;  %v16227_v35 = vcombine.low %v4807_v38, %v4817_v16  ;;  %v16248_v14 = vsel %vm13988_vm7, %v9310_v5, %v9311_v45  ;;  %v11627_v26 = vld [vmem:[%s13820_s24 + $0x110] sm:$0xf] }
 0x23a   : > { %v11686_v3 = vcombine.low %v16199_v52, %v16215_v42  ;;  %v16240_v40 = vcombine.low %v4827_v28, %v4837_v13  ;;  %v16244_v41 = vsel %vm13988_vm7, %v9307_v25, %v9308_v57  ;;  %v4846_v33 = vrot.slane %v4845_v30, 4 }
 0x23b   : > { %v4865_v47 = vor.u32 %v4864_v8, %v16220_v55  ;;  %v11660_v6 = vrot.slane %v11624_v24, 9  ;;  %v4875_v54 = vor.u32 %v4874_v20, %v16229_v9  ;;  %v4892_v49 = vshll.u32 %v11053_v43, 16  ;;  %v11629_v20 = vld [vmem:[%s13820_s24 + $0x118] sm:$0xe]  ;;  %v11631_v24 = vld [vmem:[%s13820_s24 + $0x120] sm:$0xf] }
 0x23c   : > { %12598 = vmatmul.mubr.msk.bf16.gmra.mrb[28].mxu0 %vm452_vm1, %v11681_v44  ;;  %v16208_v44 = vrot.slane %v4848_v48, 5  ;;  %v9315_v48 = vrot.slane %v11625_v0, 5  ;;  %v4896_v50 = vshrl.u32 %v11053_v43, 16  ;;  %v9321_v4 = vrot.slane %v11627_v26, 5 }
 0x23d   : > { %12601 = vmatprep.mubr.msk.bf16.mxu0 %vm452_vm1, %v11682_v18  ;;  %v11052_v18 = vld [vmem:[%s13820_s24 + $0x118] sm:$0xf]  ;;  %v4912_v12 = vshll.u32 %v11055_v34, 16  ;;  %v4866_v21 = vrot.slane %v4865_v47, 4  ;;  %v4876_v22 = vrot.slane %v4875_v54, 4  ;;  %v16269_v16 = vrot.slane %v4892_v49, 5 }
 0x23e   : > { %v4883_v27 = vshrl.u32 %v11052_v18, 16  ;;  %v4886_v56 = vshll.u32 %v11052_v18, 16  ;;  %v4851_v38 = vsel %vm13838_vm4, %v4846_v33, %v16208_v44  ;;  %v9317_v59 = vrot.slane %v9315_v48, 4  ;;  %v11633_v47 = vld [vmem:[%s13820_s24 + $0x128] sm:$0x1] }
 0x23f   : > { %12338 = vmatmul.mubr.msk.bf16.vlgmr.msra.gmra.mrb[32].mxu1 %vm452_vm1, %v16017_v62  ;;  %v4855_v62 = vor.u32 %v4854_v63, %v16208_v44  ;;  %v4898_v25 = vrot.slane %v4896_v50, 4  ;;  %v11630_v63 = vld [vmem:[%s13820_s24 + $0x11c] sm:$0xf]  ;;  %v9323_v28 = vrot.slane %v9321_v4, 4  ;;  %v9324_v5 = vrot.slane %v11628_v19, 5 }
 0x240   : > { %12341 = vmatprep.mubr.msk.bf16.mxu1 %vm452_vm1, %v16075_v58  ;;  %v4878_v58 = vshll.u32 %v11051_v11, 16  ;;  %v4885_v32 = vrot.slane %v4883_v27, 4  ;;  %v4888_v1 = vrot.slane %v4886_v56, 5  ;;  %v16277_v18 = vrot.slane %v4902_v39, 5  ;;  %v11632_v56 = vld [vmem:[%s13820_s24 + $0x124] sm:$0xf] }
 0x241   : > { %v4856_v57 = vrot.slane %v4855_v62, 4  ;;  %v4908_v13 = vrot.slane %v4906_v61, 4  ;;  %v16280_v30 = vrot.slane %v4912_v12, 5  ;;  %v11687_v8 = vcombine.low %v16244_v41, %v16248_v14  ;;  %v11057_v41 = vld [vmem:[%s13820_s24 + $0x12c] sm:$0xf] }
 0x242   : > { %v4880_v46 = vrot.slane %v4878_v58, 5  ;;  %v4889_v45 = vor.u32 %v4888_v1, %v4885_v32  ;;  %v9328_v0 = vrot.slane %v11630_v63, 5  ;;  %v4871_v60 = vsel %vm13838_vm4, %v4866_v21, %v16229_v9  ;;  %v11059_v54 = vld [vmem:[%s13820_s24 + $0x134] sm:$0xf]  ;;  %v11060_v61 = vld [vmem:[%s13820_s24 + $0x138] sm:$0xf] }
 0x243   : > { %v4861_v44 = vsel %vm13838_vm4, %v4856_v57, %v16220_v55  ;;  %v9319_v55 = vsel %vm13988_vm7, %v9317_v59, %v9318_v53  ;;  %v4899_v27 = vor.u32 %v4898_v25, %v16269_v16  ;;  %v16313_v2 = vsel %vm13988_vm7, %v9323_v28, %v9324_v5  ;;  %v11635_v21 = vld [vmem:[%s13820_s24 + $0x130] sm:$0xf]  ;;  %v11062_v5 = vld [vmem:[%s13820_s24 + $0x140] sm:$0xf] }
 0x244   : > { %12602 = vmatmul.mubr.msk.bf16.gmra.mrb[32].mxu0 %vm452_vm1, %v11683_v15  ;;  %v4916_v15 = vshrl.u32 %v11055_v34, 16  ;;  %v16294_v62 = vcombine.low %v4851_v38, %v4861_v44  ;;  %v4881_v43 = vsel %vm13838_vm4, %v4876_v22, %v4880_v46  ;;  %v4909_v14 = vor.u32 %v4908_v13, %v16277_v18  ;;  %v11634_v13 = vld [vmem:[%s13820_s24 + $0x12c] sm:$0xe] }
 0x245   : > { %12605 = vmatprep.mubr.msk.bf16.mxu0 %vm452_vm1, %v11684_v31  ;;  %v9320_v31 = vrot.slane %v9318_v53, 4  ;;  %v11661_v52 = vrot.slane %v11629_v20, 9  ;;  %v9331_v42 = vrot.slane %v11631_v24, 5  ;;  %v16321_v26 = vcombine.low %v4871_v60, %v4881_v43  ;;  %v11636_v24 = vld [vmem:[%s13820_s24 + $0x134] sm:$0xf] }
 0x246   : > { %v4918_v11 = vrot.slane %v4916_v15, 4  ;;  %v9330_v33 = vrot.slane %v9328_v0, 4  ;;  %v4900_v34 = vrot.slane %v4899_v27, 4  ;;  %v4927_v53 = vshrl.u32 %v11057_v41, 16  ;;  %v11637_v43 = vld [vmem:[%s13820_s24 + $0x138] sm:$0xf] }
 0x247   : > { %12342 = vmatmul.mubr.msk.bf16.gmra.mrb[36].mxu1 %vm452_vm1, %v16148_v17  ;;  %v11056_v17 = vld [vmem:[%s13820_s24 + $0x128] sm:$0x1]  ;;  %v16309_v37 = vsel %vm13988_vm7, %v9320_v31, %v9321_v4  ;;  %v4930_v49 = vshll.u32 %v11057_v41, 16  ;;  %v9329_v19 = vsel %vm13988_vm7, %v11661_v52, %v9328_v0  ;;  %v9333_v39 = vrot.slane %v9331_v42, 4  ;;  %v11063_v0 = vld [vmem:[%s13820_s24 + $0x144] sm:$0xf] }
 0x248   : > { %12345 = vmatprep.mubr.msk.bf16.mxu1 %vm452_vm1, %v16157_v51  ;;  %v9316_v51 = vsel %vm13988_vm7, %v11660_v6, %v9315_v48  ;;  %v4922_v9 = vshll.u32 %v11056_v17, 16  ;;  %v4919_v58 = vor.u32 %v4918_v11, %v16280_v30  ;;  %v9334_v6 = vrot.slane %v11632_v56, 5 }
 0x249   : > { %v11688_v7 = vcombine.low %v9316_v51, %v9319_v55  ;;  %v11689_v48 = vcombine.low %v16309_v37, %v16313_v2  ;;  %v9332_v12 = vsel %vm13988_vm7, %v9330_v33, %v9331_v42  ;;  %v9337_v15 = vrot.slane %v11633_v47, 5  ;;  %v11638_v47 = vld [vmem:[%s13820_s24 + $0x13c] sm:$0x1]  ;;  %v11065_v2 = vld [vmem:[%s13820_s24 + $0x14c] sm:$0xf] }
 0x24a   : > { %v4924_v57 = vrot.slane %v4922_v9, 5  ;;  %v4920_v1 = vrot.slane %v4919_v58, 4  ;;  %v4946_v38 = vshll.u32 %v11059_v54, 16  ;;  %v4905_v46 = vsel %vm13838_vm4, %v4900_v34, %v16277_v18 }
 0x24b   : > { %v4929_v59 = vrot.slane %v4927_v53, 4  ;;  %v4932_v22 = vrot.slane %v4930_v49, 5  ;;  %v4950_v31 = vshrl.u32 %v11059_v54, 16  ;;  %v4956_v44 = vshll.u32 %v11060_v61, 16  ;;  %v11064_v53 = vld [vmem:[%s13820_s24 + $0x148] sm:$0xf] }
 0x24c   : > { %12606 = vmatmul.mubr.msk.bf16.gmra.mrb[36].mxu0 %vm452_vm1, %v11685_v23  ;;  %v16315_v23 = vrot.slane %v4889_v45, 4  ;;  %v4960_v28 = vshrl.u32 %v11060_v61, 16  ;;  %v4925_v18 = vsel %vm13838_vm4, %v4920_v1, %v4924_v57  ;;  %v11690_v17 = vcombine.low %v9329_v19, %v9332_v12  ;;  %v11639_v19 = vld [vmem:[%s13820_s24 + $0x140] sm:$0xe] }
 0x24d   : > { %12609 = vmatprep.mubr.msk.bf16.mxu0 %vm452_vm1, %v11686_v3  ;;  %v11058_v3 = vld [vmem:[%s13820_s24 + $0x130] sm:$0xf]  ;;  %v9341_v11 = vrot.slane %v11635_v21, 5  ;;  %v16364_v55 = vrot.slane %v4946_v38, 5  ;;  %v4952_v60 = vrot.slane %v4950_v31, 4  ;;  %v4971_v27 = vshrl.u32 %v11062_v5, 16 }
 0x24e   : > { %v4895_v50 = vsel %vm13838_vm4, %v16315_v23, %v16269_v16  ;;  %v4936_v4 = vshll.u32 %v11058_v3, 16  ;;  %v4940_v32 = vshrl.u32 %v11058_v3, 16  ;;  %v11061_v16 = vld [vmem:[%s13820_s24 + $0x13c] sm:$0x1]  ;;  %v4974_v56 = vshll.u32 %v11062_v5, 16 }
 0x24f   : > { %12346 = vmatmul.mubr.msk.bf16.gmra.mrb[40].mxu1 %vm452_vm1, %v16183_v29  ;;  %v4910_v29 = vrot.slane %v4909_v14, 4  ;;  %v4966_v20 = vshll.u32 %v11061_v16, 16  ;;  %v16374_v9 = vrot.slane %v4956_v44, 5  ;;  %v4962_v41 = vrot.slane %v4960_v28, 4  ;;  %v11641_v38 = vld [vmem:[%s13820_s24 + $0x148] sm:$0xf] }
 0x250   : > { %12349 = vmatprep.mubr.msk.bf16.mxu1 %vm452_vm1, %v16227_v35  ;;  %v9336_v35 = vrot.slane %v9334_v6, 4  ;;  %v16347_v25 = vrot.slane %v4936_v4, 5  ;;  %v4942_v63 = vrot.slane %v4940_v32, 4  ;;  %v11662_v14 = vrot.slane %v11634_v13, 9 }
 0x251   : > { %v4915_v45 = vsel %vm13838_vm4, %v4910_v29, %v16280_v30  ;;  %v4933_v30 = vor.u32 %v4932_v22, %v4929_v59  ;;  %v9343_v58 = vrot.slane %v9341_v11, 4  ;;  %v9344_v52 = vrot.slane %v11636_v24, 5 }
 0x252   : > { %v16362_v51 = vsel %vm13988_vm7, %v9336_v35, %v9337_v15  ;;  %v4943_v23 = vor.u32 %v4942_v63, %v16347_v25  ;;  %v4984_v42 = vshrl.u32 %v11063_v0, 16  ;;  %v11094_v3 = vcombine.low %v4895_v50, %v4905_v46 }
 0x253   : > { %v4934_v34 = vrot.slane %v4933_v30, 4  ;;  %v16386_v54 = vrot.slane %v4966_v20, 5  ;;  %v4973_v49 = vrot.slane %v4971_v27, 4  ;;  %v4976_v50 = vrot.slane %v4974_v56, 5  ;;  %v11066_v30 = vld [vmem:[%s13820_s24 + $0x150] sm:$0x1] }
 0x254   : > { %12610 = vmatmul.mubr.msk.bf16.gmra.mrb[40].mxu0 %vm452_vm1, %v11687_v8  ;;  %v16358_v8 = vsel %vm13988_vm7, %v9333_v39, %v9334_v6  ;;  %v11640_v6 = vld [vmem:[%s13820_s24 + $0x144] sm:$0xf]  ;;  %v4944_v57 = vrot.slane %v4943_v23, 4  ;;  %v4953_v4 = vor.u32 %v4952_v60, %v16364_v55  ;;  %v4963_v32 = vor.u32 %v4962_v41, %v16374_v9  ;;  %v11643_v23 = vld [vmem:[%s13820_s24 + $0x150] sm:$0x1] }
 0x255   : > { %12613 = vmatprep.mubr.msk.bf16.mxu0 %vm452_vm1, %v11688_v7  ;;  %v16376_v7 = vcombine.low %v4915_v45, %v4925_v18  ;;  %v11691_v33 = vcombine.low %v16358_v8, %v16362_v51  ;;  %v9342_v37 = vsel %vm13988_vm7, %v11662_v14, %v9341_v11  ;;  %v4986_v1 = vrot.slane %v4984_v42, 4  ;;  %v11642_v18 = vld [vmem:[%s13820_s24 + $0x14c] sm:$0xf]  ;;  %v11645_v8 = vld [vmem:[%s13820_s24 + $0x158] sm:$0xf] }
 0x256   : > { %v9354_v39 = vrot.slane %v11640_v6, 5  ;;  %v9346_v61 = vrot.slane %v9344_v52, 4  ;;  %v9350_v35 = vrot.slane %v11638_v47, 5  ;;  %v4990_v15 = vshll.u32 %v11064_v53, 16  ;;  %v11646_v42 = vld [vmem:[%s13820_s24 + $0x15c] sm:$0xf] }
 0x257   : > { %12350 = vmatmul.mubr.msk.bf16.gmra.mrb[44].mxu1 %vm452_vm1, %v16240_v40  ;;  %v4980_v40 = vshll.u32 %v11063_v0, 16  ;;  %v4977_v21 = vor.u32 %v4976_v50, %v4973_v49  ;;  %v4994_v46 = vshrl.u32 %v11064_v53, 16  ;;  %v5000_v59 = vshll.u32 %v11065_v2, 16 }
 0x258   : > { %12353 = vmatprep.mubr.msk.bf16.mxu1 %vm452_vm1, %v16294_v62  ;;  %v9347_v62 = vrot.slane %v11637_v43, 5  ;;  %v5004_v22 = vshrl.u32 %v11065_v2, 16  ;;  %v4939_v31 = vsel %vm13838_vm4, %v4934_v34, %v16347_v25  ;;  %v4949_v16 = vsel %vm13838_vm4, %v4944_v57, %v16364_v55  ;;  %v11647_v57 = vld [vmem:[%s13820_s24 + $0x160] sm:$0xf] }
 0x259   : > { %v16397_v29 = vrot.slane %v4980_v40, 5  ;;  %v4954_v63 = vrot.slane %v4953_v4, 4  ;;  %v9356_v5 = vrot.slane %v9354_v39, 4  ;;  %v9357_v45 = vrot.slane %v11641_v38, 5  ;;  %v11644_v40 = vld [vmem:[%s13820_s24 + $0x154] sm:$0xe] }
 0x25a   : > { %v9349_v12 = vrot.slane %v9347_v62, 4  ;;  %v9348_v13 = vsel %vm13988_vm7, %v9346_v61, %v9347_v62  ;;  %v4992_v11 = vrot.slane %v4990_v15, 5  ;;  %v4978_v51 = vrot.slane %v4977_v21, 4 }
 0x25b   : > { %v4987_v28 = vor.u32 %v4986_v1, %v16397_v29  ;;  %v4996_v55 = vrot.slane %v4994_v46, 4  ;;  %v5002_v20 = vrot.slane %v5000_v59, 5  ;;  %v5006_v24 = vrot.slane %v5004_v22, 4 }
 0x25c   : > { %12614 = vmatmul.mubr.msk.bf16.gmra.mrb[44].mxu0 %vm452_vm1, %v11689_v48  ;;  %v9345_v48 = vsel %vm13988_vm7, %v9343_v58, %v9344_v52  ;;  %v9351_v25 = vsel %vm13988_vm7, %v9349_v12, %v9350_v35  ;;  %v11096_v0 = vcombine.low %v4939_v31, %v4949_v16  ;;  %v9360_v60 = vrot.slane %v11642_v18, 5  ;;  %v11648_v12 = vld [vmem:[%s13820_s24 + $0x164] sm:$0x1]  ;;  %s17202_s24 = sand.u32 1, %s13614_s19  }
 0x25d   : > { %12617 = vmatprep.mubr.msk.bf16.mxu0 %vm452_vm1, %v11690_v17  ;;  %v11692_v44 = vcombine.low %v9342_v37, %v9345_v48  ;;  %v4964_v17 = vrot.slane %v4963_v32, 4  ;;  %v4988_v43 = vrot.slane %v4987_v28, 4  ;;  %v9358_v56 = vsel %vm13988_vm7, %v9356_v5, %v9357_v45  ;;  %s10640_s8 = sshll.u32 %s17202_s24, 9 }
 0x25e   : > { %v9367_v41 = vrot.slane %v11645_v8, 5  ;;  %v4959_v14 = vsel %vm13838_vm4, %v4954_v63, %v16374_v9  ;;  %v11693_v52 = vcombine.low %v9348_v13, %v9351_v25  ;;  %v5007_v47 = vor.u32 %v5006_v24, %v5002_v20  ;;  %s16525_s12 = scalar_lea.vmem [#allocation2], %s10640_s8 }
 0x25f   : > { %12354 = vmatmul.mubr.msk.bf16.gmra.mrb[48].mxu1 %vm452_vm1, %v16321_v26  ;;  %v11663_v26 = vrot.slane %v11639_v19, 9  ;;  %v4969_v58 = vsel %vm13838_vm4, %v4964_v17, %v16386_v54  ;;  %v5010_v62 = vshll.u32 %v11066_v30, 16  ;;  %v9359_v6 = vrot.slane %v9357_v45, 4 }
 0x260   : > { %12357 = vmatprep.mubr.msk.bf16.mxu1 %vm452_vm1, %v11094_v3  ;;  %v4983_v3 = vsel %vm13838_vm4, %v4978_v51, %v16397_v29  ;;  %v9362_v34 = vrot.slane %v9360_v60, 4  ;;  %v9363_v54 = vrot.slane %v11643_v23, 5  ;;  %v4993_v53 = vsel %vm13838_vm4, %v4988_v43, %v4992_v11 }
 0x261   : > { %v9355_v27 = vsel %vm13988_vm7, %v11663_v26, %v9354_v39  ;;  %v11664_v49 = vrot.slane %v11644_v40, 9  ;;  %v9369_v50 = vrot.slane %v9367_v41, 4  ;;  %v11097_v4 = vcombine.low %v4959_v14, %v4969_v58 }
 0x262   : > { %v11694_v9 = vcombine.low %v9355_v27, %v9358_v56  ;;  %v5008_v37 = vrot.slane %v5007_v47, 4  ;;  %v5012_v2 = vrot.slane %v5010_v62, 5  ;;  %v11098_v48 = vcombine.low %v4983_v3, %v4993_v53 }
 0x263   : > { %v9361_v29 = vsel %vm13988_vm7, %v9359_v6, %v9360_v60  ;;  %v9364_v1 = vsel %vm13988_vm7, %v9362_v34, %v9363_v54  ;;  %v9373_v19 = vrot.slane %v11647_v57, 5  ;;  %v9368_v39 = vsel %vm13988_vm7, %v11664_v49, %v9367_v41 }
 0x264   : > { %12618 = vmatmul.mubr.msk.bf16.gmra.mrb[48].mxu0 %vm452_vm1, %v11691_v33  ;;  %v4997_v33 = vor.u32 %v4996_v55, %v4992_v11  ;;  %v5013_v15 = vsel %vm13838_vm4, %v5008_v37, %v5012_v2  ;;  %v11695_v38 = vcombine.low %v9361_v29, %v9364_v1  ;;  %v9376_v22 = vrot.slane %v11648_v12, 5 }
 0x265   : > { %12621 = vmatprep.mubr.msk.bf16.mxu0 %vm452_vm1, %v11692_v44  ;;  %v9375_v59 = vrot.slane %v9373_v19, 4 }
 0x266   : > { %v4998_v32 = vrot.slane %v4997_v33, 4 }
 0x267   : > { %12358 = vmatmul.mubr.msk.bf16.gmra.mrb[52].mxu1 %vm452_vm1, %v16376_v7  ;;  %v9370_v7 = vrot.slane %v11646_v42, 5  ;;  %v9377_v63 = vsel %vm13988_vm7, %v9375_v59, %v9376_v22 }
 0x268   : > { %12361 = vmatprep.mubr.msk.bf16.mxu1 %vm452_vm1, %v11096_v0  ;;  %v5003_v35 = vsel %vm13838_vm4, %v4998_v32, %v5002_v20 }
 0x269   : > { %v9371_v61 = vsel %vm13988_vm7, %v9369_v50, %v9370_v7  ;;  %v9372_v46 = vrot.slane %v9370_v7, 4  ;;  %v11099_v31 = vcombine.low %v5003_v35, %v5013_v15 }
 0x26a   : > { %v11696_v21 = vcombine.low %v9368_v39, %v9371_v61 }
 0x26b   : > { %v9374_v16 = vsel %vm13988_vm7, %v9372_v46, %v9373_v19 }
 0x26c   : > { %12622 = vmatmul.mubr.msk.bf16.gmra.mrb[52].mxu0 %vm452_vm1, %v11693_v52  ;;  %v11697_v36 = vcombine.low %v9374_v16, %v9377_v63 }
 0x26d   : > { %12625 = vmatprep.mubr.msk.bf16.mxu0 %vm452_vm1, %v11694_v9  ;;  %v16517_v9 = vld [vmem:[%s17227_s2] ss:$0 sm:$0xff] }
 0x26f   : > { %12362 = vmatmul.mubr.msk.bf16.gmra.mrb[56].mxu1 %vm452_vm1, %v11097_v4 }
 0x270   : > { %12365 = vmatprep.mubr.msk.bf16.mxu1 %vm452_vm1, %v11098_v48 }
 0x274   : > { %12626 = vmatmul.mubr.msk.bf16.gmra.mrb[56].mxu0 %vm452_vm1, %v11695_v38 }
 0x275   : > { %12629 = vmatprep.mubr.msk.bf16.mxu0 %vm452_vm1, %v11696_v21 }
 0x277   : > { %12366 = vmatmul.mubr.msk.bf16.gmra.mrb[60].mxu1 %vm452_vm1, %v11099_v31 }
 0x27c   : > { %12630 = vmatmul.mubr.msk.bf16.gmra.mrb[60].mxu0 %vm452_vm1, %v11697_v36 }
 0x292   : > { %v12241_v44 = vpop.f32.mrb[0].mxu1 }
 0x293   : > { %v3783_v28 = vpop.f32.mrb[1].mxu1 }
 0x294   : > { %v12242_v26 = vpop.f32.mrb[2].mxu1 }
 0x295   : > { %v3786_v5 = vpop.f32.mrb[3].mxu1 }
 0x29a   : > { %v12245_v45 = vpop.f32.mrb[4].mxu1 }
 0x29b   : > { %v3799_v18 = vpop.f32.mrb[5].mxu1 }
 0x29c   : > { %v12246_v17 = vpop.f32.mrb[6].mxu1 }
 0x29d   : > { %v3802_v13 = vpop.f32.mrb[7].mxu1 }
 0x2a2   : > { %v12249_v25 = vpop.f32.mrb[8].mxu1 }
 0x2a3   : > { %v3815_v11 = vpop.f32.mrb[9].mxu1 }
 0x2a4   : > { %v16467_v8 = vpop.f32.mrb[10].mxu1 }
 0x2a5   : > { %v16469_v51 = vpop.f32.mrb[11].mxu1 }
 0x2aa   : > { %v16471_v10 = vpop.f32.mrb[12].mxu1 }
 0x2ab   : > { %v16473_v55 = vpop.f32.mrb[13].mxu1 }
 0x2ac   : > { %v16475_v20 = vpop.f32.mrb[14].mxu1 }
 0x2ad   : > { %v16477_v24 = vpop.f32.mrb[15].mxu1 }
 0x2b2   : > { %v16479_v0 = vpop.f32.mrb[16].mxu1 }
 0x2b3   : > { %v16481_v30 = vpop.f32.mrb[17].mxu1 }
 0x2b4   : > { %v16483_v60 = vpop.f32.mrb[18].mxu1 }
 0x2b5   : > { %v16485_v43 = vpop.f32.mrb[19].mxu1 }
 0x2ba   : > { %v16487_v27 = vpop.f32.mrb[20].mxu1 }
 0x2bb   : > { %v16489_v56 = vpop.f32.mrb[21].mxu1 }
 0x2bc   : > { %v16491_v23 = vpop.f32.mrb[22].mxu1 }
 0x2bd   : > { %v16493_v41 = vpop.f32.mrb[23].mxu1 }
 0x2c2   : > { %v16495_v14 = vpop.f32.mrb[24].mxu1 }
 0x2c3   : > { %v16497_v58 = vpop.f32.mrb[25].mxu1 }
 0x2c4   : > { %v16499_v52 = vpop.f32.mrb[26].mxu1 }
 0x2c5   : > { %v16501_v40 = vpop.f32.mrb[27].mxu1 }
 0x2ca   : > { %v16503_v42 = vpop.f32.mrb[28].mxu1 }
 0x2cb   : > { %v16505_v3 = vpop.f32.mrb[29].mxu1 }
 0x2cc   : > { %v16507_v33 = vpop.f32.mrb[30].mxu1 }
 0x2cd   : > { %v16509_v47 = vpop.f32.mrb[31].mxu1 }
 0x2d7   : > { %v12571_v62 = vpop.f32.mrb[0].mxu0 }
 0x2d8   : > { %v12637_v6 = vadd.f32 %v12571_v62, %v12241_v44  ;;  %v9609_v34 = vpop.f32.mrb[1].mxu0 }
 0x2d9   : > { %v12640_v54 = vadd.f32 %v9609_v34, %v3783_v28  ;;  %v12572_v53 = vpop.f32.mrb[2].mxu0 }
 0x2da   : > { %v16520_v49 = vadd.f32 %v12637_v6, %v16517_v9  ;;  %v12643_v50 = vadd.f32 %v12572_v53, %v12242_v26  ;;  %v9612_v7 = vpop.f32.mrb[3].mxu0 }
 0x2db   : > { %v16523_v57 = vadd.f32 %v12640_v54, %v16517_v9  ;;  %v12646_v4 = vadd.f32 %v9612_v7, %v3786_v5 }
 0x2dc   : > { %10193 = vst [vmem:[%s16525_s12 + $0x10] sm:$0xff] %v16520_v49  ;;  %v16530_v32 = vadd.f32 %v12643_v50, %v16517_v9 }
 0x2dd   : > { %10191 = vst [vmem:[%s16525_s12] sm:$0xff] %v16523_v57  ;;  %v16535_v37 = vadd.f32 %v12646_v4, %v16517_v9 }
 0x2de   : > { %10194 = vst [vmem:[%s16525_s12 + $0x18] sm:$0xff] %v16530_v32 }
 0x2df   : > { %10192 = vst [vmem:[%s16525_s12 + $0x8] sm:$0xff] %v16535_v37  ;;  %v12575_v2 = vpop.f32.mrb[4].mxu0 }
 0x2e0   : > { %v12649_v48 = vadd.f32 %v12575_v2, %v12245_v45  ;;  %v9625_v29 = vpop.f32.mrb[5].mxu0 }
 0x2e1   : > { %v12652_v1 = vadd.f32 %v9625_v29, %v3799_v18  ;;  %v12576_v19 = vpop.f32.mrb[6].mxu0 }
 0x2e2   : > { %v16542_v39 = vadd.f32 %v12649_v48, %v16517_v9  ;;  %v12655_v61 = vadd.f32 %v12576_v19, %v12246_v17  ;;  %v9628_v12 = vpop.f32.mrb[7].mxu0 }
 0x2e3   : > { %v16545_v35 = vadd.f32 %v12652_v1, %v16517_v9  ;;  %v12658_v15 = vadd.f32 %v9628_v12, %v3802_v13 }
 0x2e4   : > { %10197 = vst [vmem:[%s16525_s12 + $0x30] sm:$0xff] %v16542_v39  ;;  %v16550_v38 = vadd.f32 %v12655_v61, %v16517_v9 }
 0x2e5   : > { %10195 = vst [vmem:[%s16525_s12 + $0x20] sm:$0xff] %v16545_v35  ;;  %v16555_v21 = vadd.f32 %v12658_v15, %v16517_v9 }
 0x2e6   : > { %10198 = vst [vmem:[%s16525_s12 + $0x38] sm:$0xff] %v16550_v38 }
 0x2e7   : > { %10196 = vst [vmem:[%s16525_s12 + $0x28] sm:$0xff] %v16555_v21  ;;  %v12579_v46 = vpop.f32.mrb[8].mxu0 }
 0x2e8   : > { %v12661_v59 = vadd.f32 %v12579_v46, %v12249_v25  ;;  %v9641_v22 = vpop.f32.mrb[9].mxu0 }
 0x2e9   : > { %v12664_v31 = vadd.f32 %v9641_v22, %v3815_v11  ;;  %v12580_v16 = vpop.f32.mrb[10].mxu0 }
 0x2ea   : > { %v16562_v63 = vadd.f32 %v12661_v59, %v16517_v9  ;;  %v12667_v36 = vadd.f32 %v12580_v16, %v16467_v8  ;;  %v9644_v44 = vpop.f32.mrb[11].mxu0 }
 0x2eb   : > { %v16566_v28 = vadd.f32 %v12664_v31, %v16517_v9  ;;  %v12670_v26 = vadd.f32 %v9644_v44, %v16469_v51 }
 0x2ec   : > { %10201 = vst [vmem:[%s16525_s12 + $0x50] sm:$0xff] %v16562_v63  ;;  %v16572_v5 = vadd.f32 %v12667_v36, %v16517_v9 }
 0x2ed   : > { %10199 = vst [vmem:[%s16525_s12 + $0x40] sm:$0xff] %v16566_v28  ;;  %v16577_v45 = vadd.f32 %v12670_v26, %v16517_v9 }
 0x2ee   : > { %10202 = vst [vmem:[%s16525_s12 + $0x58] sm:$0xff] %v16572_v5 }
 0x2ef   : > { %10200 = vst [vmem:[%s16525_s12 + $0x48] sm:$0xff] %v16577_v45  ;;  %v12583_v18 = vpop.f32.mrb[12].mxu0 }
 0x2f0   : > { %v12673_v17 = vadd.f32 %v12583_v18, %v16471_v10  ;;  %v9657_v13 = vpop.f32.mrb[13].mxu0 }
 0x2f1   : > { %v12676_v25 = vadd.f32 %v9657_v13, %v16473_v55  ;;  %v12584_v11 = vpop.f32.mrb[14].mxu0 }
 0x2f2   : > { %v16586_v8 = vadd.f32 %v12673_v17, %v16517_v9  ;;  %v12679_v51 = vadd.f32 %v12584_v11, %v16475_v20  ;;  %v9660_v62 = vpop.f32.mrb[15].mxu0 }
 0x2f3   : > { %v16590_v6 = vadd.f32 %v12676_v25, %v16517_v9  ;;  %v12682_v34 = vadd.f32 %v9660_v62, %v16477_v24 }
 0x2f4   : > { %10205 = vst [vmem:[%s16525_s12 + $0x70] sm:$0xff] %v16586_v8  ;;  %v16596_v10 = vadd.f32 %v12679_v51, %v16517_v9 }
 0x2f5   : > { %10203 = vst [vmem:[%s16525_s12 + $0x60] sm:$0xff] %v16590_v6  ;;  %v16601_v55 = vadd.f32 %v12682_v34, %v16517_v9 }
 0x2f6   : > { %10206 = vst [vmem:[%s16525_s12 + $0x78] sm:$0xff] %v16596_v10 }
 0x2f7   : > { %10204 = vst [vmem:[%s16525_s12 + $0x68] sm:$0xff] %v16601_v55  ;;  %v12587_v20 = vpop.f32.mrb[16].mxu0 }
 0x2f8   : > { %v12685_v24 = vadd.f32 %v12587_v20, %v16479_v0  ;;  %v9673_v54 = vpop.f32.mrb[17].mxu0 }
 0x2f9   : > { %v12688_v53 = vadd.f32 %v9673_v54, %v16481_v30  ;;  %v12588_v50 = vpop.f32.mrb[18].mxu0 }
 0x2fa   : > { %v16610_v7 = vadd.f32 %v12685_v24, %v16517_v9  ;;  %v12691_v4 = vadd.f32 %v12588_v50, %v16483_v60  ;;  %v9676_v2 = vpop.f32.mrb[19].mxu0 }
 0x2fb   : > { %v16614_v48 = vadd.f32 %v12688_v53, %v16517_v9  ;;  %v12694_v29 = vadd.f32 %v9676_v2, %v16485_v43 }
 0x2fc   : > { %10209 = vst [vmem:[%s16525_s12 + $0x90] sm:$0xff] %v16610_v7  ;;  %v16620_v0 = vadd.f32 %v12691_v4, %v16517_v9 }
 0x2fd   : > { %10207 = vst [vmem:[%s16525_s12 + $0x80] sm:$0xff] %v16614_v48  ;;  %v16625_v30 = vadd.f32 %v12694_v29, %v16517_v9 }
 0x2fe   : > { %10210 = vst [vmem:[%s16525_s12 + $0x98] sm:$0xff] %v16620_v0 }
 0x2ff   : > { %10208 = vst [vmem:[%s16525_s12 + $0x88] sm:$0xff] %v16625_v30  ;;  %v12591_v60 = vpop.f32.mrb[20].mxu0 }
 0x300   : > { %v12697_v43 = vadd.f32 %v12591_v60, %v16487_v27  ;;  %v9689_v1 = vpop.f32.mrb[21].mxu0 }
 0x301   : > { %v12700_v19 = vadd.f32 %v9689_v1, %v16489_v56  ;;  %v12592_v61 = vpop.f32.mrb[22].mxu0 }
 0x302   : > { %v16634_v12 = vadd.f32 %v12697_v43, %v16517_v9  ;;  %v12703_v15 = vadd.f32 %v12592_v61, %v16491_v23  ;;  %v9692_v46 = vpop.f32.mrb[23].mxu0 }
 0x303   : > { %v16638_v59 = vadd.f32 %v12700_v19, %v16517_v9  ;;  %v12706_v22 = vadd.f32 %v9692_v46, %v16493_v41 }
 0x304   : > { %10213 = vst [vmem:[%s16525_s12 + $0xb0] sm:$0xff] %v16634_v12  ;;  %v16644_v27 = vadd.f32 %v12703_v15, %v16517_v9 }
 0x305   : > { %10211 = vst [vmem:[%s16525_s12 + $0xa0] sm:$0xff] %v16638_v59  ;;  %v16649_v56 = vadd.f32 %v12706_v22, %v16517_v9 }
 0x306   : > { %10214 = vst [vmem:[%s16525_s12 + $0xb8] sm:$0xff] %v16644_v27 }
 0x307   : > { %10212 = vst [vmem:[%s16525_s12 + $0xa8] sm:$0xff] %v16649_v56  ;;  %v12595_v23 = vpop.f32.mrb[24].mxu0 }
 0x308   : > { %v12709_v41 = vadd.f32 %v12595_v23, %v16495_v14  ;;  %v9705_v31 = vpop.f32.mrb[25].mxu0 }
 0x309   : > { %v12712_v16 = vadd.f32 %v9705_v31, %v16497_v58  ;;  %v12596_v36 = vpop.f32.mrb[26].mxu0 }
 0x30a   : > { %v16658_v44 = vadd.f32 %v12709_v41, %v16517_v9  ;;  %v12715_v26 = vadd.f32 %v12596_v36, %v16499_v52  ;;  %v9708_v18 = vpop.f32.mrb[27].mxu0 }
 0x30b   : > { %v16662_v17 = vadd.f32 %v12712_v16, %v16517_v9  ;;  %v12718_v13 = vadd.f32 %v9708_v18, %v16501_v40 }
 0x30c   : > { %10217 = vst [vmem:[%s16525_s12 + $0xd0] sm:$0xff] %v16658_v44  ;;  %v16668_v25 = vadd.f32 %v12715_v26, %v16517_v9 }
 0x30d   : > { %10215 = vst [vmem:[%s16525_s12 + $0xc0] sm:$0xff] %v16662_v17  ;;  %v16673_v14 = vadd.f32 %v12718_v13, %v16517_v9 }
 0x30e   : > { %10218 = vst [vmem:[%s16525_s12 + $0xd8] sm:$0xff] %v16668_v25 }
 0x30f   : > { %10216 = vst [vmem:[%s16525_s12 + $0xc8] sm:$0xff] %v16673_v14  ;;  %v12599_v58 = vpop.f32.mrb[28].mxu0 }
 0x310   : > { %v12721_v52 = vadd.f32 %v12599_v58, %v16503_v42  ;;  %v9721_v40 = vpop.f32.mrb[29].mxu0 }
 0x311   : > { %v12724_v11 = vadd.f32 %v9721_v40, %v16505_v3  ;;  %v12600_v51 = vpop.f32.mrb[30].mxu0 }
 0x312   : > { %v16682_v62 = vadd.f32 %v12721_v52, %v16517_v9  ;;  %v12727_v34 = vadd.f32 %v12600_v51, %v16507_v33  ;;  %v9724_v20 = vpop.f32.mrb[31].mxu0  ;;  %v12339_v24 = vpop.f32.mrb[32].mxu1 }
 0x313   : > { %v16686_v54 = vadd.f32 %v12724_v11, %v16517_v9  ;;  %v12730_v53 = vadd.f32 %v9724_v20, %v16509_v47  ;;  %v5373_v50 = vpop.f32.mrb[33].mxu1 }
 0x314   : > { %10221 = vst [vmem:[%s16525_s12 + $0xf0] sm:$0xff] %v16682_v62  ;;  %v16692_v42 = vadd.f32 %v12727_v34, %v16517_v9  ;;  %v12340_v3 = vpop.f32.mrb[34].mxu1 }
 0x315   : > { %10219 = vst [vmem:[%s16525_s12 + $0xe0] sm:$0xff] %v16686_v54  ;;  %v16697_v4 = vadd.f32 %v12730_v53, %v16517_v9  ;;  %v5376_v33 = vpop.f32.mrb[35].mxu1 }
 0x316   : > { %10222 = vst [vmem:[%s16525_s12 + $0xf8] sm:$0xff] %v16692_v42 }
 0x317   : > { %10220 = vst [vmem:[%s16525_s12 + $0xe8] sm:$0xff] %v16697_v4  ;;  %v12603_v47 = vpop.f32.mrb[32].mxu0 }
 0x318   : > { %v12733_v2 = vadd.f32 %v12603_v47, %v12339_v24  ;;  %v9737_v29 = vpop.f32.mrb[33].mxu0 }
 0x319   : > { %v12736_v60 = vadd.f32 %v9737_v29, %v5373_v50  ;;  %v12604_v43 = vpop.f32.mrb[34].mxu0 }
 0x31a   : > { %v16704_v1 = vadd.f32 %v12733_v2, %v16517_v9  ;;  %v12739_v19 = vadd.f32 %v12604_v43, %v12340_v3  ;;  %v9740_v61 = vpop.f32.mrb[35].mxu0  ;;  %v12343_v15 = vpop.f32.mrb[36].mxu1 }
 0x31b   : > { %v16707_v46 = vadd.f32 %v12736_v60, %v16517_v9  ;;  %v12742_v22 = vadd.f32 %v9740_v61, %v5376_v33  ;;  %v5389_v23 = vpop.f32.mrb[37].mxu1 }
 0x31c   : > { %10225 = vst [vmem:[%s16525_s12 + $0x110] sm:$0xff] %v16704_v1  ;;  %v16712_v41 = vadd.f32 %v12739_v19, %v16517_v9  ;;  %v12344_v31 = vpop.f32.mrb[38].mxu1 }
 0x31d   : > { %10223 = vst [vmem:[%s16525_s12 + $0x100] sm:$0xff] %v16707_v46  ;;  %v16717_v16 = vadd.f32 %v12742_v22, %v16517_v9  ;;  %v5392_v36 = vpop.f32.mrb[39].mxu1 }
 0x31e   : > { %10226 = vst [vmem:[%s16525_s12 + $0x118] sm:$0xff] %v16712_v41 }
 0x31f   : > { %10224 = vst [vmem:[%s16525_s12 + $0x108] sm:$0xff] %v16717_v16  ;;  %v12607_v26 = vpop.f32.mrb[36].mxu0 }
 0x320   : > { %v12745_v18 = vadd.f32 %v12607_v26, %v12343_v15  ;;  %v9753_v13 = vpop.f32.mrb[37].mxu0 }
 0x321   : > { %v12748_v58 = vadd.f32 %v9753_v13, %v5389_v23  ;;  %v12608_v52 = vpop.f32.mrb[38].mxu0 }
 0x322   : > { %v16724_v40 = vadd.f32 %v12745_v18, %v16517_v9  ;;  %v12751_v11 = vadd.f32 %v12608_v52, %v12344_v31  ;;  %v9756_v51 = vpop.f32.mrb[39].mxu0  ;;  %v12347_v34 = vpop.f32.mrb[40].mxu1 }
 0x323   : > { %v16727_v20 = vadd.f32 %v12748_v58, %v16517_v9  ;;  %v12754_v24 = vadd.f32 %v9756_v51, %v5392_v36  ;;  %v5405_v53 = vpop.f32.mrb[41].mxu1 }
 0x324   : > { %10229 = vst [vmem:[%s16525_s12 + $0x130] sm:$0xff] %v16724_v40  ;;  %v16732_v50 = vadd.f32 %v12751_v11, %v16517_v9  ;;  %v12348_v3 = vpop.f32.mrb[42].mxu1 }
 0x325   : > { %10227 = vst [vmem:[%s16525_s12 + $0x120] sm:$0xff] %v16727_v20  ;;  %v16737_v33 = vadd.f32 %v12754_v24, %v16517_v9  ;;  %v5408_v47 = vpop.f32.mrb[43].mxu1 }
 0x326   : > { %10230 = vst [vmem:[%s16525_s12 + $0x138] sm:$0xff] %v16732_v50 }
 0x327   : > { %10228 = vst [vmem:[%s16525_s12 + $0x128] sm:$0xff] %v16737_v33  ;;  %v12611_v2 = vpop.f32.mrb[40].mxu0 }
 0x328   : > { %v12757_v29 = vadd.f32 %v12611_v2, %v12347_v34  ;;  %v9769_v60 = vpop.f32.mrb[41].mxu0 }
 0x329   : > { %v12760_v43 = vadd.f32 %v9769_v60, %v5405_v53  ;;  %v12612_v19 = vpop.f32.mrb[42].mxu0 }
 0x32a   : > { %v16744_v61 = vadd.f32 %v12757_v29, %v16517_v9  ;;  %v12763_v15 = vadd.f32 %v12612_v19, %v12348_v3  ;;  %v9772_v22 = vpop.f32.mrb[43].mxu0  ;;  %v12351_v23 = vpop.f32.mrb[44].mxu1 }
 0x32b   : > { %v16747_v31 = vadd.f32 %v12760_v43, %v16517_v9  ;;  %v12766_v36 = vadd.f32 %v9772_v22, %v5408_v47  ;;  %v5421_v26 = vpop.f32.mrb[45].mxu1 }
 0x32c   : > { %10233 = vst [vmem:[%s16525_s12 + $0x150] sm:$0xff] %v16744_v61  ;;  %v16752_v18 = vadd.f32 %v12763_v15, %v16517_v9  ;;  %v12352_v13 = vpop.f32.mrb[46].mxu1 }
 0x32d   : > { %10231 = vst [vmem:[%s16525_s12 + $0x140] sm:$0xff] %v16747_v31  ;;  %v16757_v58 = vadd.f32 %v12766_v36, %v16517_v9  ;;  %v5424_v52 = vpop.f32.mrb[47].mxu1 }
 0x32e   : > { %10234 = vst [vmem:[%s16525_s12 + $0x158] sm:$0xff] %v16752_v18 }
 0x32f   : > { %10232 = vst [vmem:[%s16525_s12 + $0x148] sm:$0xff] %v16757_v58  ;;  %v12615_v11 = vpop.f32.mrb[44].mxu0 }
 0x330   : > { %v12769_v51 = vadd.f32 %v12615_v11, %v12351_v23  ;;  %v9785_v34 = vpop.f32.mrb[45].mxu0 }
 0x331   : > { %v12772_v24 = vadd.f32 %v9785_v34, %v5421_v26  ;;  %v12616_v53 = vpop.f32.mrb[46].mxu0 }
 0x332   : > { %v16764_v3 = vadd.f32 %v12769_v51, %v16517_v9  ;;  %v12775_v47 = vadd.f32 %v12616_v53, %v12352_v13  ;;  %v9788_v2 = vpop.f32.mrb[47].mxu0  ;;  %v12355_v29 = vpop.f32.mrb[48].mxu1 }
 0x333   : > { %v16767_v60 = vadd.f32 %v12772_v24, %v16517_v9  ;;  %v12778_v43 = vadd.f32 %v9788_v2, %v5424_v52  ;;  %v5437_v19 = vpop.f32.mrb[49].mxu1 }
 0x334   : > { %17228 = vst [vmem:[#allocation12_spill] sm:$0xff] %v16764_v3  ;;  %10237 = vst [vmem:[%s16525_s12 + $0x170] sm:$0xff] %v16764_v3  ;;  %v16772_v15 = vadd.f32 %v12775_v47, %v16517_v9  ;;  %v12356_v22 = vpop.f32.mrb[50].mxu1 }
 0x335   : > { %10235 = vst [vmem:[%s16525_s12 + $0x160] sm:$0xff] %v16767_v60  ;;  %v16777_v23 = vadd.f32 %v12778_v43, %v16517_v9  ;;  %v5440_v36 = vpop.f32.mrb[51].mxu1 }
 0x336   : > { %17229 = vst [vmem:[#allocation13_spill] sm:$0xff] %v16772_v15  ;;  %10238 = vst [vmem:[%s16525_s12 + $0x178] sm:$0xff] %v16772_v15 }
 0x337   : > { %10236 = vst [vmem:[%s16525_s12 + $0x168] sm:$0xff] %v16777_v23  ;;  %v12619_v26 = vpop.f32.mrb[48].mxu0 }
 0x338   : > { %v12781_v13 = vadd.f32 %v12619_v26, %v12355_v29  ;;  %v9801_v52 = vpop.f32.mrb[49].mxu0 }
 0x339   : > { %v12784_v11 = vadd.f32 %v9801_v52, %v5437_v19  ;;  %v12620_v51 = vpop.f32.mrb[50].mxu0 }
 0x33a   : > { %v16784_v34 = vadd.f32 %v12781_v13, %v16517_v9  ;;  %v12787_v24 = vadd.f32 %v12620_v51, %v12356_v22  ;;  %v9804_v53 = vpop.f32.mrb[51].mxu0  ;;  %v12359_v47 = vpop.f32.mrb[52].mxu1 }
 0x33b   : > { %v16787_v2 = vadd.f32 %v12784_v11, %v16517_v9  ;;  %v12790_v43 = vadd.f32 %v9804_v53, %v5440_v36  ;;  %v5453_v15 = vpop.f32.mrb[53].mxu1 }
 0x33c   : > { %17230 = vst [vmem:[#allocation14_spill] sm:$0xff] %v16784_v34  ;;  %10241 = vst [vmem:[%s16525_s12 + $0x190] sm:$0xff] %v16784_v34  ;;  %v16792_v29 = vadd.f32 %v12787_v24, %v16517_v9  ;;  %v12360_v26 = vpop.f32.mrb[54].mxu1 }
 0x33d   : > { %17231 = vst [vmem:[#allocation15_spill] sm:$0xff] %v16787_v2  ;;  %10239 = vst [vmem:[%s16525_s12 + $0x180] sm:$0xff] %v16787_v2  ;;  %v16797_v19 = vadd.f32 %v12790_v43, %v16517_v9  ;;  %v5456_v22 = vpop.f32.mrb[55].mxu1 }
 0x33e   : > { %17232 = vst [vmem:[#allocation16_spill] sm:$0xff] %v16792_v29  ;;  %10242 = vst [vmem:[%s16525_s12 + $0x198] sm:$0xff] %v16792_v29 }
 0x33f   : > { %17233 = vst [vmem:[#allocation17_spill] sm:$0xff] %v16797_v19  ;;  %10240 = vst [vmem:[%s16525_s12 + $0x188] sm:$0xff] %v16797_v19  ;;  %v12623_v36 = vpop.f32.mrb[52].mxu0 }
 0x340   : > { %v12793_v13 = vadd.f32 %v12623_v36, %v12359_v47  ;;  %v9817_v52 = vpop.f32.mrb[53].mxu0 }
 0x341   : > { %v12796_v11 = vadd.f32 %v9817_v52, %v5453_v15  ;;  %v12624_v51 = vpop.f32.mrb[54].mxu0 }
 0x342   : > { %v16804_v24 = vadd.f32 %v12793_v13, %v16517_v9  ;;  %v12799_v53 = vadd.f32 %v12624_v51, %v12360_v26  ;;  %v9820_v43 = vpop.f32.mrb[55].mxu0  ;;  %v12363_v34 = vpop.f32.mrb[56].mxu1 }
 0x343   : > { %v16807_v2 = vadd.f32 %v12796_v11, %v16517_v9  ;;  %v12802_v29 = vadd.f32 %v9820_v43, %v5456_v22  ;;  %v5469_v3 = vpop.f32.mrb[57].mxu1 }
 0x344   : > { %17234 = vst [vmem:[#allocation18_spill] sm:$0xff] %v16804_v24  ;;  %10245 = vst [vmem:[%s16525_s12 + $0x1b0] sm:$0xff] %v16804_v24  ;;  %v16812_v47 = vadd.f32 %v12799_v53, %v16517_v9  ;;  %v12364_v36 = vpop.f32.mrb[58].mxu1 }
 0x345   : > { %17235 = vst [vmem:[#allocation19_spill] sm:$0xff] %v16807_v2  ;;  %10243 = vst [vmem:[%s16525_s12 + $0x1a0] sm:$0xff] %v16807_v2  ;;  %v16817_v15 = vadd.f32 %v12802_v29, %v16517_v9  ;;  %v5472_v26 = vpop.f32.mrb[59].mxu1 }
 0x346   : > { %17236 = vst [vmem:[#allocation20_spill] sm:$0xff] %v16812_v47  ;;  %10246 = vst [vmem:[%s16525_s12 + $0x1b8] sm:$0xff] %v16812_v47 }
 0x347   : > { %10244 = vst [vmem:[%s16525_s12 + $0x1a8] sm:$0xff] %v16817_v15  ;;  %v12627_v22 = vpop.f32.mrb[56].mxu0 }
 0x348   : > { %v12805_v13 = vadd.f32 %v12627_v22, %v12363_v34  ;;  %v9833_v52 = vpop.f32.mrb[57].mxu0 }
 0x349   : > { %v12808_v11 = vadd.f32 %v9833_v52, %v5469_v3  ;;  %v12628_v51 = vpop.f32.mrb[58].mxu0 }
 0x34a   : > { %v16824_v53 = vadd.f32 %v12805_v13, %v16517_v9  ;;  %v12811_v43 = vadd.f32 %v12628_v51, %v12364_v36  ;;  %v9836_v29 = vpop.f32.mrb[59].mxu0  ;;  %v12367_v24 = vpop.f32.mrb[60].mxu1 }
 0x34b   : > { %v16827_v2 = vadd.f32 %v12808_v11, %v16517_v9  ;;  %v12814_v47 = vadd.f32 %v9836_v29, %v5472_v26  ;;  %v5485_v19 = vpop.f32.mrb[61].mxu1 }
 0x34c   : > { %17237 = vst [vmem:[#allocation21_spill] sm:$0xff] %v16824_v53  ;;  %10249 = vst [vmem:[%s16525_s12 + $0x1d0] sm:$0xff] %v16824_v53  ;;  %v16832_v34 = vadd.f32 %v12811_v43, %v16517_v9  ;;  %v12368_v22 = vpop.f32.mrb[62].mxu1 }
 0x34d   : > { %17238 = vst [vmem:[#allocation22_spill] sm:$0xff] %v16827_v2  ;;  %10247 = vst [vmem:[%s16525_s12 + $0x1c0] sm:$0xff] %v16827_v2  ;;  %v16837_v3 = vadd.f32 %v12814_v47, %v16517_v9  ;;  %v5488_v36 = vpop.f32.mrb[63].mxu1 }
 0x34e   : > { %17239 = vst [vmem:[#allocation23_spill] sm:$0xff] %v16832_v34  ;;  %10250 = vst [vmem:[%s16525_s12 + $0x1d8] sm:$0xff] %v16832_v34 }
 0x34f   : > { %10248 = vst [vmem:[%s16525_s12 + $0x1c8] sm:$0xff] %v16837_v3  ;;  %v12631_v26 = vpop.f32.mrb[60].mxu0 }
 0x350   : > { %v12817_v13 = vadd.f32 %v12631_v26, %v12367_v24  ;;  %v9849_v52 = vpop.f32.mrb[61].mxu0 }
 0x351   : > { %v12820_v11 = vadd.f32 %v9849_v52, %v5485_v19  ;;  %v12632_v51 = vpop.f32.mrb[62].mxu0  ;;  %10258 = sbr.rel (%p11731_p5) target bundleno = 856 (0x358), region = 36  ;;  %v13640_v19 = vmov (!%p11731_p5), 0.0  }
 0x352   : > { %v16844_v43 = vadd.f32 %v12817_v13, %v16517_v9  ;;  %v12823_v29 = vadd.f32 %v12632_v51, %v12368_v22  ;;  %v9852_v47 = vpop.f32.mrb[63].mxu0  ;;  %10259 = vst [vmem:[%s16864_s28] sm:$0x3] (!%p11731_p5), %v13640_v19 }
 0x353   : > { %v16847_v53 = vadd.f32 %v12820_v11, %v16517_v9  ;;  %v12826_v2 = vadd.f32 %v9852_v47, %v5488_v36 }
 0x354   : > { %10253 = vst [vmem:[%s16525_s12 + $0x1f0] sm:$0xff] %v16844_v43  ;;  %v16852_v34 = vadd.f32 %v12823_v29, %v16517_v9 }
 0x355   : > { %10251 = vst [vmem:[%s16525_s12 + $0x1e0] sm:$0xff] %v16847_v53  ;;  %v16857_v24 = vadd.f32 %v12826_v2, %v16517_v9 }
 0x356   : > { %10254 = vst [vmem:[%s16525_s12 + $0x1f8] sm:$0xff] %v16852_v34 }
 0x357   : > { %10252 = vst [vmem:[%s16525_s12 + $0x1e8] sm:$0xff] %v16857_v24 }
 0x358 PF: > { %v10260_v22 = vadd.f32 %v16535_v37, %v16523_v57  ;;  %v10329_v51 = vmul.f32 %v16523_v57, %v16523_v57  ;;  %v10330_v29 = vmul.f32 %v16535_v37, %v16535_v37  ;;  %v10331_v19 = vmul.f32 %v16520_v49, %v16520_v49  ;;  %p11732_p6 = scmp.ne.s32.totalorder %s13622_s21, 1 }
 0x359   : > { %v10334_v37 = vmul.f32 %v16555_v21, %v16555_v21  ;;  %vm10462_vm8 = vcmask 1040384  }
 0x35a   : > { %v10261_v36 = vadd.f32 %v10260_v22, %v16520_v49 }
 0x35c   : > { %v10262_v9 = vadd.f32 %v10261_v36, %v16530_v32  ;;  %v10332_v36 = vmul.f32 %v16530_v32, %v16530_v32 }
 0x35e   : > { %v10263_v2 = vadd.f32 %v10262_v9, %v16545_v35  ;;  %v10393_v9 = vadd.f32 %v10330_v29, %v10329_v51  ;;  %v10336_v51 = vmul.f32 %v16550_v38, %v16550_v38 }
 0x360   : > { %v10264_v26 = vadd.f32 %v10263_v2, %v16555_v21  ;;  %v10394_v57 = vadd.f32 %v10393_v9, %v10331_v19  ;;  %v10337_v19 = vmul.f32 %v16566_v28, %v16566_v28 }
 0x362   : > { %v10265_v13 = vadd.f32 %v10264_v26, %v16542_v39  ;;  %v10333_v26 = vmul.f32 %v16545_v35, %v16545_v35 }
 0x364   : > { %v10266_v52 = vadd.f32 %v10265_v13, %v16550_v38 }
 0x366   : > { %v10267_v11 = vadd.f32 %v10266_v52, %v16566_v28  ;;  %v10395_v52 = vadd.f32 %v10394_v57, %v10332_v36  ;;  %v10338_v36 = vmul.f32 %v16577_v45, %v16577_v45  ;;  %v10340_v57 = vmul.f32 %v16572_v5, %v16572_v5 }
 0x368   : > { %v10268_v47 = vadd.f32 %v10267_v11, %v16577_v45  ;;  %v10335_v11 = vmul.f32 %v16542_v39, %v16542_v39 }
 0x36a   : > { %v10269_v22 = vadd.f32 %v10268_v47, %v16562_v63  ;;  %v10396_v47 = vadd.f32 %v10395_v52, %v10333_v26 }
 0x36c   : > { %v10270_v2 = vadd.f32 %v10269_v22, %v16572_v5  ;;  %v10397_v29 = vadd.f32 %v10396_v47, %v10334_v37  ;;  %v10341_v37 = vmul.f32 %v16590_v6, %v16590_v6  ;;  %v10343_v47 = vmul.f32 %v16586_v8, %v16586_v8 }
 0x36e   : > { %v10271_v13 = vadd.f32 %v10270_v2, %v16590_v6  ;;  %v10398_v22 = vadd.f32 %v10397_v29, %v10335_v11  ;;  %v10339_v2 = vmul.f32 %v16562_v63, %v16562_v63 }
 0x370   : > { %v10272_v49 = vadd.f32 %v10271_v13, %v16601_v55  ;;  %v10399_v9 = vadd.f32 %v10398_v22, %v10336_v51  ;;  %v10344_v51 = vmul.f32 %v16596_v10, %v16596_v10  ;;  %v10346_v22 = vmul.f32 %v16625_v30, %v16625_v30 }
 0x372   : > { %v10273_v32 = vadd.f32 %v10272_v49, %v16586_v8  ;;  %v10400_v26 = vadd.f32 %v10399_v9, %v10337_v19  ;;  %v10342_v49 = vmul.f32 %v16601_v55, %v16601_v55 }
 0x374   : > { %v10274_v35 = vadd.f32 %v10273_v32, %v16596_v10  ;;  %v10401_v13 = vadd.f32 %v10400_v26, %v10338_v36  ;;  %v10347_v36 = vmul.f32 %v16610_v7, %v16610_v7  ;;  %v10349_v26 = vmul.f32 %v16638_v59, %v16638_v59 }
 0x376   : > { %v10275_v21 = vadd.f32 %v10274_v35, %v16614_v48  ;;  %v10402_v52 = vadd.f32 %v10401_v13, %v10339_v2  ;;  %v10345_v35 = vmul.f32 %v16614_v48, %v16614_v48 }
 0x378   : > { %v10276_v39 = vadd.f32 %v10275_v21, %v16625_v30  ;;  %v10403_v11 = vadd.f32 %v10402_v52, %v10340_v57  ;;  %v10350_v57 = vmul.f32 %v16649_v56, %v16649_v56  ;;  %v10352_v52 = vmul.f32 %v16644_v27, %v16644_v27 }
 0x37a   : > { %v10277_v38 = vadd.f32 %v10276_v39, %v16610_v7  ;;  %v10404_v32 = vadd.f32 %v10403_v11, %v10341_v37  ;;  %v10348_v39 = vmul.f32 %v16620_v0, %v16620_v0 }
 0x37c   : > { %v10278_v28 = vadd.f32 %v10277_v38, %v16620_v0  ;;  %v10405_v29 = vadd.f32 %v10404_v32, %v10342_v49  ;;  %v10353_v49 = vmul.f32 %v16662_v17, %v16662_v17  ;;  %v10355_v32 = vmul.f32 %v16658_v44, %v16658_v44 }
 0x37e   : > { %v10279_v45 = vadd.f32 %v10278_v28, %v16638_v59  ;;  %v10406_v19 = vadd.f32 %v10405_v29, %v10343_v47  ;;  %v10351_v28 = vmul.f32 %v16634_v12, %v16634_v12 }
 0x380   : > { %v10280_v63 = vadd.f32 %v10279_v45, %v16649_v56  ;;  %v10407_v21 = vadd.f32 %v10406_v19, %v10344_v51  ;;  %v10356_v51 = vmul.f32 %v16668_v25, %v16668_v25  ;;  %v10358_v19 = vmul.f32 %v16697_v4, %v16697_v4 }
 0x382   : > { %v10281_v5 = vadd.f32 %v10280_v63, %v16634_v12  ;;  %v10408_v9 = vadd.f32 %v10407_v21, %v10345_v35  ;;  %v10354_v63 = vmul.f32 %v16673_v14, %v16673_v14 }
 0x384   : > { %v10282_v6 = vadd.f32 %v10281_v5, %v16644_v27  ;;  %v10409_v2 = vadd.f32 %v10408_v9, %v10346_v22  ;;  %v10359_v22 = vmul.f32 %v16682_v62, %v16682_v62  ;;  %v10361_v9 = vmul.f32 %v16707_v46, %v16707_v46 }
 0x386   : > { %v10283_v55 = vadd.f32 %v10282_v6, %v16662_v17  ;;  %v10410_v38 = vadd.f32 %v10409_v2, %v10347_v36  ;;  %v10357_v6 = vmul.f32 %v16686_v54, %v16686_v54 }
 0x388   : > { %v10284_v8 = vadd.f32 %v10283_v55, %v16673_v14  ;;  %v10411_v13 = vadd.f32 %v10410_v38, %v10348_v39  ;;  %v10362_v39 = vmul.f32 %v16717_v16, %v16717_v16  ;;  %v10364_v38 = vmul.f32 %v16712_v41, %v16712_v41 }
 0x38a   : > { %v10285_v10 = vadd.f32 %v10284_v8, %v16658_v44  ;;  %v10412_v37 = vadd.f32 %v10411_v13, %v10349_v26  ;;  %v10360_v8 = vmul.f32 %v16692_v42, %v16692_v42 }
 0x38c   : > { %v10286_v48 = vadd.f32 %v10285_v10, %v16668_v25  ;;  %v10413_v45 = vadd.f32 %v10412_v37, %v10350_v57  ;;  %v10365_v57 = vmul.f32 %v16727_v20, %v16727_v20  ;;  %v10367_v37 = vmul.f32 %v16724_v40, %v16724_v40 }
 0x38e   : > { %v10287_v30 = vadd.f32 %v10286_v48, %v16686_v54  ;;  %v10414_v11 = vadd.f32 %v10413_v45, %v10351_v28  ;;  %v10363_v48 = vmul.f32 %v16704_v1, %v16704_v1  ;;  %v10368_v45 = vmul.f32 %v16732_v50, %v16732_v50 }
 0x390   : > { %v10288_v7 = vadd.f32 %v10287_v30, %v16697_v4  ;;  %v10415_v47 = vadd.f32 %v10414_v11, %v10352_v52  ;;  %v10369_v11 = vmul.f32 %v16747_v31, %v16747_v31 }
 0x392   : > { %v10289_v0 = vadd.f32 %v10288_v7, %v16682_v62  ;;  %v10416_v5 = vadd.f32 %v10415_v47, %v10353_v49  ;;  %v10366_v7 = vmul.f32 %v16737_v33, %v16737_v33  ;;  %v10370_v47 = vmul.f32 %v16757_v58, %v16757_v58 }
 0x394   : > { %v10290_v59 = vadd.f32 %v10289_v0, %v16692_v42  ;;  %v10417_v29 = vadd.f32 %v10416_v5, %v10354_v63  ;;  %v10371_v5 = vmul.f32 %v16744_v61, %v16744_v61 }
 0x396   : > { %v10291_v56 = vadd.f32 %v10290_v59, %v16707_v46  ;;  %v10418_v35 = vadd.f32 %v10417_v29, %v10355_v32  ;;  %v10372_v29 = vmul.f32 %v16752_v18, %v16752_v18 }
 0x398   : > { %v10292_v12 = vadd.f32 %v10291_v56, %v16717_v16  ;;  %v10419_v55 = vadd.f32 %v10418_v35, %v10356_v51  ;;  %v10373_v35 = vmul.f32 %v16767_v60, %v16767_v60 }
 0x39a   : > { %v10293_v27 = vadd.f32 %v10292_v12, %v16704_v1  ;;  %v10420_v21 = vadd.f32 %v10419_v55, %v10357_v6  ;;  %v10374_v55 = vmul.f32 %v16777_v23, %v16777_v23 }
 0x39c   : > { %v10294_v17 = vadd.f32 %v10293_v27, %v16712_v41  ;;  %v10421_v36 = vadd.f32 %v10420_v21, %v10358_v19  ;;  %v17240_v41 = vld [vmem:[#allocation12_spill] sm:$0xff] }
 0x39e   : > { %v10295_v14 = vadd.f32 %v10294_v17, %v16727_v20  ;;  %v10422_v10 = vadd.f32 %v10421_v36, %v10359_v22  ;;  %v17241_v20 = vld [vmem:[#allocation13_spill] sm:$0xff]  ;;  %v10375_v22 = vmul.f32 %v17240_v41, %v17240_v41 }
 0x3a0   : > { %v10296_v44 = vadd.f32 %v10295_v14, %v16737_v33  ;;  %v10423_v2 = vadd.f32 %v10422_v10, %v10360_v8  ;;  %v17242_v33 = vld [vmem:[#allocation15_spill] sm:$0xff]  ;;  %v10376_v8 = vmul.f32 %v17241_v20, %v17241_v20 }
 0x3a2   : > { %v10297_v25 = vadd.f32 %v10296_v44, %v16724_v40  ;;  %v10424_v26 = vadd.f32 %v10423_v2, %v10361_v9  ;;  %v17243_v40 = vld [vmem:[#allocation17_spill] sm:$0xff]  ;;  %v10377_v9 = vmul.f32 %v17242_v33, %v17242_v33 }
 0x3a4   : > { %v10298_v54 = vadd.f32 %v10297_v25, %v16732_v50  ;;  %v10425_v30 = vadd.f32 %v10424_v26, %v10362_v39  ;;  %v17244_v50 = vld [vmem:[#allocation14_spill] sm:$0xff]  ;;  %v10378_v39 = vmul.f32 %v17243_v40, %v17243_v40 }
 0x3a6   : > { %v10299_v4 = vadd.f32 %v10298_v54, %v16747_v31  ;;  %v10426_v13 = vadd.f32 %v10425_v30, %v10363_v48  ;;  %v17245_v31 = vld [vmem:[#allocation16_spill] sm:$0xff]  ;;  %v10379_v48 = vmul.f32 %v17244_v50, %v17244_v50 }
 0x3a7   : > { %v10380_v30 = vmul.f32 %v17245_v31, %v17245_v31 }
 0x3a8   : > { %v10300_v62 = vadd.f32 %v10299_v4, %v16757_v58  ;;  %v10427_v28 = vadd.f32 %v10426_v13, %v10364_v38  ;;  %v17246_v58 = vld [vmem:[#allocation19_spill] sm:$0xff] }
 0x3aa   : > { %v10301_v42 = vadd.f32 %v10300_v62, %v16744_v61  ;;  %v10428_v0 = vadd.f32 %v10427_v28, %v10365_v57  ;;  %v17251_v57 = vld [vmem:[#allocation23_spill] sm:$0xff] }
 0x3ac   : > { %v10302_v46 = vadd.f32 %v10301_v42, %v16752_v18  ;;  %v10429_v59 = vadd.f32 %v10428_v0, %v10366_v7  ;;  %v17247_v18 = vld [vmem:[#allocation18_spill] sm:$0xff]  ;;  %v17250_v42 = vld [vmem:[#allocation21_spill] sm:$0xff] }
 0x3ae   : > { %v10303_v16 = vadd.f32 %v10302_v46, %v16767_v60  ;;  %v10430_v56 = vadd.f32 %v10429_v59, %v10367_v37  ;;  %v17248_v60 = vld [vmem:[#allocation20_spill] sm:$0xff] }
 0x3b0   : > { %v10304_v1 = vadd.f32 %v10303_v16, %v16777_v23  ;;  %v10431_v12 = vadd.f32 %v10430_v56, %v10368_v45  ;;  %v17249_v23 = vld [vmem:[#allocation22_spill] sm:$0xff]  ;;  %v10381_v16 = vmul.f32 %v17246_v58, %v17246_v58  ;;  %v10384_v45 = vmul.f32 %v17248_v60, %v17248_v60 }
 0x3b2   : > { %v10305_v52 = vadd.f32 %v10304_v1, %v17240_v41  ;;  %v10432_v27 = vadd.f32 %v10431_v12, %v10369_v11  ;;  %v10382_v1 = vmul.f32 %v16817_v15, %v16817_v15  ;;  %v10383_v41 = vmul.f32 %v17247_v18, %v17247_v18 }
 0x3b3   : > { %v10388_v12 = vmul.f32 %v17251_v57, %v17251_v57 }
 0x3b4   : > { %v10306_v49 = vadd.f32 %v10305_v52, %v17241_v20  ;;  %v10433_v17 = vadd.f32 %v10432_v27, %v10370_v47 }
 0x3b6   : > { %v10307_v63 = vadd.f32 %v10306_v49, %v17242_v33  ;;  %v10434_v14 = vadd.f32 %v10433_v17, %v10371_v5  ;;  %v10385_v49 = vmul.f32 %v17249_v23, %v17249_v23  ;;  %v10389_v5 = vmul.f32 %v16847_v53, %v16847_v53 }
 0x3b8   : > { %v10308_v32 = vadd.f32 %v10307_v63, %v17243_v40  ;;  %v10435_v44 = vadd.f32 %v10434_v14, %v10372_v29  ;;  %v10387_v63 = vmul.f32 %v17250_v42, %v17250_v42  ;;  %v10391_v29 = vmul.f32 %v16844_v43, %v16844_v43 }
 0x3ba   : > { %v10309_v51 = vadd.f32 %v10308_v32, %v17244_v50  ;;  %v10436_v21 = vadd.f32 %v10435_v44, %v10373_v35  ;;  %v10390_v50 = vmul.f32 %v16857_v24, %v16857_v24 }
 0x3bc   : > { %v10310_v6 = vadd.f32 %v10309_v51, %v17245_v31  ;;  %v10437_v36 = vadd.f32 %v10436_v21, %v10374_v55  ;;  %v10392_v31 = vmul.f32 %v16852_v34, %v16852_v34 }
 0x3be   : > { %v10311_v19 = vadd.f32 %v10310_v6, %v17246_v58  ;;  %v10438_v10 = vadd.f32 %v10437_v36, %v10375_v22 }
 0x3c0   : > { %v10312_v61 = vadd.f32 %v10311_v19, %v16817_v15  ;;  %v10439_v2 = vadd.f32 %v10438_v10, %v10376_v8  ;;  %v10386_v15 = vmul.f32 %v16837_v3, %v16837_v3 }
 0x3c2   : > { %v10313_v25 = vadd.f32 %v10312_v61, %v17247_v18  ;;  %v10440_v26 = vadd.f32 %v10439_v2, %v10377_v9  ;;  %v10464_v18 = vld [vmem:[%s16864_s28] sm:$0x3] }
 0x3c4   : > { %v10314_v54 = vadd.f32 %v10313_v25, %v17248_v60  ;;  %v10441_v46 = vadd.f32 %v10440_v26, %v10378_v39 }
 0x3c6   : > { %v10315_v4 = vadd.f32 %v10314_v54, %v17249_v23  ;;  %v10442_v7 = vadd.f32 %v10441_v46, %v10379_v48 }
 0x3c8   : > { %v10316_v62 = vadd.f32 %v10315_v4, %v16837_v3  ;;  %v10443_v37 = vadd.f32 %v10442_v7, %v10380_v30 }
 0x3ca   : > { %v10317_v38 = vadd.f32 %v10316_v62, %v17250_v42  ;;  %v10444_v52 = vadd.f32 %v10443_v37, %v10381_v16 }
 0x3cc   : > { %v10318_v13 = vadd.f32 %v10317_v38, %v17251_v57  ;;  %v10445_v59 = vadd.f32 %v10444_v52, %v10382_v1 }
 0x3ce   : > { %v10319_v28 = vadd.f32 %v10318_v13, %v16847_v53  ;;  %v10446_v11 = vadd.f32 %v10445_v59, %v10383_v41 }
 0x3d0   : > { %v10320_v0 = vadd.f32 %v10319_v28, %v16857_v24  ;;  %v10447_v56 = vadd.f32 %v10446_v11, %v10384_v45 }
 0x3d2   : > { %v10321_v20 = vadd.f32 %v10320_v0, %v16844_v43  ;;  %v10448_v47 = vadd.f32 %v10447_v56, %v10385_v49 }
 0x3d4   : > { %v10322_v33 = vadd.f32 %v10321_v20, %v16852_v34  ;;  %v10449_v40 = vadd.f32 %v10448_v47, %v10386_v15 }
 0x3d6   : > { %v10323_v32 = vrot.slane %v10322_v33, 4  ;;  %v10450_v27 = vadd.f32 %v10449_v40, %v10387_v63 }
 0x3d8   : > { %v10451_v3 = vadd.f32 %v10450_v27, %v10388_v12  ;;  %v10324_v51 = vadd.f32 %v10323_v32, %v10322_v33 }
 0x3da   : > { %v10452_v17 = vadd.f32 %v10451_v3, %v10389_v5  ;;  %v10325_v35 = vrot.slane %v10324_v51, 2 }
 0x3dc   : > { %v10453_v6 = vadd.f32 %v10452_v17, %v10390_v50  ;;  %v10326_v53 = vadd.f32 %v10325_v35, %v10324_v51 }
 0x3de   : > { %v10454_v14 = vadd.f32 %v10453_v6, %v10391_v29  ;;  %v10327_v44 = vrot.slane %v10326_v53, 1 }
 0x3e0   : > { %v10455_v58 = vadd.f32 %v10454_v14, %v10392_v31  ;;  %v10328_v22 = vadd.f32 %v10327_v44, %v10326_v53 }
 0x3e2   : > { %v10456_v19 = vrot.slane %v10455_v58, 4 }
 0x3e4   : > { %v10457_v55 = vadd.f32 %v10456_v19, %v10455_v58 }
 0x3e6   : > { %v10458_v24 = vrot.slane %v10457_v55, 2 }
 0x3e8   : > { %v10459_v61 = vadd.f32 %v10458_v24, %v10457_v55 }
 0x3ea   : > { %v10460_v21 = vrot.slane %v10459_v61, 1 }
 0x3eb   : > { %10470 = sbr.rel (%p11732_p6) target bundleno = 1042 (0x412), region = 40 }
 0x3ec   : > { %v10461_v43 = vadd.f32 %v10460_v21, %v10459_v61 }
 0x3ee   : > { %v10463_v25 = vsel %vm10462_vm8, %v10328_v22, %v10461_v43 }
 0x3ef   : > { %v10465_v8 = vadd.f32 %v10464_v18, %v10463_v25 }
 0x3f1   : > { %10466 = vst [vmem:[%s16864_s28] sm:$0x3] %v10465_v8 }
 0x3f8   : > { %v10471_v34 = vld [vmem:[%s16864_s28] sm:$0x3] }
 0x3f9   : > { %v10472_v36 = vmul.f32 0.0009765625, %v10471_v34 }
 0x3fb   : > { %v10473_v60 = vmul.f32 %v10472_v36, %v10472_v36 }
 0x3fd   : > { %v10475_v54 = vrot.slane %v10473_v60, 7 }
 0x3ff   : > { %v10477_v9 = vsub.f32 %v10472_v36, %v10475_v54 }
 0x401   : > { %v10478_v10 = vmax.f32 %v10477_v9, 0.0 }
 0x403   : > { %v10479_v23 = vadd.f32 1e-05, %v10478_v10 }
 0x405   : > { %13486 = vrsqrt.f32 %v10479_v23 }
 0x40f   : > { %v13487_v4 = vpop.eup %13486 }
 0x410   : > { %v10481_v39 = vsel %vm10462_vm8, %v10472_v36, %v13487_v4 }
 0x411   : > { %10482 = vst [vmem:[%s16864_s28] sm:$0x3] %v10481_v39 }
 0x412 PF: > { %s11735_s30 = sshll.u32 %s13622_s21, 6  ;;  %s11736_s5 = sshll.u32 %s13626_s22, 7 }
 0x413   : > { %s10504_s6 = sshll.u32 %s16525_s12, 4  ;;  %s10501_s9 = sadd.s32 %s11736_s5, %s11735_s30  ;;  %s17070_s6 = int_to_ptr.vmem [resolvable:$true] %s10504_s6 }
 0x414   : > { %s11737_s8 = sshll.u32 %s10501_s9, 7  ;;  %s17252_s3 = sld [smem:[#allocation27_spill]] }
 0x415   : > { %s17253_s0 = sand.u32 1, %s13614_s19   ;;  %s13488_s2 = scalar_lea.vmem %s17070_s6, 8192 }
 0x416   : > { %s17079_s1 = scalar_lea.sflag [#allocation3], %s17253_s0  ;;  %p13489_p8 = scmp.ne.s32.totalorder %s17070_s6, %s13488_s2 }
 0x417   : > { %s13641_s21 = smov [#allocation2]  }
 0x418   : > { %p13490_p9 = pnand %p13489_p8, %p13743_p3  ;;  %s13492_s12 = sshll.u32 %s13641_s21, 4  ;;  %s13493_s12 = int_to_ptr.vmem [resolvable:$false] %s13492_s12 }
 0x419   : > { %s13494_s30 = scalar_lea.vmem %s13493_s12, 16384  ;;  %p13495_p11 = scmp.lt.s32.totalorder %s17070_s6, %s13493_s12 }
 0x41a   : > { %s17075_s24 = scalar_lea.hbm %s17252_s3, %s11737_s8  ;;  %p13491_p10 = pneg %p13490_p9 }
 0x41b   : > { %p13496_p0 = scmp.lt.s32.totalorder %s13494_s30, %s13488_s2 }
 0x41d   : > { %p13497_p1 = por %p13496_p0, %p13495_p11 }
 0x41f   : > { %p13498_p4 = pnand %p13497_p1, %p13491_p10 }
 0x421   : > { %13501 = shalt.err (!%p13498_p4)
}
 0x422   : > { %s13502_s0 = scalar_lea.hbm %s17075_s24, 8192  ;;  %s13506_s8 = scalar_lea.hbm %s17252_s3, 32768 }
 0x423   : > { %p13503_p2 = scmp.ne.s32.totalorder %s17075_s24, %s13502_s0  ;;  %p13507_p8 = scmp.lt.u32.totalorder %s17075_s24, %s17252_s3 }
 0x424   : > { %p13508_p9 = scmp.lt.u32.totalorder %s13506_s8, %s13502_s0  ;;  %p13510_p11 = scmp.lt.u32.totalorder %s13502_s0, %s17075_s24 }
 0x425   : > { %p13504_p5 = pnand %p13503_p2, %p13743_p3 }
 0x426   : > { %p13509_p10 = por %p13508_p9, %p13507_p8 }
 0x427   : > { %p13505_p6 = pneg %p13504_p5 }
 0x428   : > { %p13511_p0 = por %p13510_p11, %p13509_p10 }
 0x42a   : > { %p13512_p1 = pnand %p13511_p0, %p13505_p6 }
 0x42c   : > { %13515 = shalt.err (!%p13512_p1)
}
 0x42d   : > { %s13642_s2 = smov 128   ;;  %s13643_s21 = smov 8  }
 0x42e   : > { %13286 = dma.vmem_to_hbm [thread:$0]  (%p13743_p3), %s17070_s6, 8192, %s17075_s24, %s17079_s1, %s13642_s2, %s13642_s2, %s13643_s21  }
 0x42f   : > { %s11738_s12 = sshll.u32 %s13626_s22, 5  ;;  %s10520_s9 = sshll.u32 %s16864_s28, 4  ;;  %s10521_s9 = int_to_ptr.vmem [resolvable:$true] %s10520_s9 }
 0x430   : > { %s17107_s0 = scalar_lea.hbm %s17173_s4, %s11738_s12  ;;  %s17254_s8 = sand.u32 1, %s13602_s16  }
 0x431   : > { %s10489_s29 = scalar_lea.sflag [#allocation5], %s17254_s8  ;;  %s13516_s11 = scalar_lea.vmem %s10521_s9, 32 }
 0x432   : > { %p13517_p4 = scmp.ne.s32.totalorder %s10521_s9, %s13516_s11  ;;  %s13644_s3 = smov [#allocation4]  }
 0x433   : > { %s13520_s23 = sshll.u32 %s13644_s3, 4  ;;  %s13521_s23 = int_to_ptr.vmem [resolvable:$false] %s13520_s23 }
 0x434   : > { %p13518_p2 = pnand %p13517_p4, %p13770_p12  ;;  %s13522_s7 = scalar_lea.vmem %s13521_s23, 64 }
 0x435   : > { %p13523_p3 = scmp.lt.s32.totalorder %s10521_s9, %s13521_s23  ;;  %p13524_p6 = scmp.lt.s32.totalorder %s13522_s7, %s13516_s11 }
 0x436   : > { %p13519_p5 = pneg %p13518_p2 }
 0x437   : > { %p13525_p8 = por %p13524_p6, %p13523_p3 }
 0x439   : > { %p13526_p9 = pnand %p13525_p8, %p13519_p5 }
 0x43b   : > { %13529 = shalt.err (!%p13526_p9)
}
 0x43c   : > { %s13530_s1 = scalar_lea.hbm %s17107_s0, 32  ;;  %s13534_s3 = scalar_lea.hbm %s17173_s4, 64 }
 0x43d   : > { %p13531_p10 = scmp.ne.s32.totalorder %s17107_s0, %s13530_s1  ;;  %p13535_p1 = scmp.lt.u32.totalorder %s17107_s0, %s17173_s4 }
 0x43e   : > { %p13536_p4 = scmp.lt.u32.totalorder %s13534_s3, %s13530_s1  ;;  %p13538_p5 = scmp.lt.u32.totalorder %s13530_s1, %s17107_s0 }
 0x43f   : > { %p13532_p11 = pnand %p13531_p10, %p13770_p12 }
 0x440   : > { %p13537_p2 = por %p13536_p4, %p13535_p1 }
 0x441   : > { %p13533_p0 = pneg %p13532_p11 }
 0x442   : > { %p13539_p3 = por %p13538_p5, %p13537_p2 }
 0x444   : > { %p13540_p6 = pnand %p13539_p3, %p13533_p0 }
 0x446   : > { %13543 = shalt.err (!%p13540_p6)
}
 0x447   : > { %13287 = dma.vmem_to_hbm [thread:$0]  (%p13770_p12), %s10521_s9, 32, %s17107_s0, %s10489_s29  }
 0x448 PF: > { %p13297_p8 = scmp.ge.s32.totalorder %s13638_s25, 2  ;;  %s10532_s6 = sand.u32 1, %s13610_s18  }
 0x449   : > { %s10533_s2 = scalar_lea.sflag [#allocation3], %s10532_s6 }
 0x44a   : > { %p13291_p9 = pnand %p13297_p8, %p13758_p7 }
 0x44c   : > { %13589 = dma.done.wait (!%p13291_p9), %s10533_s2, 8192  }
 0x44d   : > { %13591 = vsyncadd (!%p13291_p9), %s10533_s2, 4294959104  ;;  %s10541_s21 = sand.u32 1, %s13598_s15   ;;  %p13294_p10 = pnand %p13297_p8, %p13782_p13 }
 0x44e   : > { %s10542_s12 = scalar_lea.sflag [#allocation5], %s10541_s21 }
 0x44f   : > { %13593 = dma.done.wait (!%p13294_p10), %s10542_s12, 32  }
 0x450   : > { %13595 = vsyncadd (!%p13294_p10), %s10542_s12, 4294967264  ;;  %s21_s25 = sadd.s32 1, %s13638_s25   ;;  %s17255_s21 = sld [smem:[#allocation8_spill]] }
 0x451   : > { %p18_p12 = scmp.ge.s32.totalorder %s21_s25, 6   ;;  %s17256_s22 = sld [smem:[#allocation9_spill]] }
 0x452   : > { %s17257_s23 = sld [smem:[#allocation10_spill]]  ;;  %s17258_s24 = sld [smem:[#allocation11_spill]] }
 0x453   : > { %s17259_s15 = smov %s13602_s16  ;;  %s17260_s16 = smov %s13606_s17 }
 0x454   : > { %s17261_s17 = smov %s13775_s14  ;;  %s17262_s18 = smov %s13614_s19 }
 0x455   : > { %s17263_s19 = smov %s13618_s20  ;;  %s17264_s20 = smov %s13778_s26 }
 0x456   :  { %20 = sbr.rel (!%p18_p12) target bundleno = 14 (0xe), region = 103 }
 0x45d   :  { %10547 = vsyncpa [#allocation3], 1 }
 0x45e   :  { %10549 = vsyncpa [#allocation3 + $0x1], 1 }
 0x45f   :  { %10550 = vsyncpa [#allocation5], 1 }
 0x460   :  { %10552 = vsyncpa [#allocation5 + $0x1], 1 }

</bundles_post_ra>
